<compile_context>
chip_gen: v6e
topology: v6e:2x2x1
jax: 0.10.0
libtpu: 0.0.40
codegen_flags: <defaults>
</compile_context>

<pallas_src>
from functools import partial

import numpy as np
import jax
import jax.numpy as jnp
from jax.experimental import pallas as pl
from jax.experimental.pallas import tpu as pltpu


def _round_up(x, m):
    return (x + m - 1) // m * m


def _silu(x):
    # x * sigmoid(x); the reciprocal runs on the EUP slot (approx vrcp).
    return x * pl.reciprocal(1.0 + jnp.exp(-x), approx=True)


def _conv3x3_flat(x_f32, w_ref, b_row, Wp):
    """3x3 'same' conv on a zero-framed, spatially flattened activation.

    x_f32 : (Np, Cin) f32.  Rows are the flattened (H+1, W+1) frame: the image
            occupies rows h*Wp + w (h < H, w < W); row H, column W and the
            flat tail rows are all zero.
    w_ref : (9, Cin, Cout) bf16 ref, tap index t = kh*3 + kw (BN folded).
    b_row : (1, Cout) f32 folded-BN bias.

    Tap (kh, kw) needs x at flat offset (kh-1)*Wp + (kw-1); pltpu.roll
    realizes that shift on the XLU.  Any wrap-around lands in the zero frame,
    so 'same' zero-padding semantics stay exact.
    Returns the (Np, Cout) f32 pre-activation (garbage on non-image rows).
    """
    Np, _ = x_f32.shape
    cout = w_ref.shape[2]
    acc = jnp.zeros((Np, cout), jnp.float32)
    for kh in range(3):
        for kw in range(3):
            off = (kh - 1) * Wp + (kw - 1)
            xs = x_f32 if off == 0 else pltpu.roll(x_f32, (-off) % Np, axis=0)
            acc = acc + jnp.dot(xs.astype(jnp.bfloat16), w_ref[kh * 3 + kw],
                                preferred_element_type=jnp.float32)
    return acc + b_row


def _bottleneck_kernel(add_residual, Wp,
                       x_ref, mask_ref, w1_ref, b1_ref, w2_ref, b2_ref, o_ref):
    """One batch image per grid step; the cv1 activation never leaves VMEM."""
    x = x_ref[0]              # (Np, C1p) f32, zero-framed + flattened
    mask = mask_ref[...]      # (Np, 1)  f32, 1 on image rows / 0 on the frame

    # cv1: conv + folded BN + SiLU.  Re-zero the frame rows so cv2 sees exact
    # 'same' padding (frame rows hold garbage after the rolled matmuls).
    y1 = _silu(_conv3x3_flat(x, w1_ref, b1_ref[...], Wp)) * mask

    # cv2: conv + folded BN + SiLU (+ optional residual, all in f32).
    z = _silu(_conv3x3_flat(y1, w2_ref, b2_ref[...], Wp))
    if add_residual:
        z = z + x
    o_ref[0] = z.astype(o_ref.dtype)


def fold_bottleneck_params(params, eps=1e-5):
    """Fold eval-mode BatchNorm into conv weights/bias, reorder taps and pad
    channels to lane-dense multiples of 128.  Call ONCE, not per forward."""
    def fold_one(w_hwio, gamma, beta, mean, var):
        scale = gamma / jnp.sqrt(var + eps)
        bias = (beta - mean * scale).astype(jnp.float32)
        kh, kw, cin, cout = w_hwio.shape
        w = (w_hwio * scale[None, None, None, :]).reshape(kh * kw, cin, cout)
        cin_p, cout_p = _round_up(cin, 128), _round_up(cout, 128)
        w = jnp.pad(w, ((0, 0), (0, cin_p - cin), (0, cout_p - cout)))
        b = jnp.pad(bias, (0, cout_p - cout)).reshape(1, cout_p)
        return w.astype(jnp.bfloat16), b

    w1, b1 = fold_one(*params["cv1"])
    w2, b2 = fold_one(*params["cv2"])
    return {"w1": w1, "b1": b1, "w2": w2, "b2": b2}


@partial(jax.jit, static_argnames=("c_out", "shortcut"))
def bottleneck_forward(x_nchw, folded, *, c_out, shortcut=True):
    """Bottleneck forward.  x_nchw: (B, c1, H, W) f32 -> (B, c_out, H, W)."""
    B, C1, H, W = x_nchw.shape
    C1p = _round_up(C1, 128)
    Chp = folded["w1"].shape[2]
    C2p = folded["w2"].shape[2]
    Wp = W + 1                                  # image width + 1 zero column
    Np = _round_up((H + 1) * Wp, 16)            # + 1 zero row, sublane-rounded

    # NCHW -> NHWC, append the zero frame (bottom row / right column), pad
    # channels to a lane-dense multiple of 128 and flatten space.  One fused
    # XLA pad; the kernel never touches HBM for halos or intermediates.
    # TODO(synk): in a full YOLO stack keep activations in this layout
    # end-to-end instead of converting per Bottleneck.
    x = jnp.transpose(x_nchw, (0, 2, 3, 1))
    x = jnp.pad(x, ((0, 0), (0, 1), (0, 1), (0, C1p - C1)))
    x = x.reshape(B, (H + 1) * Wp, C1p)
    x = jnp.pad(x, ((0, 0), (0, Np - (H + 1) * Wp), (0, 0)))

    # 1.0 on image rows, 0.0 on the zero frame / flat tail.
    p = jnp.arange(Np)
    mask = ((p < H * Wp) & (p % Wp < W)).astype(jnp.float32).reshape(Np, 1)

    add_res = bool(shortcut) and (C1 == c_out)

    out_flat = pl.pallas_call(
        partial(_bottleneck_kernel, add_res, Wp),
        out_shape=jax.ShapeDtypeStruct((B, Np, C2p), jnp.float32),
        grid=(B,),
        in_specs=[
            pl.BlockSpec((1, Np, C1p), lambda b: (b, 0, 0)),
            pl.BlockSpec((Np, 1), lambda b: (0, 0)),
            pl.BlockSpec((9, C1p, Chp), lambda b: (0, 0, 0)),
            pl.BlockSpec((1, Chp), lambda b: (0, 0)),
            pl.BlockSpec((9, Chp, C2p), lambda b: (0, 0, 0)),
            pl.BlockSpec((1, C2p), lambda b: (0, 0)),
        ],
        out_specs=pl.BlockSpec((1, Np, C2p), lambda b: (b, 0, 0)),
        compiler_params=pltpu.CompilerParams(
            dimension_semantics=("parallel",),   # megacore on v7x
            vmem_limit_bytes=48 * 1024 * 1024,   # headroom on v7x (64 MiB phys)
        ),
    )(x, mask, folded["w1"], folded["b1"], folded["w2"], folded["b2"])

    out = out_flat[:, :(H + 1) * Wp, :].reshape(B, H + 1, Wp, C2p)
    out = out[:, :H, :W, :c_out]
    return jnp.transpose(out, (0, 3, 1, 2))     # NHWC -> NCHW


# ---------------- pure-JAX reference (same bf16-in / f32-acc numerics) -------
def _ref_bottleneck(x_nchw, params, shortcut=True, eps=1e-5):
    x = jnp.transpose(x_nchw, (0, 2, 3, 1)).astype(jnp.float32)

    def conv_bn_silu(inp, w_hwio, gamma, beta, mean, var):
        scale = gamma / jnp.sqrt(var + eps)
        bias = (beta - mean * scale).astype(jnp.float32)
        w = (w_hwio * scale[None, None, None, :]).astype(jnp.bfloat16)
        y = jax.lax.conv_general_dilated(
            inp.astype(jnp.bfloat16), w, window_strides=(1, 1), padding="SAME",
            dimension_numbers=("NHWC", "HWIO", "NHWC"),
            preferred_element_type=jnp.float32) + bias
        return y * jax.nn.sigmoid(y)

    y = conv_bn_silu(x, *params["cv1"])
    z = conv_bn_silu(y, *params["cv2"])
    if shortcut and x.shape[-1] == z.shape[-1]:
        z = z + x
    return jnp.transpose(z, (0, 3, 1, 2))


if __name__ == "__main__":
    key = jax.random.PRNGKey(0)
    B, C1, C2, H, W = 2, 8, 8, 16, 16
    e = 0.5
    C_ = int(C2 * e)                     # cv1 hidden channels

    ks = jax.random.split(key, 11)
    x = jax.random.normal(ks[0], (B, C1, H, W), jnp.float32)

    # cv1: Conv(c1 -> c_, k=3) HWIO weights + eval-mode BatchNorm stats.
    w1 = jax.random.normal(ks[1], (3, 3, C1, C_), jnp.float32) * 0.1
    g1 = 0.5 + jax.random.uniform(ks[2], (C_,), jnp.float32)
    b1 = jax.random.normal(ks[3], (C_,), jnp.float32) * 0.1
    m1 = jax.random.normal(ks[4], (C_,), jnp.float32) * 0.1
    v1 = 0.5 + jax.random.uniform(ks[5], (C_,), jnp.float32)

    # cv2: Conv(c_ -> c2, k=3)
    w2 = jax.random.normal(ks[6], (3, 3, C_, C2), jnp.float32) * 0.1
    g2 = 0.5 + jax.random.uniform(ks[7], (C2,), jnp.float32)
    b2 = jax.random.normal(ks[8], (C2,), jnp.float32) * 0.1
    m2 = jax.random.normal(ks[9], (C2,), jnp.float32) * 0.1
    v2 = 0.5 + jax.random.uniform(ks[10], (C2,), jnp.float32)

    params = {"cv1": (w1, g1, b1, m1, v1), "cv2": (w2, g2, b2, m2, v2)}
    folded = fold_bottleneck_params(params)          # folded once, not per call

    out = jax.block_until_ready(
        bottleneck_forward(x, folded, c_out=C2, shortcut=True))
    ref = jax.block_until_ready(_ref_bottleneck(x, params, shortcut=True))

    assert out.shape == (B, C2, H, W)
    np.testing.assert_allclose(np.asarray(out), np.asarray(ref),
                               rtol=5e-3, atol=5e-3)
    print("KERNEL_OK")
</pallas_src>

<mosaic_0001>
module attributes {stable_mosaic.version = 11 : i64} {
  func.func @_bottleneck_kernel(%arg0: i32, %arg1: memref<1x304x128xf32, #tpu.memory_space<vmem>>, %arg2: memref<304x1xf32, #tpu.memory_space<vmem>>, %arg3: memref<9x128x128xbf16, #tpu.memory_space<vmem>>, %arg4: memref<1x128xf32, #tpu.memory_space<vmem>>, %arg5: memref<9x128x128xbf16, #tpu.memory_space<vmem>>, %arg6: memref<1x128xf32, #tpu.memory_space<vmem>>, %arg7: memref<1x304x128xf32, #tpu.memory_space<vmem>>) attributes {dimension_semantics = [#tpu.dimension_semantics<parallel>], iteration_bounds = array<i64: 2>, scalar_prefetch = 0 : i64, scratch_operands = 0 : i64, tpu.core_type = #tpu.core_type<tc>, window_params = [{transform_indices = @transform_0, window_bounds = array<i64: 1, 304, 128>}, {pipeline_mode = #tpu.pipeline_mode<synchronous>, transform_indices = @transform_1, window_bounds = array<i64: 304, 1>}, {pipeline_mode = #tpu.pipeline_mode<synchronous>, transform_indices = @transform_2, window_bounds = array<i64: 9, 128, 128>}, {pipeline_mode = #tpu.pipeline_mode<synchronous>, transform_indices = @transform_3, window_bounds = array<i64: 1, 128>}, {pipeline_mode = #tpu.pipeline_mode<synchronous>, transform_indices = @transform_4, window_bounds = array<i64: 9, 128, 128>}, {pipeline_mode = #tpu.pipeline_mode<synchronous>, transform_indices = @transform_5, window_bounds = array<i64: 1, 128>}, {transform_indices = @transform_6, window_bounds = array<i64: 1, 304, 128>}]} {
    %c0 = arith.constant 0 : index
    %c0_0 = arith.constant 0 : index
    %c0_1 = arith.constant 0 : index
    %0 = vector.load %arg1[%c0, %c0_0, %c0_1] : memref<1x304x128xf32, #tpu.memory_space<vmem>>, vector<1x304x128xf32>
    %1 = vector.shape_cast %0 : vector<1x304x128xf32> to vector<304x128xf32>
    %c0_2 = arith.constant 0 : index
    %c0_3 = arith.constant 0 : index
    %2 = vector.load %arg2[%c0_2, %c0_3] : memref<304x1xf32, #tpu.memory_space<vmem>>, vector<304x1xf32>
    %c0_4 = arith.constant 0 : index
    %c0_5 = arith.constant 0 : index
    %3 = vector.load %arg4[%c0_4, %c0_5] : memref<1x128xf32, #tpu.memory_space<vmem>>, vector<1x128xf32>
    %cst = arith.constant 0.000000e+00 : f32
    %4 = vector.broadcast %cst : f32 to vector<304x128xf32>
    %c18_i32 = arith.constant 18 : i32
    %5 = tpu.dynamic_rotate %1 by %c18_i32 dim 0 : vector<304x128xf32>, i32 -> vector<304x128xf32>
    %6 = arith.truncf %5 : vector<304x128xf32> to vector<304x128xbf16>
    %c0_6 = arith.constant 0 : index
    %c0_7 = arith.constant 0 : index
    %c0_8 = arith.constant 0 : index
    %7 = vector.load %arg3[%c0_6, %c0_7, %c0_8] : memref<9x128x128xbf16, #tpu.memory_space<vmem>>, vector<1x128x128xbf16>
    %8 = vector.shape_cast %7 : vector<1x128x128xbf16> to vector<128x128xbf16>
    %cst_9 = arith.constant dense<0.000000e+00> : vector<304x128xf32>
    %9 = tpu.matmul %6, %8, %cst_9 {dimension_numbers = #tpu.dot_dimension_numbers<[1], [0], [0], [1], [0, 0, 1, 1], [], []>} : vector<304x128xbf16>, vector<128x128xbf16>, vector<304x128xf32> -> vector<304x128xf32>
    %10 = arith.addf %4, %9 : vector<304x128xf32>
    %c17_i32 = arith.constant 17 : i32
    %11 = tpu.dynamic_rotate %1 by %c17_i32 dim 0 : vector<304x128xf32>, i32 -> vector<304x128xf32>
    %12 = arith.truncf %11 : vector<304x128xf32> to vector<304x128xbf16>
    %c1 = arith.constant 1 : index
    %c0_10 = arith.constant 0 : index
    %c0_11 = arith.constant 0 : index
    %13 = vector.load %arg3[%c1, %c0_10, %c0_11] : memref<9x128x128xbf16, #tpu.memory_space<vmem>>, vector<1x128x128xbf16>
    %14 = vector.shape_cast %13 : vector<1x128x128xbf16> to vector<128x128xbf16>
    %cst_12 = arith.constant dense<0.000000e+00> : vector<304x128xf32>
    %15 = tpu.matmul %12, %14, %cst_12 {dimension_numbers = #tpu.dot_dimension_numbers<[1], [0], [0], [1], [0, 0, 1, 1], [], []>} : vector<304x128xbf16>, vector<128x128xbf16>, vector<304x128xf32> -> vector<304x128xf32>
    %16 = arith.addf %10, %15 : vector<304x128xf32>
    %c16_i32 = arith.constant 16 : i32
    %17 = tpu.dynamic_rotate %1 by %c16_i32 dim 0 : vector<304x128xf32>, i32 -> vector<304x128xf32>
    %18 = arith.truncf %17 : vector<304x128xf32> to vector<304x128xbf16>
    %c2 = arith.constant 2 : index
    %c0_13 = arith.constant 0 : index
    %c0_14 = arith.constant 0 : index
    %19 = vector.load %arg3[%c2, %c0_13, %c0_14] : memref<9x128x128xbf16, #tpu.memory_space<vmem>>, vector<1x128x128xbf16>
    %20 = vector.shape_cast %19 : vector<1x128x128xbf16> to vector<128x128xbf16>
    %cst_15 = arith.constant dense<0.000000e+00> : vector<304x128xf32>
    %21 = tpu.matmul %18, %20, %cst_15 {dimension_numbers = #tpu.dot_dimension_numbers<[1], [0], [0], [1], [0, 0, 1, 1], [], []>} : vector<304x128xbf16>, vector<128x128xbf16>, vector<304x128xf32> -> vector<304x128xf32>
    %22 = arith.addf %16, %21 : vector<304x128xf32>
    %c1_i32 = arith.constant 1 : i32
    %23 = tpu.dynamic_rotate %1 by %c1_i32 dim 0 : vector<304x128xf32>, i32 -> vector<304x128xf32>
    %24 = arith.truncf %23 : vector<304x128xf32> to vector<304x128xbf16>
    %c3 = arith.constant 3 : index
    %c0_16 = arith.constant 0 : index
    %c0_17 = arith.constant 0 : index
    %25 = vector.load %arg3[%c3, %c0_16, %c0_17] : memref<9x128x128xbf16, #tpu.memory_space<vmem>>, vector<1x128x128xbf16>
    %26 = vector.shape_cast %25 : vector<1x128x128xbf16> to vector<128x128xbf16>
    %cst_18 = arith.constant dense<0.000000e+00> : vector<304x128xf32>
    %27 = tpu.matmul %24, %26, %cst_18 {dimension_numbers = #tpu.dot_dimension_numbers<[1], [0], [0], [1], [0, 0, 1, 1], [], []>} : vector<304x128xbf16>, vector<128x128xbf16>, vector<304x128xf32> -> vector<304x128xf32>
    %28 = arith.addf %22, %27 : vector<304x128xf32>
    %29 = arith.truncf %1 : vector<304x128xf32> to vector<304x128xbf16>
    %c4 = arith.constant 4 : index
    %c0_19 = arith.constant 0 : index
    %c0_20 = arith.constant 0 : index
    %30 = vector.load %arg3[%c4, %c0_19, %c0_20] : memref<9x128x128xbf16, #tpu.memory_space<vmem>>, vector<1x128x128xbf16>
    %31 = vector.shape_cast %30 : vector<1x128x128xbf16> to vector<128x128xbf16>
    %cst_21 = arith.constant dense<0.000000e+00> : vector<304x128xf32>
    %32 = tpu.matmul %29, %31, %cst_21 {dimension_numbers = #tpu.dot_dimension_numbers<[1], [0], [0], [1], [0, 0, 1, 1], [], []>} : vector<304x128xbf16>, vector<128x128xbf16>, vector<304x128xf32> -> vector<304x128xf32>
    %33 = arith.addf %28, %32 : vector<304x128xf32>
    %c303_i32 = arith.constant 303 : i32
    %34 = tpu.dynamic_rotate %1 by %c303_i32 dim 0 : vector<304x128xf32>, i32 -> vector<304x128xf32>
    %35 = arith.truncf %34 : vector<304x128xf32> to vector<304x128xbf16>
    %c5 = arith.constant 5 : index
    %c0_22 = arith.constant 0 : index
    %c0_23 = arith.constant 0 : index
    %36 = vector.load %arg3[%c5, %c0_22, %c0_23] : memref<9x128x128xbf16, #tpu.memory_space<vmem>>, vector<1x128x128xbf16>
    %37 = vector.shape_cast %36 : vector<1x128x128xbf16> to vector<128x128xbf16>
    %cst_24 = arith.constant dense<0.000000e+00> : vector<304x128xf32>
    %38 = tpu.matmul %35, %37, %cst_24 {dimension_numbers = #tpu.dot_dimension_numbers<[1], [0], [0], [1], [0, 0, 1, 1], [], []>} : vector<304x128xbf16>, vector<128x128xbf16>, vector<304x128xf32> -> vector<304x128xf32>
    %39 = arith.addf %33, %38 : vector<304x128xf32>
    %c288_i32 = arith.constant 288 : i32
    %40 = tpu.dynamic_rotate %1 by %c288_i32 dim 0 : vector<304x128xf32>, i32 -> vector<304x128xf32>
    %41 = arith.truncf %40 : vector<304x128xf32> to vector<304x128xbf16>
    %c6 = arith.constant 6 : index
    %c0_25 = arith.constant 0 : index
    %c0_26 = arith.constant 0 : index
    %42 = vector.load %arg3[%c6, %c0_25, %c0_26] : memref<9x128x128xbf16, #tpu.memory_space<vmem>>, vector<1x128x128xbf16>
    %43 = vector.shape_cast %42 : vector<1x128x128xbf16> to vector<128x128xbf16>
    %cst_27 = arith.constant dense<0.000000e+00> : vector<304x128xf32>
    %44 = tpu.matmul %41, %43, %cst_27 {dimension_numbers = #tpu.dot_dimension_numbers<[1], [0], [0], [1], [0, 0, 1, 1], [], []>} : vector<304x128xbf16>, vector<128x128xbf16>, vector<304x128xf32> -> vector<304x128xf32>
    %45 = arith.addf %39, %44 : vector<304x128xf32>
    %c287_i32 = arith.constant 287 : i32
    %46 = tpu.dynamic_rotate %1 by %c287_i32 dim 0 : vector<304x128xf32>, i32 -> vector<304x128xf32>
    %47 = arith.truncf %46 : vector<304x128xf32> to vector<304x128xbf16>
    %c7 = arith.constant 7 : index
    %c0_28 = arith.constant 0 : index
    %c0_29 = arith.constant 0 : index
    %48 = vector.load %arg3[%c7, %c0_28, %c0_29] : memref<9x128x128xbf16, #tpu.memory_space<vmem>>, vector<1x128x128xbf16>
    %49 = vector.shape_cast %48 : vector<1x128x128xbf16> to vector<128x128xbf16>
    %cst_30 = arith.constant dense<0.000000e+00> : vector<304x128xf32>
    %50 = tpu.matmul %47, %49, %cst_30 {dimension_numbers = #tpu.dot_dimension_numbers<[1], [0], [0], [1], [0, 0, 1, 1], [], []>} : vector<304x128xbf16>, vector<128x128xbf16>, vector<304x128xf32> -> vector<304x128xf32>
    %51 = arith.addf %45, %50 : vector<304x128xf32>
    %c286_i32 = arith.constant 286 : i32
    %52 = tpu.dynamic_rotate %1 by %c286_i32 dim 0 : vector<304x128xf32>, i32 -> vector<304x128xf32>
    %53 = arith.truncf %52 : vector<304x128xf32> to vector<304x128xbf16>
    %c8 = arith.constant 8 : index
    %c0_31 = arith.constant 0 : index
    %c0_32 = arith.constant 0 : index
    %54 = vector.load %arg3[%c8, %c0_31, %c0_32] : memref<9x128x128xbf16, #tpu.memory_space<vmem>>, vector<1x128x128xbf16>
    %55 = vector.shape_cast %54 : vector<1x128x128xbf16> to vector<128x128xbf16>
    %cst_33 = arith.constant dense<0.000000e+00> : vector<304x128xf32>
    %56 = tpu.matmul %53, %55, %cst_33 {dimension_numbers = #tpu.dot_dimension_numbers<[1], [0], [0], [1], [0, 0, 1, 1], [], []>} : vector<304x128xbf16>, vector<128x128xbf16>, vector<304x128xf32> -> vector<304x128xf32>
    %57 = arith.addf %51, %56 : vector<304x128xf32>
    %58 = vector.broadcast %3 : vector<1x128xf32> to vector<304x128xf32>
    %59 = arith.addf %57, %58 : vector<304x128xf32>
    %cst_34 = arith.constant 0.000000e+00 : f32
    %60 = vector.broadcast %cst_34 : f32 to vector<304x128xf32>
    %61 = arith.subf %60, %59 : vector<304x128xf32>
    %62 = math.exp %61 : vector<304x128xf32>
    %cst_35 = arith.constant 1.000000e+00 : f32
    %63 = vector.broadcast %cst_35 : f32 to vector<304x128xf32>
    %64 = arith.addf %63, %62 : vector<304x128xf32>
    %65 = tpu.reciprocal %64 {approx = true} : vector<304x128xf32> -> vector<304x128xf32>
    %66 = arith.mulf %59, %65 : vector<304x128xf32>
    %67 = vector.broadcast %2 : vector<304x1xf32> to vector<304x128xf32>
    %68 = arith.mulf %66, %67 : vector<304x128xf32>
    %c0_36 = arith.constant 0 : index
    %c0_37 = arith.constant 0 : index
    %69 = vector.load %arg6[%c0_36, %c0_37] : memref<1x128xf32, #tpu.memory_space<vmem>>, vector<1x128xf32>
    %cst_38 = arith.constant 0.000000e+00 : f32
    %70 = vector.broadcast %cst_38 : f32 to vector<304x128xf32>
    %c18_i32_39 = arith.constant 18 : i32
    %71 = tpu.dynamic_rotate %68 by %c18_i32_39 dim 0 : vector<304x128xf32>, i32 -> vector<304x128xf32>
    %72 = arith.truncf %71 : vector<304x128xf32> to vector<304x128xbf16>
    %c0_40 = arith.constant 0 : index
    %c0_41 = arith.constant 0 : index
    %c0_42 = arith.constant 0 : index
    %73 = vector.load %arg5[%c0_40, %c0_41, %c0_42] : memref<9x128x128xbf16, #tpu.memory_space<vmem>>, vector<1x128x128xbf16>
    %74 = vector.shape_cast %73 : vector<1x128x128xbf16> to vector<128x128xbf16>
    %cst_43 = arith.constant dense<0.000000e+00> : vector<304x128xf32>
    %75 = tpu.matmul %72, %74, %cst_43 {dimension_numbers = #tpu.dot_dimension_numbers<[1], [0], [0], [1], [0, 0, 1, 1], [], []>} : vector<304x128xbf16>, vector<128x128xbf16>, vector<304x128xf32> -> vector<304x128xf32>
    %76 = arith.addf %70, %75 : vector<304x128xf32>
    %c17_i32_44 = arith.constant 17 : i32
    %77 = tpu.dynamic_rotate %68 by %c17_i32_44 dim 0 : vector<304x128xf32>, i32 -> vector<304x128xf32>
    %78 = arith.truncf %77 : vector<304x128xf32> to vector<304x128xbf16>
    %c1_45 = arith.constant 1 : index
    %c0_46 = arith.constant 0 : index
    %c0_47 = arith.constant 0 : index
    %79 = vector.load %arg5[%c1_45, %c0_46, %c0_47] : memref<9x128x128xbf16, #tpu.memory_space<vmem>>, vector<1x128x128xbf16>
    %80 = vector.shape_cast %79 : vector<1x128x128xbf16> to vector<128x128xbf16>
    %cst_48 = arith.constant dense<0.000000e+00> : vector<304x128xf32>
    %81 = tpu.matmul %78, %80, %cst_48 {dimension_numbers = #tpu.dot_dimension_numbers<[1], [0], [0], [1], [0, 0, 1, 1], [], []>} : vector<304x128xbf16>, vector<128x128xbf16>, vector<304x128xf32> -> vector<304x128xf32>
    %82 = arith.addf %76, %81 : vector<304x128xf32>
    %c16_i32_49 = arith.constant 16 : i32
    %83 = tpu.dynamic_rotate %68 by %c16_i32_49 dim 0 : vector<304x128xf32>, i32 -> vector<304x128xf32>
    %84 = arith.truncf %83 : vector<304x128xf32> to vector<304x128xbf16>
    %c2_50 = arith.constant 2 : index
    %c0_51 = arith.constant 0 : index
    %c0_52 = arith.constant 0 : index
    %85 = vector.load %arg5[%c2_50, %c0_51, %c0_52] : memref<9x128x128xbf16, #tpu.memory_space<vmem>>, vector<1x128x128xbf16>
    %86 = vector.shape_cast %85 : vector<1x128x128xbf16> to vector<128x128xbf16>
    %cst_53 = arith.constant dense<0.000000e+00> : vector<304x128xf32>
    %87 = tpu.matmul %84, %86, %cst_53 {dimension_numbers = #tpu.dot_dimension_numbers<[1], [0], [0], [1], [0, 0, 1, 1], [], []>} : vector<304x128xbf16>, vector<128x128xbf16>, vector<304x128xf32> -> vector<304x128xf32>
    %88 = arith.addf %82, %87 : vector<304x128xf32>
    %c1_i32_54 = arith.constant 1 : i32
    %89 = tpu.dynamic_rotate %68 by %c1_i32_54 dim 0 : vector<304x128xf32>, i32 -> vector<304x128xf32>
    %90 = arith.truncf %89 : vector<304x128xf32> to vector<304x128xbf16>
    %c3_55 = arith.constant 3 : index
    %c0_56 = arith.constant 0 : index
    %c0_57 = arith.constant 0 : index
    %91 = vector.load %arg5[%c3_55, %c0_56, %c0_57] : memref<9x128x128xbf16, #tpu.memory_space<vmem>>, vector<1x128x128xbf16>
    %92 = vector.shape_cast %91 : vector<1x128x128xbf16> to vector<128x128xbf16>
    %cst_58 = arith.constant dense<0.000000e+00> : vector<304x128xf32>
    %93 = tpu.matmul %90, %92, %cst_58 {dimension_numbers = #tpu.dot_dimension_numbers<[1], [0], [0], [1], [0, 0, 1, 1], [], []>} : vector<304x128xbf16>, vector<128x128xbf16>, vector<304x128xf32> -> vector<304x128xf32>
    %94 = arith.addf %88, %93 : vector<304x128xf32>
    %95 = arith.truncf %68 : vector<304x128xf32> to vector<304x128xbf16>
    %c4_59 = arith.constant 4 : index
    %c0_60 = arith.constant 0 : index
    %c0_61 = arith.constant 0 : index
    %96 = vector.load %arg5[%c4_59, %c0_60, %c0_61] : memref<9x128x128xbf16, #tpu.memory_space<vmem>>, vector<1x128x128xbf16>
    %97 = vector.shape_cast %96 : vector<1x128x128xbf16> to vector<128x128xbf16>
    %cst_62 = arith.constant dense<0.000000e+00> : vector<304x128xf32>
    %98 = tpu.matmul %95, %97, %cst_62 {dimension_numbers = #tpu.dot_dimension_numbers<[1], [0], [0], [1], [0, 0, 1, 1], [], []>} : vector<304x128xbf16>, vector<128x128xbf16>, vector<304x128xf32> -> vector<304x128xf32>
    %99 = arith.addf %94, %98 : vector<304x128xf32>
    %c303_i32_63 = arith.constant 303 : i32
    %100 = tpu.dynamic_rotate %68 by %c303_i32_63 dim 0 : vector<304x128xf32>, i32 -> vector<304x128xf32>
    %101 = arith.truncf %100 : vector<304x128xf32> to vector<304x128xbf16>
    %c5_64 = arith.constant 5 : index
    %c0_65 = arith.constant 0 : index
    %c0_66 = arith.constant 0 : index
    %102 = vector.load %arg5[%c5_64, %c0_65, %c0_66] : memref<9x128x128xbf16, #tpu.memory_space<vmem>>, vector<1x128x128xbf16>
    %103 = vector.shape_cast %102 : vector<1x128x128xbf16> to vector<128x128xbf16>
    %cst_67 = arith.constant dense<0.000000e+00> : vector<304x128xf32>
    %104 = tpu.matmul %101, %103, %cst_67 {dimension_numbers = #tpu.dot_dimension_numbers<[1], [0], [0], [1], [0, 0, 1, 1], [], []>} : vector<304x128xbf16>, vector<128x128xbf16>, vector<304x128xf32> -> vector<304x128xf32>
    %105 = arith.addf %99, %104 : vector<304x128xf32>
    %c288_i32_68 = arith.constant 288 : i32
    %106 = tpu.dynamic_rotate %68 by %c288_i32_68 dim 0 : vector<304x128xf32>, i32 -> vector<304x128xf32>
    %107 = arith.truncf %106 : vector<304x128xf32> to vector<304x128xbf16>
    %c6_69 = arith.constant 6 : index
    %c0_70 = arith.constant 0 : index
    %c0_71 = arith.constant 0 : index
    %108 = vector.load %arg5[%c6_69, %c0_70, %c0_71] : memref<9x128x128xbf16, #tpu.memory_space<vmem>>, vector<1x128x128xbf16>
    %109 = vector.shape_cast %108 : vector<1x128x128xbf16> to vector<128x128xbf16>
    %cst_72 = arith.constant dense<0.000000e+00> : vector<304x128xf32>
    %110 = tpu.matmul %107, %109, %cst_72 {dimension_numbers = #tpu.dot_dimension_numbers<[1], [0], [0], [1], [0, 0, 1, 1], [], []>} : vector<304x128xbf16>, vector<128x128xbf16>, vector<304x128xf32> -> vector<304x128xf32>
    %111 = arith.addf %105, %110 : vector<304x128xf32>
    %c287_i32_73 = arith.constant 287 : i32
    %112 = tpu.dynamic_rotate %68 by %c287_i32_73 dim 0 : vector<304x128xf32>, i32 -> vector<304x128xf32>
    %113 = arith.truncf %112 : vector<304x128xf32> to vector<304x128xbf16>
    %c7_74 = arith.constant 7 : index
    %c0_75 = arith.constant 0 : index
    %c0_76 = arith.constant 0 : index
    %114 = vector.load %arg5[%c7_74, %c0_75, %c0_76] : memref<9x128x128xbf16, #tpu.memory_space<vmem>>, vector<1x128x128xbf16>
    %115 = vector.shape_cast %114 : vector<1x128x128xbf16> to vector<128x128xbf16>
    %cst_77 = arith.constant dense<0.000000e+00> : vector<304x128xf32>
    %116 = tpu.matmul %113, %115, %cst_77 {dimension_numbers = #tpu.dot_dimension_numbers<[1], [0], [0], [1], [0, 0, 1, 1], [], []>} : vector<304x128xbf16>, vector<128x128xbf16>, vector<304x128xf32> -> vector<304x128xf32>
    %117 = arith.addf %111, %116 : vector<304x128xf32>
    %c286_i32_78 = arith.constant 286 : i32
    %118 = tpu.dynamic_rotate %68 by %c286_i32_78 dim 0 : vector<304x128xf32>, i32 -> vector<304x128xf32>
    %119 = arith.truncf %118 : vector<304x128xf32> to vector<304x128xbf16>
    %c8_79 = arith.constant 8 : index
    %c0_80 = arith.constant 0 : index
    %c0_81 = arith.constant 0 : index
    %120 = vector.load %arg5[%c8_79, %c0_80, %c0_81] : memref<9x128x128xbf16, #tpu.memory_space<vmem>>, vector<1x128x128xbf16>
    %121 = vector.shape_cast %120 : vector<1x128x128xbf16> to vector<128x128xbf16>
    %cst_82 = arith.constant dense<0.000000e+00> : vector<304x128xf32>
    %122 = tpu.matmul %119, %121, %cst_82 {dimension_numbers = #tpu.dot_dimension_numbers<[1], [0], [0], [1], [0, 0, 1, 1], [], []>} : vector<304x128xbf16>, vector<128x128xbf16>, vector<304x128xf32> -> vector<304x128xf32>
    %123 = arith.addf %117, %122 : vector<304x128xf32>
    %124 = vector.broadcast %69 : vector<1x128xf32> to vector<304x128xf32>
    %125 = arith.addf %123, %124 : vector<304x128xf32>
    %cst_83 = arith.constant 0.000000e+00 : f32
    %126 = vector.broadcast %cst_83 : f32 to vector<304x128xf32>
    %127 = arith.subf %126, %125 : vector<304x128xf32>
    %128 = math.exp %127 : vector<304x128xf32>
    %cst_84 = arith.constant 1.000000e+00 : f32
    %129 = vector.broadcast %cst_84 : f32 to vector<304x128xf32>
    %130 = arith.addf %129, %128 : vector<304x128xf32>
    %131 = tpu.reciprocal %130 {approx = true} : vector<304x128xf32> -> vector<304x128xf32>
    %132 = arith.mulf %125, %131 : vector<304x128xf32>
    %133 = arith.addf %132, %1 : vector<304x128xf32>
    %c0_85 = arith.constant 0 : index
    %c0_86 = arith.constant 0 : index
    %c0_87 = arith.constant 0 : index
    %134 = vector.load %arg7[%c0_85, %c0_86, %c0_87] : memref<1x304x128xf32, #tpu.memory_space<vmem>>, vector<1x304x128xf32>
    %135 = vector.shape_cast %134 : vector<1x304x128xf32> to vector<304x128xf32>
    %136 = vector.shape_cast %133 : vector<304x128xf32> to vector<1x304x128xf32>
    tpu.vector_store %arg7[%c0_85, %c0_86, %c0_87], %136 {strides = array<i32>} : memref<1x304x128xf32, #tpu.memory_space<vmem>>, vector<1x304x128xf32>,
    return
  }
  func.func @transform_0(%arg0: i32) -> (i32, i32, i32) {
    %c0_i32 = arith.constant 0 : i32
    %c0_i32_0 = arith.constant 0 : i32
    %c0_i32_1 = arith.constant 0 : i32
    return %arg0, %c0_i32, %c0_i32_0 : i32, i32, i32
  }
  func.func @transform_1(%arg0: i32) -> (i32, i32) {
    %c0_i32 = arith.constant 0 : i32
    %c0_i32_0 = arith.constant 0 : i32
    %c0_i32_1 = arith.constant 0 : i32
    return %c0_i32, %c0_i32_0 : i32, i32
  }
  func.func @transform_2(%arg0: i32) -> (i32, i32, i32) {
    %c0_i32 = arith.constant 0 : i32
    %c0_i32_0 = arith.constant 0 : i32
    %c0_i32_1 = arith.constant 0 : i32
    %c0_i32_2 = arith.constant 0 : i32
    return %c0_i32, %c0_i32_0, %c0_i32_1 : i32, i32, i32
  }
  func.func @transform_3(%arg0: i32) -> (i32, i32) {
    %c0_i32 = arith.constant 0 : i32
    %c0_i32_0 = arith.constant 0 : i32
    %c0_i32_1 = arith.constant 0 : i32
    return %c0_i32, %c0_i32_0 : i32, i32
  }
  func.func @transform_4(%arg0: i32) -> (i32, i32, i32) {
    %c0_i32 = arith.constant 0 : i32
    %c0_i32_0 = arith.constant 0 : i32
    %c0_i32_1 = arith.constant 0 : i32
    %c0_i32_2 = arith.constant 0 : i32
    return %c0_i32, %c0_i32_0, %c0_i32_1 : i32, i32, i32
  }
  func.func @transform_5(%arg0: i32) -> (i32, i32) {
    %c0_i32 = arith.constant 0 : i32
    %c0_i32_0 = arith.constant 0 : i32
    %c0_i32_1 = arith.constant 0 : i32
    return %c0_i32, %c0_i32_0 : i32, i32
  }
  func.func @transform_6(%arg0: i32) -> (i32, i32, i32) {
    %c0_i32 = arith.constant 0 : i32
    %c0_i32_0 = arith.constant 0 : i32
    %c0_i32_1 = arith.constant 0 : i32
    return %arg0, %c0_i32, %c0_i32_0 : i32, i32, i32
  }
}

</mosaic_0001>

<bundles_post_ra>
// kernel: bottleneck_forward.1
= control target key start
LH: loop header
LB: loop body
LE: loop exit
PB: predicated region body
PF: predicated region fallthrough
CT: control target
= control target key end

     0   :  { %s10246_s21 = smov 0   ;;  %s15305_s0 = inlined_call_operand.vmem [shape: f32[2,304,128], index: 0, kind: input, shape index: {}]   ;;  %s15306_s1 = inlined_call_operand.vmem [shape: f32[304,1], index: 1, kind: input, shape index: {}]   ;;  %s15307_s2 = inlined_call_operand.vmem [shape: bf16[9,128,128], index: 2, kind: input, shape index: {}]   ;;  %s15308_s3 = inlined_call_operand.vmem [shape: f32[1,128], index: 3, kind: input, shape index: {}]   ;;  %s15309_s4 = inlined_call_operand.vmem [shape: bf16[9,128,128], index: 4, kind: input, shape index: {}]   ;;  %s15310_s5 = inlined_call_operand.vmem [shape: f32[1,128], index: 5, kind: input, shape index: {}]   ;;  %s15311_s6 = inlined_call_operand.vmem [shape: f32[2,304,128], index: 6, kind: output, shape index: {}]  }
   0x1 LB: > { %s7068_s22 = sadd.s32 4294967295, %s10206_s21   ;;  %p7072_p0 = scmp.ge.s32.totalorder %s10206_s21, 1  ;;  %s10206_s21 = sphi %s10246_s21, %s16_s21  }
   0x2   : > { %p212_p1 = scmp.lt.s32.totalorder %s10206_s21, 3 }
   0x4   : > { %p213_p2 = pnand %p7072_p0, %p212_p1 }
   0x6   : > { %216 = sbr.rel (%p213_p2) target bundleno = 2034 (0x7f2), region = 44 }
   0xb   : > { %v9635_v0 = vld [vmem:[%s15307_s2 + $0x78] sm:$0xff]   ;;  %v15327_v1 = vmov 0.0   ;;  %v9637_v3 = vld [vmem:[%s15307_s2 + $0x70] sm:$0xff]   ;;  %vm10209_vm0 = vmmov 0   ;;  %p242_p3 = scmp.lt.s32.totalorder %s7068_s22, 1  ;;  %v9639_v5 = vld [vmem:[%s15307_s2 + $0x68] sm:$0xff]   ;;  %v368_v9 = vlaneseq }
   0xc   : > { %7965 = vmatprep.subr.bf16.mxu0 %v15327_v1  ;;  %8057 = vmatprep.subr.bf16.mxu1 %v15327_v1  ;;  %v9636_v2 = vld [vmem:[%s15307_s2 + $0x38] sm:$0xff]   ;;  %v9638_v4 = vld [vmem:[%s15307_s2 + $0x30] sm:$0xff]   ;;  %v9640_v6 = vld [vmem:[%s15307_s2 + $0x28] sm:$0xff]  }
   0xd   : > { %7966 = vmatpush3.bf16.msra.mxu0 %v9635_v0  ;;  %7981 = vmatprep.mubr.msk.bf16.mxu0 %vm10209_vm0, %v15327_v1  ;;  %s15875_s22 = smov (!%p242_p3, %s7068_s22), 1  ;;  %v9641_v7 = vld [vmem:[%s15307_s2 + $0x60] sm:$0xff]   ;;  %v9643_v10 = vld [vmem:[%s15307_s2 + $0x58] sm:$0xff]   ;;  %v10308_v12 = vshrl.u32 %v368_v9, 7  ;;  %v9645_v13 = vld [vmem:[%s15307_s2 + $0x50] sm:$0xff]  }
   0xe   : > { %8058 = vmatpush3.bf16.msra.mxu1 %v9636_v2  ;;  %7967 = vmatprep.subr.bf16.mxu0 %v15327_v1  ;;  %v9642_v8 = vld [vmem:[%s15307_s2 + $0x20] sm:$0xff]   ;;  %s9621_s15 = smul.u32 304, %s15875_s22  ;;  %v9644_v11 = vld [vmem:[%s15307_s2 + $0x18] sm:$0xff]   ;;  %v9646_v14 = vld [vmem:[%s15307_s2 + $0x10] sm:$0xff]  }
   0xf   : > { %8059 = vmatprep.subr.bf16.mxu1 %v15327_v1  ;;  %8073 = vmatprep.mubr.msk.bf16.mxu1 %vm10209_vm0, %v15327_v1  ;;  %15446 = vst [vmem:[#allocation2_spill] sm:$0xff] %v10308_v12  ;;  %vm482_vm1 = vcmp.lt.s32.totalorder %v10308_v12, 1  ;;  %v9647_v18 = vld [vmem:[%s15307_s2 + $0x48] sm:$0xff]   ;;  %vm370_vm2 = vcmp.lt.s32.totalorder %v10308_v12, 2  ;;  %v9649_v26 = vld [vmem:[%s15307_s2 + $0x40] sm:$0xff]   ;;  %v9651_v36 = vld [vmem:[%s15307_s2 + $0xb8] sm:$0xff]  }
  0x10   : > { %s10306_s24 = scalar_lea.vmem %s15305_s0, %s9621_s15  ;;  %v9648_v22 = vld [vmem:[%s15307_s2 + $0x8] sm:$0xff]   ;;  %v9650_v29 = vld [vmem:[%s15307_s2] sm:$0xff]   ;;  %v9652_v45 = vld [vmem:[%s15307_s2 + $0xb0] sm:$0xff]   ;;  %vm1944_vm3 = vcmp.lt.s32.totalorder %v10308_v12, 7  ;;  %s15046_s13 = scalar_lea.vmem %s15311_s6, %s9621_s15 }
  0x11   : > { %7968 = vmatpush3.bf16.msra.mxu0 %v9637_v3  ;;  %v10318_v15 = vld [vmem:[%s10306_s24 + $0x118] sm:$0xff]  ;;  %v289_v16 = vld [vmem:[%s10306_s24 + $0x120] sm:$0xff]  ;;  %v290_v17 = vld [vmem:[%s10306_s24 + $0x128] sm:$0xff] }
  0x12   : > { %8060 = vmatpush3.bf16.msra.mxu1 %v9638_v4  ;;  %7969 = vmatprep.subr.bf16.mxu0 %v15327_v1  ;;  %v15313_v19 = vrot.slane %v10318_v15, 7  ;;  %v480_v20 = vrot.slane %v289_v16, 7  ;;  %v481_v21 = vrot.slane %v290_v17, 7  ;;  %v15312_v23 = vrot.slane %v10318_v15, 6  ;;  %v253_v32 = vld [vmem:[%s10306_s24] sm:$0xff]  ;;  %v254_v33 = vld [vmem:[%s10306_s24 + $0x8] sm:$0xff] }
  0x13   : > { %8061 = vmatprep.subr.bf16.mxu1 %v15327_v1  ;;  %v366_v24 = vrot.slane %v289_v16, 6  ;;  %v367_v25 = vrot.slane %v290_v17, 6  ;;  %v444_v37 = vrot.slane %v253_v32, 7  ;;  %v445_v38 = vrot.slane %v254_v33, 7  ;;  %v255_v41 = vld [vmem:[%s10306_s24 + $0x10] sm:$0xff]  ;;  %v10367_v42 = vld [vmem:[%s10306_s24 + $0x18] sm:$0xff] }
  0x14   : > { %v483_v27 = vsel %vm482_vm1, %v480_v20, %v481_v21  ;;  %v484_v28 = vsel %vm482_vm1, %v15313_v19, %v480_v20  ;;  %v330_v39 = vrot.slane %v253_v32, 6  ;;  %v331_v40 = vrot.slane %v254_v33, 6  ;;  %v9658_v51 = vld [vmem:[%s15307_s2 + $0xf8] sm:$0xff]   ;;  %v10392_v54 = vld [vmem:[%s10306_s24 + $0x20] sm:$0xff]  ;;  %v10395_v55 = vld [vmem:[%s10306_s24 + $0x28] sm:$0xff] }
  0x15   : > { %7970 = vmatpush3.bf16.msra.mxu0 %v9639_v5  ;;  %v371_v30 = vsel %vm370_vm2, %v366_v24, %v367_v25  ;;  %v372_v31 = vsel %vm370_vm2, %v15312_v23, %v366_v24  ;;  %v10357_v34 = vpack.c.bf16 %v483_v27, %v484_v28  ;;  %v519_v43 = vsel %vm482_vm1, %v444_v37, %v445_v38  ;;  %v9653_v57 = vld [vmem:[%s15307_s2 + $0xa8] sm:$0xff]   ;;  %v9659_v58 = vld [vmem:[%s15307_s2 + $0xf0] sm:$0xff]   ;;  %v10415_v62 = vld [vmem:[%s10306_s24 + $0x38] sm:$0xff] }
  0x16   : > { %8062 = vmatpush3.bf16.msra.mxu1 %v9640_v6  ;;  %7971 = vmatprep.subr.bf16.mxu0 %v15327_v1  ;;  %v409_v35 = vpack.c.bf16 %v371_v30, %v372_v31  ;;  %v520_v44 = vsel %vm482_vm1, %v481_v21, %v444_v37  ;;  %v407_v46 = vsel %vm370_vm2, %v330_v39, %v331_v40  ;;  %v446_v49 = vrot.slane %v255_v41, 7  ;;  %v10412_v61 = vld [vmem:[%s10306_s24 + $0x30] sm:$0xff]  ;;  %v10422_v2 = vld [vmem:[%s10306_s24 + $0x40] sm:$0xff]  ;;  %v10425_v3 = vld [vmem:[%s10306_s24 + $0x48] sm:$0xff] }
  0x17   : > { %8063 = vmatprep.subr.bf16.mxu1 %v15327_v1  ;;  %v408_v47 = vsel %vm370_vm2, %v367_v25, %v330_v39  ;;  %v10385_v48 = vpack.c.bf16 %v519_v43, %v520_v44  ;;  %v447_v50 = vrot.slane %v10367_v42, 7  ;;  %v332_v53 = vrot.slane %v255_v41, 6  ;;  %v10457_v20 = vld [vmem:[%s10306_s24 + $0x60] sm:$0xff]  ;;  %v10462_v24 = vld [vmem:[%s10306_s24 + $0x68] sm:$0xff]  ;;  %v9655_v25 = vld [vmem:[%s15307_s2 + $0x98] sm:$0xff]  }
  0x18   : > { %v410_v52 = vpack.c.bf16 %v407_v46, %v408_v47  ;;  %v333_v56 = vrot.slane %v10367_v42, 6  ;;  %v518_v60 = vsel %vm482_vm1, %v445_v38, %v446_v49  ;;  %v448_v63 = vrot.slane %v10392_v54, 7  ;;  %v10474_v30 = vld [vmem:[%s10306_s24 + $0x78] sm:$0xff]  ;;  %v9662_v31 = vld [vmem:[%s15307_s2 + $0xe0] sm:$0xff]   ;;  %v10499_v41 = vld [vmem:[%s10306_s24 + $0x88] sm:$0xff] }
  0x19   : > { %7972 = vmatpush3.bf16.msra.mxu0 %v9641_v7  ;;  %v517_v59 = vsel %vm482_vm1, %v446_v49, %v447_v50  ;;  %v449_v0 = vrot.slane %v10395_v55, 7  ;;  %v406_v5 = vsel %vm370_vm2, %v331_v40, %v332_v53  ;;  %v334_v6 = vrot.slane %v10392_v54, 6  ;;  %v9654_v7 = vld [vmem:[%s15307_s2 + $0xa0] sm:$0xff]   ;;  %v9656_v43 = vld [vmem:[%s15307_s2 + $0x90] sm:$0xff]   ;;  %v9663_v42 = vld [vmem:[%s15307_s2 + $0xd8] sm:$0xff]  }
  0x1a   : > { %8064 = vmatpush3.bf16.msra.mxu1 %v9642_v8  ;;  %7973 = vmatprep.subr.bf16.mxu0 %v15327_v1  ;;  %v405_v4 = vsel %vm370_vm2, %v332_v53, %v333_v56  ;;  %v10439_v8 = vpack.c.bf16 %v517_v59, %v518_v60  ;;  %v335_v9 = vrot.slane %v10395_v55, 6  ;;  %v451_v16 = vrot.slane %v10415_v62, 7  ;;  %v10496_v40 = vld [vmem:[%s10306_s24 + $0x80] sm:$0xff] }
  0x1b   : > { %8065 = vmatprep.subr.bf16.mxu1 %v15327_v1  ;;  %v336_v17 = vrot.slane %v10412_v61, 6  ;;  %v411_v21 = vpack.c.bf16 %v405_v4, %v406_v5  ;;  %v338_v27 = vrot.slane %v10422_v2, 6  ;;  %v339_v28 = vrot.slane %v10425_v3, 6  ;;  %v10538_v60 = vld [vmem:[%s10306_s24 + $0xa0] sm:$0xff] }
  0x1c   : > { %v516_v32 = vsel %vm482_vm1, %v447_v50, %v448_v63  ;;  %v456_v39 = vrot.slane %v10457_v20, 7  ;;  %v403_v44 = vsel %vm370_vm2, %v334_v6, %v335_v9  ;;  %v457_v46 = vrot.slane %v10462_v24, 7  ;;  %v10518_v50 = vld [vmem:[%s10306_s24 + $0x90] sm:$0xff]  ;;  %v9666_v19 = vld [vmem:[%s15307_s2 + $0xc0] sm:$0xff]  }
  0x1d   : > { %7974 = vmatpush3.bf16.msra.mxu0 %v9643_v10  ;;  %v10443_v10 = vld [vmem:[%s10306_s24 + $0x50] sm:$0xff]  ;;  %v342_v47 = vrot.slane %v10457_v20, 6  ;;  %v343_v49 = vrot.slane %v10462_v24, 6  ;;  %v459_v54 = vrot.slane %v10474_v30, 7  ;;  %v345_v59 = vrot.slane %v10474_v30, 6 }
  0x1e   : > { %8066 = vmatpush3.bf16.msra.mxu1 %v9644_v11  ;;  %7975 = vmatprep.subr.bf16.mxu0 %v15327_v1  ;;  %v10446_v11 = vld [vmem:[%s10306_s24 + $0x58] sm:$0xff]  ;;  %v454_v33 = vrot.slane %v10443_v10, 7  ;;  %v340_v37 = vrot.slane %v10443_v10, 6  ;;  %v460_v4 = vrot.slane %v10496_v40, 7  ;;  %v461_v5 = vrot.slane %v10499_v41, 7 }
  0x1f   : > { %8067 = vmatprep.subr.bf16.mxu1 %v15327_v1  ;;  %v341_v38 = vrot.slane %v10446_v11, 6  ;;  %v507_v10 = vsel %vm482_vm1, %v456_v39, %v457_v46 }
  0x20   : > { %v504_v24 = vsel %vm482_vm1, %v459_v54, %v460_v4 }
  0x21   : > { %7976 = vmatpush3.bf16.msra.mxu0 %v9645_v13  ;;  %v9660_v13 = vld [vmem:[%s15307_s2 + $0xe8] sm:$0xff]  }
  0x22   : > { %8068 = vmatpush3.bf16.msra.mxu1 %v9646_v14  ;;  %7977 = vmatprep.subr.bf16.mxu0 %v15327_v1  ;;  %v450_v14 = vrot.slane %v10412_v61, 7 }
  0x23   : > { %8069 = vmatprep.subr.bf16.mxu1 %v15327_v1 }
  0x25   : > { %7978 = vmatpush3.bf16.msra.mxu0 %v9647_v18  ;;  %v337_v18 = vrot.slane %v10415_v62, 6 }
  0x26   : > { %8070 = vmatpush3.bf16.msra.mxu1 %v9648_v22  ;;  %7979 = vmatprep.subr.bf16.mxu0 %v15327_v1  ;;  %v452_v22 = vrot.slane %v10422_v2, 7 }
  0x27   : > { %8071 = vmatprep.subr.bf16.mxu1 %v15327_v1 }
  0x29   : > { %7980 = vmatpush3.bf16.msra.mxu0 %v9649_v26  ;;  %v453_v26 = vrot.slane %v10425_v3, 7 }
  0x2a   : > { %8072 = vmatpush3.bf16.msra.mxu1 %v9650_v29  ;;  %8149 = vmatprep.subr.bf16.mxu0 %v15327_v1  ;;  %v10471_v29 = vld [vmem:[%s10306_s24 + $0x70] sm:$0xff] }
  0x2b   : > { %8241 = vmatprep.subr.bf16.mxu1 %v15327_v1  ;;  %v458_v53 = vrot.slane %v10471_v29, 7 }
  0x2c   : > { %7982 = vmatmul.mubr.bf16.vlgmr.msra.gmra.mxu0 %v10357_v34 }
  0x2d   : > { %8074 = vmatmul.mubr.bf16.vlgmr.msra.gmra.mxu1 %v409_v35  ;;  %8150 = vmatpush3.bf16.msra.mxu0 %v9651_v36  ;;  %v455_v35 = vrot.slane %v10446_v11, 7  ;;  %v515_v36 = vsel %vm482_vm1, %v448_v63, %v449_v0  ;;  %v10541_v63 = vld [vmem:[%s10306_s24 + $0xa8] sm:$0xff]  ;;  %v505_v11 = vsel %vm482_vm1, %v458_v53, %v459_v54  ;;  %v506_v20 = vsel %vm482_vm1, %v457_v46, %v458_v53 }
  0x2e   : > { %7985 = vmatprep.mubr.msk.bf16.mxu0 %vm10209_vm0, %v15327_v1  ;;  %8077 = vmatprep.mubr.msk.bf16.mxu1 %vm10209_vm0, %v15327_v1  ;;  %v465_v23 = vrot.slane %v10541_v63, 7  ;;  %v351_v55 = vrot.slane %v10541_v63, 6  ;;  %v10745_v53 = vpack.c.bf16 %v505_v11, %v506_v20 }
  0x2f   : > { %8151 = vmatprep.subr.bf16.mxu0 %v15327_v1  ;;  %8242 = vmatpush3.bf16.msra.mxu1 %v9658_v51  ;;  %v10521_v51 = vld [vmem:[%s10306_s24 + $0x98] sm:$0xff]  ;;  %v509_v62 = vsel %vm482_vm1, %v454_v33, %v455_v35  ;;  %v508_v3 = vsel %vm482_vm1, %v455_v35, %v456_v39  ;;  %v10709_v35 = vld [vmem:[%s10306_s24 + $0xc0] sm:$0xff]  ;;  %v10712_v39 = vld [vmem:[%s10306_s24 + $0xc8] sm:$0xff] }
  0x30   : > { %8243 = vmatprep.subr.bf16.mxu1 %v15327_v1 }
  0x31   : > { %8152 = vmatpush3.bf16.msra.mxu0 %v9652_v45  ;;  %v404_v45 = vsel %vm370_vm2, %v333_v56, %v334_v6  ;;  %v9657_v56 = vld [vmem:[%s15307_s2 + $0x88] sm:$0xff]   ;;  %v346_v6 = vrot.slane %v10496_v40, 6 }
  0x32   : > { %8153 = vmatprep.subr.bf16.mxu0 %v15327_v1 }
  0x33   : > { %8244 = vmatpush3.bf16.msra.mxu1 %v9659_v58  ;;  %v344_v58 = vrot.slane %v10471_v29, 6  ;;  %v503_v29 = vsel %vm482_vm1, %v460_v4, %v461_v5 }
  0x34   : > { %7986 = vmatmul.mubr.bf16.gmra.mxu0 %v10385_v48  ;;  %8245 = vmatprep.subr.bf16.mxu1 %v15327_v1 }
  0x35   : > { %8078 = vmatmul.mubr.bf16.gmra.mxu1 %v410_v52  ;;  %7989 = vmatprep.mubr.msk.bf16.mxu0 %vm10209_vm0, %v15327_v1  ;;  %v10527_v52 = vpack.c.bf16 %v515_v36, %v516_v32  ;;  %v10558_v32 = vld [vmem:[%s10306_s24 + $0xb8] sm:$0xff]  ;;  %v9661_v36 = vld [vmem:[%s15307_s2 + $0x80] sm:$0xff]   ;;  %v394_v46 = vsel %vm370_vm2, %v343_v49, %v344_v58 }
  0x36   : > { %8081 = vmatprep.mubr.msk.bf16.mxu1 %vm10209_vm0, %v15327_v1  ;;  %8154 = vmatpush3.bf16.msra.mxu0 %v9653_v57  ;;  %v412_v57 = vpack.c.bf16 %v403_v44, %v404_v45  ;;  %v514_v44 = vsel %vm482_vm1, %v449_v0, %v450_v14  ;;  %v402_v0 = vsel %vm370_vm2, %v335_v9, %v336_v17  ;;  %v9665_v45 = vld [vmem:[%s15307_s2 + $0xc8] sm:$0xff]  }
  0x37   : > { %8155 = vmatprep.subr.bf16.mxu0 %v15327_v1  ;;  %8246 = vmatpush3.bf16.msra.mxu1 %v9660_v13  ;;  %v9664_v13 = vld [vmem:[%s15307_s2 + $0xd0] sm:$0xff]  }
  0x38   : > { %8247 = vmatprep.subr.bf16.mxu1 %v15327_v1 }
  0x3a   : > { %8156 = vmatpush3.bf16.msra.mxu0 %v9654_v7  ;;  %v10547_v7 = vld [vmem:[%s10306_s24 + $0xb0] sm:$0xff] }
  0x3b   : > { %8157 = vmatprep.subr.bf16.mxu0 %v15327_v1  ;;  %8248 = vmatpush3.bf16.msra.mxu1 %v9662_v31  ;;  %v463_v31 = vrot.slane %v10521_v51, 7  ;;  %v466_v9 = vrot.slane %v10547_v7, 7  ;;  %v352_v2 = vrot.slane %v10547_v7, 6 }
  0x3c   : > { %7990 = vmatmul.mubr.bf16.gmra.mxu0 %v10439_v8  ;;  %8249 = vmatprep.subr.bf16.mxu1 %v15327_v1 }
  0x3d   : > { %8082 = vmatmul.mubr.bf16.gmra.mxu1 %v411_v21  ;;  %7993 = vmatprep.mubr.msk.bf16.mxu0 %vm10209_vm0, %v15327_v1  ;;  %v347_v21 = vrot.slane %v10499_v41, 6 }
  0x3e   : > { %8085 = vmatprep.mubr.msk.bf16.mxu1 %vm10209_vm0, %v15327_v1  ;;  %8158 = vmatpush3.bf16.msra.mxu0 %v9655_v25  ;;  %v462_v25 = vrot.slane %v10518_v50, 7 }
  0x3f   : > { %8159 = vmatprep.subr.bf16.mxu0 %v15327_v1  ;;  %8250 = vmatpush3.bf16.msra.mxu1 %v9663_v42  ;;  %v349_v42 = vrot.slane %v10521_v51, 6 }
  0x40   : > { %8251 = vmatprep.subr.bf16.mxu1 %v15327_v1  ;;  %v501_v40 = vsel %vm482_vm1, %v462_v25, %v463_v31  ;;  %v502_v30 = vsel %vm482_vm1, %v461_v5, %v462_v25 }
  0x42   : > { %8160 = vmatpush3.bf16.msra.mxu0 %v9656_v43  ;;  %v513_v43 = vsel %vm482_vm1, %v450_v14, %v451_v16  ;;  %v464_v14 = vrot.slane %v10538_v60, 7 }
  0x43   : > { %8161 = vmatprep.subr.bf16.mxu0 %v15327_v1  ;;  %8252 = vmatpush3.bf16.msra.mxu1 %v9664_v13  ;;  %v10601_v61 = vpack.c.bf16 %v513_v43, %v514_v44  ;;  %v511_v13 = vsel %vm482_vm1, %v452_v22, %v453_v26  ;;  %v399_v43 = vsel %vm370_vm2, %v338_v27, %v339_v28 }
  0x44   : > { %7994 = vmatmul.mubr.bf16.gmra.mxu0 %v10527_v52  ;;  %8253 = vmatprep.subr.bf16.mxu1 %v15327_v1  ;;  %v400_v44 = vsel %vm370_vm2, %v337_v18, %v338_v27  ;;  %v397_v27 = vsel %vm370_vm2, %v340_v37, %v341_v38  ;;  %v500_v41 = vsel %vm482_vm1, %v463_v31, %v464_v14  ;;  %v355_v31 = vrot.slane %v10712_v39, 6 }
  0x45   : > { %8086 = vmatmul.mubr.bf16.gmra.mxu1 %v412_v57  ;;  %7997 = vmatprep.mubr.msk.bf16.mxu0 %vm10209_vm0, %v15327_v1  ;;  %v401_v57 = vsel %vm370_vm2, %v336_v17, %v337_v18  ;;  %v353_v18 = vrot.slane %v10558_v32, 6 }
  0x46   : > { %8089 = vmatprep.mubr.msk.bf16.mxu1 %vm10209_vm0, %v15327_v1  ;;  %8162 = vmatpush3.bf16.msra.mxu0 %v9657_v56  ;;  %v413_v17 = vpack.c.bf16 %v401_v57, %v402_v0  ;;  %v467_v56 = vrot.slane %v10558_v32, 7  ;;  %v10706_v57 = vpack.c.bf16 %v507_v10, %v508_v3  ;;  %v10896_v10 = vld [vmem:[%s10306_s24 + $0xd8] sm:$0xff] }
  0x47   : > { %8163 = vmatprep.subr.bf16.mxu0 %v15327_v1  ;;  %8254 = vmatpush3.bf16.msra.mxu1 %v9665_v45  ;;  %v357_v32 = vrot.slane %v10896_v10, 6 }
  0x48   : > { %8255 = vmatprep.subr.bf16.mxu1 %v15327_v1  ;;  %v497_v51 = vsel %vm482_vm1, %v466_v9, %v467_v56 }
  0x4a   : > { %8164 = vmatpush3.bf16.msra.mxu0 %v9661_v36  ;;  %v512_v36 = vsel %vm482_vm1, %v451_v16, %v452_v22  ;;  %v414_v22 = vpack.c.bf16 %v399_v43, %v400_v44  ;;  %v10807_v44 = vpack.c.bf16 %v501_v40, %v502_v30 }
  0x4b   : > { %8333 = vmatprep.subr.bf16.mxu0 %v15327_v1  ;;  %8256 = vmatpush3.bf16.msra.mxu1 %v9666_v19  ;;  %v10641_v16 = vpack.c.bf16 %v511_v13, %v512_v36  ;;  %v510_v19 = vsel %vm482_vm1, %v453_v26, %v454_v33  ;;  %v398_v26 = vsel %vm370_vm2, %v339_v28, %v340_v37 }
  0x4c   : > { %7998 = vmatmul.mubr.bf16.gmra.mxu0 %v10601_v61  ;;  %8425 = vmatprep.subr.bf16.mxu1 %v15327_v1  ;;  %v10675_v33 = vpack.c.bf16 %v509_v62, %v510_v19  ;;  %v415_v45 = vpack.c.bf16 %v397_v27, %v398_v26  ;;  %v395_v28 = vsel %vm370_vm2, %v342_v47, %v343_v49  ;;  %v354_v19 = vrot.slane %v10709_v35, 6 }
  0x4d   : > { %8090 = vmatmul.mubr.bf16.gmra.mxu1 %v413_v17  ;;  %8001 = vmatprep.mubr.msk.bf16.mxu0 %vm10209_vm0, %v15327_v1  ;;  %v396_v37 = vsel %vm370_vm2, %v341_v38, %v342_v47  ;;  %v468_v38 = vrot.slane %v10709_v35, 7  ;;  %v469_v47 = vrot.slane %v10712_v39, 7  ;;  %v393_v17 = vsel %vm370_vm2, %v344_v58, %v345_v59 }
  0x4e   : > { %8093 = vmatprep.mubr.msk.bf16.mxu1 %vm10209_vm0, %v15327_v1  ;;  %v416_v0 = vpack.c.bf16 %v395_v28, %v396_v37  ;;  %v417_v13 = vpack.c.bf16 %v393_v17, %v394_v46  ;;  %v391_v49 = vsel %vm370_vm2, %v346_v6, %v347_v21  ;;  %v392_v58 = vsel %vm370_vm2, %v345_v59, %v346_v6  ;;  %v10920_v17 = vld [vmem:[%s10306_s24 + $0xe0] sm:$0xff]  ;;  %v10923_v46 = vld [vmem:[%s10306_s24 + $0xe8] sm:$0xff] }
  0x4f   : > { %v10776_v36 = vpack.c.bf16 %v503_v29, %v504_v24  ;;  %v418_v54 = vpack.c.bf16 %v391_v49, %v392_v58  ;;  %v15447_v59 = vrot.slane %v10518_v50, 6  ;;  %v499_v50 = vsel %vm482_vm1, %v464_v14, %v465_v23 }
  0x50   : > { %v10840_v14 = vpack.c.bf16 %v499_v50, %v500_v41  ;;  %v386_v26 = vsel %vm370_vm2, %v351_v55, %v352_v2  ;;  %v496_v63 = vsel %vm482_vm1, %v467_v56, %v468_v38  ;;  %v383_v7 = vsel %vm370_vm2, %v354_v19, %v355_v31 }
  0x51   : > { %v389_v4 = vsel %vm370_vm2, %v15447_v59, %v349_v42  ;;  %v15448_v6 = vmov %v15447_v59  ;;  %v471_v37 = vrot.slane %v10896_v10, 7  ;;  %v473_v24 = vrot.slane %v10923_v46, 7 }
  0x52   : > { %v390_v43 = vsel %vm370_vm2, %v347_v21, %v15448_v6  ;;  %v15449_v21 = vrot.slane %v10538_v60, 6  ;;  %v498_v60 = vsel %vm482_vm1, %v465_v23, %v466_v9  ;;  %v495_v9 = vsel %vm482_vm1, %v468_v38, %v469_v47  ;;  %v10948_v6 = vld [vmem:[%s10306_s24 + $0xf8] sm:$0xff] }
  0x53   : > { %v419_v5 = vpack.c.bf16 %v389_v4, %v390_v43  ;;  %v10898_v3 = vpack.c.bf16 %v495_v9, %v496_v63  ;;  %v358_v49 = vrot.slane %v10920_v17, 6  ;;  %v359_v58 = vrot.slane %v10923_v46, 6  ;;  %v10945_v4 = vld [vmem:[%s10306_s24 + $0xf0] sm:$0xff] }
  0x54   : > { %8002 = vmatmul.mubr.bf16.gmra.mxu0 %v10641_v16  ;;  %v387_v25 = vsel %vm370_vm2, %v15449_v21, %v351_v55  ;;  %v384_v55 = vsel %vm370_vm2, %v353_v18, %v354_v19  ;;  %v474_v50 = vrot.slane %v10945_v4, 7  ;;  %v475_v41 = vrot.slane %v10948_v6, 7 }
  0x55   : > { %8094 = vmatmul.mubr.bf16.gmra.mxu1 %v414_v22  ;;  %8005 = vmatprep.mubr.msk.bf16.mxu0 %vm10209_vm0, %v15327_v1  ;;  %v15450_v22 = vmov %v15449_v21  ;;  %v422_v56 = vpack.c.bf16 %v383_v7, %v384_v55  ;;  %v379_v30 = vsel %vm370_vm2, %v358_v49, %v359_v58  ;;  %v380_v59 = vsel %vm370_vm2, %v357_v32, %v358_v49 }
  0x56   : > { %8097 = vmatprep.mubr.msk.bf16.mxu1 %vm10209_vm0, %v15327_v1  ;;  %v388_v62 = vsel %vm370_vm2, %v349_v42, %v15450_v22  ;;  %v385_v42 = vsel %vm370_vm2, %v352_v2, %v353_v18  ;;  %v10893_v2 = vld [vmem:[%s10306_s24 + $0xd0] sm:$0xff]  ;;  %v360_v21 = vrot.slane %v10945_v4, 6  ;;  %v489_v22 = vsel %vm482_vm1, %v474_v50, %v475_v41 }
  0x57   : > { %v420_v27 = vpack.c.bf16 %v387_v25, %v388_v62  ;;  %v421_v23 = vpack.c.bf16 %v385_v42, %v386_v26  ;;  %v470_v28 = vrot.slane %v10893_v2, 7  ;;  %v361_v25 = vrot.slane %v10948_v6, 6 }
  0x58   : > { %v490_v62 = vsel %vm482_vm1, %v473_v24, %v474_v50  ;;  %v9668_v50 = vld [vmem:[%s15307_s2 + $0x130] sm:$0xff]  }
  0x59   : > { %v493_v18 = vsel %vm482_vm1, %v470_v28, %v471_v37  ;;  %v494_v11 = vsel %vm482_vm1, %v469_v47, %v470_v28  ;;  %v472_v47 = vrot.slane %v10920_v17, 7  ;;  %v377_v19 = vsel %vm370_vm2, %v360_v21, %v361_v25 }
  0x5b   : > { %v492_v40 = vsel %vm482_vm1, %v471_v37, %v472_v47  ;;  %v10995_v37 = vld [vmem:[%s10306_s24 + $0x110] sm:$0xff] }
  0x5c   : > { %8006 = vmatmul.mubr.bf16.gmra.mxu0 %v10675_v33 }
  0x5d   : > { %8098 = vmatmul.mubr.bf16.gmra.mxu1 %v415_v45  ;;  %8009 = vmatprep.mubr.msk.bf16.mxu0 %vm10209_vm0, %v15327_v1  ;;  %v10871_v45 = vpack.c.bf16 %v497_v51, %v498_v60  ;;  %v10973_v51 = vld [vmem:[%s10306_s24 + $0x108] sm:$0xff]  ;;  %v10975_v60 = vpack.c.bf16 %v489_v22, %v490_v62 }
  0x5e   : > { %8101 = vmatprep.mubr.msk.bf16.mxu1 %vm10209_vm0, %v15327_v1  ;;  %v363_v63 = vrot.slane %v10973_v51, 6  ;;  %v9669_v22 = vld [vmem:[%s15307_s2 + $0x128] sm:$0xff]  }
  0x5f   : > { %v9676_v62 = vld [vmem:[%s15307_s2 + $0x168] sm:$0xff]  }
  0x64   : > { %8010 = vmatmul.mubr.bf16.gmra.mxu0 %v10706_v57 }
  0x65   : > { %8102 = vmatmul.mubr.bf16.gmra.mxu1 %v416_v0  ;;  %8013 = vmatprep.mubr.msk.bf16.mxu0 %vm10209_vm0, %v15327_v1  ;;  %v356_v0 = vrot.slane %v10893_v2, 6 }
  0x66   : > { %8105 = vmatprep.mubr.msk.bf16.mxu1 %vm10209_vm0, %v15327_v1 }
  0x67   : > { %v381_v20 = vsel %vm370_vm2, %v356_v0, %v357_v32  ;;  %v382_v38 = vsel %vm370_vm2, %v355_v31, %v356_v0  ;;  %v378_v31 = vsel %vm370_vm2, %v359_v58, %v360_v21  ;;  %v11049_v21 = vld [vmem:[%s10306_s24] sm:$0xff] }
  0x68   : > { %v423_v29 = vpack.c.bf16 %v381_v20, %v382_v38  ;;  %v425_v42 = vpack.c.bf16 %v377_v19, %v378_v31  ;;  %v15451_v20 = vrot.slane %v10318_v15, 7  ;;  %15454 = vst [vmem:[#allocation4_spill] sm:$0xff] %v11049_v21  ;;  %v9670_v19 = vld [vmem:[%s15307_s2 + $0x120] sm:$0xff]  }
  0x69   : > { %v9678_v31 = vld [vmem:[%s15307_s2 + $0x160] sm:$0xff]  }
  0x6c   : > { %8014 = vmatmul.mubr.bf16.gmra.mxu0 %v10745_v53 }
  0x6d   : > { %8106 = vmatmul.mubr.bf16.gmra.mxu1 %v417_v13  ;;  %8017 = vmatprep.mubr.msk.bf16.mxu0 %vm10209_vm0, %v15327_v1  ;;  %v10925_v13 = vpack.c.bf16 %v493_v18, %v494_v11  ;;  %v478_v18 = vrot.slane %v10995_v37, 7  ;;  %v364_v11 = vrot.slane %v10995_v37, 6 }
  0x6e   : > { %8109 = vmatprep.mubr.msk.bf16.mxu1 %vm10209_vm0, %v15327_v1 }
  0x6f   : > { %v485_v38 = vsel %vm482_vm1, %v478_v18, %v15451_v20  ;;  %v374_v49 = vsel %vm370_vm2, %v363_v63, %v364_v11  ;;  %v11148_v20 = vld [vmem:[%s10306_s24 + $0x38] sm:$0xff] }
  0x74   : > { %8018 = vmatmul.mubr.bf16.gmra.mxu0 %v10776_v36 }
  0x75   : > { %8110 = vmatmul.mubr.bf16.gmra.mxu1 %v418_v54  ;;  %8021 = vmatprep.mubr.msk.bf16.mxu0 %vm10209_vm0, %v15327_v1  ;;  %v491_v54 = vsel %vm482_vm1, %v472_v47, %v473_v24  ;;  %v15452_v47 = vrot.slane %v10318_v15, 6  ;;  %v10083_v15 = vld [vmem:[%s10306_s24 + $0x120] sm:$0xff] }
  0x76   : > { %8113 = vmatprep.mubr.msk.bf16.mxu1 %vm10209_vm0, %v15327_v1  ;;  %v10950_v43 = vpack.c.bf16 %v491_v54, %v492_v40  ;;  %v10084_v40 = vld [vmem:[%s10306_s24 + $0x128] sm:$0xff] }
  0x77   : > { %v373_v24 = vsel %vm370_vm2, %v364_v11, %v15452_v47  ;;  %v11145_v11 = vld [vmem:[%s10306_s24 + $0x30] sm:$0xff]  ;;  %v11167_v47 = vld [vmem:[%s10306_s24 + $0x48] sm:$0xff] }
  0x78   : > { %v427_v54 = vpack.c.bf16 %v373_v24, %v374_v49 }
  0x7c   : > { %8022 = vmatmul.mubr.bf16.gmra.mxu0 %v10807_v44 }
  0x7d   : > { %8114 = vmatmul.mubr.bf16.gmra.mxu1 %v419_v5  ;;  %8025 = vmatprep.mubr.msk.bf16.mxu0 %vm10209_vm0, %v15327_v1  ;;  %v424_v5 = vpack.c.bf16 %v379_v30, %v380_v59  ;;  %v11027_v30 = vpack.c.bf16 %v10084_v40, %v10083_v15  ;;  %v9667_v59 = vld [vmem:[%s15307_s2 + $0x138] sm:$0xff]  }
  0x7e   : > { %8117 = vmatprep.mubr.msk.bf16.mxu1 %vm10209_vm0, %v15327_v1 }
  0x7f   : > { %15453 = vst [vmem:[#allocation3_spill] sm:$0xff] %v11027_v30 }
  0x84   : > { %8026 = vmatmul.mubr.bf16.gmra.mxu0 %v10840_v14 }
  0x85   : > { %8118 = vmatmul.mubr.bf16.gmra.mxu1 %v420_v27  ;;  %8029 = vmatprep.mubr.msk.bf16.mxu0 %vm10209_vm0, %v15327_v1  ;;  %v10970_v27 = vld [vmem:[%s10306_s24 + $0x100] sm:$0xff] }
  0x86   : > { %8121 = vmatprep.mubr.msk.bf16.mxu1 %vm10209_vm0, %v15327_v1  ;;  %v476_v26 = vrot.slane %v10970_v27, 7  ;;  %v362_v9 = vrot.slane %v10970_v27, 6 }
  0x88   : > { %v488_v55 = vsel %vm482_vm1, %v475_v41, %v476_v26  ;;  %v376_v28 = vsel %vm370_vm2, %v361_v25, %v362_v9  ;;  %v9675_v41 = vld [vmem:[%s15307_s2 + $0x170] sm:$0xff]  }
  0x8c   : > { %8030 = vmatmul.mubr.bf16.gmra.mxu0 %v10871_v45 }
  0x8d   : > { %8122 = vmatmul.mubr.bf16.gmra.mxu1 %v421_v23  ;;  %8033 = vmatprep.mubr.msk.bf16.mxu0 %vm10209_vm0, %v15327_v1  ;;  %v477_v23 = vrot.slane %v10973_v51, 7 }
  0x8e   : > { %8125 = vmatprep.mubr.msk.bf16.mxu1 %vm10209_vm0, %v15327_v1 }
  0x8f   : > { %v487_v7 = vsel %vm482_vm1, %v476_v26, %v477_v23 }
  0x90   : > { %v10997_v0 = vpack.c.bf16 %v487_v7, %v488_v55  ;;  %v9680_v7 = vld [vmem:[%s15307_s2 + $0x150] sm:$0xff]   ;;  %v11113_v55 = vld [vmem:[%s10306_s24 + $0x20] sm:$0xff] }
  0x94   : > { %8034 = vmatmul.mubr.bf16.gmra.mxu0 %v10898_v3 }
  0x95   : > { %8126 = vmatmul.mubr.bf16.gmra.mxu1 %v422_v56  ;;  %8037 = vmatprep.mubr.msk.bf16.mxu0 %vm10209_vm0, %v15327_v1  ;;  %v375_v56 = vsel %vm370_vm2, %v362_v9, %v363_v63  ;;  %v9679_v9 = vld [vmem:[%s15307_s2 + $0x158] sm:$0xff]   ;;  %v9672_v63 = vld [vmem:[%s15307_s2 + $0x110] sm:$0xff]  }
  0x96   : > { %8129 = vmatprep.mubr.msk.bf16.mxu1 %vm10209_vm0, %v15327_v1  ;;  %v426_v32 = vpack.c.bf16 %v375_v56, %v376_v28  ;;  %v9673_v28 = vld [vmem:[%s15307_s2 + $0x108] sm:$0xff]  }
  0x9c   : > { %8038 = vmatmul.mubr.bf16.gmra.mxu0 %v10925_v13 }
  0x9d   : > { %8130 = vmatmul.mubr.bf16.gmra.mxu1 %v423_v29  ;;  %8041 = vmatprep.mubr.msk.bf16.mxu0 %vm10209_vm0, %v15327_v1  ;;  %v486_v29 = vsel %vm482_vm1, %v477_v23, %v478_v18  ;;  %v9671_v23 = vld [vmem:[%s15307_s2 + $0x118] sm:$0xff]   ;;  %v9677_v18 = vld [vmem:[%s15307_s2 + $0x100] sm:$0xff]  }
  0x9e   : > { %8133 = vmatprep.mubr.msk.bf16.mxu1 %vm10209_vm0, %v15327_v1  ;;  %v11018_v58 = vpack.c.bf16 %v485_v38, %v486_v29  ;;  %v11152_v38 = vpack.c.bf16 %v11148_v20, %v11145_v11  ;;  %v11164_v29 = vld [vmem:[%s10306_s24 + $0x40] sm:$0xff] }
  0x9f   : > { %v11171_v24 = vpack.c.bf16 %v11167_v47, %v11164_v29 }
  0xa4   : > { %8042 = vmatmul.mubr.bf16.gmra.mxu0 %v10950_v43 }
  0xa5   : > { %8134 = vmatmul.mubr.bf16.gmra.mxu1 %v424_v5  ;;  %8045 = vmatprep.mubr.msk.bf16.mxu0 %vm10209_vm0, %v15327_v1  ;;  %v9674_v5 = vld [vmem:[%s15307_s2 + $0x178] sm:$0xff]  }
  0xa6   : > { %8137 = vmatprep.mubr.msk.bf16.mxu1 %vm10209_vm0, %v15327_v1 }
  0xac   : > { %8046 = vmatmul.mubr.bf16.gmra.mxu0 %v10975_v60 }
  0xad   : > { %8138 = vmatmul.mubr.bf16.gmra.mxu1 %v425_v42  ;;  %8049 = vmatprep.mubr.msk.bf16.mxu0 %vm10209_vm0, %v15327_v1  ;;  %v11081_v42 = vld [vmem:[%s10306_s24 + $0x10] sm:$0xff] }
  0xae   : > { %8141 = vmatprep.mubr.msk.bf16.mxu1 %vm10209_vm0, %v15327_v1 }
  0xb4   : > { %8050 = vmatmul.mubr.bf16.gmra.mxu0 %v10997_v0 }
  0xb5   : > { %8142 = vmatmul.mubr.bf16.gmra.mxu1 %v426_v32  ;;  %8053 = vmatprep.mubr.msk.bf16.mxu0 %vm10209_vm0, %v15327_v1  ;;  %v9681_v32 = vld [vmem:[%s15307_s2 + $0x148] sm:$0xff]  }
  0xb6   : > { %8145 = vmatprep.mubr.msk.bf16.mxu1 %vm10209_vm0, %v15327_v1 }
  0xbc   : > { %8054 = vmatmul.mubr.bf16.gmra.mxu0 %v11018_v58 }
  0xbd   : > { %8146 = vmatmul.mubr.bf16.gmra.mxu1 %v427_v54  ;;  %8165 = vmatprep.mubr.msk.bf16.mxu0 %vm10209_vm0, %v15327_v1 }
  0xbe   : > { %8257 = vmatprep.mubr.msk.bf16.mxu1 %vm10209_vm0, %v15327_v1 }
  0xc4   : > { %8166 = vmatmul.mubr.bf16.vlgmr.msra.gmra.mxu0 %v11027_v30 }
  0xc5   : > { %8334 = vmatpush3.bf16.msra.mxu0 %v9667_v59  ;;  %8258 = vmatmul.mubr.bf16.vlgmr.msra.gmra.mxu1 %v10385_v48  ;;  %v11052_v48 = vld [vmem:[%s10306_s24 + $0x8] sm:$0xff] }
  0xc6   : > { %8169 = vmatprep.mubr.msk.bf16.mxu0 %vm10209_vm0, %v15327_v1  ;;  %8261 = vmatprep.mubr.msk.bf16.mxu1 %vm10209_vm0, %v15327_v1  ;;  %v11056_v25 = vpack.c.bf16 %v11052_v48, %v11049_v21 }
  0xc7   : > { %8335 = vmatprep.subr.bf16.mxu0 %v15327_v1  ;;  %8426 = vmatpush3.bf16.msra.mxu1 %v9674_v5  ;;  %v11182_v5 = vld [vmem:[%s10306_s24 + $0x50] sm:$0xff] }
  0xc8   : > { %15455 = vst [vmem:[#allocation5_spill] sm:$0xff] %v11056_v25  ;;  %8427 = vmatprep.subr.bf16.mxu1 %v15327_v1 }
  0xc9   : > { %8336 = vmatpush3.bf16.msra.mxu0 %v9668_v50  ;;  %v11185_v50 = vld [vmem:[%s10306_s24 + $0x58] sm:$0xff] }
  0xca   : > { %8337 = vmatprep.subr.bf16.mxu0 %v15327_v1 }
  0xcb   : > { %8428 = vmatpush3.bf16.msra.mxu1 %v9675_v41  ;;  %v11189_v41 = vpack.c.bf16 %v11185_v50, %v11182_v5 }
  0xcc   : > { %8170 = vmatmul.mubr.bf16.gmra.mxu0 %v11056_v25  ;;  %8429 = vmatprep.subr.bf16.mxu1 %v15327_v1 }
  0xcd   : > { %8262 = vmatmul.mubr.bf16.gmra.mxu1 %v10439_v8  ;;  %8173 = vmatprep.mubr.msk.bf16.mxu0 %vm10209_vm0, %v15327_v1  ;;  %v11084_v8 = vld [vmem:[%s10306_s24 + $0x18] sm:$0xff] }
  0xce   : > { %8265 = vmatprep.mubr.msk.bf16.mxu1 %vm10209_vm0, %v15327_v1  ;;  %8338 = vmatpush3.bf16.msra.mxu0 %v9669_v22  ;;  %v11088_v26 = vpack.c.bf16 %v11084_v8, %v11081_v42 }
  0xcf   : > { %8339 = vmatprep.subr.bf16.mxu0 %v15327_v1  ;;  %8430 = vmatpush3.bf16.msra.mxu1 %v9676_v62 }
  0xd0   : > { %8431 = vmatprep.subr.bf16.mxu1 %v15327_v1 }
  0xd2   : > { %8340 = vmatpush3.bf16.msra.mxu0 %v9670_v19 }
  0xd3   : > { %8341 = vmatprep.subr.bf16.mxu0 %v15327_v1  ;;  %8432 = vmatpush3.bf16.msra.mxu1 %v9678_v31 }
  0xd4   : > { %8174 = vmatmul.mubr.bf16.gmra.mxu0 %v11088_v26  ;;  %8433 = vmatprep.subr.bf16.mxu1 %v15327_v1 }
  0xd5   : > { %8266 = vmatmul.mubr.bf16.gmra.mxu1 %v10527_v52  ;;  %8177 = vmatprep.mubr.msk.bf16.mxu0 %vm10209_vm0, %v15327_v1  ;;  %v11116_v52 = vld [vmem:[%s10306_s24 + $0x28] sm:$0xff] }
  0xd6   : > { %8269 = vmatprep.mubr.msk.bf16.mxu1 %vm10209_vm0, %v15327_v1  ;;  %8342 = vmatpush3.bf16.msra.mxu0 %v9671_v23  ;;  %v11120_v56 = vpack.c.bf16 %v11116_v52, %v11113_v55 }
  0xd7   : > { %8343 = vmatprep.subr.bf16.mxu0 %v15327_v1  ;;  %8434 = vmatpush3.bf16.msra.mxu1 %v9679_v9 }
  0xd8   : > { %8435 = vmatprep.subr.bf16.mxu1 %v15327_v1 }
  0xda   : > { %8344 = vmatpush3.bf16.msra.mxu0 %v9672_v63 }
  0xdb   : > { %8345 = vmatprep.subr.bf16.mxu0 %v15327_v1  ;;  %8436 = vmatpush3.bf16.msra.mxu1 %v9680_v7 }
  0xdc   : > { %8178 = vmatmul.mubr.bf16.gmra.mxu0 %v11120_v56  ;;  %8437 = vmatprep.subr.bf16.mxu1 %v15327_v1 }
  0xdd   : > { %8270 = vmatmul.mubr.bf16.gmra.mxu1 %v10601_v61  ;;  %8181 = vmatprep.mubr.msk.bf16.mxu0 %vm10209_vm0, %v15327_v1  ;;  %v9682_v61 = vld [vmem:[%s15307_s2 + $0x140] sm:$0xff]  }
  0xde   : > { %8273 = vmatprep.mubr.msk.bf16.mxu1 %vm10209_vm0, %v15327_v1  ;;  %8346 = vmatpush3.bf16.msra.mxu0 %v9673_v28 }
  0xdf   : > { %8347 = vmatprep.subr.bf16.mxu0 %v15327_v1  ;;  %8438 = vmatpush3.bf16.msra.mxu1 %v9681_v32  ;;  %v11202_v32 = vld [vmem:[%s10306_s24 + $0x60] sm:$0xff] }
  0xe0   : > { %8439 = vmatprep.subr.bf16.mxu1 %v15327_v1 }
  0xe2   : > { %8348 = vmatpush3.bf16.msra.mxu0 %v9677_v18  ;;  %v11205_v18 = vld [vmem:[%s10306_s24 + $0x68] sm:$0xff] }
  0xe3   : > { %8440 = vmatpush3.bf16.msra.mxu1 %v9682_v61  ;;  %8517 = vmatprep.subr.bf16.mxu0 %v15327_v1  ;;  %v11209_v61 = vpack.c.bf16 %v11205_v18, %v11202_v32 }
  0xe4   : > { %8182 = vmatmul.mubr.bf16.gmra.mxu0 %v11152_v38  ;;  %8609 = vmatprep.subr.bf16.mxu1 %v15327_v1 }
  0xe5   : > { %8274 = vmatmul.mubr.bf16.gmra.mxu1 %v10641_v16  ;;  %8185 = vmatprep.mubr.msk.bf16.mxu0 %vm10209_vm0, %v15327_v1 }
  0xe6   : > { %8277 = vmatprep.mubr.msk.bf16.mxu1 %vm10209_vm0, %v15327_v1 }
  0xec   : > { %v639_v49 = vpop.f32.mrf.mxu0  ;;  %8186 = vmatmul.mubr.bf16.gmra.mxu0 %v11171_v24 }
  0xed   : > { %v872_v16 = vpop.f32.mrf.mxu1  ;;  %8278 = vmatmul.mubr.bf16.gmra.mxu1 %v10675_v33  ;;  %8189 = vmatprep.mubr.msk.bf16.mxu0 %vm10209_vm0, %v15327_v1 }
  0xee   : > { %v11177_v54 = vadd.f32 %v872_v16, %v639_v49  ;;  %v7983_v15 = vpop.f32.mrf.mxu0  ;;  %8281 = vmatprep.mubr.msk.bf16.mxu1 %vm10209_vm0, %v15327_v1 }
  0xef   : > { %v8075_v40 = vpop.f32.mrf.mxu1 }
  0xf0   : > { %v642_v59 = vpop.f32.mrf.mxu0 }
  0xf1   : > { %v875_v33 = vpop.f32.mrf.mxu1 }
  0xf2   : > { %v11191_v22 = vadd.f32 %v875_v33, %v642_v59  ;;  %v7984_v62 = vpop.f32.mrf.mxu0 }
  0xf3   : > { %v8076_v19 = vpop.f32.mrf.mxu1 }
  0xf4   : > { %v647_v31 = vpop.f32.mrf.mxu0  ;;  %8190 = vmatmul.mubr.bf16.gmra.mxu0 %v11189_v41 }
  0xf5   : > { %v880_v23 = vpop.f32.mrf.mxu1  ;;  %8282 = vmatmul.mubr.bf16.gmra.mxu1 %v10706_v57  ;;  %8193 = vmatprep.mubr.msk.bf16.mxu0 %vm10209_vm0, %v15327_v1 }
  0xf6   : > { %v11197_v9 = vadd.f32 %v880_v23, %v647_v31  ;;  %v7987_v63 = vpop.f32.mrf.mxu0  ;;  %8285 = vmatprep.mubr.msk.bf16.mxu1 %vm10209_vm0, %v15327_v1  ;;  %v11222_v23 = vld [vmem:[%s10306_s24 + $0x70] sm:$0xff] }
  0xf7   : > { %v8079_v7 = vpop.f32.mrf.mxu1  ;;  %v11225_v63 = vld [vmem:[%s10306_s24 + $0x78] sm:$0xff] }
  0xf8   : > { %v650_v28 = vpop.f32.mrf.mxu0  ;;  %v11229_v7 = vpack.c.bf16 %v11225_v63, %v11222_v23 }
  0xf9   : > { %v883_v57 = vpop.f32.mrf.mxu1 }
  0xfa   : > { %v11211_v49 = vadd.f32 %v883_v57, %v650_v28  ;;  %v7988_v16 = vpop.f32.mrf.mxu0 }
  0xfb   : > { %v8080_v15 = vpop.f32.mrf.mxu1 }
  0xfc   : > { %v655_v40 = vpop.f32.mrf.mxu0  ;;  %8194 = vmatmul.mubr.bf16.gmra.mxu0 %v11209_v61 }
  0xfd   : > { %v888_v59 = vpop.f32.mrf.mxu1  ;;  %8286 = vmatmul.mubr.bf16.gmra.mxu1 %v10745_v53  ;;  %8197 = vmatprep.mubr.msk.bf16.mxu0 %vm10209_vm0, %v15327_v1 }
  0xfe   : > { %v11217_v33 = vadd.f32 %v888_v59, %v655_v40  ;;  %v7991_v62 = vpop.f32.mrf.mxu0  ;;  %8289 = vmatprep.mubr.msk.bf16.mxu1 %vm10209_vm0, %v15327_v1 }
  0xff   : > { %v8083_v19 = vpop.f32.mrf.mxu1 }
 0x100   : > { %15456 = vst [vmem:[#allocation6_spill] sm:$0xff] %v11217_v33  ;;  %v658_v31 = vpop.f32.mrf.mxu0 }
 0x101   : > { %v891_v53 = vpop.f32.mrf.mxu1 }
 0x102   : > { %v11231_v28 = vadd.f32 %v891_v53, %v658_v31  ;;  %v7992_v57 = vpop.f32.mrf.mxu0  ;;  %v11242_v53 = vld [vmem:[%s10306_s24 + $0x80] sm:$0xff] }
 0x103   : > { %v8084_v16 = vpop.f32.mrf.mxu1  ;;  %v11245_v57 = vld [vmem:[%s10306_s24 + $0x88] sm:$0xff] }
 0x104   : > { %15457 = vst [vmem:[#allocation7_spill] sm:$0xff] %v11231_v28  ;;  %v663_v15 = vpop.f32.mrf.mxu0  ;;  %8198 = vmatmul.mubr.bf16.gmra.mxu0 %v11229_v7  ;;  %v11249_v16 = vpack.c.bf16 %v11245_v57, %v11242_v53 }
 0x105   : > { %v896_v40 = vpop.f32.mrf.mxu1  ;;  %8290 = vmatmul.mubr.bf16.gmra.mxu1 %v10776_v36  ;;  %8201 = vmatprep.mubr.msk.bf16.mxu0 %vm10209_vm0, %v15327_v1 }
 0x106   : > { %v11237_v59 = vadd.f32 %v896_v40, %v663_v15  ;;  %v7995_v62 = vpop.f32.mrf.mxu0  ;;  %8293 = vmatprep.mubr.msk.bf16.mxu1 %vm10209_vm0, %v15327_v1  ;;  %15459 = vst [vmem:[#allocation9_spill] sm:$0xff] %v11249_v16 }
 0x107   : > { %v8087_v19 = vpop.f32.mrf.mxu1 }
 0x108   : > { %15458 = vst [vmem:[#allocation8_spill] sm:$0xff] %v11237_v59  ;;  %v666_v31 = vpop.f32.mrf.mxu0 }
 0x109   : > { %v899_v36 = vpop.f32.mrf.mxu1 }
 0x10a   : > { %v11251_v30 = vadd.f32 %v899_v36, %v666_v31  ;;  %v7996_v15 = vpop.f32.mrf.mxu0  ;;  %v11262_v36 = vld [vmem:[%s10306_s24 + $0x90] sm:$0xff] }
 0x10b   : > { %v8088_v40 = vpop.f32.mrf.mxu1  ;;  %v11265_v15 = vld [vmem:[%s10306_s24 + $0x98] sm:$0xff] }
 0x10c   : > { %15460 = vst [vmem:[#allocation10_spill] sm:$0xff] %v11251_v30  ;;  %v671_v62 = vpop.f32.mrf.mxu0  ;;  %8202 = vmatmul.mubr.bf16.gmra.mxu0 %v11249_v16  ;;  %15462 = vst [vmem:[#allocation12_spill] sm:$0xff] %v11265_v15  ;;  %v11269_v40 = vpack.c.bf16 %v11265_v15, %v11262_v36 }
 0x10d   : > { %v904_v19 = vpop.f32.mrf.mxu1  ;;  %8294 = vmatmul.mubr.bf16.gmra.mxu1 %v10807_v44  ;;  %8205 = vmatprep.mubr.msk.bf16.mxu0 %vm10209_vm0, %v15327_v1 }
 0x10e   : > { %v11257_v59 = vadd.f32 %v904_v19, %v671_v62  ;;  %v7999_v28 = vpop.f32.mrf.mxu0  ;;  %8297 = vmatprep.mubr.msk.bf16.mxu1 %vm10209_vm0, %v15327_v1  ;;  %15463 = vst [vmem:[#allocation13_spill] sm:$0xff] %v11269_v40 }
 0x10f   : > { %v8091_v33 = vpop.f32.mrf.mxu1 }
 0x110   : > { %15461 = vst [vmem:[#allocation11_spill] sm:$0xff] %v11257_v59  ;;  %v674_v31 = vpop.f32.mrf.mxu0 }
 0x111   : > { %v907_v44 = vpop.f32.mrf.mxu1 }
 0x112   : > { %v11271_v30 = vadd.f32 %v907_v44, %v674_v31  ;;  %v8000_v62 = vpop.f32.mrf.mxu0  ;;  %v11282_v44 = vld [vmem:[%s10306_s24 + $0xa0] sm:$0xff] }
 0x113   : > { %v8092_v28 = vpop.f32.mrf.mxu1  ;;  %v11285_v62 = vld [vmem:[%s10306_s24 + $0xa8] sm:$0xff] }
 0x114   : > { %15464 = vst [vmem:[#allocation14_spill] sm:$0xff] %v11271_v30  ;;  %v679_v19 = vpop.f32.mrf.mxu0  ;;  %8206 = vmatmul.mubr.bf16.gmra.mxu0 %v11269_v40  ;;  %15466 = vst [vmem:[#allocation16_spill] sm:$0xff] %v11285_v62  ;;  %v11289_v28 = vpack.c.bf16 %v11285_v62, %v11282_v44 }
 0x115   : > { %v912_v33 = vpop.f32.mrf.mxu1  ;;  %8298 = vmatmul.mubr.bf16.gmra.mxu1 %v10840_v14  ;;  %8209 = vmatprep.mubr.msk.bf16.mxu0 %vm10209_vm0, %v15327_v1 }
 0x116   : > { %v11277_v59 = vadd.f32 %v912_v33, %v679_v19  ;;  %v8003_v16 = vpop.f32.mrf.mxu0  ;;  %8301 = vmatprep.mubr.msk.bf16.mxu1 %vm10209_vm0, %v15327_v1  ;;  %15467 = vst [vmem:[#allocation17_spill] sm:$0xff] %v11289_v28 }
 0x117   : > { %v8095_v15 = vpop.f32.mrf.mxu1 }
 0x118   : > { %15465 = vst [vmem:[#allocation15_spill] sm:$0xff] %v11277_v59  ;;  %v682_v31 = vpop.f32.mrf.mxu0 }
 0x119   : > { %v915_v14 = vpop.f32.mrf.mxu1 }
 0x11a   : > { %v11291_v30 = vadd.f32 %v915_v14, %v682_v31  ;;  %v8004_v19 = vpop.f32.mrf.mxu0  ;;  %v11302_v14 = vld [vmem:[%s10306_s24 + $0xb0] sm:$0xff] }
 0x11b   : > { %v8096_v16 = vpop.f32.mrf.mxu1  ;;  %v11305_v19 = vld [vmem:[%s10306_s24 + $0xb8] sm:$0xff] }
 0x11c   : > { %15468 = vst [vmem:[#allocation18_spill] sm:$0xff] %v11291_v30  ;;  %v687_v33 = vpop.f32.mrf.mxu0  ;;  %8210 = vmatmul.mubr.bf16.gmra.mxu0 %v11289_v28  ;;  %15470 = vst [vmem:[#allocation20_spill] sm:$0xff] %v11305_v19  ;;  %v11309_v16 = vpack.c.bf16 %v11305_v19, %v11302_v14 }
 0x11d   : > { %v920_v15 = vpop.f32.mrf.mxu1  ;;  %8302 = vmatmul.mubr.bf16.gmra.mxu1 %v10871_v45  ;;  %8213 = vmatprep.mubr.msk.bf16.mxu0 %vm10209_vm0, %v15327_v1 }
 0x11e   : > { %v11297_v59 = vadd.f32 %v920_v15, %v687_v33  ;;  %v8007_v40 = vpop.f32.mrf.mxu0  ;;  %8305 = vmatprep.mubr.msk.bf16.mxu1 %vm10209_vm0, %v15327_v1  ;;  %15471 = vst [vmem:[#allocation21_spill] sm:$0xff] %v11309_v16 }
 0x11f   : > { %v8099_v62 = vpop.f32.mrf.mxu1 }
 0x120   : > { %15469 = vst [vmem:[#allocation19_spill] sm:$0xff] %v11297_v59  ;;  %v690_v31 = vpop.f32.mrf.mxu0 }
 0x121   : > { %v923_v45 = vpop.f32.mrf.mxu1 }
 0x122   : > { %v11311_v30 = vadd.f32 %v923_v45, %v690_v31  ;;  %v8008_v28 = vpop.f32.mrf.mxu0 }
 0x123   : > { %v8100_v33 = vpop.f32.mrf.mxu1  ;;  %v11323_v28 = vpack.c.bf16 %v10712_v39, %v10709_v35 }
 0x124   : > { %15472 = vst [vmem:[#allocation22_spill] sm:$0xff] %v11311_v30  ;;  %v695_v15 = vpop.f32.mrf.mxu0  ;;  %8214 = vmatmul.mubr.bf16.gmra.mxu0 %v11309_v16 }
 0x125   : > { %v928_v40 = vpop.f32.mrf.mxu1  ;;  %8306 = vmatmul.mubr.bf16.gmra.mxu1 %v10898_v3  ;;  %8217 = vmatprep.mubr.msk.bf16.mxu0 %vm10209_vm0, %v15327_v1 }
 0x126   : > { %v11317_v62 = vadd.f32 %v928_v40, %v695_v15  ;;  %v8011_v59 = vpop.f32.mrf.mxu0  ;;  %8309 = vmatprep.mubr.msk.bf16.mxu1 %vm10209_vm0, %v15327_v1 }
 0x127   : > { %v8103_v19 = vpop.f32.mrf.mxu1 }
 0x128   : > { %v698_v31 = vpop.f32.mrf.mxu0 }
 0x129   : > { %v931_v45 = vpop.f32.mrf.mxu1 }
 0x12a   : > { %v11325_v33 = vadd.f32 %v931_v45, %v698_v31  ;;  %v8012_v30 = vpop.f32.mrf.mxu0 }
 0x12b   : > { %v8104_v3 = vpop.f32.mrf.mxu1  ;;  %v11337_v30 = vpack.c.bf16 %v10896_v10, %v10893_v2 }
 0x12c   : > { %v703_v16 = vpop.f32.mrf.mxu0  ;;  %8218 = vmatmul.mubr.bf16.gmra.mxu0 %v11323_v28 }
 0x12d   : > { %v936_v15 = vpop.f32.mrf.mxu1  ;;  %8310 = vmatmul.mubr.bf16.gmra.mxu1 %v10925_v13  ;;  %8221 = vmatprep.mubr.msk.bf16.mxu0 %vm10209_vm0, %v15327_v1 }
 0x12e   : > { %v11331_v59 = vadd.f32 %v936_v15, %v703_v16  ;;  %v8015_v19 = vpop.f32.mrf.mxu0  ;;  %8313 = vmatprep.mubr.msk.bf16.mxu1 %vm10209_vm0, %v15327_v1 }
 0x12f   : > { %v8107_v35 = vpop.f32.mrf.mxu1 }
 0x130   : > { %v706_v39 = vpop.f32.mrf.mxu0  ;;  %v11351_v35 = vpack.c.bf16 %v10923_v46, %v10920_v17 }
 0x131   : > { %v939_v40 = vpop.f32.mrf.mxu1 }
 0x132   : > { %v11339_v31 = vadd.f32 %v939_v40, %v706_v39  ;;  %v8016_v45 = vpop.f32.mrf.mxu0 }
 0x133   : > { %v8108_v13 = vpop.f32.mrf.mxu1 }
 0x134   : > { %v711_v3 = vpop.f32.mrf.mxu0  ;;  %8222 = vmatmul.mubr.bf16.gmra.mxu0 %v11337_v30 }
 0x135   : > { %v944_v16 = vpop.f32.mrf.mxu1  ;;  %8314 = vmatmul.mubr.bf16.gmra.mxu1 %v10950_v43  ;;  %8225 = vmatprep.mubr.msk.bf16.mxu0 %vm10209_vm0, %v15327_v1 }
 0x136   : > { %v11345_v15 = vadd.f32 %v944_v16, %v711_v3  ;;  %v8019_v19 = vpop.f32.mrf.mxu0  ;;  %8317 = vmatprep.mubr.msk.bf16.mxu1 %vm10209_vm0, %v15327_v1 }
 0x137   : > { %v8111_v2 = vpop.f32.mrf.mxu1 }
 0x138   : > { %v714_v10 = vpop.f32.mrf.mxu0  ;;  %v11365_v2 = vpack.c.bf16 %v10948_v6, %v10945_v4 }
 0x139   : > { %v947_v39 = vpop.f32.mrf.mxu1 }
 0x13a   : > { %v11353_v40 = vadd.f32 %v947_v39, %v714_v10  ;;  %v8020_v45 = vpop.f32.mrf.mxu0 }
 0x13b   : > { %v8112_v43 = vpop.f32.mrf.mxu1 }
 0x13c   : > { %v719_v13 = vpop.f32.mrf.mxu0  ;;  %8226 = vmatmul.mubr.bf16.gmra.mxu0 %v11351_v35 }
 0x13d   : > { %v952_v3 = vpop.f32.mrf.mxu1  ;;  %8318 = vmatmul.mubr.bf16.gmra.mxu1 %v10975_v60  ;;  %8229 = vmatprep.mubr.msk.bf16.mxu0 %vm10209_vm0, %v15327_v1 }
 0x13e   : > { %v11359_v16 = vadd.f32 %v952_v3, %v719_v13  ;;  %v8023_v19 = vpop.f32.mrf.mxu0  ;;  %8321 = vmatprep.mubr.msk.bf16.mxu1 %vm10209_vm0, %v15327_v1 }
 0x13f   : > { %v8115_v17 = vpop.f32.mrf.mxu1 }
 0x140   : > { %v722_v46 = vpop.f32.mrf.mxu0  ;;  %v11379_v17 = vpack.c.bf16 %v10973_v51, %v10970_v27 }
 0x141   : > { %v955_v10 = vpop.f32.mrf.mxu1 }
 0x142   : > { %v11367_v39 = vadd.f32 %v955_v10, %v722_v46  ;;  %v8024_v45 = vpop.f32.mrf.mxu0 }
 0x143   : > { %v8116_v60 = vpop.f32.mrf.mxu1 }
 0x144   : > { %v727_v43 = vpop.f32.mrf.mxu0  ;;  %8230 = vmatmul.mubr.bf16.gmra.mxu0 %v11365_v2 }
 0x145   : > { %v960_v13 = vpop.f32.mrf.mxu1  ;;  %8322 = vmatmul.mubr.bf16.gmra.mxu1 %v10997_v0  ;;  %8233 = vmatprep.mubr.msk.bf16.mxu0 %vm10209_vm0, %v15327_v1 }
 0x146   : > { %v11373_v3 = vadd.f32 %v960_v13, %v727_v43  ;;  %v8027_v19 = vpop.f32.mrf.mxu0  ;;  %8325 = vmatprep.mubr.msk.bf16.mxu1 %vm10209_vm0, %v15327_v1 }
 0x147   : > { %v8119_v4 = vpop.f32.mrf.mxu1 }
 0x148   : > { %v730_v6 = vpop.f32.mrf.mxu0  ;;  %v11392_v4 = vld [vmem:[%s10306_s24 + $0x118] sm:$0xff] }
 0x149   : > { %v963_v46 = vpop.f32.mrf.mxu1 }
 0x14a   : > { %v11381_v10 = vadd.f32 %v963_v46, %v730_v6  ;;  %v8028_v0 = vpop.f32.mrf.mxu0  ;;  %v11396_v6 = vpack.c.bf16 %v11392_v4, %v10995_v37  ;;  %v15475_v37 = vmov 0.0  }
 0x14b   : > { %v8120_v45 = vpop.f32.mrf.mxu1 }
 0x14c   : > { %v735_v60 = vpop.f32.mrf.mxu0  ;;  %8234 = vmatmul.mubr.bf16.gmra.mxu0 %v11379_v17  ;;  %v15330_v45 = vrot.slane %v11049_v21, 1 }
 0x14d   : > { %v968_v43 = vpop.f32.mrf.mxu1  ;;  %8326 = vmatmul.mubr.bf16.gmra.mxu1 %v11018_v58  ;;  %8237 = vmatprep.mubr.msk.bf16.mxu0 %vm10209_vm0, %v15327_v1 }
 0x14e   : > { %v11387_v13 = vadd.f32 %v968_v43, %v735_v60  ;;  %v8031_v19 = vpop.f32.mrf.mxu0  ;;  %8329 = vmatprep.mubr.msk.bf16.mxu1 %vm10209_vm0, %v15327_v1  ;;  %v1907_v60 = vrot.slane %v11052_v48, 1  ;;  %v1908_v43 = vrot.slane %v11081_v42, 1 }
 0x14f   : > { %v8123_v27 = vpop.f32.mrf.mxu1 }
 0x150   : > { %15473 = vst [vmem:[#allocation23_spill] sm:$0xff] %v11387_v13  ;;  %v738_v51 = vpop.f32.mrf.mxu0  ;;  %v1980_v48 = vsel %vm1944_vm3, %v1907_v60, %v1908_v43  ;;  %v1981_v42 = vsel %vm1944_vm3, %v15330_v45, %v1907_v60  ;;  %v1910_v13 = vrot.slane %v11113_v55, 1  ;;  %v9690_v60 = vld [vmem:[%s15307_s2 + $0x1f8] sm:$0xff]  }
 0x151   : > { %v971_v46 = vpop.f32.mrf.mxu1 }
 0x152   : > { %v11398_v0 = vadd.f32 %v971_v46, %v738_v51  ;;  %v8032_v58 = vpop.f32.mrf.mxu0 }
 0x153   : > { %v8124_v19 = vpop.f32.mrf.mxu1 }
 0x154   : > { %15474 = vst [vmem:[#allocation24_spill] sm:$0xff] %v11398_v0  ;;  %v743_v27 = vpop.f32.mrf.mxu0  ;;  %8238 = vmatmul.mubr.bf16.gmra.mxu0 %v11396_v6  ;;  %v1909_v0 = vrot.slane %v11084_v8, 1 }
 0x155   : > { %v976_v1 = vpop.f32.mrf.mxu1  ;;  %8330 = vmatmul.mubr.bf16.gmra.mxu1 %v10357_v34  ;;  %8349 = vmatprep.mubr.msk.bf16.mxu0 %vm10209_vm0, %v15475_v37 }
 0x156   : > { %v11408_v51 = vadd.f32 %v976_v1, %v743_v27  ;;  %v8035_v46 = vpop.f32.mrf.mxu0  ;;  %8441 = vmatprep.mubr.msk.bf16.mxu1 %vm10209_vm0, %v15475_v37  ;;  %v9683_v1 = vld [vmem:[%s15307_s2 + $0x1b8] sm:$0xff]   ;;  %v11421_v27 = vpack.c.bf16 %v1980_v48, %v1981_v42  ;;  %v1979_v55 = vsel %vm1944_vm3, %v1908_v43, %v1909_v0  ;;  %v1912_v43 = vrot.slane %v11145_v11, 1 }
 0x157   : > { %v8127_v58 = vpop.f32.mrf.mxu1 }
 0x158   : > { %15476 = vst [vmem:[#allocation25_spill] sm:$0xff] %v11408_v51  ;;  %v746_v19 = vpop.f32.mrf.mxu0  ;;  %15477 = vst [vmem:[#allocation26_spill] sm:$0xff] %v11421_v27 }
 0x159   : > { %v979_v34 = vpop.f32.mrf.mxu1 }
 0x15a   : > { %v11423_v46 = vadd.f32 %v979_v34, %v746_v19  ;;  %v8036_v51 = vpop.f32.mrf.mxu0 }
 0x15b   : > { %v8128_v21 = vpop.f32.mrf.mxu1  ;;  %v9684_v51 = vld [vmem:[%s15307_s2 + $0x1b0] sm:$0xff]  }
 0x15c   : > { %v751_v58 = vpop.f32.mrf.mxu0  ;;  %8350 = vmatmul.mubr.bf16.vlgmr.msra.gmra.mxu0 %v11056_v25  ;;  %v1978_v21 = vsel %vm1944_vm3, %v1909_v0, %v1910_v13  ;;  %v1911_v0 = vrot.slane %v11116_v52, 1 }
 0x15d   : > { %v984_v45 = vpop.f32.mrf.mxu1  ;;  %8518 = vmatpush3.bf16.msra.mxu0 %v9683_v1  ;;  %8442 = vmatmul.mubr.bf16.vlgmr.msra.gmra.mxu1 %v11421_v27  ;;  %v11450_v1 = vpack.c.bf16 %v1978_v21, %v1979_v55  ;;  %v9692_v21 = vld [vmem:[%s15307_s2 + $0x1e8] sm:$0xff]  }
 0x15e   : > { %v11435_v48 = vadd.f32 %v984_v45, %v751_v58  ;;  %v8039_v8 = vpop.f32.mrf.mxu0  ;;  %8353 = vmatprep.mubr.msk.bf16.mxu0 %vm10209_vm0, %v15475_v37  ;;  %8445 = vmatprep.mubr.msk.bf16.mxu1 %vm10209_vm0, %v15475_v37  ;;  %v9691_v45 = vld [vmem:[%s15307_s2 + $0x1f0] sm:$0xff]  }
 0x15f   : > { %v8131_v42 = vpop.f32.mrf.mxu1  ;;  %8519 = vmatprep.subr.bf16.mxu0 %v15475_v37  ;;  %8610 = vmatpush3.bf16.msra.mxu1 %v9690_v60  ;;  %v9685_v60 = vld [vmem:[%s15307_s2 + $0x1a8] sm:$0xff]  }
 0x160   : > { %v754_v19 = vpop.f32.mrf.mxu0  ;;  %8611 = vmatprep.subr.bf16.mxu1 %v15475_v37 }
 0x161   : > { %v987_v34 = vpop.f32.mrf.mxu1  ;;  %8520 = vmatpush3.bf16.msra.mxu0 %v9684_v51 }
 0x162   : > { %v11452_v58 = vadd.f32 %v987_v34, %v754_v19  ;;  %v8040_v8 = vpop.f32.mrf.mxu0  ;;  %8521 = vmatprep.subr.bf16.mxu0 %v15475_v37  ;;  %v1977_v19 = vsel %vm1944_vm3, %v1910_v13, %v1911_v0  ;;  %v9686_v34 = vld [vmem:[%s15307_s2 + $0x1a0] sm:$0xff]  }
 0x163   : > { %v8132_v42 = vpop.f32.mrf.mxu1  ;;  %8612 = vmatpush3.bf16.msra.mxu1 %v9691_v45  ;;  %v1976_v45 = vsel %vm1944_vm3, %v1911_v0, %v1912_v43 }
 0x164   : > { %v759_v51 = vpop.f32.mrf.mxu0  ;;  %8354 = vmatmul.mubr.bf16.gmra.mxu0 %v11088_v26  ;;  %8613 = vmatprep.subr.bf16.mxu1 %v15475_v37  ;;  %v9694_v42 = vld [vmem:[%s15307_s2 + $0x1e0] sm:$0xff]  }
 0x165   : > { %v992_v52 = vpop.f32.mrf.mxu1  ;;  %8446 = vmatmul.mubr.bf16.gmra.mxu1 %v11450_v1  ;;  %8357 = vmatprep.mubr.msk.bf16.mxu0 %vm10209_vm0, %v15475_v37 }
 0x166   : > { %v11468_v11 = vadd.f32 %v992_v52, %v759_v51  ;;  %v8043_v55 = vpop.f32.mrf.mxu0  ;;  %8449 = vmatprep.mubr.msk.bf16.mxu1 %vm10209_vm0, %v15475_v37  ;;  %8522 = vmatpush3.bf16.msra.mxu0 %v9685_v60  ;;  %v1913_v60 = vrot.slane %v11148_v20, 1 }
 0x167   : > { %v8135_v8 = vpop.f32.mrf.mxu1  ;;  %8523 = vmatprep.subr.bf16.mxu0 %v15475_v37  ;;  %8614 = vmatpush3.bf16.msra.mxu1 %v9692_v21  ;;  %v11484_v55 = vpack.c.bf16 %v1976_v45, %v1977_v19  ;;  %v9687_v21 = vld [vmem:[%s15307_s2 + $0x198] sm:$0xff]  }
 0x168   : > { %v762_v51 = vpop.f32.mrf.mxu0  ;;  %8615 = vmatprep.subr.bf16.mxu1 %v15475_v37  ;;  %v1914_v8 = vrot.slane %v11164_v29, 1  ;;  %v9695_v45 = vld [vmem:[%s15307_s2 + $0x1d8] sm:$0xff]  }
 0x169   : > { %v995_v52 = vpop.f32.mrf.mxu1 }
 0x16a   : > { %v11486_v13 = vadd.f32 %v995_v52, %v762_v51  ;;  %v8044_v0 = vpop.f32.mrf.mxu0  ;;  %8524 = vmatpush3.bf16.msra.mxu0 %v9686_v34  ;;  %v1974_v34 = vsel %vm1944_vm3, %v1913_v60, %v1914_v8  ;;  %v9688_v51 = vld [vmem:[%s15307_s2 + $0x190] sm:$0xff]  }
 0x16b   : > { %v8136_v27 = vpop.f32.mrf.mxu1  ;;  %8525 = vmatprep.subr.bf16.mxu0 %v15475_v37  ;;  %8616 = vmatpush3.bf16.msra.mxu1 %v9694_v42  ;;  %v1975_v42 = vsel %vm1944_vm3, %v1912_v43, %v1913_v60  ;;  %v9696_v0 = vld [vmem:[%s15307_s2 + $0x1d0] sm:$0xff]  }
 0x16c   : > { %v767_v19 = vpop.f32.mrf.mxu0  ;;  %8358 = vmatmul.mubr.bf16.gmra.mxu0 %v11120_v56  ;;  %8617 = vmatprep.subr.bf16.mxu1 %v15475_v37 }
 0x16d   : > { %v1000_v20 = vpop.f32.mrf.mxu1  ;;  %8450 = vmatmul.mubr.bf16.gmra.mxu1 %v11484_v55  ;;  %8361 = vmatprep.mubr.msk.bf16.mxu0 %vm10209_vm0, %v15475_v37 }
 0x16e   : > { %v11502_v29 = vadd.f32 %v1000_v20, %v767_v19  ;;  %v8047_v27 = vpop.f32.mrf.mxu0  ;;  %8453 = vmatprep.mubr.msk.bf16.mxu1 %vm10209_vm0, %v15475_v37  ;;  %8526 = vmatpush3.bf16.msra.mxu0 %v9687_v21  ;;  %v1915_v21 = vrot.slane %v11167_v47, 1 }
 0x16f   : > { %v8139_v52 = vpop.f32.mrf.mxu1  ;;  %8527 = vmatprep.subr.bf16.mxu0 %v15475_v37  ;;  %8618 = vmatpush3.bf16.msra.mxu1 %v9695_v45  ;;  %v11518_v27 = vpack.c.bf16 %v1974_v34, %v1975_v42  ;;  %v9689_v45 = vld [vmem:[%s15307_s2 + $0x188] sm:$0xff]  }
 0x170   : > { %v770_v19 = vpop.f32.mrf.mxu0  ;;  %8619 = vmatprep.subr.bf16.mxu1 %v15475_v37  ;;  %v1916_v52 = vrot.slane %v11182_v5, 1  ;;  %v9697_v34 = vld [vmem:[%s15307_s2 + $0x1c8] sm:$0xff]  }
 0x171   : > { %v1003_v20 = vpop.f32.mrf.mxu1 }
 0x172   : > { %v11520_v43 = vadd.f32 %v1003_v20, %v770_v19  ;;  %v8048_v60 = vpop.f32.mrf.mxu0  ;;  %8528 = vmatpush3.bf16.msra.mxu0 %v9688_v51  ;;  %v1972_v51 = vsel %vm1944_vm3, %v1915_v21, %v1916_v52  ;;  %v9693_v19 = vld [vmem:[%s15307_s2 + $0x180] sm:$0xff]  }
 0x173   : > { %v8140_v25 = vpop.f32.mrf.mxu1  ;;  %8529 = vmatprep.subr.bf16.mxu0 %v15475_v37  ;;  %8620 = vmatpush3.bf16.msra.mxu1 %v9696_v0  ;;  %v1973_v0 = vsel %vm1944_vm3, %v1914_v8, %v1915_v21  ;;  %v9698_v60 = vld [vmem:[%s15307_s2 + $0x1c0] sm:$0xff]  }
 0x174   : > { %15478 = vst [vmem:[#allocation27_spill] sm:$0xff] %v11520_v43  ;;  %v775_v42 = vpop.f32.mrf.mxu0  ;;  %8362 = vmatmul.mubr.bf16.gmra.mxu0 %v11152_v38  ;;  %8621 = vmatprep.subr.bf16.mxu1 %v15475_v37 }
 0x175   : > { %v1008_v47 = vpop.f32.mrf.mxu1  ;;  %8454 = vmatmul.mubr.bf16.gmra.mxu1 %v11518_v27  ;;  %8365 = vmatprep.mubr.msk.bf16.mxu0 %vm10209_vm0, %v15475_v37 }
 0x176   : > { %v11536_v5 = vadd.f32 %v1008_v47, %v775_v42  ;;  %v8051_v25 = vpop.f32.mrf.mxu0  ;;  %8457 = vmatprep.mubr.msk.bf16.mxu1 %vm10209_vm0, %v15475_v37  ;;  %8530 = vmatpush3.bf16.msra.mxu0 %v9689_v45  ;;  %v1917_v45 = vrot.slane %v11185_v50, 1 }
 0x177   : > { %v8143_v20 = vpop.f32.mrf.mxu1  ;;  %8531 = vmatprep.subr.bf16.mxu0 %v15475_v37  ;;  %8622 = vmatpush3.bf16.msra.mxu1 %v9697_v34  ;;  %v11552_v25 = vpack.c.bf16 %v1972_v51, %v1973_v0 }
 0x178   : > { %15479 = vst [vmem:[#allocation28_spill] sm:$0xff] %v11536_v5  ;;  %v778_v42 = vpop.f32.mrf.mxu0  ;;  %8623 = vmatprep.subr.bf16.mxu1 %v15475_v37  ;;  %v1918_v20 = vrot.slane %v11202_v32, 1 }
 0x179   : > { %v1011_v47 = vpop.f32.mrf.mxu1  ;;  %15480 = vst [vmem:[#allocation29_spill] sm:$0xff] %v11552_v25 }
 0x17a   : > { %v11554_v8 = vadd.f32 %v1011_v47, %v778_v42  ;;  %v8052_v21 = vpop.f32.mrf.mxu0  ;;  %8532 = vmatpush3.bf16.msra.mxu0 %v9693_v19  ;;  %v1970_v32 = vsel %vm1944_vm3, %v1917_v45, %v1918_v20 }
 0x17b   : > { %v8144_v5 = vpop.f32.mrf.mxu1  ;;  %8624 = vmatpush3.bf16.msra.mxu1 %v9698_v60  ;;  %8701 = vmatprep.subr.bf16.mxu0 %v15475_v37 }
 0x17c   : > { %15481 = vst [vmem:[#allocation30_spill] sm:$0xff] %v11554_v8  ;;  %v783_v34 = vpop.f32.mrf.mxu0  ;;  %8366 = vmatmul.mubr.bf16.gmra.mxu0 %v11171_v24  ;;  %8793 = vmatprep.subr.bf16.mxu1 %v15475_v37  ;;  %v1971_v5 = vsel %vm1944_vm3, %v1916_v52, %v1917_v45 }
 0x17d   : > { %v1016_v43 = vpop.f32.mrf.mxu1  ;;  %8458 = vmatmul.mubr.bf16.gmra.mxu1 %v11552_v25  ;;  %8369 = vmatprep.mubr.msk.bf16.mxu0 %vm10209_vm0, %v15475_v37  ;;  %v11572_v42 = vpack.c.bf16 %v1970_v32, %v1971_v5 }
 0x17e   : > { %v11564_v51 = vadd.f32 %v1016_v43, %v783_v34  ;;  %v8055_v50 = vpop.f32.mrf.mxu0  ;;  %8461 = vmatprep.mubr.msk.bf16.mxu1 %vm10209_vm0, %v15475_v37  ;;  %v1919_v43 = vrot.slane %v11205_v18, 1  ;;  %v1920_v34 = vrot.slane %v11222_v23, 1 }
 0x17f   : > { %v8147_v0 = vpop.f32.mrf.mxu1 }
 0x180   : > { %15482 = vst [vmem:[#allocation31_spill] sm:$0xff] %v11564_v51  ;;  %v786_v19 = vpop.f32.mrf.mxu0  ;;  %v1968_v18 = vsel %vm1944_vm3, %v1919_v43, %v1920_v34  ;;  %v1969_v23 = vsel %vm1944_vm3, %v1918_v20, %v1919_v43 }
 0x181   : > { %v1019_v60 = vpop.f32.mrf.mxu1  ;;  %v11592_v0 = vpack.c.bf16 %v1968_v18, %v1969_v23 }
 0x182   : > { %v11574_v47 = vadd.f32 %v1019_v60, %v786_v19  ;;  %v8056_v21 = vpop.f32.mrf.mxu0  ;;  %v1921_v60 = vrot.slane %v11225_v63, 1 }
 0x183   : > { %v8148_v50 = vpop.f32.mrf.mxu1  ;;  %v1922_v21 = vrot.slane %v11242_v53, 1 }
 0x184   : > { %15483 = vst [vmem:[#allocation32_spill] sm:$0xff] %v11574_v47  ;;  %v1141_v51 = vpop.f32.mrf.mxu0  ;;  %8370 = vmatmul.mubr.bf16.gmra.mxu0 %v11189_v41  ;;  %v1967_v53 = vsel %vm1944_vm3, %v1920_v34, %v1921_v60  ;;  %v15486_v34 = vld [vmem:[#allocation6_spill] sm:$0xff] }
 0x185   : > { %v1292_v8 = vadd.f32 %v1141_v51, %v11177_v54  ;;  %v1429_v25 = vpop.f32.mrf.mxu1  ;;  %8462 = vmatmul.mubr.bf16.gmra.mxu1 %v11572_v42  ;;  %8373 = vmatprep.mubr.msk.bf16.mxu0 %vm10209_vm0, %v15475_v37  ;;  %v1966_v63 = vsel %vm1944_vm3, %v1921_v60, %v1922_v21 }
 0x186   : > { %v8167_v52 = vpop.f32.mrf.mxu0  ;;  %8465 = vmatprep.mubr.msk.bf16.mxu1 %vm10209_vm0, %v15475_v37  ;;  %v11612_v23 = vpack.c.bf16 %v1966_v63, %v1967_v53  ;;  %v15488_v53 = vld [vmem:[#allocation7_spill] sm:$0xff] }
 0x187   : > { %v11589_v45 = vadd.f32 %v1429_v25, %v1292_v8  ;;  %v8259_v32 = vpop.f32.mrf.mxu1 }
 0x188   : > { %v1144_v54 = vpop.f32.mrf.mxu0  ;;  %15484 = vst [vmem:[#allocation33_spill] sm:$0xff] %v11612_v23 }
 0x189   : > { %v1293_v51 = vadd.f32 %v1144_v54, %v11191_v22  ;;  %v1432_v5 = vpop.f32.mrf.mxu1  ;;  %v1923_v54 = vrot.slane %v11245_v57, 1 }
 0x18a   : > { %v8168_v19 = vpop.f32.mrf.mxu0 }
 0x18b   : > { %v11596_v50 = vadd.f32 %v1432_v5, %v1293_v51  ;;  %v8260_v52 = vpop.f32.mrf.mxu1  ;;  %v1924_v51 = vrot.slane %v11262_v36, 1  ;;  %v1965_v36 = vsel %vm1944_vm3, %v1922_v21, %v1923_v54  ;;  %v15493_v21 = vld [vmem:[#allocation8_spill] sm:$0xff] }
 0x18c   : > { %v1149_v47 = vpop.f32.mrf.mxu0  ;;  %8374 = vmatmul.mubr.bf16.gmra.mxu0 %v11209_v61 }
 0x18d   : > { %v1294_v25 = vadd.f32 %v1149_v47, %v11197_v9  ;;  %v1437_v8 = vpop.f32.mrf.mxu1  ;;  %8466 = vmatmul.mubr.bf16.gmra.mxu1 %v11592_v0  ;;  %8377 = vmatprep.mubr.msk.bf16.mxu0 %vm10209_vm0, %v15475_v37  ;;  %v1964_v57 = vsel %vm1944_vm3, %v1923_v54, %v1924_v51 }
 0x18e   : > { %v8171_v22 = vpop.f32.mrf.mxu0  ;;  %8469 = vmatprep.mubr.msk.bf16.mxu1 %vm10209_vm0, %v15475_v37 }
 0x18f   : > { %v11609_v20 = vadd.f32 %v1437_v8, %v1294_v25  ;;  %v8263_v43 = vpop.f32.mrf.mxu1 }
 0x190   : > { %v1152_v9 = vpop.f32.mrf.mxu0 }
 0x191   : > { %v1295_v47 = vadd.f32 %v1152_v9, %v11211_v49  ;;  %v1440_v18 = vpop.f32.mrf.mxu1 }
 0x192   : > { %v8172_v32 = vpop.f32.mrf.mxu0 }
 0x193   : > { %v11616_v5 = vadd.f32 %v1440_v18, %v1295_v47  ;;  %v8264_v19 = vpop.f32.mrf.mxu1  ;;  %v11632_v47 = vpack.c.bf16 %v1964_v57, %v1965_v36  ;;  %v15490_v32 = vld [vmem:[#allocation12_spill] sm:$0xff] }
 0x194   : > { %v1157_v52 = vpop.f32.mrf.mxu0  ;;  %8378 = vmatmul.mubr.bf16.gmra.mxu0 %v11229_v7  ;;  %v1925_v19 = vrot.slane %v15490_v32, 1  ;;  %v15497_v32 = vld [vmem:[#allocation16_spill] sm:$0xff] }
 0x195   : > { %15485 = vst [vmem:[#allocation34_spill] sm:$0xff] %v11616_v5  ;;  %v1296_v60 = vadd.f32 %v1157_v52, %v15486_v34  ;;  %v1445_v25 = vpop.f32.mrf.mxu1  ;;  %8470 = vmatmul.mubr.bf16.gmra.mxu1 %v11612_v23  ;;  %8381 = vmatprep.mubr.msk.bf16.mxu0 %vm10209_vm0, %v15475_v37  ;;  %15489 = vst [vmem:[#allocation7_spill] sm:$0xff] %v11632_v47  ;;  %v1926_v52 = vrot.slane %v11282_v44, 1  ;;  %v15492_v23 = vld [vmem:[#allocation9_spill] sm:$0xff] }
 0x196   : > { %v8175_v49 = vpop.f32.mrf.mxu0  ;;  %8473 = vmatprep.mubr.msk.bf16.mxu1 %vm10209_vm0, %v15475_v37  ;;  %v1963_v57 = vsel %vm1944_vm3, %v1924_v51, %v1925_v19  ;;  %v15500_v51 = vld [vmem:[#allocation11_spill] sm:$0xff] }
 0x197   : > { %v11629_v8 = vadd.f32 %v1445_v25, %v1296_v60  ;;  %v8267_v22 = vpop.f32.mrf.mxu1  ;;  %v1962_v44 = vsel %vm1944_vm3, %v1925_v19, %v1926_v52 }
 0x198   : > { %v1160_v63 = vpop.f32.mrf.mxu0 }
 0x199   : > { %15487 = vst [vmem:[#allocation6_spill] sm:$0xff] %v11629_v8  ;;  %v1297_v43 = vadd.f32 %v1160_v63, %v15488_v53  ;;  %v1448_v9 = vpop.f32.mrf.mxu1  ;;  %v15495_v63 = vld [vmem:[#allocation10_spill] sm:$0xff]  ;;  %v15499_v8 = vld [vmem:[#allocation13_spill] sm:$0xff] }
 0x19a   : > { %v8176_v18 = vpop.f32.mrf.mxu0 }
 0x19b   : > { %v11636_v34 = vadd.f32 %v1448_v9, %v1297_v43  ;;  %v8268_v49 = vpop.f32.mrf.mxu1  ;;  %v11652_v9 = vpack.c.bf16 %v1962_v44, %v1963_v57 }
 0x19c   : > { %v1165_v5 = vpop.f32.mrf.mxu0  ;;  %8382 = vmatmul.mubr.bf16.gmra.mxu0 %v15492_v23  ;;  %v1927_v49 = vrot.slane %v15497_v32, 1 }
 0x19d   : > { %15491 = vst [vmem:[#allocation12_spill] sm:$0xff] %v11636_v34  ;;  %v1298_v54 = vadd.f32 %v1165_v5, %v15493_v21  ;;  %v1453_v60 = vpop.f32.mrf.mxu1  ;;  %8474 = vmatmul.mubr.bf16.gmra.mxu1 %v11632_v47  ;;  %8385 = vmatprep.mubr.msk.bf16.mxu0 %vm10209_vm0, %v15475_v37  ;;  %15496 = vst [vmem:[#allocation8_spill] sm:$0xff] %v11652_v9  ;;  %v1928_v21 = vrot.slane %v11302_v14, 1 }
 0x19e   : > { %v8179_v25 = vpop.f32.mrf.mxu0  ;;  %8477 = vmatprep.mubr.msk.bf16.mxu1 %vm10209_vm0, %v15475_v37 }
 0x19f   : > { %v11649_v36 = vadd.f32 %v1453_v60, %v1298_v54  ;;  %v8271_v22 = vpop.f32.mrf.mxu1  ;;  %v1960_v14 = vsel %vm1944_vm3, %v1927_v49, %v1928_v21 }
 0x1a0   : > { %v1168_v5 = vpop.f32.mrf.mxu0  ;;  %v15502_v22 = vld [vmem:[#allocation14_spill] sm:$0xff] }
 0x1a1   : > { %15494 = vst [vmem:[#allocation9_spill] sm:$0xff] %v11649_v36  ;;  %v1299_v53 = vadd.f32 %v1168_v5, %v15495_v63  ;;  %v1456_v43 = vpop.f32.mrf.mxu1 }
 0x1a2   : > { %v8180_v18 = vpop.f32.mrf.mxu0 }
 0x1a3   : > { %v11656_v25 = vadd.f32 %v1456_v43, %v1299_v53  ;;  %v8272_v34 = vpop.f32.mrf.mxu1  ;;  %v15504_v18 = vld [vmem:[#allocation20_spill] sm:$0xff] }
 0x1a4   : > { %v1173_v47 = vpop.f32.mrf.mxu0  ;;  %8386 = vmatmul.mubr.bf16.gmra.mxu0 %v15499_v8  ;;  %v1961_v34 = vsel %vm1944_vm3, %v1926_v52, %v1927_v49  ;;  %v1929_v32 = vrot.slane %v15504_v18, 1  ;;  %v15506_v8 = vld [vmem:[#allocation17_spill] sm:$0xff]  ;;  %v15507_v52 = vld [vmem:[#allocation15_spill] sm:$0xff] }
 0x1a5   : > { %15498 = vst [vmem:[#allocation10_spill] sm:$0xff] %v11656_v25  ;;  %v1300_v19 = vadd.f32 %v1173_v47, %v15500_v51  ;;  %v1461_v54 = vpop.f32.mrf.mxu1  ;;  %8478 = vmatmul.mubr.bf16.gmra.mxu1 %v11652_v9  ;;  %8389 = vmatprep.mubr.msk.bf16.mxu0 %vm10209_vm0, %v15475_v37  ;;  %v11672_v53 = vpack.c.bf16 %v1960_v14, %v1961_v34  ;;  %v10110_v51 = vld [vmem:[%s10306_s24 + $0xc0] sm:$0xff]  ;;  %v10111_v18 = vld [vmem:[%s10306_s24 + $0xc8] sm:$0xff] }
 0x1a6   : > { %v8183_v60 = vpop.f32.mrf.mxu0  ;;  %8481 = vmatprep.mubr.msk.bf16.mxu1 %vm10209_vm0, %v15475_v37  ;;  %v1959_v14 = vsel %vm1944_vm3, %v1928_v21, %v1929_v32  ;;  %v15513_v21 = vld [vmem:[#allocation19_spill] sm:$0xff] }
 0x1a7   : > { %v11669_v44 = vadd.f32 %v1461_v54, %v1300_v19  ;;  %v8275_v47 = vpop.f32.mrf.mxu1  ;;  %15503 = vst [vmem:[#allocation11_spill] sm:$0xff] %v11672_v53  ;;  %v1930_v60 = vrot.slane %v10110_v51, 1  ;;  %v1931_v51 = vrot.slane %v10111_v18, 1  ;;  %v10113_v18 = vld [vmem:[%s10306_s24 + $0xd8] sm:$0xff] }
 0x1a8   : > { %v1176_v57 = vpop.f32.mrf.mxu0 }
 0x1a9   : > { %15501 = vst [vmem:[#allocation16_spill] sm:$0xff] %v11669_v44  ;;  %v1301_v5 = vadd.f32 %v1176_v57, %v15502_v22  ;;  %v1464_v63 = vpop.f32.mrf.mxu1  ;;  %v15509_v57 = vld [vmem:[#allocation18_spill] sm:$0xff] }
 0x1aa   : > { %v8184_v43 = vpop.f32.mrf.mxu0 }
 0x1ab   : > { %v11676_v25 = vadd.f32 %v1464_v63, %v1301_v5  ;;  %v8276_v9 = vpop.f32.mrf.mxu1 }
 0x1ac   : > { %v1181_v36 = vpop.f32.mrf.mxu0  ;;  %8390 = vmatmul.mubr.bf16.gmra.mxu0 %v15506_v8  ;;  %v1958_v9 = vsel %vm1944_vm3, %v1929_v32, %v1930_v60  ;;  %v15512_v8 = vld [vmem:[#allocation21_spill] sm:$0xff] }
 0x1ad   : > { %15505 = vst [vmem:[#allocation14_spill] sm:$0xff] %v11676_v25  ;;  %v1302_v49 = vadd.f32 %v1181_v36, %v15507_v52  ;;  %v1469_v19 = vpop.f32.mrf.mxu1  ;;  %8482 = vmatmul.mubr.bf16.gmra.mxu1 %v11672_v53  ;;  %8393 = vmatprep.mubr.msk.bf16.mxu0 %vm10209_vm0, %v15475_v37  ;;  %v11692_v63 = vpack.c.bf16 %v1958_v9, %v1959_v14  ;;  %v10112_v52 = vld [vmem:[%s10306_s24 + $0xd0] sm:$0xff] }
 0x1ae   : > { %v8187_v54 = vpop.f32.mrf.mxu0  ;;  %8485 = vmatprep.mubr.msk.bf16.mxu1 %vm10209_vm0, %v15475_v37  ;;  %v1957_v9 = vsel %vm1944_vm3, %v1930_v60, %v1931_v51 }
 0x1af   : > { %v11689_v34 = vadd.f32 %v1469_v19, %v1302_v49  ;;  %v8279_v36 = vpop.f32.mrf.mxu1  ;;  %15510 = vst [vmem:[#allocation15_spill] sm:$0xff] %v11692_v63  ;;  %v1932_v54 = vrot.slane %v10112_v52, 1  ;;  %v1933_v52 = vrot.slane %v10113_v18, 1 }
 0x1b0   : > { %v1184_v47 = vpop.f32.mrf.mxu0 }
 0x1b1   : > { %15508 = vst [vmem:[#allocation20_spill] sm:$0xff] %v11689_v34  ;;  %v1303_v22 = vadd.f32 %v1184_v47, %v15509_v57  ;;  %v1472_v5 = vpop.f32.mrf.mxu1  ;;  %v15514_v47 = vld [vmem:[#allocation22_spill] sm:$0xff] }
 0x1b2   : > { %v8188_v43 = vpop.f32.mrf.mxu0 }
 0x1b3   : > { %v11696_v25 = vadd.f32 %v1472_v5, %v1303_v22  ;;  %v8280_v53 = vpop.f32.mrf.mxu1 }
 0x1b4   : > { %v1189_v44 = vpop.f32.mrf.mxu0  ;;  %8394 = vmatmul.mubr.bf16.gmra.mxu0 %v15512_v8  ;;  %v1956_v53 = vsel %vm1944_vm3, %v1931_v51, %v1932_v54 }
 0x1b5   : > { %15511 = vst [vmem:[#allocation18_spill] sm:$0xff] %v11696_v25  ;;  %v1304_v32 = vadd.f32 %v1189_v44, %v15513_v21  ;;  %v1477_v49 = vpop.f32.mrf.mxu1  ;;  %8486 = vmatmul.mubr.bf16.gmra.mxu1 %v11692_v63  ;;  %8397 = vmatprep.mubr.msk.bf16.mxu0 %vm10209_vm0, %v15475_v37  ;;  %v11712_v5 = vpack.c.bf16 %v1956_v53, %v1957_v9  ;;  %v10114_v21 = vld [vmem:[%s10306_s24 + $0xe0] sm:$0xff] }
 0x1b6   : > { %v8191_v19 = vpop.f32.mrf.mxu0  ;;  %8489 = vmatprep.mubr.msk.bf16.mxu1 %vm10209_vm0, %v15475_v37 }
 0x1b7   : > { %v11709_v14 = vadd.f32 %v1477_v49, %v1304_v32  ;;  %v8283_v44 = vpop.f32.mrf.mxu1  ;;  %v1934_v19 = vrot.slane %v10114_v21, 1  ;;  %v1955_v49 = vsel %vm1944_vm3, %v1932_v54, %v1933_v52 }
 0x1b8   : > { %v1192_v36 = vpop.f32.mrf.mxu0 }
 0x1b9   : > { %v1305_v57 = vadd.f32 %v1192_v36, %v15514_v47  ;;  %v1480_v22 = vpop.f32.mrf.mxu1 }
 0x1ba   : > { %v8192_v43 = vpop.f32.mrf.mxu0 }
 0x1bb   : > { %v11716_v25 = vadd.f32 %v1480_v22, %v1305_v57  ;;  %v8284_v63 = vpop.f32.mrf.mxu1  ;;  %v10115_v57 = vld [vmem:[%s10306_s24 + $0xe8] sm:$0xff]  ;;  %v10116_v43 = vld [vmem:[%s10306_s24 + $0xf0] sm:$0xff] }
 0x1bc   : > { %v1197_v34 = vpop.f32.mrf.mxu0  ;;  %8398 = vmatmul.mubr.bf16.gmra.mxu0 %v11323_v28  ;;  %v1954_v63 = vsel %vm1944_vm3, %v1933_v52, %v1934_v19  ;;  %v1935_v22 = vrot.slane %v10115_v57, 1  ;;  %v1936_v18 = vrot.slane %v10116_v43, 1  ;;  %v10118_v57 = vld [vmem:[%s10306_s24 + $0x100] sm:$0xff] }
 0x1bd   : > { %15515 = vst [vmem:[#allocation21_spill] sm:$0xff] %v11716_v25  ;;  %v1306_v60 = vadd.f32 %v1197_v34, %v11317_v62  ;;  %v1485_v51 = vpop.f32.mrf.mxu1  ;;  %8490 = vmatmul.mubr.bf16.gmra.mxu1 %v11712_v5  ;;  %8401 = vmatprep.mubr.msk.bf16.mxu0 %vm10209_vm0, %v15475_v37  ;;  %v11732_v36 = vpack.c.bf16 %v1954_v63, %v1955_v49  ;;  %v1938_v43 = vrot.slane %v10118_v57, 1 }
 0x1be   : > { %v8195_v32 = vpop.f32.mrf.mxu0  ;;  %8493 = vmatprep.mubr.msk.bf16.mxu1 %vm10209_vm0, %v15475_v37 }
 0x1bf   : > { %v11729_v53 = vadd.f32 %v1485_v51, %v1306_v60  ;;  %v8287_v62 = vpop.f32.mrf.mxu1  ;;  %v1952_v60 = vsel %vm1944_vm3, %v1935_v22, %v1936_v18  ;;  %v1953_v51 = vsel %vm1944_vm3, %v1934_v19, %v1935_v22 }
 0x1c0   : > { %v1200_v34 = vpop.f32.mrf.mxu0 }
 0x1c1   : > { %v1307_v9 = vadd.f32 %v1200_v34, %v11325_v33  ;;  %v1488_v44 = vpop.f32.mrf.mxu1  ;;  %v11752_v34 = vpack.c.bf16 %v1952_v60, %v1953_v51 }
 0x1c2   : > { %v8196_v47 = vpop.f32.mrf.mxu0 }
 0x1c3   : > { %v11736_v21 = vadd.f32 %v1488_v44, %v1307_v9  ;;  %v8288_v32 = vpop.f32.mrf.mxu1  ;;  %v10117_v44 = vld [vmem:[%s10306_s24 + $0xf8] sm:$0xff] }
 0x1c4   : > { %v1205_v25 = vpop.f32.mrf.mxu0  ;;  %8402 = vmatmul.mubr.bf16.gmra.mxu0 %v11337_v30  ;;  %v1937_v47 = vrot.slane %v10117_v44, 1  ;;  %v10120_v44 = vld [vmem:[%s10306_s24 + $0x110] sm:$0xff] }
 0x1c5   : > { %15516 = vst [vmem:[#allocation19_spill] sm:$0xff] %v11736_v21  ;;  %v1308_v54 = vadd.f32 %v1205_v25, %v11331_v59  ;;  %v1493_v52 = vpop.f32.mrf.mxu1  ;;  %8494 = vmatmul.mubr.bf16.gmra.mxu1 %v11732_v36  ;;  %8405 = vmatprep.mubr.msk.bf16.mxu0 %vm10209_vm0, %v15475_v37  ;;  %v1940_v57 = vrot.slane %v10120_v44, 1 }
 0x1c6   : > { %v8199_v33 = vpop.f32.mrf.mxu0  ;;  %8497 = vmatprep.mubr.msk.bf16.mxu1 %vm10209_vm0, %v15475_v37 }
 0x1c7   : > { %v11749_v63 = vadd.f32 %v1493_v52, %v1308_v54  ;;  %v8291_v59 = vpop.f32.mrf.mxu1  ;;  %v1950_v54 = vsel %vm1944_vm3, %v1937_v47, %v1938_v43  ;;  %v1951_v52 = vsel %vm1944_vm3, %v1936_v18, %v1937_v47 }
 0x1c8   : > { %v1208_v25 = vpop.f32.mrf.mxu0 }
 0x1c9   : > { %v1309_v49 = vadd.f32 %v1208_v25, %v11339_v31  ;;  %v1496_v62 = vpop.f32.mrf.mxu1  ;;  %v11772_v25 = vpack.c.bf16 %v1950_v54, %v1951_v52 }
 0x1ca   : > { %v8200_v9 = vpop.f32.mrf.mxu0 }
 0x1cb   : > { %v11756_v32 = vadd.f32 %v1496_v62, %v1309_v49  ;;  %v8292_v33 = vpop.f32.mrf.mxu1  ;;  %v10119_v62 = vld [vmem:[%s10306_s24 + $0x108] sm:$0xff] }
 0x1cc   : > { %v1213_v21 = vpop.f32.mrf.mxu0  ;;  %8406 = vmatmul.mubr.bf16.gmra.mxu0 %v11351_v35  ;;  %v1939_v9 = vrot.slane %v10119_v62, 1 }
 0x1cd   : > { %15517 = vst [vmem:[#allocation22_spill] sm:$0xff] %v11756_v32  ;;  %v1310_v19 = vadd.f32 %v1213_v21, %v11345_v15  ;;  %v1501_v22 = vpop.f32.mrf.mxu1  ;;  %8498 = vmatmul.mubr.bf16.gmra.mxu1 %v11752_v34  ;;  %8409 = vmatprep.mubr.msk.bf16.mxu0 %vm10209_vm0, %v15475_v37 }
 0x1ce   : > { %v8203_v31 = vpop.f32.mrf.mxu0  ;;  %8501 = vmatprep.mubr.msk.bf16.mxu1 %vm10209_vm0, %v15475_v37 }
 0x1cf   : > { %v11769_v60 = vadd.f32 %v1501_v22, %v1310_v19  ;;  %v8295_v15 = vpop.f32.mrf.mxu1  ;;  %v1948_v19 = vsel %vm1944_vm3, %v1939_v9, %v1940_v57  ;;  %v1949_v22 = vsel %vm1944_vm3, %v1938_v43, %v1939_v9 }
 0x1d0   : > { %v1216_v21 = vpop.f32.mrf.mxu0 }
 0x1d1   : > { %v1311_v51 = vadd.f32 %v1216_v21, %v11353_v40  ;;  %v1504_v59 = vpop.f32.mrf.mxu1  ;;  %v11792_v21 = vpack.c.bf16 %v1948_v19, %v1949_v22 }
 0x1d2   : > { %v8204_v49 = vpop.f32.mrf.mxu0 }
 0x1d3   : > { %v11776_v33 = vadd.f32 %v1504_v59, %v1311_v51  ;;  %v8296_v31 = vpop.f32.mrf.mxu1  ;;  %v1941_v59 = vrot.slane %v11392_v4, 1  ;;  %v10121_v49 = vld [vmem:[%s10306_s24 + $0x120] sm:$0xff] }
 0x1d4   : > { %v1221_v32 = vpop.f32.mrf.mxu0  ;;  %8410 = vmatmul.mubr.bf16.gmra.mxu0 %v11365_v2  ;;  %v1942_v62 = vrot.slane %v10121_v49, 1 }
 0x1d5   : > { %v1312_v18 = vadd.f32 %v1221_v32, %v11359_v16  ;;  %v1509_v47 = vpop.f32.mrf.mxu1  ;;  %8502 = vmatmul.mubr.bf16.gmra.mxu1 %v11772_v25  ;;  %8413 = vmatprep.mubr.msk.bf16.mxu0 %vm10209_vm0, %v15475_v37 }
 0x1d6   : > { %v8207_v40 = vpop.f32.mrf.mxu0  ;;  %8505 = vmatprep.mubr.msk.bf16.mxu1 %vm10209_vm0, %v15475_v37  ;;  %v1946_v4 = vsel %vm1944_vm3, %v1941_v59, %v1942_v62 }
 0x1d7   : > { %v11789_v54 = vadd.f32 %v1509_v47, %v1312_v18  ;;  %v8299_v16 = vpop.f32.mrf.mxu1  ;;  %v1947_v18 = vsel %vm1944_vm3, %v1940_v57, %v1941_v59 }
 0x1d8   : > { %v1224_v32 = vpop.f32.mrf.mxu0 }
 0x1d9   : > { %v1313_v52 = vadd.f32 %v1224_v32, %v11367_v39  ;;  %v1512_v15 = vpop.f32.mrf.mxu1  ;;  %v11812_v32 = vpack.c.bf16 %v1946_v4, %v1947_v18 }
 0x1da   : > { %v8208_v51 = vpop.f32.mrf.mxu0 }
 0x1db   : > { %v11796_v44 = vadd.f32 %v1512_v15, %v1313_v52  ;;  %v8300_v31 = vpop.f32.mrf.mxu1  ;;  %15518 = vst [vmem:[#allocation35_spill] sm:$0xff] %v11812_v32  ;;  %v10122_v15 = vld [vmem:[%s10306_s24 + $0x128] sm:$0xff] }
 0x1dc   : > { %v1229_v40 = vpop.f32.mrf.mxu0  ;;  %8414 = vmatmul.mubr.bf16.gmra.mxu0 %v11379_v17  ;;  %v1943_v51 = vrot.slane %v10122_v15, 1 }
 0x1dd   : > { %v1314_v43 = vadd.f32 %v1229_v40, %v11373_v3  ;;  %v1517_v9 = vpop.f32.mrf.mxu1  ;;  %8506 = vmatmul.mubr.bf16.gmra.mxu1 %v11792_v21  ;;  %8417 = vmatprep.mubr.msk.bf16.mxu0 %vm10209_vm0, %v15475_v37 }
 0x1de   : > { %v8211_v39 = vpop.f32.mrf.mxu0  ;;  %8509 = vmatprep.mubr.msk.bf16.mxu1 %vm10209_vm0, %v15475_v37 }
 0x1df   : > { %v11809_v47 = vadd.f32 %v1517_v9, %v1314_v43  ;;  %v8303_v19 = vpop.f32.mrf.mxu1  ;;  %v15520_v39 = vld [vmem:[#allocation23_spill] sm:$0xff]  ;;  %v1945_v43 = vsel %vm1944_vm3, %v1942_v62, %v1943_v51  ;;  %v15521_v9 = vld [vmem:[#allocation4_spill] sm:$0xff] }
 0x1e0   : > { %v1232_v3 = vpop.f32.mrf.mxu0  ;;  %v15522_v4 = vrot.slane %v15521_v9, 1  ;;  %v15524_v62 = vld [vmem:[#allocation3_spill] sm:$0xff]  ;;  %v15525_v9 = vld [vmem:[#allocation25_spill] sm:$0xff] }
 0x1e1   : > { %v1315_v22 = vadd.f32 %v1232_v3, %v11381_v10  ;;  %v1520_v16 = vpop.f32.mrf.mxu1 }
 0x1e2   : > { %v8212_v52 = vpop.f32.mrf.mxu0  ;;  %v1982_v18 = vsel %vm1944_vm3, %v1943_v51, %v15522_v4 }
 0x1e3   : > { %v11815_v49 = vadd.f32 %v1520_v16, %v1315_v22  ;;  %v8304_v31 = vpop.f32.mrf.mxu1  ;;  %v15523_v16 = vld [vmem:[#allocation24_spill] sm:$0xff] }
 0x1e4   : > { %v1237_v40 = vpop.f32.mrf.mxu0  ;;  %8418 = vmatmul.mubr.bf16.gmra.mxu0 %v11396_v6  ;;  %v11833_v31 = vpack.c.bf16 %v1982_v18, %v1945_v43 }
 0x1e5   : > { %15519 = vst [vmem:[#allocation36_spill] sm:$0xff] %v11815_v49  ;;  %v1316_v57 = vadd.f32 %v1237_v40, %v15520_v39  ;;  %v1525_v59 = vpop.f32.mrf.mxu1  ;;  %8510 = vmatmul.mubr.bf16.gmra.mxu1 %v11812_v32  ;;  %8421 = vmatprep.mubr.msk.bf16.mxu0 %vm10209_vm0, %v15475_v37 }
 0x1e6   : > { %v8215_v10 = vpop.f32.mrf.mxu0  ;;  %8513 = vmatprep.mubr.msk.bf16.mxu1 %vm10209_vm0, %v15475_v37 }
 0x1e7   : > { %v11830_v19 = vadd.f32 %v1525_v59, %v1316_v57  ;;  %v8307_v3 = vpop.f32.mrf.mxu1 }
 0x1e8   : > { %v1240_v22 = vpop.f32.mrf.mxu0 }
 0x1e9   : > { %v1317_v52 = vadd.f32 %v1240_v22, %v15523_v16  ;;  %v1528_v15 = vpop.f32.mrf.mxu1 }
 0x1ea   : > { %v8216_v40 = vpop.f32.mrf.mxu0 }
 0x1eb   : > { %v11835_v39 = vadd.f32 %v1528_v15, %v1317_v52  ;;  %v8308_v10 = vpop.f32.mrf.mxu1 }
 0x1ec   : > { %v1245_v49 = vpop.f32.mrf.mxu0  ;;  %8422 = vmatmul.mubr.bf16.gmra.mxu0 %v15524_v62 }
 0x1ed   : > { %v1318_v32 = vadd.f32 %v1245_v49, %v15525_v9  ;;  %v1533_v12 = vpop.f32.mrf.mxu1  ;;  %8514 = vmatmul.mubr.bf16.gmra.mxu1 %v11833_v31  ;;  %8533 = vmatprep.mubr.msk.bf16.mxu0 %vm10209_vm0, %v15475_v37  ;;  %v9699_v49 = vld [vmem:[%s15307_s2 + $0x238] sm:$0xff]  }
 0x1ee   : > { %v8219_v51 = vpop.f32.mrf.mxu0  ;;  %8625 = vmatprep.mubr.msk.bf16.mxu1 %vm10209_vm0, %v15475_v37 }
 0x1ef   : > { %v11844_v57 = vadd.f32 %v1533_v12, %v1318_v32  ;;  %v8311_v59 = vpop.f32.mrf.mxu1  ;;  %v9701_v51 = vld [vmem:[%s15307_s2 + $0x228] sm:$0xff]  }
 0x1f0   : > { %v1248_v43 = vpop.f32.mrf.mxu0 }
 0x1f1   : > { %v1319_v4 = vadd.f32 %v1248_v43, %v11423_v46  ;;  %v1536_v18 = vpop.f32.mrf.mxu1  ;;  %v9700_v46 = vld [vmem:[%s15307_s2 + $0x230] sm:$0xff]  }
 0x1f2   : > { %v8220_v3 = vpop.f32.mrf.mxu0 }
 0x1f3   : > { %v11850_v22 = vadd.f32 %v1536_v18, %v1319_v4  ;;  %v8312_v16 = vpop.f32.mrf.mxu1  ;;  %v9702_v3 = vld [vmem:[%s15307_s2 + $0x220] sm:$0xff]  }
 0x1f4   : > { %v1253_v52 = vpop.f32.mrf.mxu0  ;;  %8534 = vmatmul.mubr.bf16.vlgmr.msra.gmra.mxu0 %v11088_v26 }
 0x1f5   : > { %v1320_v15 = vadd.f32 %v1253_v52, %v11435_v48  ;;  %8702 = vmatpush3.bf16.msra.mxu0 %v9699_v49  ;;  %v1541_v12 = vpop.f32.mrf.mxu1  ;;  %8626 = vmatmul.mubr.bf16.vlgmr.msra.gmra.mxu1 %v11450_v1 }
 0x1f6   : > { %v8223_v32 = vpop.f32.mrf.mxu0  ;;  %8537 = vmatprep.mubr.msk.bf16.mxu0 %vm10209_vm0, %v15475_v37  ;;  %8629 = vmatprep.mubr.msk.bf16.mxu1 %vm10209_vm0, %v15475_v37 }
 0x1f7   : > { %v11862_v40 = vadd.f32 %v1541_v12, %v1320_v15  ;;  %v8315_v26 = vpop.f32.mrf.mxu1  ;;  %8703 = vmatprep.subr.bf16.mxu0 %v15475_v37  ;;  %v9703_v12 = vld [vmem:[%s15307_s2 + $0x218] sm:$0xff]  }
 0x1f8   : > { %v1256_v48 = vpop.f32.mrf.mxu0 }
 0x1f9   : > { %v1321_v10 = vadd.f32 %v1256_v48, %v11452_v58  ;;  %v1544_v1 = vpop.f32.mrf.mxu1  ;;  %8704 = vmatpush3.bf16.msra.mxu0 %v9700_v46 }
 0x1fa   : > { %v8224_v9 = vpop.f32.mrf.mxu0  ;;  %8705 = vmatprep.subr.bf16.mxu0 %v15475_v37 }
 0x1fb   : > { %v11870_v59 = vadd.f32 %v1544_v1, %v1321_v10  ;;  %v8316_v43 = vpop.f32.mrf.mxu1  ;;  %v9704_v1 = vld [vmem:[%s15307_s2 + $0x210] sm:$0xff]  }
 0x1fc   : > { %v1261_v4 = vpop.f32.mrf.mxu0  ;;  %8538 = vmatmul.mubr.bf16.gmra.mxu0 %v11120_v56 }
 0x1fd   : > { %v1322_v18 = vadd.f32 %v1261_v4, %v11468_v11  ;;  %v1549_v49 = vpop.f32.mrf.mxu1  ;;  %8630 = vmatmul.mubr.bf16.gmra.mxu1 %v11484_v55  ;;  %8541 = vmatprep.mubr.msk.bf16.mxu0 %vm10209_vm0, %v15475_v37 }
 0x1fe   : > { %v8227_v58 = vpop.f32.mrf.mxu0  ;;  %8633 = vmatprep.mubr.msk.bf16.mxu1 %vm10209_vm0, %v15475_v37  ;;  %8706 = vmatpush3.bf16.msra.mxu0 %v9701_v51  ;;  %v15526_v51 = vld [vmem:[#allocation27_spill] sm:$0xff] }
 0x1ff   : > { %v11882_v16 = vadd.f32 %v1549_v49, %v1322_v18  ;;  %v8319_v56 = vpop.f32.mrf.mxu1  ;;  %8707 = vmatprep.subr.bf16.mxu0 %v15475_v37  ;;  %v9705_v18 = vld [vmem:[%s15307_s2 + $0x208] sm:$0xff]  }
 0x200   : > { %v1264_v11 = vpop.f32.mrf.mxu0  ;;  %v15527_v56 = vld [vmem:[#allocation28_spill] sm:$0xff] }
 0x201   : > { %v1323_v55 = vadd.f32 %v1264_v11, %v11486_v13  ;;  %v1552_v52 = vpop.f32.mrf.mxu1 }
 0x202   : > { %v8228_v15 = vpop.f32.mrf.mxu0  ;;  %8708 = vmatpush3.bf16.msra.mxu0 %v9702_v3 }
 0x203   : > { %v11889_v46 = vadd.f32 %v1552_v52, %v1323_v55  ;;  %v8320_v32 = vpop.f32.mrf.mxu1  ;;  %8709 = vmatprep.subr.bf16.mxu0 %v15475_v37  ;;  %v15528_v52 = vld [vmem:[#allocation29_spill] sm:$0xff] }
 0x204   : > { %v1269_v26 = vpop.f32.mrf.mxu0  ;;  %8542 = vmatmul.mubr.bf16.gmra.mxu0 %v11152_v38 }
 0x205   : > { %v1324_v48 = vadd.f32 %v1269_v26, %v11502_v29  ;;  %v1557_v10 = vpop.f32.mrf.mxu1  ;;  %8634 = vmatmul.mubr.bf16.gmra.mxu1 %v11518_v27  ;;  %8545 = vmatprep.mubr.msk.bf16.mxu0 %vm10209_vm0, %v15475_v37 }
 0x206   : > { %v8231_v13 = vpop.f32.mrf.mxu0  ;;  %8637 = vmatprep.mubr.msk.bf16.mxu1 %vm10209_vm0, %v15475_v37  ;;  %8710 = vmatpush3.bf16.msra.mxu0 %v9703_v12  ;;  %v9706_v12 = vld [vmem:[%s15307_s2 + $0x200] sm:$0xff]  }
 0x207   : > { %v11902_v9 = vadd.f32 %v1557_v10, %v1324_v48  ;;  %v8323_v38 = vpop.f32.mrf.mxu1  ;;  %8711 = vmatprep.subr.bf16.mxu0 %v15475_v37  ;;  %v15529_v48 = vld [vmem:[#allocation30_spill] sm:$0xff] }
 0x208   : > { %v1272_v29 = vpop.f32.mrf.mxu0 }
 0x209   : > { %v1325_v27 = vadd.f32 %v1272_v29, %v15526_v51  ;;  %v1560_v43 = vpop.f32.mrf.mxu1 }
 0x20a   : > { %v8232_v4 = vpop.f32.mrf.mxu0  ;;  %8712 = vmatpush3.bf16.msra.mxu0 %v9704_v1 }
 0x20b   : > { %v11909_v49 = vadd.f32 %v1560_v43, %v1325_v27  ;;  %v8324_v58 = vpop.f32.mrf.mxu1  ;;  %8713 = vmatprep.subr.bf16.mxu0 %v15475_v37  ;;  %v15530_v27 = vld [vmem:[#allocation31_spill] sm:$0xff] }
 0x20c   : > { %v1277_v3 = vpop.f32.mrf.mxu0  ;;  %8546 = vmatmul.mubr.bf16.gmra.mxu0 %v11171_v24 }
 0x20d   : > { %v1326_v11 = vadd.f32 %v1277_v3, %v15527_v56  ;;  %v1565_v55 = vpop.f32.mrf.mxu1  ;;  %8638 = vmatmul.mubr.bf16.gmra.mxu1 %v15528_v52  ;;  %8549 = vmatprep.mubr.msk.bf16.mxu0 %vm10209_vm0, %v15475_v37 }
 0x20e   : > { %v8235_v15 = vpop.f32.mrf.mxu0  ;;  %8641 = vmatprep.mubr.msk.bf16.mxu1 %vm10209_vm0, %v15475_v37  ;;  %8714 = vmatpush3.bf16.msra.mxu0 %v9705_v18 }
 0x20f   : > { %v11922_v32 = vadd.f32 %v1565_v55, %v1326_v11  ;;  %v8327_v24 = vpop.f32.mrf.mxu1  ;;  %8715 = vmatprep.subr.bf16.mxu0 %v15475_v37  ;;  %v15531_v11 = vld [vmem:[#allocation32_spill] sm:$0xff] }
 0x210   : > { %v1280_v26 = vpop.f32.mrf.mxu0 }
 0x211   : > { %v1327_v10 = vadd.f32 %v1280_v26, %v15529_v48  ;;  %v1568_v13 = vpop.f32.mrf.mxu1 }
 0x212   : > { %v8236_v1 = vpop.f32.mrf.mxu0  ;;  %8716 = vmatpush3.bf16.msra.mxu0 %v9706_v12 }
 0x213   : > { %v11926_v38 = vadd.f32 %v1568_v13, %v1327_v10  ;;  %v8328_v29 = vpop.f32.mrf.mxu1  ;;  %8885 = vmatprep.subr.bf16.mxu0 %v15475_v37 }
 0x214   : > { %v1285_v51 = vpop.f32.mrf.mxu0  ;;  %8550 = vmatmul.mubr.bf16.gmra.mxu0 %v11189_v41 }
 0x215   : > { %v1328_v43 = vadd.f32 %v1285_v51, %v15530_v27  ;;  %v1573_v4 = vpop.f32.mrf.mxu1  ;;  %8642 = vmatmul.mubr.bf16.gmra.mxu1 %v11572_v42  ;;  %8553 = vmatprep.mubr.msk.bf16.mxu0 %vm10209_vm0, %v15475_v37 }
 0x216   : > { %v8239_v18 = vpop.f32.mrf.mxu0  ;;  %8645 = vmatprep.mubr.msk.bf16.mxu1 %vm10209_vm0, %v15475_v37 }
 0x217   : > { %v11936_v58 = vadd.f32 %v1573_v4, %v1328_v43  ;;  %v8331_v3 = vpop.f32.mrf.mxu1  ;;  %v15532_v18 = vld [vmem:[#allocation33_spill] sm:$0xff] }
 0x218   : > { %v1288_v56 = vpop.f32.mrf.mxu0 }
 0x219   : > { %v1329_v55 = vadd.f32 %v1288_v56, %v15531_v11  ;;  %v1576_v52 = vpop.f32.mrf.mxu1 }
 0x21a   : > { %v8240_v41 = vpop.f32.mrf.mxu0 }
 0x21b   : > { %v11939_v15 = vadd.f32 %v1576_v52, %v1329_v55  ;;  %v8332_v12 = vpop.f32.mrf.mxu1  ;;  %v15533_v55 = vld [vmem:[#allocation34_spill] sm:$0xff] }
 0x21c   : > { %v1717_v24 = vpop.f32.mrf.mxu0  ;;  %8554 = vmatmul.mubr.bf16.gmra.mxu0 %v11209_v61 }
 0x21d   : > { %v1868_v42 = vadd.f32 %v1717_v24, %v11589_v45  ;;  %v2101_v26 = vpop.f32.mrf.mxu1  ;;  %8646 = vmatmul.mubr.bf16.gmra.mxu1 %v11592_v0  ;;  %8557 = vmatprep.mubr.msk.bf16.mxu0 %vm10209_vm0, %v15475_v37 }
 0x21e   : > { %v8351_v48 = vpop.f32.mrf.mxu0  ;;  %8649 = vmatprep.mubr.msk.bf16.mxu1 %vm10209_vm0, %v15475_v37 }
 0x21f   : > { %v11948_v10 = vadd.f32 %v2101_v26, %v1868_v42  ;;  %v8443_v13 = vpop.f32.mrf.mxu1  ;;  %v15534_v42 = vld [vmem:[#allocation6_spill] sm:$0xff] }
 0x220   : > { %v1720_v1 = vpop.f32.mrf.mxu0  ;;  %v15535_v13 = vld [vmem:[#allocation7_spill] sm:$0xff] }
 0x221   : > { %v1869_v29 = vadd.f32 %v1720_v1, %v11596_v50  ;;  %v2104_v51 = vpop.f32.mrf.mxu1 }
 0x222   : > { %v8352_v61 = vpop.f32.mrf.mxu0 }
 0x223   : > { %v11951_v27 = vadd.f32 %v2104_v51, %v1869_v29  ;;  %v8444_v45 = vpop.f32.mrf.mxu1 }
 0x224   : > { %v1725_v43 = vpop.f32.mrf.mxu0  ;;  %8558 = vmatmul.mubr.bf16.gmra.mxu0 %v11229_v7  ;;  %v15536_v45 = vld [vmem:[#allocation12_spill] sm:$0xff] }
 0x225   : > { %v1870_v0 = vadd.f32 %v1725_v43, %v11609_v20  ;;  %v2109_v4 = vpop.f32.mrf.mxu1  ;;  %8650 = vmatmul.mubr.bf16.gmra.mxu1 %v15532_v18  ;;  %8561 = vmatprep.mubr.msk.bf16.mxu0 %vm10209_vm0, %v15475_v37 }
 0x226   : > { %v8355_v3 = vpop.f32.mrf.mxu0  ;;  %8653 = vmatprep.mubr.msk.bf16.mxu1 %vm10209_vm0, %v15475_v37 }
 0x227   : > { %v11960_v50 = vadd.f32 %v2109_v4, %v1870_v0  ;;  %v8447_v56 = vpop.f32.mrf.mxu1 }
 0x228   : > { %v1728_v11 = vpop.f32.mrf.mxu0  ;;  %v15537_v56 = vld [vmem:[#allocation13_spill] sm:$0xff] }
 0x229   : > { %v1871_v52 = vadd.f32 %v1728_v11, %v15533_v55  ;;  %v2112_v41 = vpop.f32.mrf.mxu1  ;;  %v15538_v11 = vld [vmem:[#allocation9_spill] sm:$0xff] }
 0x22a   : > { %v8356_v7 = vpop.f32.mrf.mxu0 }
 0x22b   : > { %v11963_v12 = vadd.f32 %v2112_v41, %v1871_v52  ;;  %v8448_v20 = vpop.f32.mrf.mxu1  ;;  %v15539_v41 = vld [vmem:[#allocation8_spill] sm:$0xff] }
 0x22c   : > { %v1733_v24 = vpop.f32.mrf.mxu0  ;;  %8562 = vmatmul.mubr.bf16.gmra.mxu0 %v15492_v23 }
 0x22d   : > { %v1872_v26 = vadd.f32 %v1733_v24, %v15534_v42  ;;  %v2117_v48 = vpop.f32.mrf.mxu1  ;;  %8654 = vmatmul.mubr.bf16.gmra.mxu1 %v15535_v13  ;;  %8565 = vmatprep.mubr.msk.bf16.mxu0 %vm10209_vm0, %v15475_v37 }
 0x22e   : > { %v8359_v1 = vpop.f32.mrf.mxu0  ;;  %8657 = vmatprep.mubr.msk.bf16.mxu1 %vm10209_vm0, %v15475_v37 }
 0x22f   : > { %v11972_v29 = vadd.f32 %v2117_v48, %v1872_v26  ;;  %v8451_v51 = vpop.f32.mrf.mxu1  ;;  %v15540_v26 = vld [vmem:[#allocation10_spill] sm:$0xff] }
 0x230   : > { %v1736_v61 = vpop.f32.mrf.mxu0 }
 0x231   : > { %v1873_v43 = vadd.f32 %v1736_v61, %v15536_v45  ;;  %v2120_v0 = vpop.f32.mrf.mxu1 }
 0x232   : > { %v8360_v23 = vpop.f32.mrf.mxu0 }
 0x233   : > { %v11975_v4 = vadd.f32 %v2120_v0, %v1873_v43  ;;  %v8452_v18 = vpop.f32.mrf.mxu1  ;;  %v15541_v43 = vld [vmem:[#allocation17_spill] sm:$0xff]  ;;  %v15542_v0 = vld [vmem:[#allocation16_spill] sm:$0xff] }
 0x234   : > { %v1741_v3 = vpop.f32.mrf.mxu0  ;;  %8566 = vmatmul.mubr.bf16.gmra.mxu0 %v15537_v56 }
 0x235   : > { %v1874_v55 = vadd.f32 %v1741_v3, %v15538_v11  ;;  %v2125_v52 = vpop.f32.mrf.mxu1  ;;  %8658 = vmatmul.mubr.bf16.gmra.mxu1 %v15539_v41  ;;  %8569 = vmatprep.mubr.msk.bf16.mxu0 %vm10209_vm0, %v15475_v37  ;;  %v15543_v3 = vld [vmem:[#allocation11_spill] sm:$0xff]  ;;  %v15544_v41 = vld [vmem:[#allocation14_spill] sm:$0xff] }
 0x236   : > { %v8363_v7 = vpop.f32.mrf.mxu0  ;;  %8661 = vmatprep.mubr.msk.bf16.mxu1 %vm10209_vm0, %v15475_v37 }
 0x237   : > { %v11984_v20 = vadd.f32 %v2125_v52, %v1874_v55  ;;  %v8455_v24 = vpop.f32.mrf.mxu1 }
 0x238   : > { %v1744_v42 = vpop.f32.mrf.mxu0 }
 0x239   : > { %v1875_v48 = vadd.f32 %v1744_v42, %v15540_v26  ;;  %v2128_v13 = vpop.f32.mrf.mxu1 }
 0x23a   : > { %v8364_v1 = vpop.f32.mrf.mxu0 }
 0x23b   : > { %v11987_v51 = vadd.f32 %v2128_v13, %v1875_v48  ;;  %v8456_v61 = vpop.f32.mrf.mxu1  ;;  %v15545_v1 = vld [vmem:[#allocation20_spill] sm:$0xff] }
 0x23c   : > { %v1749_v45 = vpop.f32.mrf.mxu0  ;;  %8570 = vmatmul.mubr.bf16.gmra.mxu0 %v15541_v43  ;;  %v15546_v43 = vld [vmem:[#allocation15_spill] sm:$0xff] }
 0x23d   : > { %v1876_v23 = vadd.f32 %v1749_v45, %v15542_v0  ;;  %v2133_v18 = vpop.f32.mrf.mxu1  ;;  %8662 = vmatmul.mubr.bf16.gmra.mxu1 %v15543_v3  ;;  %8573 = vmatprep.mubr.msk.bf16.mxu0 %vm10209_vm0, %v15475_v37 }
 0x23e   : > { %v8367_v56 = vpop.f32.mrf.mxu0  ;;  %8665 = vmatprep.mubr.msk.bf16.mxu1 %vm10209_vm0, %v15475_v37 }
 0x23f   : > { %v11996_v11 = vadd.f32 %v2133_v18, %v1876_v23  ;;  %v8459_v55 = vpop.f32.mrf.mxu1  ;;  %v15547_v56 = vld [vmem:[#allocation18_spill] sm:$0xff] }
 0x240   : > { %v1752_v52 = vpop.f32.mrf.mxu0 }
 0x241   : > { %v1877_v7 = vadd.f32 %v1752_v52, %v15544_v41  ;;  %v2136_v24 = vpop.f32.mrf.mxu1 }
 0x242   : > { %v8368_v42 = vpop.f32.mrf.mxu0 }
 0x243   : > { %v11999_v26 = vadd.f32 %v2136_v24, %v1877_v7  ;;  %v8460_v48 = vpop.f32.mrf.mxu1 }
 0x244   : > { %v1757_v13 = vpop.f32.mrf.mxu0  ;;  %8574 = vmatmul.mubr.bf16.gmra.mxu0 %v15512_v8 }
 0x245   : > { %v1878_v61 = vadd.f32 %v1757_v13, %v15545_v1  ;;  %v2141_v45 = vpop.f32.mrf.mxu1  ;;  %8666 = vmatmul.mubr.bf16.gmra.mxu1 %v15546_v43  ;;  %8577 = vmatprep.mubr.msk.bf16.mxu0 %vm10209_vm0, %v15475_v37  ;;  %v15548_v43 = vld [vmem:[#allocation21_spill] sm:$0xff] }
 0x246   : > { %v8371_v0 = vpop.f32.mrf.mxu0  ;;  %8669 = vmatprep.mubr.msk.bf16.mxu1 %vm10209_vm0, %v15475_v37 }
 0x247   : > { %v12008_v23 = vadd.f32 %v2141_v45, %v1878_v61  ;;  %v8463_v18 = vpop.f32.mrf.mxu1 }
 0x248   : > { %v1760_v3 = vpop.f32.mrf.mxu0 }
 0x249   : > { %v1879_v55 = vadd.f32 %v1760_v3, %v15547_v56  ;;  %v2144_v52 = vpop.f32.mrf.mxu1 }
 0x24a   : > { %v8372_v8 = vpop.f32.mrf.mxu0 }
 0x24b   : > { %v12011_v41 = vadd.f32 %v2144_v52, %v1879_v55  ;;  %v8464_v7 = vpop.f32.mrf.mxu1 }
 0x24c   : > { %v1765_v24 = vpop.f32.mrf.mxu0  ;;  %8578 = vmatmul.mubr.bf16.gmra.mxu0 %v11323_v28 }
 0x24d   : > { %v1880_v42 = vadd.f32 %v1765_v24, %v11709_v14  ;;  %v2149_v48 = vpop.f32.mrf.mxu1  ;;  %8670 = vmatmul.mubr.bf16.gmra.mxu1 %v11712_v5  ;;  %8581 = vmatprep.mubr.msk.bf16.mxu0 %vm10209_vm0, %v15475_v37 }
 0x24e   : > { %v8375_v13 = vpop.f32.mrf.mxu0  ;;  %8673 = vmatprep.mubr.msk.bf16.mxu1 %vm10209_vm0, %v15475_v37 }
 0x24f   : > { %v12020_v1 = vadd.f32 %v2149_v48, %v1880_v42  ;;  %v8467_v61 = vpop.f32.mrf.mxu1  ;;  %v15549_v42 = vld [vmem:[#allocation19_spill] sm:$0xff] }
 0x250   : > { %v1768_v45 = vpop.f32.mrf.mxu0 }
 0x251   : > { %v1881_v0 = vadd.f32 %v1768_v45, %v15548_v43  ;;  %v2152_v18 = vpop.f32.mrf.mxu1 }
 0x252   : > { %v8376_v28 = vpop.f32.mrf.mxu0 }
 0x253   : > { %v12023_v3 = vadd.f32 %v2152_v18, %v1881_v0  ;;  %v8468_v14 = vpop.f32.mrf.mxu1 }
 0x254   : > { %v1773_v56 = vpop.f32.mrf.mxu0  ;;  %8582 = vmatmul.mubr.bf16.gmra.mxu0 %v11337_v30 }
 0x255   : > { %v1882_v5 = vadd.f32 %v1773_v56, %v11729_v53  ;;  %v2157_v55 = vpop.f32.mrf.mxu1  ;;  %8674 = vmatmul.mubr.bf16.gmra.mxu1 %v11732_v36  ;;  %8585 = vmatprep.mubr.msk.bf16.mxu0 %vm10209_vm0, %v15475_v37  ;;  %v15550_v56 = vld [vmem:[#allocation22_spill] sm:$0xff] }
 0x256   : > { %v8379_v52 = vpop.f32.mrf.mxu0  ;;  %8677 = vmatprep.mubr.msk.bf16.mxu1 %vm10209_vm0, %v15475_v37 }
 0x257   : > { %v12032_v8 = vadd.f32 %v2157_v55, %v1882_v5  ;;  %v8471_v7 = vpop.f32.mrf.mxu1 }
 0x258   : > { %v1776_v24 = vpop.f32.mrf.mxu0 }
 0x259   : > { %v1883_v48 = vadd.f32 %v1776_v24, %v15549_v42  ;;  %v2160_v13 = vpop.f32.mrf.mxu1 }
 0x25a   : > { %v8380_v30 = vpop.f32.mrf.mxu0 }
 0x25b   : > { %v12035_v61 = vadd.f32 %v2160_v13, %v1883_v48  ;;  %v8472_v53 = vpop.f32.mrf.mxu1 }
 0x25c   : > { %v1781_v45 = vpop.f32.mrf.mxu0  ;;  %8586 = vmatmul.mubr.bf16.gmra.mxu0 %v11351_v35 }
 0x25d   : > { %v1884_v36 = vadd.f32 %v1781_v45, %v11749_v63  ;;  %v2165_v43 = vpop.f32.mrf.mxu1  ;;  %8678 = vmatmul.mubr.bf16.gmra.mxu1 %v11752_v34  ;;  %8589 = vmatprep.mubr.msk.bf16.mxu0 %vm10209_vm0, %v15475_v37 }
 0x25e   : > { %v8383_v0 = vpop.f32.mrf.mxu0  ;;  %8681 = vmatprep.mubr.msk.bf16.mxu1 %vm10209_vm0, %v15475_v37 }
 0x25f   : > { %v12044_v18 = vadd.f32 %v2165_v43, %v1884_v36  ;;  %v8475_v28 = vpop.f32.mrf.mxu1 }
 0x260   : > { %v1784_v14 = vpop.f32.mrf.mxu0 }
 0x261   : > { %v1885_v5 = vadd.f32 %v1784_v14, %v15550_v56  ;;  %v2168_v55 = vpop.f32.mrf.mxu1 }
 0x262   : > { %v8384_v35 = vpop.f32.mrf.mxu0 }
 0x263   : > { %v12047_v52 = vadd.f32 %v2168_v55, %v1885_v5  ;;  %v8476_v63 = vpop.f32.mrf.mxu1 }
 0x264   : > { %v1789_v7 = vpop.f32.mrf.mxu0  ;;  %8590 = vmatmul.mubr.bf16.gmra.mxu0 %v11365_v2 }
 0x265   : > { %v1886_v34 = vadd.f32 %v1789_v7, %v11769_v60  ;;  %v2173_v24 = vpop.f32.mrf.mxu1  ;;  %8682 = vmatmul.mubr.bf16.gmra.mxu1 %v11772_v25  ;;  %8593 = vmatprep.mubr.msk.bf16.mxu0 %vm10209_vm0, %v15475_v37 }
 0x266   : > { %v8387_v42 = vpop.f32.mrf.mxu0  ;;  %8685 = vmatprep.mubr.msk.bf16.mxu1 %vm10209_vm0, %v15475_v37 }
 0x267   : > { %v12056_v48 = vadd.f32 %v2173_v24, %v1886_v34  ;;  %v8479_v13 = vpop.f32.mrf.mxu1  ;;  %v15551_v24 = vld [vmem:[#allocation35_spill] sm:$0xff]  ;;  %v326_v42 = vld [vmem:[%s15306_s1 + $0x118] sm:$0xff] }
 0x268   : > { %v1792_v30 = vpop.f32.mrf.mxu0 }
 0x269   : > { %v1887_v53 = vadd.f32 %v1792_v30, %v11776_v33  ;;  %v2176_v45 = vpop.f32.mrf.mxu1 }
 0x26a   : > { %v8388_v2 = vpop.f32.mrf.mxu0 }
 0x26b   : > { %v12059_v36 = vadd.f32 %v2176_v45, %v1887_v53  ;;  %v8480_v60 = vpop.f32.mrf.mxu1  ;;  %v15552_v53 = vld [vmem:[#allocation36_spill] sm:$0xff] }
 0x26c   : > { %v1797_v43 = vpop.f32.mrf.mxu0  ;;  %8594 = vmatmul.mubr.bf16.gmra.mxu0 %v11379_v17  ;;  %v327_v60 = vld [vmem:[%s15306_s1 + $0x120] sm:$0xff] }
 0x26d   : > { %v1888_v25 = vadd.f32 %v1797_v43, %v11789_v54  ;;  %v2181_v0 = vpop.f32.mrf.mxu1  ;;  %8686 = vmatmul.mubr.bf16.gmra.mxu1 %v11792_v21  ;;  %8597 = vmatprep.mubr.msk.bf16.mxu0 %vm10209_vm0, %v15475_v37  ;;  %v10210_v21 = vmov 0   ;;  %v291_v43 = vld [vmem:[%s15306_s1] sm:$0xff] }
 0x26e   : > { %v8391_v28 = vpop.f32.mrf.mxu0  ;;  %8689 = vmatprep.mubr.msk.bf16.mxu1 %vm10209_vm0, %v15475_v37  ;;  %9634 = vset.pattern.permute.xlu1 %v10210_v21 }
 0x26f   : > { %v12068_v33 = vadd.f32 %v2181_v0, %v1888_v25  ;;  %v8483_v14 = vpop.f32.mrf.mxu1  ;;  %9633 = vset.pattern.permute.xlu0 %v10210_v21 }
 0x270   : > { %v1800_v56 = vpop.f32.mrf.mxu0  ;;  %3699 = vperm.xlu0 %9633, %v326_v42  }
 0x271   : > { %v1889_v5 = vadd.f32 %v1800_v56, %v11796_v44  ;;  %v2184_v55 = vpop.f32.mrf.mxu1  ;;  %v328_v44 = vld [vmem:[%s15306_s1 + $0x128] sm:$0xff] }
 0x272   : > { %v8392_v17 = vpop.f32.mrf.mxu0  ;;  %3709 = vperm.xlu1 %9634, %v328_v44   ;;  %v10125_v44 = vld [vmem:[%s10306_s24 + $0x20] sm:$0xff] }
 0x273   : > { %v12071_v35 = vadd.f32 %v2184_v55, %v1889_v5  ;;  %v8484_v54 = vpop.f32.mrf.mxu1  ;;  %v292_v55 = vld [vmem:[%s15306_s1 + $0x8] sm:$0xff]  ;;  %v2870_v42 = vrot.slane %v10125_v44, 2 }
 0x274   : > { %v1805_v63 = vpop.f32.mrf.mxu0  ;;  %8598 = vmatmul.mubr.bf16.gmra.mxu0 %v11396_v6  ;;  %3704 = vperm.xlu0 %9633, %v327_v60  }
 0x275   : > { %v1890_v7 = vadd.f32 %v1805_v63, %v11809_v47  ;;  %v2189_v34 = vpop.f32.mrf.mxu1  ;;  %8690 = vmatmul.mubr.bf16.gmra.mxu1 %v15551_v24  ;;  %8601 = vmatprep.mubr.msk.bf16.mxu0 %vm10209_vm0, %v15475_v37 }
 0x276   : > { %v8395_v13 = vpop.f32.mrf.mxu0  ;;  %8693 = vmatprep.mubr.msk.bf16.mxu1 %vm10209_vm0, %v15475_v37  ;;  %3524 = vperm.xlu1 %9634, %v291_v43  }
 0x277   : > { %v12086_v6 = vadd.f32 %v2189_v34, %v1890_v7  ;;  %v8487_v47 = vpop.f32.mrf.mxu1  ;;  %v10124_v34 = vld [vmem:[%s10306_s24 + $0x18] sm:$0xff]  ;;  %v293_v13 = vld [vmem:[%s15306_s1 + $0x10] sm:$0xff] }
 0x278   : > { %v1808_v30 = vpop.f32.mrf.mxu0  ;;  %3529 = vperm.xlu0 %9633, %v292_v55   ;;  %v2869_v24 = vrot.slane %v10124_v34, 2 }
 0x279   : > { %v1891_v45 = vadd.f32 %v1808_v30, %v15552_v53  ;;  %v2192_v2 = vpop.f32.mrf.mxu1  ;;  %v15553_v30 = vld [vmem:[#allocation2_spill] sm:$0xff] }
 0x27a   : > { %v8396_v25 = vpop.f32.mrf.mxu0  ;;  %vm2904_vm4 = vcmp.lt.s32.totalorder %v15553_v30, 6  ;;  %3534 = vperm.xlu1 %9634, %v293_v13   ;;  %v295_v13 = vld [vmem:[%s15306_s1 + $0x20] sm:$0xff] }
 0x27b   : > { %v12095_v0 = vadd.f32 %v2192_v2, %v1891_v45  ;;  %v8488_v28 = vpop.f32.mrf.mxu1  ;;  %v15554_v2 = vld [vmem:[#allocation5_spill] sm:$0xff]  ;;  %v15555_v25 = vld [vmem:[#allocation26_spill] sm:$0xff] }
 0x27c   : > { %v1813_v14 = vpop.f32.mrf.mxu0  ;;  %8602 = vmatmul.mubr.bf16.gmra.mxu0 %v15524_v62  ;;  %v2938_v28 = vsel %vm2904_vm4, %v2869_v24, %v2870_v42 }
 0x27d   : > { %v1892_v56 = vadd.f32 %v1813_v14, %v11830_v19  ;;  %v2197_v5 = vpop.f32.mrf.mxu1  ;;  %8694 = vmatmul.mubr.bf16.gmra.mxu1 %v11833_v31  ;;  %8605 = vmatprep.mubr.msk.bf16.mxu0 %vm10209_vm0, %v15475_v37  ;;  %v12111_v31 = vld [vmem:[%s10306_s24 + $0x10] sm:$0xff] }
 0x27e   : > { %v8399_v17 = vpop.f32.mrf.mxu0  ;;  %8697 = vmatprep.mubr.msk.bf16.mxu1 %vm10209_vm0, %v15475_v37  ;;  %v2868_v7 = vrot.slane %v12111_v31, 2  ;;  %3544 = vperm.xlu1 %9634, %v295_v13  }
 0x27f   : > { %v12107_v54 = vadd.f32 %v2197_v5, %v1892_v56  ;;  %v8491_v62 = vpop.f32.mrf.mxu1 }
 0x280   : > { %v1816_v19 = vpop.f32.mrf.mxu0  ;;  %v2939_v14 = vsel %vm2904_vm4, %v2868_v7, %v2869_v24  ;;  %v10127_v24 = vld [vmem:[%s10306_s24 + $0x30] sm:$0xff] }
 0x281   : > { %v1893_v63 = vadd.f32 %v1816_v19, %v11835_v39  ;;  %v2200_v21 = vpop.f32.mrf.mxu1  ;;  %v2943_v62 = vpack.c.bf16 %v2938_v28, %v2939_v14  ;;  %v2872_v44 = vrot.slane %v10127_v24, 2  ;;  %v296_v28 = vld [vmem:[%s15306_s1 + $0x28] sm:$0xff] }
 0x282   : > { %v8400_v47 = vpop.f32.mrf.mxu0 }
 0x283   : > { %v12120_v53 = vadd.f32 %v2200_v21, %v1893_v63  ;;  %v8492_v39 = vpop.f32.mrf.mxu1  ;;  %v10126_v21 = vld [vmem:[%s10306_s24 + $0x28] sm:$0xff] }
 0x284   : > { %v1821_v45 = vpop.f32.mrf.mxu0  ;;  %8606 = vmatmul.mubr.bf16.gmra.mxu0 %v15554_v2  ;;  %v2871_v34 = vrot.slane %v10126_v21, 2  ;;  %v10129_v21 = vld [vmem:[%s10306_s24 + $0x40] sm:$0xff] }
 0x285   : > { %v1894_v60 = vadd.f32 %v1821_v45, %v11844_v57  ;;  %v2205_v43 = vpop.f32.mrf.mxu1  ;;  %8698 = vmatmul.mubr.bf16.gmra.mxu1 %v15555_v25  ;;  %8717 = vmatprep.mubr.msk.bf16.mxu0 %vm10209_vm0, %v15475_v37  ;;  %v294_v57 = vld [vmem:[%s15306_s1 + $0x18] sm:$0xff]  ;;  %v2874_v24 = vrot.slane %v10129_v21, 2 }
 0x286   : > { %v8403_v56 = vpop.f32.mrf.mxu0  ;;  %3539 = vperm.xlu0 %9633, %v294_v57   ;;  %8809 = vmatprep.mubr.msk.bf16.mxu1 %vm10209_vm0, %v15475_v37  ;;  %v2937_v25 = vsel %vm2904_vm4, %v2870_v42, %v2871_v34  ;;  %v297_v42 = vld [vmem:[%s15306_s1 + $0x30] sm:$0xff] }
 0x287   : > { %v12138_v5 = vadd.f32 %v2205_v43, %v1894_v60  ;;  %v8495_v55 = vpop.f32.mrf.mxu1  ;;  %v2936_v43 = vsel %vm2904_vm4, %v2871_v34, %v2872_v44  ;;  %3554 = vperm.xlu1 %9634, %v297_v42  }
 0x288   : > { %v1824_v17 = vpop.f32.mrf.mxu0  ;;  %v2944_v55 = vpack.c.bf16 %v2936_v43, %v2937_v25  ;;  %v298_v43 = vld [vmem:[%s15306_s1 + $0x38] sm:$0xff] }
 0x289   : > { %v1895_v19 = vadd.f32 %v1824_v17, %v11850_v22  ;;  %v2208_v63 = vpop.f32.mrf.mxu1 }
 0x28a   : > { %v8404_v47 = vpop.f32.mrf.mxu0  ;;  %3549 = vperm.xlu0 %9633, %v296_v28  }
 0x28b   : > { %v12146_v39 = vadd.f32 %v2208_v63, %v1895_v19  ;;  %v8496_v45 = vpop.f32.mrf.mxu1  ;;  %v10128_v19 = vld [vmem:[%s10306_s24 + $0x38] sm:$0xff] }
 0x28c   : > { %v1829_v2 = vpop.f32.mrf.mxu0  ;;  %8718 = vmatmul.mubr.bf16.vlgmr.msra.gmra.mxu0 %v2943_v62  ;;  %v2873_v63 = vrot.slane %v10128_v19, 2  ;;  %v10131_v19 = vld [vmem:[%s10306_s24 + $0x50] sm:$0xff] }
 0x28d   : > { %v1896_v60 = vadd.f32 %v1829_v2, %v11862_v40  ;;  %v2213_v22 = vpop.f32.mrf.mxu1  ;;  %8721 = vmatprep.mubr.msk.bf16.mxu0 %vm10209_vm0, %v15475_v37  ;;  %v2876_v21 = vrot.slane %v10131_v19, 2 }
 0x28e   : > { %v8407_v14 = vpop.f32.mrf.mxu0  ;;  %3559 = vperm.xlu0 %9633, %v298_v43  }
 0x28f   : > { %v12158_v57 = vadd.f32 %v2213_v22, %v1896_v60  ;;  %v8499_v40 = vpop.f32.mrf.mxu1  ;;  %v2934_v60 = vsel %vm2904_vm4, %v2873_v63, %v2874_v24  ;;  %v2935_v22 = vsel %vm2904_vm4, %v2872_v44, %v2873_v63  ;;  %v299_v44 = vld [vmem:[%s15306_s1 + $0x40] sm:$0xff] }
 0x290   : > { %v1832_v56 = vpop.f32.mrf.mxu0  ;;  %v2945_v40 = vpack.c.bf16 %v2934_v60, %v2935_v22  ;;  %3564 = vperm.xlu1 %9634, %v299_v44   ;;  %v300_v60 = vld [vmem:[%s15306_s1 + $0x48] sm:$0xff] }
 0x291   : > { %v1897_v17 = vadd.f32 %v1832_v56, %v11870_v59  ;;  %v2216_v62 = vpop.f32.mrf.mxu1 }
 0x292   : > { %v8408_v34 = vpop.f32.mrf.mxu0  ;;  %3569 = vperm.xlu0 %9633, %v300_v60  }
 0x293   : > { %v12166_v13 = vadd.f32 %v2216_v62, %v1897_v17  ;;  %v8500_v47 = vpop.f32.mrf.mxu1  ;;  %v10130_v17 = vld [vmem:[%s10306_s24 + $0x48] sm:$0xff] }
 0x294   : > { %v1837_v45 = vpop.f32.mrf.mxu0  ;;  %8722 = vmatmul.mubr.bf16.gmra.mxu0 %v2944_v55  ;;  %v2875_v62 = vrot.slane %v10130_v17, 2  ;;  %v10133_v17 = vld [vmem:[%s10306_s24 + $0x60] sm:$0xff] }
 0x295   : > { %v1898_v2 = vadd.f32 %v1837_v45, %v11882_v16  ;;  %v2221_v59 = vpop.f32.mrf.mxu1  ;;  %8725 = vmatprep.mubr.msk.bf16.mxu0 %vm10209_vm0, %v15475_v37  ;;  %v2878_v19 = vrot.slane %v10133_v17, 2 }
 0x296   : > { %v8411_v25 = vpop.f32.mrf.mxu0 }
 0x297   : > { %v12178_v28 = vadd.f32 %v2221_v59, %v1898_v2  ;;  %v8503_v16 = vpop.f32.mrf.mxu1  ;;  %v2932_v2 = vsel %vm2904_vm4, %v2875_v62, %v2876_v21  ;;  %v2933_v59 = vsel %vm2904_vm4, %v2874_v24, %v2875_v62  ;;  %v301_v24 = vld [vmem:[%s15306_s1 + $0x50] sm:$0xff] }
 0x298   : > { %v1840_v14 = vpop.f32.mrf.mxu0  ;;  %v2946_v16 = vpack.c.bf16 %v2932_v2, %v2933_v59  ;;  %3574 = vperm.xlu1 %9634, %v301_v24   ;;  %v302_v2 = vld [vmem:[%s15306_s1 + $0x58] sm:$0xff] }
 0x299   : > { %v1899_v56 = vadd.f32 %v1840_v14, %v11889_v46  ;;  %v2224_v55 = vpop.f32.mrf.mxu1  ;;  %3579 = vperm.xlu0 %9633, %v302_v2  }
 0x29a   : > { %v8412_v63 = vpop.f32.mrf.mxu0 }
 0x29b   : > { %v12186_v42 = vadd.f32 %v2224_v55, %v1899_v56  ;;  %v8504_v34 = vpop.f32.mrf.mxu1  ;;  %v10132_v56 = vld [vmem:[%s10306_s24 + $0x58] sm:$0xff] }
 0x29c   : > { %v1845_v47 = vpop.f32.mrf.mxu0  ;;  %8726 = vmatmul.mubr.bf16.gmra.mxu0 %v2945_v40  ;;  %v2877_v55 = vrot.slane %v10132_v56, 2  ;;  %v10135_v56 = vld [vmem:[%s10306_s24 + $0x70] sm:$0xff] }
 0x29d   : > { %v1900_v45 = vadd.f32 %v1845_v47, %v11902_v9  ;;  %v2229_v46 = vpop.f32.mrf.mxu1  ;;  %8729 = vmatprep.mubr.msk.bf16.mxu0 %vm10209_vm0, %v15475_v37  ;;  %v2880_v17 = vrot.slane %v10135_v56, 2 }
 0x29e   : > { %v8415_v22 = vpop.f32.mrf.mxu0 }
 0x29f   : > { %v12198_v43 = vadd.f32 %v2229_v46, %v1900_v45  ;;  %v8507_v9 = vpop.f32.mrf.mxu1  ;;  %v2930_v45 = vsel %vm2904_vm4, %v2877_v55, %v2878_v19  ;;  %v2931_v46 = vsel %vm2904_vm4, %v2876_v21, %v2877_v55  ;;  %v303_v21 = vld [vmem:[%s15306_s1 + $0x60] sm:$0xff] }
 0x2a0   : > { %v1848_v25 = vpop.f32.mrf.mxu0  ;;  %v2947_v9 = vpack.c.bf16 %v2930_v45, %v2931_v46  ;;  %3584 = vperm.xlu1 %9634, %v303_v21   ;;  %v304_v45 = vld [vmem:[%s15306_s1 + $0x68] sm:$0xff] }
 0x2a1   : > { %v1901_v14 = vadd.f32 %v1848_v25, %v11909_v49  ;;  %v2232_v40 = vpop.f32.mrf.mxu1  ;;  %3589 = vperm.xlu0 %9633, %v304_v45  }
 0x2a2   : > { %v8416_v62 = vpop.f32.mrf.mxu0 }
 0x2a3   : > { %v12206_v44 = vadd.f32 %v2232_v40, %v1901_v14  ;;  %v8508_v63 = vpop.f32.mrf.mxu1  ;;  %v10134_v14 = vld [vmem:[%s10306_s24 + $0x68] sm:$0xff] }
 0x2a4   : > { %v1853_v34 = vpop.f32.mrf.mxu0  ;;  %8730 = vmatmul.mubr.bf16.gmra.mxu0 %v2946_v16  ;;  %v2879_v40 = vrot.slane %v10134_v14, 2  ;;  %v10137_v14 = vld [vmem:[%s10306_s24 + $0x80] sm:$0xff] }
 0x2a5   : > { %v1902_v47 = vadd.f32 %v1853_v34, %v11922_v32  ;;  %v2237_v49 = vpop.f32.mrf.mxu1  ;;  %8733 = vmatprep.mubr.msk.bf16.mxu0 %vm10209_vm0, %v15475_v37  ;;  %v2882_v56 = vrot.slane %v10137_v14, 2 }
 0x2a6   : > { %v8419_v59 = vpop.f32.mrf.mxu0 }
 0x2a7   : > { %v12218_v60 = vadd.f32 %v2237_v49, %v1902_v47  ;;  %v8511_v32 = vpop.f32.mrf.mxu1  ;;  %v2928_v47 = vsel %vm2904_vm4, %v2879_v40, %v2880_v17  ;;  %v2929_v49 = vsel %vm2904_vm4, %v2878_v19, %v2879_v40  ;;  %v305_v19 = vld [vmem:[%s15306_s1 + $0x70] sm:$0xff] }
 0x2a8   : > { %v1856_v22 = vpop.f32.mrf.mxu0  ;;  %v2948_v32 = vpack.c.bf16 %v2928_v47, %v2929_v49  ;;  %3594 = vperm.xlu1 %9634, %v305_v19   ;;  %v306_v47 = vld [vmem:[%s15306_s1 + $0x78] sm:$0xff] }
 0x2a9   : > { %v1903_v25 = vadd.f32 %v1856_v22, %v11926_v38  ;;  %v2240_v16 = vpop.f32.mrf.mxu1  ;;  %3599 = vperm.xlu0 %9633, %v306_v47  }
 0x2aa   : > { %v8420_v55 = vpop.f32.mrf.mxu0 }
 0x2ab   : > { %v12226_v24 = vadd.f32 %v2240_v16, %v1903_v25  ;;  %v8512_v62 = vpop.f32.mrf.mxu1  ;;  %v10136_v25 = vld [vmem:[%s10306_s24 + $0x78] sm:$0xff] }
 0x2ac   : > { %v1861_v63 = vpop.f32.mrf.mxu0  ;;  %8734 = vmatmul.mubr.bf16.gmra.mxu0 %v2947_v9  ;;  %v2881_v16 = vrot.slane %v10136_v25, 2  ;;  %v10139_v25 = vld [vmem:[%s10306_s24 + $0x90] sm:$0xff] }
 0x2ad   : > { %v1904_v34 = vadd.f32 %v1861_v63, %v11936_v58  ;;  %v2245_v38 = vpop.f32.mrf.mxu1  ;;  %8737 = vmatprep.mubr.msk.bf16.mxu0 %vm10209_vm0, %v15475_v37  ;;  %v2884_v14 = vrot.slane %v10139_v25, 2 }
 0x2ae   : > { %v8423_v46 = vpop.f32.mrf.mxu0 }
 0x2af   : > { %v12238_v2 = vadd.f32 %v2245_v38, %v1904_v34  ;;  %v8515_v58 = vpop.f32.mrf.mxu1  ;;  %v2926_v34 = vsel %vm2904_vm4, %v2881_v16, %v2882_v56  ;;  %v2927_v38 = vsel %vm2904_vm4, %v2880_v17, %v2881_v16  ;;  %v307_v17 = vld [vmem:[%s15306_s1 + $0x80] sm:$0xff] }
 0x2b0   : > { %v1864_v59 = vpop.f32.mrf.mxu0  ;;  %v2949_v58 = vpack.c.bf16 %v2926_v34, %v2927_v38  ;;  %3604 = vperm.xlu1 %9634, %v307_v17   ;;  %v308_v34 = vld [vmem:[%s15306_s1 + $0x88] sm:$0xff] }
 0x2b1   : > { %v1905_v22 = vadd.f32 %v1864_v59, %v11939_v15  ;;  %v2248_v9 = vpop.f32.mrf.mxu1  ;;  %3609 = vperm.xlu0 %9633, %v308_v34  }
 0x2b2   : > { %v8424_v40 = vpop.f32.mrf.mxu0 }
 0x2b3   : > { %v12246_v21 = vadd.f32 %v2248_v9, %v1905_v22  ;;  %v8516_v55 = vpop.f32.mrf.mxu1  ;;  %v10138_v22 = vld [vmem:[%s10306_s24 + $0x88] sm:$0xff] }
 0x2b4   : > { %v2389_v62 = vpop.f32.mrf.mxu0  ;;  %8738 = vmatmul.mubr.bf16.gmra.mxu0 %v2948_v32  ;;  %v2883_v9 = vrot.slane %v10138_v22, 2  ;;  %v10141_v22 = vld [vmem:[%s10306_s24 + $0xa0] sm:$0xff] }
 0x2b5   : > { %v2540_v63 = vadd.f32 %v2389_v62, %v11948_v10  ;;  %v2677_v15 = vpop.f32.mrf.mxu1  ;;  %8741 = vmatprep.mubr.msk.bf16.mxu0 %vm10209_vm0, %v15475_v37  ;;  %v2886_v25 = vrot.slane %v10141_v22, 2 }
 0x2b6   : > { %v8535_v49 = vpop.f32.mrf.mxu0 }
 0x2b7   : > { %v12258_v45 = vadd.f32 %v2677_v15, %v2540_v63  ;;  %v8627_v10 = vpop.f32.mrf.mxu1  ;;  %v2924_v63 = vsel %vm2904_vm4, %v2883_v9, %v2884_v14  ;;  %v2925_v15 = vsel %vm2904_vm4, %v2882_v56, %v2883_v9  ;;  %v309_v56 = vld [vmem:[%s15306_s1 + $0x90] sm:$0xff] }
 0x2b8   : > { %v2392_v46 = vpop.f32.mrf.mxu0  ;;  %v2950_v10 = vpack.c.bf16 %v2924_v63, %v2925_v15  ;;  %3614 = vperm.xlu1 %9634, %v309_v56   ;;  %v310_v63 = vld [vmem:[%s15306_s1 + $0x98] sm:$0xff] }
 0x2b9   : > { %v2541_v59 = vadd.f32 %v2392_v46, %v11951_v27  ;;  %v2680_v32 = vpop.f32.mrf.mxu1  ;;  %3619 = vperm.xlu0 %9633, %v310_v63  }
 0x2ba   : > { %v8536_v16 = vpop.f32.mrf.mxu0 }
 0x2bb   : > { %v12266_v19 = vadd.f32 %v2680_v32, %v2541_v59  ;;  %v8628_v40 = vpop.f32.mrf.mxu1  ;;  %v10140_v59 = vld [vmem:[%s10306_s24 + $0x98] sm:$0xff] }
 0x2bc   : > { %v2397_v55 = vpop.f32.mrf.mxu0  ;;  %8742 = vmatmul.mubr.bf16.gmra.mxu0 %v2949_v58  ;;  %v2885_v32 = vrot.slane %v10140_v59, 2  ;;  %v10143_v59 = vld [vmem:[%s10306_s24 + $0xb0] sm:$0xff] }
 0x2bd   : > { %v2542_v62 = vadd.f32 %v2397_v55, %v11960_v50  ;;  %v2685_v27 = vpop.f32.mrf.mxu1  ;;  %8745 = vmatprep.mubr.msk.bf16.mxu0 %vm10209_vm0, %v15475_v37  ;;  %v2888_v22 = vrot.slane %v10143_v59, 2 }
 0x2be   : > { %v8539_v38 = vpop.f32.mrf.mxu0 }
 0x2bf   : > { %v12278_v47 = vadd.f32 %v2685_v27, %v2542_v62  ;;  %v8631_v50 = vpop.f32.mrf.mxu1  ;;  %v2922_v62 = vsel %vm2904_vm4, %v2885_v32, %v2886_v25  ;;  %v2923_v27 = vsel %vm2904_vm4, %v2884_v14, %v2885_v32  ;;  %v311_v14 = vld [vmem:[%s15306_s1 + $0xa0] sm:$0xff] }
 0x2c0   : > { %v2400_v49 = vpop.f32.mrf.mxu0  ;;  %v2951_v50 = vpack.c.bf16 %v2922_v62, %v2923_v27  ;;  %3624 = vperm.xlu1 %9634, %v311_v14   ;;  %v312_v62 = vld [vmem:[%s15306_s1 + $0xa8] sm:$0xff] }
 0x2c1   : > { %v2543_v46 = vadd.f32 %v2400_v49, %v11963_v12  ;;  %v2688_v58 = vpop.f32.mrf.mxu1  ;;  %3629 = vperm.xlu0 %9633, %v312_v62  }
 0x2c2   : > { %v8540_v9 = vpop.f32.mrf.mxu0 }
 0x2c3   : > { %v12286_v17 = vadd.f32 %v2688_v58, %v2543_v46  ;;  %v8632_v16 = vpop.f32.mrf.mxu1  ;;  %v10142_v46 = vld [vmem:[%s10306_s24 + $0xa8] sm:$0xff] }
 0x2c4   : > { %v2405_v40 = vpop.f32.mrf.mxu0  ;;  %8746 = vmatmul.mubr.bf16.gmra.mxu0 %v2950_v10  ;;  %v2887_v58 = vrot.slane %v10142_v46, 2  ;;  %v10145_v46 = vld [vmem:[%s10306_s24 + $0xc0] sm:$0xff] }
 0x2c5   : > { %v2544_v55 = vadd.f32 %v2405_v40, %v11972_v29  ;;  %v2693_v12 = vpop.f32.mrf.mxu1  ;;  %8749 = vmatprep.mubr.msk.bf16.mxu0 %vm10209_vm0, %v15475_v37  ;;  %v2890_v59 = vrot.slane %v10145_v46, 2 }
 0x2c6   : > { %v8543_v15 = vpop.f32.mrf.mxu0 }
 0x2c7   : > { %v12298_v34 = vadd.f32 %v2693_v12, %v2544_v55  ;;  %v8635_v29 = vpop.f32.mrf.mxu1  ;;  %v2920_v55 = vsel %vm2904_vm4, %v2887_v58, %v2888_v22  ;;  %v2921_v12 = vsel %vm2904_vm4, %v2886_v25, %v2887_v58  ;;  %v313_v25 = vld [vmem:[%s15306_s1 + $0xb0] sm:$0xff] }
 0x2c8   : > { %v2408_v38 = vpop.f32.mrf.mxu0  ;;  %v2952_v29 = vpack.c.bf16 %v2920_v55, %v2921_v12  ;;  %3634 = vperm.xlu1 %9634, %v313_v25   ;;  %v314_v55 = vld [vmem:[%s15306_s1 + $0xb8] sm:$0xff] }
 0x2c9   : > { %v2545_v49 = vadd.f32 %v2408_v38, %v11975_v4  ;;  %v2696_v10 = vpop.f32.mrf.mxu1  ;;  %3639 = vperm.xlu0 %9633, %v314_v55  }
 0x2ca   : > { %v8544_v32 = vpop.f32.mrf.mxu0 }
 0x2cb   : > { %v12306_v56 = vadd.f32 %v2696_v10, %v2545_v49  ;;  %v8636_v9 = vpop.f32.mrf.mxu1  ;;  %v10144_v49 = vld [vmem:[%s10306_s24 + $0xb8] sm:$0xff] }
 0x2cc   : > { %v2413_v16 = vpop.f32.mrf.mxu0  ;;  %8750 = vmatmul.mubr.bf16.gmra.mxu0 %v2951_v50  ;;  %v2889_v10 = vrot.slane %v10144_v49, 2  ;;  %v10147_v49 = vld [vmem:[%s10306_s24 + $0xd0] sm:$0xff] }
 0x2cd   : > { %v2546_v40 = vadd.f32 %v2413_v16, %v11984_v20  ;;  %v2701_v4 = vpop.f32.mrf.mxu1  ;;  %8753 = vmatprep.mubr.msk.bf16.mxu0 %vm10209_vm0, %v15475_v37  ;;  %v2892_v46 = vrot.slane %v10147_v49, 2 }
 0x2ce   : > { %v8547_v27 = vpop.f32.mrf.mxu0 }
 0x2cf   : > { %v12318_v63 = vadd.f32 %v2701_v4, %v2546_v40  ;;  %v8639_v20 = vpop.f32.mrf.mxu1  ;;  %v2918_v40 = vsel %vm2904_vm4, %v2889_v10, %v2890_v59  ;;  %v2919_v4 = vsel %vm2904_vm4, %v2888_v22, %v2889_v10  ;;  %v315_v22 = vld [vmem:[%s15306_s1 + $0xc0] sm:$0xff] }
 0x2d0   : > { %v2416_v15 = vpop.f32.mrf.mxu0  ;;  %v2953_v20 = vpack.c.bf16 %v2918_v40, %v2919_v4  ;;  %3644 = vperm.xlu1 %9634, %v315_v22   ;;  %v316_v40 = vld [vmem:[%s15306_s1 + $0xc8] sm:$0xff] }
 0x2d1   : > { %v2547_v38 = vadd.f32 %v2416_v15, %v11987_v51  ;;  %v2704_v50 = vpop.f32.mrf.mxu1  ;;  %3649 = vperm.xlu0 %9633, %v316_v40  }
 0x2d2   : > { %v8548_v58 = vpop.f32.mrf.mxu0 }
 0x2d3   : > { %v12326_v14 = vadd.f32 %v2704_v50, %v2547_v38  ;;  %v8640_v32 = vpop.f32.mrf.mxu1  ;;  %v10146_v38 = vld [vmem:[%s10306_s24 + $0xc8] sm:$0xff] }
 0x2d4   : > { %v2421_v9 = vpop.f32.mrf.mxu0  ;;  %8754 = vmatmul.mubr.bf16.gmra.mxu0 %v2952_v29  ;;  %v2891_v50 = vrot.slane %v10146_v38, 2  ;;  %v10149_v38 = vld [vmem:[%s10306_s24 + $0xe0] sm:$0xff] }
 0x2d5   : > { %v2548_v16 = vadd.f32 %v2421_v9, %v11996_v11  ;;  %v2709_v51 = vpop.f32.mrf.mxu1  ;;  %8757 = vmatprep.mubr.msk.bf16.mxu0 %vm10209_vm0, %v15475_v37  ;;  %v2894_v49 = vrot.slane %v10149_v38, 2 }
 0x2d6   : > { %v8551_v12 = vpop.f32.mrf.mxu0 }
 0x2d7   : > { %v12338_v62 = vadd.f32 %v2709_v51, %v2548_v16  ;;  %v8643_v11 = vpop.f32.mrf.mxu1  ;;  %v2916_v16 = vsel %vm2904_vm4, %v2891_v50, %v2892_v46  ;;  %v2917_v51 = vsel %vm2904_vm4, %v2890_v59, %v2891_v50  ;;  %v317_v59 = vld [vmem:[%s15306_s1 + $0xd0] sm:$0xff] }
 0x2d8   : > { %v2424_v27 = vpop.f32.mrf.mxu0  ;;  %v2954_v11 = vpack.c.bf16 %v2916_v16, %v2917_v51  ;;  %3654 = vperm.xlu1 %9634, %v317_v59   ;;  %v318_v16 = vld [vmem:[%s15306_s1 + $0xd8] sm:$0xff] }
 0x2d9   : > { %v2549_v15 = vadd.f32 %v2424_v27, %v11999_v26  ;;  %v2712_v29 = vpop.f32.mrf.mxu1  ;;  %3659 = vperm.xlu0 %9633, %v318_v16  }
 0x2da   : > { %v8552_v10 = vpop.f32.mrf.mxu0 }
 0x2db   : > { %v12346_v25 = vadd.f32 %v2712_v29, %v2549_v15  ;;  %v8644_v58 = vpop.f32.mrf.mxu1  ;;  %v10148_v15 = vld [vmem:[%s10306_s24 + $0xd8] sm:$0xff] }
 0x2dc   : > { %v2429_v32 = vpop.f32.mrf.mxu0  ;;  %8758 = vmatmul.mubr.bf16.gmra.mxu0 %v2953_v20  ;;  %v2893_v29 = vrot.slane %v10148_v15, 2  ;;  %v10151_v15 = vld [vmem:[%s10306_s24 + $0xf0] sm:$0xff] }
 0x2dd   : > { %v2550_v9 = vadd.f32 %v2429_v32, %v12008_v23  ;;  %v2717_v26 = vpop.f32.mrf.mxu1  ;;  %8761 = vmatprep.mubr.msk.bf16.mxu0 %vm10209_vm0, %v15475_v37  ;;  %v2896_v38 = vrot.slane %v10151_v15, 2 }
 0x2de   : > { %v8555_v4 = vpop.f32.mrf.mxu0 }
 0x2df   : > { %v12358_v55 = vadd.f32 %v2717_v26, %v2550_v9  ;;  %v8647_v23 = vpop.f32.mrf.mxu1  ;;  %v2914_v9 = vsel %vm2904_vm4, %v2893_v29, %v2894_v49  ;;  %v2915_v26 = vsel %vm2904_vm4, %v2892_v46, %v2893_v29  ;;  %v319_v46 = vld [vmem:[%s15306_s1 + $0xe0] sm:$0xff] }
 0x2e0   : > { %v2432_v12 = vpop.f32.mrf.mxu0  ;;  %v2955_v23 = vpack.c.bf16 %v2914_v9, %v2915_v26  ;;  %3664 = vperm.xlu1 %9634, %v319_v46   ;;  %v320_v9 = vld [vmem:[%s15306_s1 + $0xe8] sm:$0xff] }
 0x2e1   : > { %v2551_v27 = vadd.f32 %v2432_v12, %v12011_v41  ;;  %v2720_v20 = vpop.f32.mrf.mxu1  ;;  %3669 = vperm.xlu0 %9633, %v320_v9  }
 0x2e2   : > { %v8556_v50 = vpop.f32.mrf.mxu0 }
 0x2e3   : > { %v12366_v22 = vadd.f32 %v2720_v20, %v2551_v27  ;;  %v8648_v10 = vpop.f32.mrf.mxu1  ;;  %v10150_v27 = vld [vmem:[%s10306_s24 + $0xe8] sm:$0xff] }
 0x2e4   : > { %v2437_v58 = vpop.f32.mrf.mxu0  ;;  %8762 = vmatmul.mubr.bf16.gmra.mxu0 %v2954_v11  ;;  %v2895_v20 = vrot.slane %v10150_v27, 2  ;;  %v10153_v27 = vld [vmem:[%s10306_s24 + $0x100] sm:$0xff] }
 0x2e5   : > { %v2552_v32 = vadd.f32 %v2437_v58, %v12020_v1  ;;  %v2725_v41 = vpop.f32.mrf.mxu1  ;;  %8765 = vmatprep.mubr.msk.bf16.mxu0 %vm10209_vm0, %v15475_v37  ;;  %v2898_v15 = vrot.slane %v10153_v27, 2 }
 0x2e6   : > { %v8559_v51 = vpop.f32.mrf.mxu0 }
 0x2e7   : > { %v12378_v40 = vadd.f32 %v2725_v41, %v2552_v32  ;;  %v8651_v1 = vpop.f32.mrf.mxu1  ;;  %v2912_v32 = vsel %vm2904_vm4, %v2895_v20, %v2896_v38  ;;  %v2913_v41 = vsel %vm2904_vm4, %v2894_v49, %v2895_v20  ;;  %v321_v49 = vld [vmem:[%s15306_s1 + $0xf0] sm:$0xff] }
 0x2e8   : > { %v2440_v4 = vpop.f32.mrf.mxu0  ;;  %v2956_v1 = vpack.c.bf16 %v2912_v32, %v2913_v41  ;;  %3674 = vperm.xlu1 %9634, %v321_v49   ;;  %v322_v32 = vld [vmem:[%s15306_s1 + $0xf8] sm:$0xff] }
 0x2e9   : > { %v2553_v12 = vadd.f32 %v2440_v4, %v12023_v3  ;;  %v2728_v11 = vpop.f32.mrf.mxu1  ;;  %3679 = vperm.xlu0 %9633, %v322_v32  }
 0x2ea   : > { %v8560_v29 = vpop.f32.mrf.mxu0 }
 0x2eb   : > { %v12386_v59 = vadd.f32 %v2728_v11, %v2553_v12  ;;  %v8652_v50 = vpop.f32.mrf.mxu1  ;;  %v10152_v12 = vld [vmem:[%s10306_s24 + $0xf8] sm:$0xff] }
 0x2ec   : > { %v2445_v10 = vpop.f32.mrf.mxu0  ;;  %8766 = vmatmul.mubr.bf16.gmra.mxu0 %v2955_v23  ;;  %v2897_v11 = vrot.slane %v10152_v12, 2  ;;  %v10155_v12 = vld [vmem:[%s10306_s24 + $0x110] sm:$0xff] }
 0x2ed   : > { %v2554_v58 = vadd.f32 %v2445_v10, %v12032_v8  ;;  %v2733_v3 = vpop.f32.mrf.mxu1  ;;  %8769 = vmatprep.mubr.msk.bf16.mxu0 %vm10209_vm0, %v15475_v37  ;;  %v2900_v27 = vrot.slane %v10155_v12, 2 }
 0x2ee   : > { %v8563_v26 = vpop.f32.mrf.mxu0 }
 0x2ef   : > { %v12398_v16 = vadd.f32 %v2733_v3, %v2554_v58  ;;  %v8655_v8 = vpop.f32.mrf.mxu1  ;;  %v2910_v58 = vsel %vm2904_vm4, %v2897_v11, %v2898_v15  ;;  %v2911_v3 = vsel %vm2904_vm4, %v2896_v38, %v2897_v11  ;;  %v323_v38 = vld [vmem:[%s15306_s1 + $0x100] sm:$0xff] }
 0x2f0   : > { %v2448_v51 = vpop.f32.mrf.mxu0  ;;  %v2957_v8 = vpack.c.bf16 %v2910_v58, %v2911_v3  ;;  %3684 = vperm.xlu1 %9634, %v323_v38   ;;  %v324_v58 = vld [vmem:[%s15306_s1 + $0x108] sm:$0xff] }
 0x2f1   : > { %v2555_v4 = vadd.f32 %v2448_v51, %v12035_v61  ;;  %v2736_v23 = vpop.f32.mrf.mxu1  ;;  %3689 = vperm.xlu0 %9633, %v324_v58  }
 0x2f2   : > { %v8564_v20 = vpop.f32.mrf.mxu0 }
 0x2f3   : > { %v12406_v46 = vadd.f32 %v2736_v23, %v2555_v4  ;;  %v8656_v29 = vpop.f32.mrf.mxu1  ;;  %v10154_v4 = vld [vmem:[%s10306_s24 + $0x108] sm:$0xff] }
 0x2f4   : > { %v2453_v50 = vpop.f32.mrf.mxu0  ;;  %8770 = vmatmul.mubr.bf16.gmra.mxu0 %v2956_v1  ;;  %v2899_v23 = vrot.slane %v10154_v4, 2  ;;  %v10157_v4 = vld [vmem:[%s10306_s24 + $0x120] sm:$0xff] }
 0x2f5   : > { %v2556_v10 = vadd.f32 %v2453_v50, %v12044_v18  ;;  %v2741_v61 = vpop.f32.mrf.mxu1  ;;  %8773 = vmatprep.mubr.msk.bf16.mxu0 %vm10209_vm0, %v15475_v37  ;;  %v2902_v12 = vrot.slane %v10157_v4, 2 }
 0x2f6   : > { %v8567_v41 = vpop.f32.mrf.mxu0 }
 0x2f7   : > { %v12418_v9 = vadd.f32 %v2741_v61, %v2556_v10  ;;  %v8659_v18 = vpop.f32.mrf.mxu1  ;;  %v2908_v10 = vsel %vm2904_vm4, %v2899_v23, %v2900_v27  ;;  %v2909_v61 = vsel %vm2904_vm4, %v2898_v15, %v2899_v23  ;;  %v325_v15 = vld [vmem:[%s15306_s1 + $0x110] sm:$0xff] }
 0x2f8   : > { %v2456_v26 = vpop.f32.mrf.mxu0  ;;  %v2958_v18 = vpack.c.bf16 %v2908_v10, %v2909_v61  ;;  %3694 = vperm.xlu1 %9634, %v325_v15  }
 0x2f9   : > { %v2557_v51 = vadd.f32 %v2456_v26, %v12047_v52  ;;  %v2744_v1 = vpop.f32.mrf.mxu1 }
 0x2fa   : > { %v8568_v11 = vpop.f32.mrf.mxu0 }
 0x2fb   : > { %v12426_v49 = vadd.f32 %v2744_v1, %v2557_v51  ;;  %v8660_v20 = vpop.f32.mrf.mxu1  ;;  %v10156_v51 = vld [vmem:[%s10306_s24 + $0x118] sm:$0xff] }
 0x2fc   : > { %v2461_v29 = vpop.f32.mrf.mxu0  ;;  %8774 = vmatmul.mubr.bf16.gmra.mxu0 %v2957_v8  ;;  %v2901_v1 = vrot.slane %v10156_v51, 2 }
 0x2fd   : > { %v2558_v50 = vadd.f32 %v2461_v29, %v12056_v48  ;;  %v2749_v52 = vpop.f32.mrf.mxu1  ;;  %8777 = vmatprep.mubr.msk.bf16.mxu0 %vm10209_vm0, %v15475_v37 }
 0x2fe   : > { %v8571_v3 = vpop.f32.mrf.mxu0 }
 0x2ff   : > { %v12438_v32 = vadd.f32 %v2749_v52, %v2558_v50  ;;  %v8663_v48 = vpop.f32.mrf.mxu1  ;;  %v2906_v50 = vsel %vm2904_vm4, %v2901_v1, %v2902_v12  ;;  %v2907_v52 = vsel %vm2904_vm4, %v2900_v27, %v2901_v1 }
 0x300   : > { %v2464_v41 = vpop.f32.mrf.mxu0  ;;  %v2959_v48 = vpack.c.bf16 %v2906_v50, %v2907_v52 }
 0x301   : > { %v2559_v26 = vadd.f32 %v2464_v41, %v12059_v36  ;;  %v2752_v8 = vpop.f32.mrf.mxu1 }
 0x302   : > { %v8572_v23 = vpop.f32.mrf.mxu0 }
 0x303   : > { %v12446_v38 = vadd.f32 %v2752_v8, %v2559_v26  ;;  %v8664_v11 = vpop.f32.mrf.mxu1  ;;  %v10159_v8 = vld [vmem:[%s10306_s24 + $0x128] sm:$0xff] }
 0x304   : > { %v2469_v20 = vpop.f32.mrf.mxu0  ;;  %8778 = vmatmul.mubr.bf16.gmra.mxu0 %v2958_v18  ;;  %v2903_v51 = vrot.slane %v10159_v8, 2 }
 0x305   : > { %v2560_v36 = vadd.f32 %v2469_v20, %v12068_v33  ;;  %v2757_v29 = vpop.f32.mrf.mxu1  ;;  %8781 = vmatprep.mubr.msk.bf16.mxu0 %vm10209_vm0, %v15475_v37  ;;  %v10158_v33 = vld [vmem:[%s10306_s24] sm:$0xff] }
 0x306   : > { %v8575_v10 = vpop.f32.mrf.mxu0  ;;  %v2866_v26 = vrot.slane %v10158_v33, 2 }
 0x307   : > { %v12455_v61 = vadd.f32 %v2757_v29, %v2560_v36  ;;  %v8667_v58 = vpop.f32.mrf.mxu1 }
 0x308   : > { %v2472_v3 = vpop.f32.mrf.mxu0  ;;  %v2942_v20 = vsel %vm2904_vm4, %v2903_v51, %v2866_v26 }
 0x309   : > { %v2561_v41 = vadd.f32 %v2472_v3, %v12071_v35  ;;  %v2760_v18 = vpop.f32.mrf.mxu1  ;;  %v2905_v35 = vsel %vm2904_vm4, %v2902_v12, %v2903_v51 }
 0x30a   : > { %v8576_v4 = vpop.f32.mrf.mxu0  ;;  %v2960_v10 = vpack.c.bf16 %v2942_v20, %v2905_v35 }
 0x30b   : > { %v12460_v15 = vadd.f32 %v2760_v18, %v2561_v41  ;;  %v8668_v23 = vpop.f32.mrf.mxu1  ;;  %v9707_v41 = vld [vmem:[%s15309_s4 + $0x78] sm:$0xff]  }
 0x30c   : > { %v2477_v11 = vpop.f32.mrf.mxu0  ;;  %8782 = vmatmul.mubr.bf16.gmra.mxu0 %v2959_v48  ;;  %8794 = vmatpush3.bf16.msra.mxu1 %v9707_v41 }
 0x30d   : > { %v2562_v27 = vadd.f32 %v2477_v11, %v12086_v6  ;;  %v2765_v1 = vpop.f32.mrf.mxu1  ;;  %8785 = vmatprep.mubr.msk.bf16.mxu0 %vm10209_vm0, %v15475_v37  ;;  %v10160_v6 = vld [vmem:[%s10306_s24 + $0x8] sm:$0xff]  ;;  %8795 = vmatprep.subr.bf16.mxu1 %v15475_v37 }
 0x30e   : > { %v8579_v36 = vpop.f32.mrf.mxu0  ;;  %v2867_v48 = vrot.slane %v10160_v6, 2 }
 0x30f   : > { %v12469_v29 = vadd.f32 %v2765_v1, %v2562_v27  ;;  %v8671_v50 = vpop.f32.mrf.mxu1 }
 0x310   : > { %v2480_v52 = vpop.f32.mrf.mxu0  ;;  %v2941_v23 = vsel %vm2904_vm4, %v2866_v26, %v2867_v48 }
 0x311   : > { %v2563_v58 = vadd.f32 %v2480_v52, %v12095_v0  ;;  %v2768_v3 = vpop.f32.mrf.mxu1  ;;  %v2940_v0 = vsel %vm2904_vm4, %v2867_v48, %v2868_v7 }
 0x312   : > { %v8580_v18 = vpop.f32.mrf.mxu0  ;;  %v2961_v20 = vpack.c.bf16 %v2940_v0, %v2941_v23  ;;  %v9708_v0 = vld [vmem:[%s15309_s4 + $0x70] sm:$0xff]  }
 0x313   : > { %v12476_v12 = vadd.f32 %v2768_v3, %v2563_v58  ;;  %v8672_v33 = vpop.f32.mrf.mxu1  ;;  %8796 = vmatpush3.bf16.msra.mxu1 %v9708_v0 }
 0x314   : > { %v2485_v8 = vpop.f32.mrf.mxu0  ;;  %8786 = vmatmul.mubr.bf16.gmra.mxu0 %v2960_v10  ;;  %8797 = vmatprep.subr.bf16.mxu1 %v15475_v37 }
 0x315   : > { %v2564_v51 = vadd.f32 %v2485_v8, %v12107_v54  ;;  %v2773_v4 = vpop.f32.mrf.mxu1  ;;  %8789 = vmatprep.mubr.msk.bf16.mxu0 %vm10209_vm0, %v15475_v37 }
 0x316   : > { %v8583_v11 = vpop.f32.mrf.mxu0 }
 0x317   : > { %v12488_v27 = vadd.f32 %v2773_v4, %v2564_v51  ;;  %v8675_v1 = vpop.f32.mrf.mxu1 }
 0x318   : > { %v2488_v35 = vpop.f32.mrf.mxu0 }
 0x319   : > { %v2565_v54 = vadd.f32 %v2488_v35, %v12120_v53  ;;  %v2776_v36 = vpop.f32.mrf.mxu1 }
 0x31a   : > { %v8584_v50 = vpop.f32.mrf.mxu0 }
 0x31b   : > { %v12491_v52 = vadd.f32 %v2776_v36, %v2565_v54  ;;  %v8676_v10 = vpop.f32.mrf.mxu1 }
 0x31c   : > { %v2493_v31 = vpop.f32.mrf.mxu0  ;;  %8790 = vmatmul.mubr.bf16.gmra.mxu0 %v2961_v20 }
 0x31d   : > { %v2566_v7 = vadd.f32 %v2493_v31, %v12138_v5  ;;  %v2781_v58 = vpop.f32.mrf.mxu1  ;;  %8901 = vmatprep.mubr.msk.bf16.mxu0 %vm10209_vm0, %v15475_v37 }
 0x31e   : > { %v8587_v26 = vpop.f32.mrf.mxu0 }
 0x31f   : > { %v12496_v3 = vadd.f32 %v2781_v58, %v2566_v7  ;;  %v8679_v6 = vpop.f32.mrf.mxu1 }
 0x320   : > { %v2496_v48 = vpop.f32.mrf.mxu0 }
 0x321   : > { %v2567_v53 = vadd.f32 %v2496_v48, %v12146_v39  ;;  %v2784_v41 = vpop.f32.mrf.mxu1 }
 0x322   : > { %v8588_v18 = vpop.f32.mrf.mxu0 }
 0x323   : > { %v12499_v33 = vadd.f32 %v2784_v41, %v2567_v53  ;;  %v8680_v8 = vpop.f32.mrf.mxu1 }
 0x324   : > { %v2501_v51 = vpop.f32.mrf.mxu0 }
 0x325   : > { %v2568_v4 = vadd.f32 %v2501_v51, %v12158_v57  ;;  %v2789_v5 = vpop.f32.mrf.mxu1 }
 0x326   : > { %v8591_v23 = vpop.f32.mrf.mxu0 }
 0x327   : > { %v12505_v11 = vadd.f32 %v2789_v5, %v2568_v4  ;;  %v8683_v1 = vpop.f32.mrf.mxu1 }
 0x328   : > { %v2504_v35 = vpop.f32.mrf.mxu0 }
 0x329   : > { %v2569_v39 = vadd.f32 %v2504_v35, %v12166_v13  ;;  %v2792_v20 = vpop.f32.mrf.mxu1 }
 0x32a   : > { %v8592_v54 = vpop.f32.mrf.mxu0 }
 0x32b   : > { %v12509_v36 = vadd.f32 %v2792_v20, %v2569_v39  ;;  %v8684_v57 = vpop.f32.mrf.mxu1 }
 0x32c   : > { %v2509_v50 = vpop.f32.mrf.mxu0 }
 0x32d   : > { %v2570_v10 = vadd.f32 %v2509_v50, %v12178_v28  ;;  %v2797_v31 = vpop.f32.mrf.mxu1  ;;  %v9709_v28 = vld [vmem:[%s15309_s4 + $0x68] sm:$0xff]  }
 0x32e   : > { %v8595_v7 = vpop.f32.mrf.mxu0  ;;  %8798 = vmatpush3.bf16.msra.mxu1 %v9709_v28 }
 0x32f   : > { %v12512_v58 = vadd.f32 %v2797_v31, %v2570_v10  ;;  %v8687_v26 = vpop.f32.mrf.mxu1  ;;  %8799 = vmatprep.subr.bf16.mxu1 %v15475_v37 }
 0x330   : > { %v2512_v6 = vpop.f32.mrf.mxu0 }
 0x331   : > { %v2571_v48 = vadd.f32 %v2512_v6, %v12186_v42  ;;  %v2800_v53 = vpop.f32.mrf.mxu1 }
 0x332   : > { %v8596_v41 = vpop.f32.mrf.mxu0 }
 0x333   : > { %v12515_v18 = vadd.f32 %v2800_v53, %v2571_v48  ;;  %v8688_v13 = vpop.f32.mrf.mxu1 }
 0x334   : > { %v2517_v8 = vpop.f32.mrf.mxu0 }
 0x335   : > { %v2572_v51 = vadd.f32 %v2517_v8, %v12198_v43  ;;  %v2805_v4 = vpop.f32.mrf.mxu1 }
 0x336   : > { %v8599_v5 = vpop.f32.mrf.mxu0 }
 0x337   : > { %v12521_v0 = vadd.f32 %v2805_v4, %v2572_v51  ;;  %v8691_v23 = vpop.f32.mrf.mxu1 }
 0x338   : > { %v2520_v1 = vpop.f32.mrf.mxu0 }
 0x339   : > { %v2573_v42 = vadd.f32 %v2520_v1, %v12206_v44  ;;  %v2808_v35 = vpop.f32.mrf.mxu1 }
 0x33a   : > { %v8600_v39 = vpop.f32.mrf.mxu0 }
 0x33b   : > { %v12525_v20 = vadd.f32 %v2808_v35, %v2573_v42  ;;  %v8692_v43 = vpop.f32.mrf.mxu1 }
 0x33c   : > { %v2525_v54 = vpop.f32.mrf.mxu0 }
 0x33d   : > { %v2574_v57 = vadd.f32 %v2525_v54, %v12218_v60  ;;  %v2813_v50 = vpop.f32.mrf.mxu1 }
 0x33e   : > { %v8603_v10 = vpop.f32.mrf.mxu0 }
 0x33f   : > { %v12528_v31 = vadd.f32 %v2813_v50, %v2574_v57  ;;  %v8695_v7 = vpop.f32.mrf.mxu1  ;;  %v12550_v50 = vld [vmem:[%s15308_s3] ss:$0 sm:$0xff] }
 0x340   : > { %v2528_v26 = vpop.f32.mrf.mxu0 }
 0x341   : > { %v2575_v6 = vadd.f32 %v2528_v26, %v12226_v24  ;;  %v2816_v48 = vpop.f32.mrf.mxu1  ;;  %v9710_v24 = vld [vmem:[%s15309_s4 + $0x60] sm:$0xff]  }
 0x342   : > { %v8604_v44 = vpop.f32.mrf.mxu0  ;;  %8800 = vmatpush3.bf16.msra.mxu1 %v9710_v24  ;;  %v9711_v24 = vld [vmem:[%s15309_s4 + $0x58] sm:$0xff]  }
 0x343   : > { %v12531_v53 = vadd.f32 %v2816_v48, %v2575_v6  ;;  %v8696_v41 = vpop.f32.mrf.mxu1  ;;  %8801 = vmatprep.subr.bf16.mxu1 %v15475_v37 }
 0x344   : > { %v2533_v13 = vpop.f32.mrf.mxu0 }
 0x345   : > { %v2576_v8 = vadd.f32 %v2533_v13, %v12238_v2  ;;  %v2821_v51 = vpop.f32.mrf.mxu1 }
 0x346   : > { %v8607_v4 = vpop.f32.mrf.mxu0  ;;  %8802 = vmatpush3.bf16.msra.mxu1 %v9711_v24 }
 0x347   : > { %v12534_v5 = vadd.f32 %v2821_v51, %v2576_v8  ;;  %v8699_v60 = vpop.f32.mrf.mxu1  ;;  %8803 = vmatprep.subr.bf16.mxu1 %v15475_v37 }
 0x348   : > { %v2536_v28 = vpop.f32.mrf.mxu0 }
 0x349   : > { %v2577_v23 = vadd.f32 %v2536_v28, %v12246_v21  ;;  %v2824_v1 = vpop.f32.mrf.mxu1 }
 0x34a   : > { %v8608_v42 = vpop.f32.mrf.mxu0 }
 0x34b   : > { %v12540_v35 = vadd.f32 %v2824_v1, %v2577_v23  ;;  %v8700_v39 = vpop.f32.mrf.mxu1 }
 0x34c   : > { %v3061_v43 = vpop.f32.mrf.mxu0 }
 0x34d   : > { %v12544_v2 = vadd.f32 %v3061_v43, %v12258_v45 }
 0x34e   : > { %v8719_v54 = vpop.f32.mrf.mxu0 }
 0x350   : > { %v3064_v57 = vpop.f32.mrf.mxu0 }
 0x351   : > { %v3213_v21 = vadd.f32 %v3064_v57, %v12266_v19 }
 0x352   : > { %v8720_v10 = vpop.f32.mrf.mxu0 }
 0x353   : > { %v12553_v7 = vadd.f32 %v12550_v50, %v3213_v21 }
 0x354   : > { %v3069_v26 = vpop.f32.mrf.mxu0 }
 0x355   : > { %v3295_v6 = vsub.f32 0.0, %v12553_v7  ;;  %v3214_v48 = vadd.f32 %v3069_v26, %v12278_v47 }
 0x356   : > { %v8723_v45 = vpop.f32.mrf.mxu0 }
 0x357   : > { %v3334_v44 = vmul.f32 1.442695, %v3295_v6  ;;  %v12558_v41 = vadd.f32 %v12550_v50, %v3214_v48 }
 0x358   : > { %v3072_v19 = vpop.f32.mrf.mxu0 }
 0x359   : > { %9779 = vpow2.f32 %v3334_v44  ;;  %v3296_v13 = vsub.f32 0.0, %v12558_v41  ;;  %v3215_v8 = vadd.f32 %v3072_v19, %v12286_v17 }
 0x35a   : > { %v8724_v51 = vpop.f32.mrf.mxu0 }
 0x35b   : > { %v3336_v4 = vmul.f32 1.442695, %v3296_v13  ;;  %v12563_v60 = vadd.f32 %v12550_v50, %v3215_v8 }
 0x35c   : > { %v3077_v28 = vpop.f32.mrf.mxu0 }
 0x35d   : > { %9781 = vpow2.f32 %v3336_v4  ;;  %v3297_v47 = vsub.f32 0.0, %v12563_v60  ;;  %v3216_v23 = vadd.f32 %v3077_v28, %v12298_v34 }
 0x35e   : > { %v8727_v1 = vpop.f32.mrf.mxu0 }
 0x35f   : > { %v3338_v42 = vmul.f32 1.442695, %v3297_v47  ;;  %v12571_v39 = vadd.f32 %v12550_v50, %v3216_v23 }
 0x360   : > { %v3080_v17 = vpop.f32.mrf.mxu0 }
 0x361   : > { %9783 = vpow2.f32 %v3338_v42  ;;  %v3298_v43 = vsub.f32 0.0, %v12571_v39  ;;  %v3217_v54 = vadd.f32 %v3080_v17, %v12306_v56  ;;  %v12591_v42 = vpop.permute.xlu1 %3709 }
 0x362   : > { %v8728_v57 = vpop.f32.mrf.mxu0 }
 0x363   : > { %v3340_v34 = vmul.f32 1.442695, %v3298_v43  ;;  %v12577_v21 = vadd.f32 %v12550_v50, %v3217_v54 }
 0x364   : > { %v3085_v10 = vpop.f32.mrf.mxu0 }
 0x365   : > { %v3299_v26 = vsub.f32 0.0, %v12577_v21  ;;  %v12581_v6 = vadd.f32 %v3085_v10, %v12318_v63  ;;  %9785 = vpow2.f32 %v3340_v34  ;;  %v12589_v63 = vpop.permute.xlu0 %3699 }
 0x366   : > { %v9780_v48 = vpop.eup %9779  ;;  %v8731_v45 = vpop.f32.mrf.mxu0 }
 0x367   : > { %v3409_v44 = vadd.f32 1.0, %v9780_v48  ;;  %v3342_v19 = vmul.f32 1.442695, %v3299_v26  ;;  %v9715_v26 = vld [vmem:[%s15309_s4 + $0x30] sm:$0xff]   ;;  %v12608_v45 = vpop.permute.xlu1 %3524 }
 0x368   : > { %v3088_v13 = vpop.f32.mrf.mxu0 }
 0x369   : > { %v12584_v56 = vadd.f32 %v3088_v13, %v12326_v14  ;;  %9787 = vpow2.f32 %v3342_v19  ;;  %v9714_v14 = vld [vmem:[%s15309_s4 + $0x38] sm:$0xff]   ;;  %v12599_v57 = vpop.permute.xlu0 %3704 }
 0x36a   : > { %v9782_v8 = vpop.eup %9781  ;;  %v8732_v51 = vpop.f32.mrf.mxu0  ;;  %9789 = vrcp.f32 %v3409_v44  ;;  %8886 = vmatpush3.bf16.msra.mxu0 %v9714_v14 }
 0x36b   : > { %v3410_v4 = vadd.f32 1.0, %v9782_v8  ;;  %8887 = vmatprep.subr.bf16.mxu0 %v15475_v37  ;;  %v9716_v51 = vld [vmem:[%s15309_s4 + $0x28] sm:$0xff]  }
 0x36c   : > { %v3093_v28 = vpop.f32.mrf.mxu0 }
 0x36d   : > { %9791 = vrcp.f32 %v3410_v4  ;;  %v12587_v47 = vadd.f32 %v3093_v28, %v12338_v62  ;;  %v3530_v4 = vpop.permute.xlu0 %3529 }
 0x36e   : > { %v9784_v23 = vpop.eup %9783  ;;  %v8735_v1 = vpop.f32.mrf.mxu0  ;;  %8888 = vmatpush3.bf16.msra.mxu0 %v9715_v26 }
 0x36f   : > { %v3411_v24 = vadd.f32 1.0, %v9784_v23  ;;  %8889 = vmatprep.subr.bf16.mxu0 %v15475_v37  ;;  %v3535_v1 = vpop.permute.xlu1 %3534 }
 0x370   : > { %v3096_v17 = vpop.f32.mrf.mxu0 }
 0x371   : > { %9793 = vrcp.f32 %v3411_v24  ;;  %v12597_v43 = vadd.f32 %v3096_v17, %v12346_v25  ;;  %v3540_v26 = vpop.permute.xlu0 %3539 }
 0x372   : > { %v8736_v54 = vpop.f32.mrf.mxu0  ;;  %v9786_v62 = vpop.eup %9785  ;;  %8890 = vmatpush3.bf16.msra.mxu0 %v9716_v51 }
 0x373   : > { %v3412_v34 = vadd.f32 1.0, %v9786_v62  ;;  %8891 = vmatprep.subr.bf16.mxu0 %v15475_v37  ;;  %v9717_v54 = vld [vmem:[%s15309_s4 + $0x20] sm:$0xff]  }
 0x374   : > { %v3101_v10 = vpop.f32.mrf.mxu0 }
 0x375   : > { %v12606_v48 = vadd.f32 %v3101_v10, %v12358_v55  ;;  %9795 = vrcp.f32 %v3412_v34 }
 0x376   : > { %v8739_v25 = vpop.f32.mrf.mxu0  ;;  %v9788_v44 = vpop.eup %9787  ;;  %8892 = vmatpush3.bf16.msra.mxu0 %v9717_v54 }
 0x377   : > { %v9790_v19 = vpop.eup %9789  ;;  %v3413_v13 = vadd.f32 1.0, %v9788_v44  ;;  %8893 = vmatprep.subr.bf16.mxu0 %v15475_v37  ;;  %v9719_v44 = vld [vmem:[%s15309_s4 + $0x18] sm:$0xff]  }
 0x378   : > { %v3104_v8 = vpop.f32.mrf.mxu0  ;;  %v3485_v24 = vmul.f32 %v9790_v19, %v12553_v7 }
 0x379   : > { %v12615_v28 = vadd.f32 %v3104_v8, %v12366_v22  ;;  %9797 = vrcp.f32 %v3413_v13 }
 0x37a   : > { %v9792_v55 = vpop.eup %9791  ;;  %v8740_v23 = vpop.f32.mrf.mxu0  ;;  %v12628_v25 = vmul.f32 %v3530_v4, %v3485_v24  ;;  %8894 = vmatpush3.bf16.msra.mxu0 %v9719_v44 }
 0x37b   : > { %v3486_v17 = vmul.f32 %v9792_v55, %v12558_v41  ;;  %v3545_v4 = vpop.permute.xlu1 %3544  ;;  %8895 = vmatprep.subr.bf16.mxu0 %v15475_v37 }
 0x37c   : > { %v3109_v14 = vpop.f32.mrf.mxu0  ;;  %15557 = vst [vmem:[#allocation4_spill] sm:$0xff] %v12628_v25  ;;  %v15343_v55 = vrot.slane %v12628_v25, 7 }
 0x37d   : > { %v12623_v62 = vmul.f32 %v3535_v1, %v3486_v17  ;;  %v12626_v34 = vadd.f32 %v3109_v14, %v12378_v40  ;;  %v9720_v17 = vld [vmem:[%s15309_s4 + $0x10] sm:$0xff]  }
 0x37e   : > { %v9794_v22 = vpop.eup %9793  ;;  %v8743_v10 = vpop.f32.mrf.mxu0  ;;  %8896 = vmatpush3.bf16.msra.mxu0 %v9720_v17  ;;  %v9713_v17 = vld [vmem:[%s15309_s4 + $0x48] sm:$0xff]  }
 0x37f   : > { %15556 = vst [vmem:[#allocation23_spill] sm:$0xff] %v12623_v62  ;;  %v3487_v7 = vmul.f32 %v9794_v22, %v12563_v60  ;;  %v3864_v40 = vrot.slane %v12623_v62, 7  ;;  %v9712_v60 = vld [vmem:[%s15309_s4 + $0x50] sm:$0xff]   ;;  %v3753_v1 = vrot.slane %v12623_v62, 6  ;;  %v15342_v10 = vrot.slane %v12628_v25, 6  ;;  %8897 = vmatprep.subr.bf16.mxu0 %v15475_v37 }
 0x380   : > { %v3112_v41 = vpop.f32.mrf.mxu0  ;;  %8804 = vmatpush3.bf16.msra.mxu1 %v9712_v60 }
 0x381   : > { %v12635_v19 = vmul.f32 %v3540_v26, %v3487_v7  ;;  %v12638_v13 = vadd.f32 %v3112_v41, %v12386_v59  ;;  %8805 = vmatprep.subr.bf16.mxu1 %v15475_v37 }
 0x382   : > { %v8744_v8 = vpop.f32.mrf.mxu0  ;;  %v9796_v51 = vpop.eup %9795 }
 0x383   : > { %v3865_v23 = vrot.slane %v12635_v19, 7  ;;  %v3488_v59 = vmul.f32 %v9796_v51, %v12571_v39  ;;  %v3754_v14 = vrot.slane %v12635_v19, 6  ;;  %v12655_v54 = vpack.c.bf16 %v12635_v19, %v12623_v62  ;;  %v3550_v51 = vpop.permute.xlu0 %3549 }
 0x384   : > { %v3117_v24 = vpop.f32.mrf.mxu0  ;;  %v3935_v39 = vsel %vm482_vm1, %v15343_v55, %v3864_v40  ;;  %v15345_v8 = vrot.slane %v12635_v19, 2  ;;  %8806 = vmatpush3.bf16.msra.mxu1 %v9713_v17 }
 0x385   : > { %15558 = vst [vmem:[#allocation24_spill] sm:$0xff] %v12655_v54  ;;  %v12658_v22 = vadd.f32 %v3117_v24, %v12398_v16  ;;  %v12665_v26 = vmul.f32 %v3545_v4, %v3488_v59  ;;  %v3934_v41 = vsel %vm482_vm1, %v3864_v40, %v3865_v23  ;;  %v12672_v16 = vsel %vm370_vm2, %v3753_v1, %v3754_v14 }
 0x386   : > { %v8747_v7 = vpop.f32.mrf.mxu0  ;;  %v9798_v44 = vpop.eup %9797  ;;  %v12676_v60 = vpack.c.bf16 %v3934_v41, %v3935_v39  ;;  %v12682_v4 = vsel %vm370_vm2, %v15342_v10, %v3753_v1  ;;  %v9721_v39 = vld [vmem:[%s15309_s4 + $0x8] sm:$0xff]   ;;  %8807 = vmatprep.subr.bf16.mxu1 %v15475_v37 }
 0x387   : > { %15559 = vst [vmem:[#allocation3_spill] sm:$0xff] %v12665_v26  ;;  %15560 = vst [vmem:[#allocation25_spill] sm:$0xff] %v12682_v4  ;;  %v15344_v40 = vrot.slane %v12665_v26, 2  ;;  %v3489_v59 = vmul.f32 %v9798_v44, %v12577_v21  ;;  %v3866_v41 = vrot.slane %v12665_v26, 7  ;;  %v3755_v10 = vrot.slane %v12665_v26, 6  ;;  %8898 = vmatpush3.bf16.msra.mxu0 %v9721_v39 }
 0x388   : > { %v3120_v24 = vpop.f32.mrf.mxu0  ;;  %8899 = vmatprep.subr.bf16.mxu0 %v15475_v37 }
 0x389   : > { %v12696_v1 = vadd.f32 %v3120_v24, %v12406_v46  ;;  %v12705_v21 = vsel %vm2904_vm4, %v15345_v8, %v15344_v40  ;;  %v12707_v44 = vmul.f32 %v3550_v51, %v3489_v59  ;;  %v3933_v7 = vsel %vm482_vm1, %v3865_v23, %v3866_v41  ;;  %v9718_v51 = vld [vmem:[%s15309_s4 + $0x40] sm:$0xff]  }
 0x38a   : > { %15561 = vst [vmem:[#allocation27_spill] sm:$0xff] %v12705_v21  ;;  %v8748_v55 = vpop.f32.mrf.mxu0  ;;  %v12715_v46 = vsel %vm370_vm2, %v3754_v14, %v3755_v10  ;;  %8808 = vmatpush3.bf16.msra.mxu1 %v9718_v51 }
 0x38b   : > { %15562 = vst [vmem:[#allocation28_spill] sm:$0xff] %v12707_v44  ;;  %15563 = vst [vmem:[#allocation29_spill] sm:$0xff] %v12715_v46  ;;  %v9722_v55 = vld [vmem:[%s15309_s4] sm:$0xff]   ;;  %v15347_v59 = vrot.slane %v12707_v44, 7  ;;  %v15346_v23 = vrot.slane %v12707_v44, 6  ;;  %8977 = vmatprep.subr.bf16.mxu1 %v15475_v37 }
 0x38c   : > { %v3125_v24 = vpop.f32.mrf.mxu0  ;;  %8900 = vmatpush3.bf16.msra.mxu0 %v9722_v55  ;;  %v15350_v55 = vrot.slane %v12665_v26, 1 }
 0x38d   : > { %v12726_v17 = vadd.f32 %v3125_v24, %v12418_v9  ;;  %v3932_v14 = vsel %vm482_vm1, %v3866_v41, %v15347_v59  ;;  %v12736_v40 = vsel %vm370_vm2, %v3755_v10, %v15346_v23  ;;  %9069 = vmatprep.subr.bf16.mxu0 %v15475_v37  ;;  %v5326_v10 = vrot.slane %v12635_v19, 1 }
 0x38e   : > { %v8751_v39 = vpop.f32.mrf.mxu0  ;;  %15564 = vst [vmem:[#allocation30_spill] sm:$0xff] %v12736_v40  ;;  %v12739_v8 = vpack.c.bf16 %v3932_v14, %v3933_v7  ;;  %v15355_v59 = vrot.slane %v12623_v62, 1 }
 0x38f   : > { %v5394_v14 = vsel %vm1944_vm3, %v5326_v10, %v15350_v55 }
 0x390   : > { %15565 = vst [vmem:[#allocation31_spill] sm:$0xff] %v12739_v8  ;;  %v3128_v9 = vpop.f32.mrf.mxu0 }
 0x391   : > { %v12745_v51 = vadd.f32 %v3128_v9, %v12426_v49 }
 0x392   : > { %v8752_v41 = vpop.f32.mrf.mxu0 }
 0x393   : > { %v5395_v41 = vsel %vm1944_vm3, %v15355_v59, %v5326_v10 }
 0x394   : > { %v3133_v39 = vpop.f32.mrf.mxu0 }
 0x395   : > { %v12750_v23 = vadd.f32 %v3133_v39, %v12438_v32  ;;  %v12764_v39 = vpack.c.bf16 %v5394_v14, %v5395_v41 }
 0x396   : > { %v8755_v7 = vpop.f32.mrf.mxu0 }
 0x397   : > { %15566 = vst [vmem:[#allocation32_spill] sm:$0xff] %v12750_v23  ;;  %15567 = vst [vmem:[#allocation33_spill] sm:$0xff] %v12764_v39 }
 0x398   : > { %v3136_v24 = vpop.f32.mrf.mxu0 }
 0x399   : > { %v12758_v49 = vadd.f32 %v3136_v24, %v12446_v38 }
 0x39a   : > { %v8756_v9 = vpop.f32.mrf.mxu0 }
 0x39c   : > { %v3141_v32 = vpop.f32.mrf.mxu0 }
 0x39d   : > { %v12767_v7 = vadd.f32 %v3141_v32, %v12455_v61 }
 0x39e   : > { %v8759_v26 = vpop.f32.mrf.mxu0 }
 0x39f   : > { %15568 = vst [vmem:[#allocation34_spill] sm:$0xff] %v12767_v7 }
 0x3a0   : > { %v3144_v55 = vpop.f32.mrf.mxu0 }
 0x3a1   : > { %v12770_v54 = vadd.f32 %v3144_v55, %v12460_v15  ;;  %v12781_v15 = vpop.permute.xlu1 %3554 }
 0x3a2   : > { %v8760_v44 = vpop.f32.mrf.mxu0  ;;  %15571 = vst [vmem:[#allocation12_spill] sm:$0xff] %v12781_v15 }
 0x3a3   : > { %15569 = vst [vmem:[#allocation6_spill] sm:$0xff] %v12770_v54 }
 0x3a4   : > { %v3149_v38 = vpop.f32.mrf.mxu0 }
 0x3a5   : > { %v12773_v24 = vadd.f32 %v3149_v38, %v12469_v29  ;;  %v12786_v38 = vpop.permute.xlu0 %3559 }
 0x3a6   : > { %v8763_v9 = vpop.f32.mrf.mxu0  ;;  %15572 = vst [vmem:[#allocation13_spill] sm:$0xff] %v12786_v38 }
 0x3a7   : > { %15570 = vst [vmem:[#allocation7_spill] sm:$0xff] %v12773_v24 }
 0x3a8   : > { %v3152_v46 = vpop.f32.mrf.mxu0 }
 0x3a9   : > { %v3235_v10 = vadd.f32 %v3152_v46, %v12476_v12 }
 0x3aa   : > { %v8764_v59 = vpop.f32.mrf.mxu0 }
 0x3ab   : > { %v12777_v14 = vadd.f32 %v12550_v50, %v3235_v10  ;;  %v12790_v59 = vpop.permute.xlu1 %3564 }
 0x3ac   : > { %v3157_v61 = vpop.f32.mrf.mxu0  ;;  %15573 = vst [vmem:[#allocation9_spill] sm:$0xff] %v12790_v59 }
 0x3ad   : > { %v3317_v26 = vsub.f32 0.0, %v12777_v14  ;;  %v3236_v41 = vadd.f32 %v3157_v61, %v12488_v27  ;;  %v12797_v61 = vadd.f32 %v12550_v50, %v12544_v2 }
 0x3ae   : > { %v8767_v44 = vpop.f32.mrf.mxu0 }
 0x3af   : > { %v3378_v55 = vmul.f32 1.442695, %v3317_v26  ;;  %v12784_v29 = vadd.f32 %v12550_v50, %v3236_v41  ;;  %v12799_v41 = vpop.permute.xlu0 %3569 }
 0x3b0   : > { %v3160_v32 = vpop.f32.mrf.mxu0  ;;  %15574 = vst [vmem:[#allocation8_spill] sm:$0xff] %v12799_v41 }
 0x3b1   : > { %v3318_v12 = vsub.f32 0.0, %v12784_v29  ;;  %v3237_v46 = vadd.f32 %v3160_v32, %v12491_v52  ;;  %9799 = vpow2.f32 %v3378_v55  ;;  %v12803_v32 = vpop.permute.xlu1 %3574 }
 0x3b2   : > { %v8768_v9 = vpop.f32.mrf.mxu0  ;;  %15575 = vst [vmem:[#allocation10_spill] sm:$0xff] %v12803_v32 }
 0x3b3   : > { %v3380_v10 = vmul.f32 1.442695, %v3318_v12  ;;  %v12793_v27 = vadd.f32 %v12550_v50, %v3237_v46  ;;  %v3294_v46 = vsub.f32 0.0, %v12797_v61  ;;  %v12809_v2 = vpop.permute.xlu0 %3579 }
 0x3b4   : > { %v3165_v26 = vpop.f32.mrf.mxu0  ;;  %15576 = vst [vmem:[#allocation17_spill] sm:$0xff] %v12809_v2 }
 0x3b5   : > { %9801 = vpow2.f32 %v3380_v10  ;;  %v3319_v44 = vsub.f32 0.0, %v12793_v27  ;;  %v3238_v52 = vadd.f32 %v3165_v26, %v12496_v3  ;;  %v12813_v59 = vpop.permute.xlu1 %3584 }
 0x3b6   : > { %v8771_v55 = vpop.f32.mrf.mxu0  ;;  %15577 = vst [vmem:[#allocation16_spill] sm:$0xff] %v12813_v59 }
 0x3b7   : > { %v3382_v9 = vmul.f32 1.442695, %v3319_v44  ;;  %v12806_v12 = vadd.f32 %v12550_v50, %v3238_v52  ;;  %v3332_v44 = vmul.f32 1.442695, %v3294_v46  ;;  %v12818_v32 = vpop.permute.xlu0 %3589 }
 0x3b8   : > { %v3168_v39 = vpop.f32.mrf.mxu0  ;;  %15578 = vst [vmem:[#allocation11_spill] sm:$0xff] %v12818_v32 }
 0x3b9   : > { %9803 = vpow2.f32 %v3382_v9  ;;  %v3320_v24 = vsub.f32 0.0, %v12806_v12  ;;  %v3239_v10 = vadd.f32 %v3168_v39, %v12499_v33  ;;  %v12822_v2 = vpop.permute.xlu1 %3594 }
 0x3ba   : > { %v8772_v3 = vpop.f32.mrf.mxu0  ;;  %15579 = vst [vmem:[#allocation14_spill] sm:$0xff] %v12822_v2 }
 0x3bb   : > { %v3384_v26 = vmul.f32 1.442695, %v3320_v24  ;;  %v12816_v55 = vadd.f32 %v12550_v50, %v3239_v10  ;;  %v12827_v46 = vpop.permute.xlu0 %3599 }
 0x3bc   : > { %v3173_v52 = vpop.f32.mrf.mxu0  ;;  %15580 = vst [vmem:[#allocation20_spill] sm:$0xff] %v12827_v46 }
 0x3bd   : > { %9805 = vpow2.f32 %v3384_v26  ;;  %v3321_v41 = vsub.f32 0.0, %v12816_v55  ;;  %v3240_v9 = vadd.f32 %v3173_v52, %v12505_v11  ;;  %v12831_v11 = vpop.permute.xlu1 %3604 }
 0x3be   : > { %v8775_v7 = vpop.f32.mrf.mxu0  ;;  %v9800_v33 = vpop.eup %9799  ;;  %9807 = vpow2.f32 %v3332_v44  ;;  %15581 = vst [vmem:[#allocation15_spill] sm:$0xff] %v12831_v11 }
 0x3bf   : > { %v3386_v39 = vmul.f32 1.442695, %v3321_v41  ;;  %v12825_v3 = vadd.f32 %v12550_v50, %v3240_v9  ;;  %v3431_v24 = vadd.f32 1.0, %v9800_v33  ;;  %v12836_v33 = vpop.permute.xlu0 %3609 }
 0x3c0   : > { %v3176_v10 = vpop.f32.mrf.mxu0  ;;  %15582 = vst [vmem:[#allocation18_spill] sm:$0xff] %v12836_v33 }
 0x3c1   : > { %9809 = vpow2.f32 %v3386_v39  ;;  %v3322_v26 = vsub.f32 0.0, %v12825_v3  ;;  %v3241_v59 = vadd.f32 %v3176_v10, %v12509_v36  ;;  %v12840_v36 = vpop.permute.xlu1 %3614 }
 0x3c2   : > { %v9802_v32 = vpop.eup %9801  ;;  %9811 = vrcp.f32 %v3431_v24  ;;  %v8776_v7 = vpop.f32.mrf.mxu0  ;;  %15583 = vst [vmem:[#allocation21_spill] sm:$0xff] %v12840_v36 }
 0x3c3   : > { %v3432_v52 = vadd.f32 1.0, %v9802_v32  ;;  %v3388_v41 = vmul.f32 1.442695, %v3322_v26  ;;  %v12834_v9 = vadd.f32 %v12550_v50, %v3241_v59  ;;  %v12845_v26 = vpop.permute.xlu0 %3619 }
 0x3c4   : > { %v3181_v44 = vpop.f32.mrf.mxu0  ;;  %15584 = vst [vmem:[#allocation19_spill] sm:$0xff] %v12845_v26 }
 0x3c5   : > { %9813 = vrcp.f32 %v3432_v52  ;;  %v3323_v39 = vsub.f32 0.0, %v12834_v9  ;;  %v3242_v2 = vadd.f32 %v3181_v44, %v12512_v58  ;;  %v12849_v58 = vpop.permute.xlu1 %3624 }
 0x3c6   : > { %v9804_v46 = vpop.eup %9803  ;;  %9815 = vpow2.f32 %v3388_v41  ;;  %v8779_v24 = vpop.f32.mrf.mxu0  ;;  %15585 = vst [vmem:[#allocation22_spill] sm:$0xff] %v12849_v58 }
 0x3c7   : > { %v3433_v10 = vadd.f32 1.0, %v9804_v46  ;;  %v3390_v7 = vmul.f32 1.442695, %v3323_v39  ;;  %v12843_v32 = vadd.f32 %v12550_v50, %v3242_v2  ;;  %v12856_v2 = vadd.f32 %v12550_v50, %v12581_v6  ;;  %v12858_v36 = vpop.permute.xlu0 %3629 }
 0x3c8   : > { %v3184_v59 = vpop.f32.mrf.mxu0  ;;  %15586 = vst [vmem:[#allocation35_spill] sm:$0xff] %v12858_v36 }
 0x3c9   : > { %9817 = vrcp.f32 %v3433_v10  ;;  %v3324_v52 = vsub.f32 0.0, %v12843_v32  ;;  %v3243_v11 = vadd.f32 %v3184_v59, %v12515_v18 }
 0x3ca   : > { %v9806_v33 = vpop.eup %9805  ;;  %9819 = vpow2.f32 %v3390_v7  ;;  %v8780_v44 = vpop.f32.mrf.mxu0 }
 0x3cb   : > { %v3434_v41 = vadd.f32 1.0, %v9806_v33  ;;  %v3392_v24 = vmul.f32 1.442695, %v3324_v52  ;;  %v12852_v46 = vadd.f32 %v12550_v50, %v3243_v11  ;;  %v9808_v10 = vpop.eup %9807  ;;  %v12862_v33 = vpop.permute.xlu1 %3634 }
 0x3cc   : > { %v3189_v39 = vpop.f32.mrf.mxu0  ;;  %15587 = vst [vmem:[#allocation36_spill] sm:$0xff] %v12862_v33  ;;  %v3408_v26 = vadd.f32 1.0, %v9808_v10  ;;  %v3640_v8 = vpop.permute.xlu0 %3639 }
 0x3cd   : > { %9821 = vrcp.f32 %v3434_v41  ;;  %v3325_v18 = vsub.f32 0.0, %v12852_v46  ;;  %v3244_v7 = vadd.f32 %v3189_v39, %v12521_v0  ;;  %v3300_v41 = vsub.f32 0.0, %v12856_v2 }
 0x3ce   : > { %v9810_v59 = vpop.eup %9809  ;;  %9823 = vpow2.f32 %v3392_v24  ;;  %v8783_v52 = vpop.f32.mrf.mxu0 }
 0x3cf   : > { %v9812_v11 = vpop.eup %9811  ;;  %v3435_v44 = vadd.f32 1.0, %v9810_v59  ;;  %v3394_v58 = vmul.f32 1.442695, %v3325_v18  ;;  %v12865_v6 = vadd.f32 %v12550_v50, %v3244_v7  ;;  %v3645_v59 = vpop.permute.xlu1 %3644  ;;  %v12873_v7 = vadd.f32 %v12550_v50, %v12584_v56 }
 0x3d0   : > { %v3192_v40 = vpop.f32.mrf.mxu0  ;;  %v3507_v39 = vmul.f32 %v9812_v11, %v12777_v14  ;;  %v3344_v54 = vmul.f32 1.442695, %v3300_v41 }
 0x3d1   : > { %9825 = vrcp.f32 %v3435_v44  ;;  %v3326_v36 = vsub.f32 0.0, %v12865_v6  ;;  %v3245_v0 = vadd.f32 %v3192_v40, %v12525_v20  ;;  %v12881_v20 = vadd.f32 %v12550_v50, %v12587_v47 }
 0x3d2   : > { %v9814_v24 = vpop.eup %9813  ;;  %9827 = vpow2.f32 %v3394_v58  ;;  %v8784_v52 = vpop.f32.mrf.mxu0 }
 0x3d3   : > { %v9816_v18 = vpop.eup %9815  ;;  %v3396_v10 = vmul.f32 1.442695, %v3326_v36  ;;  %v12876_v33 = vadd.f32 %v12550_v50, %v3245_v0  ;;  %v3508_v44 = vmul.f32 %v9814_v24, %v12784_v29  ;;  %9829 = vrcp.f32 %v3408_v26  ;;  %15588 = vst [vmem:[#allocation5_spill] sm:$0xff] %v12881_v20  ;;  %v3650_v26 = vpop.permute.xlu0 %3649 }
 0x3d4   : > { %v3436_v40 = vadd.f32 1.0, %v9816_v18  ;;  %v3197_v14 = vpop.f32.mrf.mxu0  ;;  %v12887_v0 = vmul.f32 %v3640_v8, %v3507_v39 }
 0x3d5   : > { %9831 = vpow2.f32 %v3396_v10  ;;  %v3327_v58 = vsub.f32 0.0, %v12876_v33  ;;  %v12884_v11 = vmul.f32 %v3645_v59, %v3508_v44  ;;  %v3246_v56 = vadd.f32 %v3197_v14, %v12528_v31 }
 0x3d6   : > { %v9818_v36 = vpop.eup %9817  ;;  %9833 = vrcp.f32 %v3436_v40  ;;  %15590 = vst [vmem:[#allocation37_spill] sm:$0xff] %v12887_v0  ;;  %v8787_v29 = vpop.f32.mrf.mxu0 }
 0x3d7   : > { %15589 = vst [vmem:[#allocation26_spill] sm:$0xff] %v12884_v11  ;;  %v9820_v41 = vpop.eup %9819  ;;  %v3398_v47 = vmul.f32 1.442695, %v3327_v58  ;;  %v12891_v52 = vadd.f32 %v12550_v50, %v3246_v56  ;;  %v3509_v18 = vmul.f32 %v9818_v36, %v12793_v27  ;;  %9835 = vpow2.f32 %v3344_v54  ;;  %v3655_v56 = vpop.permute.xlu1 %3654 }
 0x3d8   : > { %v3437_v10 = vadd.f32 1.0, %v9820_v41  ;;  %v3200_v31 = vpop.f32.mrf.mxu0  ;;  %v3886_v44 = vrot.slane %v12884_v11, 7  ;;  %v15359_v27 = vrot.slane %v12887_v0, 7  ;;  %v3775_v36 = vrot.slane %v12884_v11, 6  ;;  %v3660_v24 = vpop.permute.xlu0 %3659 }
 0x3d9   : > { %9837 = vpow2.f32 %v3398_v47  ;;  %v3328_v8 = vsub.f32 0.0, %v12891_v52  ;;  %v12897_v39 = vmul.f32 %v3650_v26, %v3509_v18  ;;  %v3247_v40 = vadd.f32 %v3200_v31, %v12531_v53 }
 0x3da   : > { %v9822_v14 = vpop.eup %9821  ;;  %9839 = vrcp.f32 %v3437_v10  ;;  %v8788_v58 = vpop.f32.mrf.mxu0  ;;  %v3913_v10 = vsel %vm482_vm1, %v15359_v27, %v3886_v44 }
 0x3db   : > { %v9824_v29 = vpop.eup %9823  ;;  %v3400_v41 = vmul.f32 1.442695, %v3328_v8  ;;  %v12904_v47 = vadd.f32 %v12550_v50, %v3247_v40  ;;  %v3510_v26 = vmul.f32 %v9822_v14, %v12806_v12  ;;  %v3887_v18 = vrot.slane %v12897_v39, 7 }
 0x3dc   : > { %v3438_v53 = vadd.f32 1.0, %v9824_v29  ;;  %v3205_v31 = vpop.f32.mrf.mxu0  ;;  %v3776_v58 = vrot.slane %v12897_v39, 6  ;;  %v12915_v59 = vpack.c.bf16 %v12897_v39, %v12884_v11  ;;  %v3670_v23 = vpop.permute.xlu0 %3669 }
 0x3dd   : > { %9841 = vpow2.f32 %v3400_v41  ;;  %v3329_v8 = vsub.f32 0.0, %v12904_v47  ;;  %v12918_v40 = vmul.f32 %v3655_v56, %v3510_v26  ;;  %v3248_v12 = vadd.f32 %v3205_v31, %v12534_v5 }
 0x3de   : > { %15591 = vst [vmem:[#allocation38_spill] sm:$0xff] %v12915_v59  ;;  %v9826_v14 = vpop.eup %9825  ;;  %9843 = vrcp.f32 %v3438_v53  ;;  %v8791_v29 = vpop.f32.mrf.mxu0  ;;  %v3912_v27 = vsel %vm482_vm1, %v3886_v44, %v3887_v18  ;;  %v12925_v54 = vsel %vm370_vm2, %v3775_v36, %v3776_v58  ;;  %v15593_v59 = vrot.slane %v12887_v0, 6 }
 0x3df   : > { %15592 = vst [vmem:[#allocation39_spill] sm:$0xff] %v12925_v54  ;;  %v9828_v56 = vpop.eup %9827  ;;  %v3402_v26 = vmul.f32 1.442695, %v3329_v8  ;;  %v12934_v5 = vadd.f32 %v12550_v50, %v3248_v12  ;;  %v3511_v53 = vmul.f32 %v9826_v14, %v12816_v55  ;;  %v12937_v31 = vpack.c.bf16 %v3912_v27, %v3913_v10 }
 0x3e0   : > { %v12931_v41 = vsel %vm370_vm2, %v15593_v59, %v3775_v36  ;;  %v3439_v44 = vadd.f32 1.0, %v9828_v56  ;;  %v3208_v29 = vpop.f32.mrf.mxu0  ;;  %v3888_v0 = vrot.slane %v12918_v40, 7  ;;  %v3777_v38 = vrot.slane %v12918_v40, 6  ;;  %v9830_v59 = vpop.eup %9829 }
 0x3e1   : > { %15594 = vst [vmem:[#allocation40_spill] sm:$0xff] %v12931_v41  ;;  %15595 = vst [vmem:[#allocation41_spill] sm:$0xff] %v12937_v31  ;;  %9845 = vpow2.f32 %v3402_v26  ;;  %v3330_v36 = vsub.f32 0.0, %v12934_v5  ;;  %v12944_v8 = vmul.f32 %v3660_v24, %v3511_v53  ;;  %v3249_v12 = vadd.f32 %v3208_v29, %v12540_v35  ;;  %v3665_v35 = vpop.permute.xlu1 %3664 }
 0x3e2   : > { %v9832_v55 = vpop.eup %9831  ;;  %v12949_v27 = vadd.f32 %v12550_v50, %v12597_v43  ;;  %9847 = vrcp.f32 %v3439_v44  ;;  %v8792_v10 = vpop.f32.mrf.mxu0  ;;  %v3911_v14 = vsel %vm482_vm1, %v3887_v18, %v3888_v0  ;;  %v12955_v56 = vsel %vm370_vm2, %v3776_v58, %v3777_v38 }
 0x3e3   : > { %15596 = vst [vmem:[#allocation42_spill] sm:$0xff] %v12955_v56  ;;  %v9834_v26 = vpop.eup %9833  ;;  %v3440_v15 = vadd.f32 1.0, %v9832_v55  ;;  %v3404_v24 = vmul.f32 1.442695, %v3330_v36  ;;  %v12958_v53 = vadd.f32 %v12550_v50, %v3249_v12  ;;  %v3889_v29 = vrot.slane %v12944_v8, 7 }
 0x3e4   : > { %v15597_v43 = vsub.f32 0.0, %v12873_v7  ;;  %v3512_v10 = vmul.f32 %v9834_v26, %v12825_v3  ;;  %v3778_v18 = vrot.slane %v12944_v8, 6  ;;  %v12967_v58 = vpack.c.bf16 %v12944_v8, %v12918_v40  ;;  %v12969_v41 = vpop.eup %9835 }
 0x3e5   : > { %v15599_v36 = vsub.f32 0.0, %v12881_v20  ;;  %9849 = vrcp.f32 %v3440_v15  ;;  %v3331_v55 = vsub.f32 0.0, %v12958_v53  ;;  %v3910_v54 = vsel %vm482_vm1, %v3888_v0, %v3889_v29 }
 0x3e6   : > { %v3346_v44 = vmul.f32 1.442695, %v15597_v43  ;;  %15598 = vst [vmem:[#allocation43_spill] sm:$0xff] %v12967_v58  ;;  %v9838_v43 = vpop.eup %9837  ;;  %9851 = vpow2.f32 %v3404_v24  ;;  %v12976_v3 = vmul.f32 %v3665_v35, %v3512_v10  ;;  %v12978_v26 = vpack.c.bf16 %v3910_v54, %v3911_v14 }
 0x3e7   : > { %v3348_v12 = vmul.f32 1.442695, %v15599_v36  ;;  %v12982_v58 = vsel %vm370_vm2, %v3777_v38, %v3778_v18  ;;  %v9840_v31 = vpop.eup %9839  ;;  %v3303_v20 = vsub.f32 0.0, %v12949_v27  ;;  %v3441_v36 = vadd.f32 1.0, %v9838_v43  ;;  %v3675_v43 = vpop.permute.xlu1 %3674 }
 0x3e8   : > { %15600 = vst [vmem:[#allocation44_spill] sm:$0xff] %v12978_v26  ;;  %15601 = vst [vmem:[#allocation45_spill] sm:$0xff] %v12982_v58  ;;  %v3406_v15 = vmul.f32 1.442695, %v3331_v55  ;;  %9853 = vpow2.f32 %v3346_v44  ;;  %v3513_v0 = vmul.f32 %v9840_v31, %v12834_v9  ;;  %v3890_v24 = vrot.slane %v12976_v3, 7 }
 0x3e9   : > { %v3779_v54 = vrot.slane %v12976_v3, 6  ;;  %v12992_v38 = vadd.f32 %v12550_v50, %v12606_v48  ;;  %9855 = vrcp.f32 %v3441_v36  ;;  %v3350_v31 = vmul.f32 1.442695, %v3303_v20 }
 0x3ea   : > { %v9842_v14 = vpop.eup %9841  ;;  %9857 = vpow2.f32 %v3406_v15  ;;  %v12994_v35 = vmul.f32 %v3670_v23, %v3513_v0  ;;  %v3909_v10 = vsel %vm482_vm1, %v3889_v29, %v3890_v24  ;;  %v3484_v29 = vmul.f32 %v9830_v59, %v12797_v61  ;;  %v3680_v61 = vpop.permute.xlu0 %3679 }
 0x3eb   : > { %v13000_v44 = vsel %vm370_vm2, %v3778_v18, %v3779_v54  ;;  %v9844_v9 = vpop.eup %9843  ;;  %9859 = vpow2.f32 %v3348_v12  ;;  %v3442_v55 = vadd.f32 1.0, %v9842_v14  ;;  %v3304_v0 = vsub.f32 0.0, %v12992_v38 }
 0x3ec   : > { %15602 = vst [vmem:[#allocation46_spill] sm:$0xff] %v13000_v44  ;;  %v3514_v48 = vmul.f32 %v9844_v9, %v12843_v32  ;;  %v3891_v36 = vrot.slane %v12994_v35, 7  ;;  %v3780_v15 = vrot.slane %v12994_v35, 6  ;;  %v13007_v23 = vpack.c.bf16 %v12994_v35, %v12976_v3 }
 0x3ed   : > { %9861 = vrcp.f32 %v3442_v55  ;;  %v13021_v9 = vadd.f32 %v12550_v50, %v12615_v28  ;;  %v15369_v50 = vrot.slane %v12623_v62, 2 }
 0x3ee   : > { %15603 = vst [vmem:[#allocation47_spill] sm:$0xff] %v13007_v23  ;;  %v9846_v18 = vpop.eup %9845  ;;  %v13011_v12 = vmul.f32 %v3675_v43, %v3514_v48  ;;  %v3908_v20 = vsel %vm482_vm1, %v3890_v24, %v3891_v36  ;;  %v13017_v32 = vsel %vm370_vm2, %v3779_v54, %v3780_v15  ;;  %9863 = vpow2.f32 %v3350_v31 }
 0x3ef   : > { %15604 = vst [vmem:[#allocation48_spill] sm:$0xff] %v13017_v32  ;;  %v9848_v14 = vpop.eup %9847  ;;  %v3443_v4 = vadd.f32 1.0, %v9846_v18  ;;  %v13023_v59 = vpack.c.bf16 %v3908_v20, %v3909_v10  ;;  %v13031_v48 = vmul.f32 %v12608_v45, %v3484_v29  ;;  %v13034_v18 = vmul.f32 1.442695, %v3304_v0  ;;  %v3685_v20 = vpop.permute.xlu1 %3684 }
 0x3f0   : > { %v3515_v43 = vmul.f32 %v9848_v14, %v12852_v46  ;;  %v3892_v24 = vrot.slane %v13011_v12, 7  ;;  %v3781_v54 = vrot.slane %v13011_v12, 6  ;;  %v13045_v45 = vadd.f32 1.0, %v12969_v41 }
 0x3f1   : > { %15605 = vst [vmem:[#allocation49_spill] sm:$0xff] %v13023_v59  ;;  %15606 = vst [vmem:[#allocation50_spill] sm:$0xff] %v13031_v48  ;;  %9865 = vrcp.f32 %v3443_v4  ;;  %v15608_v4 = vrot.slane %v12635_v19, 2  ;;  %v15613_v59 = vrot.slane %v12884_v11, 1  ;;  %v5351_v23 = vrot.slane %v12976_v3, 1 }
 0x3f2   : > { %v9850_v28 = vpop.eup %9849  ;;  %v13036_v10 = vmul.f32 %v3680_v61, %v3515_v43  ;;  %v3907_v31 = vsel %vm482_vm1, %v3891_v36, %v3892_v24  ;;  %v13042_v46 = vsel %vm370_vm2, %v3780_v15, %v3781_v54 }
 0x3f3   : > { %15607 = vst [vmem:[#allocation51_spill] sm:$0xff] %v13042_v46  ;;  %v9852_v14 = vpop.eup %9851  ;;  %v13054_v0 = vsel %vm2904_vm4, %v15369_v50, %v15608_v4  ;;  %v3516_v36 = vmul.f32 %v9850_v28, %v12865_v6  ;;  %v5348_v4 = vrot.slane %v12897_v39, 1  ;;  %v5349_v50 = vrot.slane %v12918_v40, 1  ;;  %v3690_v28 = vpop.permute.xlu0 %3689 }
 0x3f4   : > { %15609 = vst [vmem:[#allocation52_spill] sm:$0xff] %v13054_v0  ;;  %v3444_v61 = vadd.f32 1.0, %v9852_v14  ;;  %v3893_v15 = vrot.slane %v13036_v10, 7  ;;  %v3782_v43 = vrot.slane %v13036_v10, 6  ;;  %v13061_v41 = vpack.c.bf16 %v13036_v10, %v13011_v12  ;;  %v3695_v46 = vpop.permute.xlu1 %3694 }
 0x3f5   : > { %v13063_v55 = vpop.eup %9853  ;;  %v13065_v19 = vmul.f32 %v3685_v20, %v3516_v36 }
 0x3f6   : > { %15610 = vst [vmem:[#allocation53_spill] sm:$0xff] %v13061_v41  ;;  %v9856_v6 = vpop.eup %9855  ;;  %9867 = vrcp.f32 %v3444_v61  ;;  %v3906_v14 = vsel %vm482_vm1, %v3892_v24, %v3893_v15  ;;  %v13074_v62 = vsel %vm370_vm2, %v3781_v54, %v3782_v43  ;;  %v5350_v41 = vrot.slane %v12944_v8, 1 }
 0x3f7   : > { %15611 = vst [vmem:[#allocation54_spill] sm:$0xff] %v13074_v62  ;;  %v9858_v20 = vpop.eup %9857  ;;  %v3517_v36 = vmul.f32 %v9856_v6, %v12876_v33  ;;  %v13078_v29 = vpack.c.bf16 %v3906_v14, %v3907_v31  ;;  %v3894_v61 = vrot.slane %v13065_v19, 7  ;;  %v3783_v24 = vrot.slane %v13065_v19, 6 }
 0x3f8   : > { %v13083_v44 = vpop.eup %9859  ;;  %v3445_v32 = vadd.f32 1.0, %v9858_v20  ;;  %v5372_v54 = vsel %vm1944_vm3, %v5348_v4, %v5349_v50  ;;  %v5373_v33 = vsel %vm1944_vm3, %v15613_v59, %v5348_v4  ;;  %v5352_v59 = vrot.slane %v12994_v35, 1 }
 0x3f9   : > { %15612 = vst [vmem:[#allocation55_spill] sm:$0xff] %v13078_v29  ;;  %v13092_v31 = vmul.f32 %v3690_v28, %v3517_v36  ;;  %v3905_v6 = vsel %vm482_vm1, %v3893_v15, %v3894_v61  ;;  %v13096_v14 = vpack.c.bf16 %v5372_v54, %v5373_v33  ;;  %v13101_v62 = vsel %vm370_vm2, %v3782_v43, %v3783_v24 }
 0x3fa   : > { %v9862_v20 = vpop.eup %9861  ;;  %9869 = vrcp.f32 %v3445_v32  ;;  %v5371_v29 = vsel %vm1944_vm3, %v5349_v50, %v5350_v41  ;;  %v5370_v32 = vsel %vm1944_vm3, %v5350_v41, %v5351_v23  ;;  %v5353_v43 = vrot.slane %v13011_v12, 1 }
 0x3fb   : > { %15614 = vst [vmem:[#allocation56_spill] sm:$0xff] %v13096_v14  ;;  %v3518_v4 = vmul.f32 %v9862_v20, %v12891_v52  ;;  %v3895_v15 = vrot.slane %v13092_v31, 7  ;;  %v3784_v28 = vrot.slane %v13092_v31, 6  ;;  %v13111_v36 = vpack.c.bf16 %v13092_v31, %v13065_v19  ;;  %v13119_v33 = vpop.eup %9863 }
 0x3fc   : > { %v5369_v50 = vsel %vm1944_vm3, %v5351_v23, %v5352_v59  ;;  %v5354_v54 = vrot.slane %v13036_v10, 1  ;;  %v5368_v58 = vsel %vm1944_vm3, %v5352_v59, %v5353_v43  ;;  %9871 = vpow2.f32 %v13034_v18 }
 0x3fd   : > { %15615 = vst [vmem:[#allocation57_spill] sm:$0xff] %v13111_v36  ;;  %v13121_v52 = vmul.f32 %v3695_v46, %v3518_v4  ;;  %v3904_v20 = vsel %vm482_vm1, %v3894_v61, %v3895_v15  ;;  %v13127_v14 = vsel %vm370_vm2, %v3783_v24, %v3784_v28  ;;  %v13129_v36 = vpack.c.bf16 %v5370_v32, %v5371_v29 }
 0x3fe   : > { %v9866_v41 = vpop.eup %9865  ;;  %v13131_v56 = vpack.c.bf16 %v3904_v20, %v3905_v6  ;;  %v5355_v46 = vrot.slane %v13065_v19, 1  ;;  %v13141_v26 = vpack.c.bf16 %v5368_v58, %v5369_v50  ;;  %v5367_v6 = vsel %vm1944_vm3, %v5353_v43, %v5354_v54 }
 0x3ff   : > { %15616 = vst [vmem:[#allocation58_spill] sm:$0xff] %v13129_v36  ;;  %v3519_v4 = vmul.f32 %v9866_v41, %v12904_v47  ;;  %v3896_v61 = vrot.slane %v13121_v52, 7  ;;  %v3785_v24 = vrot.slane %v13121_v52, 6  ;;  %v5356_v32 = vrot.slane %v13092_v31, 1 }
 0x400   : > { %15617 = vst [vmem:[#allocation59_spill] sm:$0xff] %v13141_v26  ;;  %v5366_v29 = vsel %vm1944_vm3, %v5354_v54, %v5355_v46  ;;  %v5357_v59 = vrot.slane %v13121_v52, 1  ;;  %v15620_v41 = vsub.f32 0.0, %v13021_v9  ;;  %9873 = vrcp.f32 %v13045_v45 }
 0x401   : > { %v13150_v20 = vmul.f32 %v12589_v63, %v3519_v4  ;;  %v3903_v47 = vsel %vm482_vm1, %v3895_v15, %v3896_v61  ;;  %v13156_v58 = vsel %vm370_vm2, %v3784_v28, %v3785_v24  ;;  %v13158_v50 = vpack.c.bf16 %v5366_v29, %v5367_v6 }
 0x402   : > { %15618 = vst [vmem:[#allocation60_spill] sm:$0xff] %v13156_v58  ;;  %v3354_v23 = vmul.f32 1.442695, %v15620_v41  ;;  %v5364_v43 = vsel %vm1944_vm3, %v5356_v32, %v5357_v59  ;;  %v5365_v54 = vsel %vm1944_vm3, %v5355_v46, %v5356_v32  ;;  %v15623_v32 = vrot.slane %v12628_v25, 7  ;;  %v9730_v58 = vld [vmem:[%s15309_s4 + $0xf8] sm:$0xff]  }
 0x403   : > { %15619 = vst [vmem:[#allocation61_spill] sm:$0xff] %v13158_v50  ;;  %v9868_v4 = vpop.eup %9867  ;;  %v3786_v15 = vrot.slane %v13150_v20, 6  ;;  %v3897_v28 = vrot.slane %v13150_v20, 7  ;;  %v13172_v29 = vpack.c.bf16 %v13150_v20, %v13121_v52  ;;  %v13174_v6 = vpack.c.bf16 %v5364_v43, %v5365_v54 }
 0x404   : > { %v3520_v41 = vmul.f32 %v9868_v4, %v12934_v5  ;;  %v5358_v46 = vrot.slane %v13150_v20, 1  ;;  %9875 = vpow2.f32 %v3354_v23 }
 0x405   : > { %15621 = vst [vmem:[#allocation62_spill] sm:$0xff] %v13172_v29  ;;  %15622 = vst [vmem:[#allocation63_spill] sm:$0xff] %v13174_v6  ;;  %v3902_v63 = vsel %vm482_vm1, %v3896_v61, %v3897_v28  ;;  %v13185_v0 = vsel %vm370_vm2, %v3785_v24, %v3786_v15  ;;  %v13199_v61 = vld [vmem:[%s15308_s3] ss:$0 sm:$0xff] }
 0x406   : > { %v13188_v43 = vmul.f32 %v12599_v57, %v3520_v41  ;;  %v13190_v54 = vpack.c.bf16 %v3902_v63, %v3903_v47  ;;  %v5363_v18 = vsel %vm1944_vm3, %v5357_v59, %v5358_v46  ;;  %v13203_v24 = vadd.f32 %v13199_v61, %v12638_v13 }
 0x407   : > { %v9870_v45 = vpop.eup %9869  ;;  %v3862_v57 = vrot.slane %v13031_v48, 7  ;;  %v3751_v47 = vrot.slane %v13031_v48, 6  ;;  %v3415_v41 = vadd.f32 1.0, %v13063_v55  ;;  %v13214_v5 = vadd.f32 %v13199_v61, %v12626_v34 }
 0x408   : > { %v3787_v63 = vrot.slane %v13188_v43, 6  ;;  %v3898_v4 = vrot.slane %v13188_v43, 7  ;;  %v3521_v59 = vmul.f32 %v9870_v45, %v12958_v53  ;;  %v5359_v23 = vrot.slane %v13188_v43, 1 }
 0x409   : > { %v13218_v13 = vadd.f32 %v13199_v61, %v12658_v22  ;;  %v3936_v21 = vsel %vm482_vm1, %v3862_v57, %v15623_v32  ;;  %v3307_v22 = vsub.f32 0.0, %v13203_v24  ;;  %v13236_v45 = vadd.f32 %v13199_v61, %v12696_v1 }
 0x40a   : > { %v13225_v6 = vmul.f32 %v12591_v42, %v3521_v59  ;;  %v3901_v53 = vsel %vm482_vm1, %v3897_v28, %v3898_v4  ;;  %v3790_v55 = vsel %vm370_vm2, %v3786_v15, %v3787_v63  ;;  %v5362_v34 = vsel %vm1944_vm3, %v5358_v46, %v5359_v23 }
 0x40b   : > { %v15624_v32 = vrot.slane %v12628_v25, 6  ;;  %v13244_v59 = vpack.c.bf16 %v5362_v34, %v5363_v18  ;;  %9877 = vrcp.f32 %v3415_v41  ;;  %v3416_v1 = vadd.f32 1.0, %v13083_v44 }
 0x40c   : > { %v3788_v28 = vrot.slane %v13225_v6, 6  ;;  %v3899_v15 = vrot.slane %v13225_v6, 7  ;;  %v13250_v46 = vpack.c.bf16 %v13225_v6, %v13188_v43  ;;  %v5360_v50 = vrot.slane %v13225_v6, 1 }
 0x40d   : > { %v13242_v42 = vsel %vm370_vm2, %v3751_v47, %v15624_v32  ;;  %15625 = vst [vmem:[#allocation64_spill] sm:$0xff] %v13244_v59  ;;  %v3306_v26 = vsub.f32 0.0, %v13214_v5  ;;  %v3308_v32 = vsub.f32 0.0, %v13218_v13  ;;  %v9723_v59 = vld [vmem:[%s15309_s4 + $0xb8] sm:$0xff]   ;;  %9879 = vrcp.f32 %v3416_v1 }
 0x40e   : > { %15626 = vst [vmem:[#allocation65_spill] sm:$0xff] %v13250_v46  ;;  %v3900_v18 = vsel %vm482_vm1, %v3898_v4, %v3899_v15  ;;  %v3789_v34 = vsel %vm370_vm2, %v3787_v63, %v3788_v28  ;;  %v3937_v36 = vsel %vm482_vm1, %v3899_v15, %v3862_v57  ;;  %v3826_v44 = vsel %vm370_vm2, %v3788_v28, %v3751_v47 }
 0x40f   : > { %v13267_v41 = vpack.c.bf16 %v3900_v18, %v3901_v53  ;;  %v3827_v29 = vpack.c.bf16 %v3789_v34, %v3790_v55  ;;  %v13269_v25 = vpack.c.bf16 %v3936_v21, %v3937_v36  ;;  %v3828_v4 = vpack.c.bf16 %v13242_v42, %v3826_v44  ;;  %v9872_v53 = vpop.eup %9871  ;;  %v9731_v42 = vld [vmem:[%s15309_s4 + $0xf0] sm:$0xff]  }
 0x410   : > { %v3358_v46 = vmul.f32 1.442695, %v3307_v22  ;;  %v3309_v63 = vsub.f32 0.0, %v13236_v45  ;;  %v5361_v57 = vsel %vm1944_vm3, %v5359_v23, %v5360_v50  ;;  %v15627_v15 = vrot.slane %v13031_v48, 1  ;;  %v13285_v55 = vpop.eup %9873  ;;  %v9724_v23 = vld [vmem:[%s15309_s4 + $0xb0] sm:$0xff]  }
 0x411   : > { %v3356_v21 = vmul.f32 1.442695, %v3306_v26  ;;  %8810 = vmatmul.mubr.bf16.vlgmr.msra.gmra.mxu1 %v13267_v41  ;;  %8902 = vmatmul.mubr.bf16.vlgmr.msra.gmra.mxu0 %v3827_v29  ;;  %v3417_v22 = vadd.f32 1.0, %v13119_v33  ;;  %v9876_v26 = vpop.eup %9875  ;;  %v13298_v33 = vadd.f32 %v13199_v61, %v12726_v17  ;;  %v15398_v28 = vrot.slane %v12884_v11, 2 }
 0x412   : > { %v5398_v47 = vsel %vm1944_vm3, %v5360_v50, %v15627_v15  ;;  %8978 = vmatpush3.bf16.msra.mxu1 %v9723_v59  ;;  %8813 = vmatprep.mubr.msk.bf16.mxu1 %vm10209_vm0, %v15475_v37  ;;  %v3360_v50 = vmul.f32 1.442695, %v3308_v32  ;;  %9881 = vpow2.f32 %v3358_v46  ;;  %v3362_v29 = vmul.f32 1.442695, %v3309_v63 }
 0x413   : > { %v13283_v36 = vpack.c.bf16 %v5398_v47, %v5361_v57  ;;  %8905 = vmatprep.mubr.msk.bf16.mxu0 %vm10209_vm0, %v15475_v37  ;;  %8979 = vmatprep.subr.bf16.mxu1 %v15475_v37  ;;  %9883 = vpow2.f32 %v3356_v21  ;;  %v13305_v59 = vadd.f32 %v13199_v61, %v12745_v51  ;;  %v6307_v46 = vrot.slane %v12897_v39, 2  ;;  %v9725_v51 = vld [vmem:[%s15309_s4 + $0xa8] sm:$0xff]   ;;  %v9726_v21 = vld [vmem:[%s15309_s4 + $0xa0] sm:$0xff]  }
 0x414   : > { %9070 = vmatpush3.bf16.msra.mxu0 %v9730_v58  ;;  %9885 = vrcp.f32 %v3417_v22  ;;  %v15397_v17 = vrot.slane %v13031_v48, 2  ;;  %v13311_v58 = vadd.f32 1.0, %v9872_v53  ;;  %v6308_v1 = vrot.slane %v12918_v40, 2  ;;  %v9732_v39 = vld [vmem:[%s15309_s4 + $0xe8] sm:$0xff]  }
 0x415   : > { %15628 = vst [vmem:[#allocation66_spill] sm:$0xff] %v13283_v36  ;;  %9071 = vmatprep.subr.bf16.mxu0 %v15475_v37  ;;  %9887 = vpow2.f32 %v3360_v50  ;;  %v6309_v32 = vrot.slane %v12944_v8, 2  ;;  %v3419_v18 = vadd.f32 1.0, %v9876_v26  ;;  %v3310_v34 = vsub.f32 0.0, %v13298_v33 }
 0x416   : > { %8980 = vmatpush3.bf16.msra.mxu1 %v9724_v23  ;;  %9889 = vpow2.f32 %v3362_v29  ;;  %v13327_v44 = vsel %vm2904_vm4, %v15398_v28, %v6307_v46  ;;  %v3311_v63 = vsub.f32 0.0, %v13305_v59  ;;  %v13333_v40 = vsel %vm2904_vm4, %v6307_v46, %v6308_v1 }
 0x417   : > { %8981 = vmatprep.subr.bf16.mxu1 %v15475_v37  ;;  %15629 = vst [vmem:[#allocation67_spill] sm:$0xff] %v13327_v44  ;;  %15630 = vst [vmem:[#allocation68_spill] sm:$0xff] %v13333_v40  ;;  %v6310_v8 = vrot.slane %v12976_v3, 2  ;;  %v13338_v57 = vsel %vm2904_vm4, %v6308_v1, %v6309_v32  ;;  %v6311_v47 = vrot.slane %v12994_v35, 2  ;;  %v6312_v53 = vrot.slane %v13011_v12, 2  ;;  %v9733_v12 = vld [vmem:[%s15309_s4 + $0xe0] sm:$0xff]  }
 0x418   : > { %9072 = vmatpush3.bf16.msra.mxu0 %v9731_v42  ;;  %15631 = vst [vmem:[#allocation69_spill] sm:$0xff] %v13338_v57  ;;  %v9878_v15 = vpop.eup %9877  ;;  %v6313_v3 = vrot.slane %v13036_v10, 2  ;;  %v6314_v23 = vrot.slane %v13065_v19, 2  ;;  %v6315_v50 = vrot.slane %v13092_v31, 2  ;;  %v6316_v35 = vrot.slane %v13121_v52, 2  ;;  %v15656_v10 = vld [vmem:[#allocation34_spill] sm:$0xff] }
 0x419   : > { %8814 = vmatmul.mubr.bf16.gmra.mxu1 %v13269_v25  ;;  %8906 = vmatmul.mubr.bf16.gmra.mxu0 %v3828_v4  ;;  %v13355_v22 = vsel %vm2904_vm4, %v6309_v32, %v6310_v8  ;;  %v13368_v26 = vsel %vm2904_vm4, %v6311_v47, %v6312_v53  ;;  %v13372_v19 = vsel %vm2904_vm4, %v6310_v8, %v6311_v47  ;;  %v6317_v31 = vrot.slane %v13150_v20, 2  ;;  %v9727_v47 = vld [vmem:[%s15309_s4 + $0x98] sm:$0xff]   ;;  %v15650_v20 = vld [vmem:[#allocation6_spill] sm:$0xff] }
 0x41a   : > { %8817 = vmatprep.mubr.msk.bf16.mxu1 %vm10209_vm0, %v15475_v37  ;;  %8909 = vmatprep.mubr.msk.bf16.mxu0 %vm10209_vm0, %v15475_v37  ;;  %15632 = vst [vmem:[#allocation70_spill] sm:$0xff] %v13355_v22  ;;  %15633 = vst [vmem:[#allocation71_spill] sm:$0xff] %v13368_v26  ;;  %v13380_v29 = vsel %vm2904_vm4, %v6313_v3, %v6314_v23  ;;  %v13384_v42 = vsel %vm2904_vm4, %v6312_v53, %v6313_v3  ;;  %v6318_v1 = vrot.slane %v13188_v43, 2  ;;  %v9880_v43 = vpop.eup %9879 }
 0x41b   : > { %8982 = vmatpush3.bf16.msra.mxu1 %v9725_v51  ;;  %9073 = vmatprep.subr.bf16.mxu0 %v15475_v37  ;;  %15634 = vst [vmem:[#allocation72_spill] sm:$0xff] %v13372_v19  ;;  %15635 = vst [vmem:[#allocation73_spill] sm:$0xff] %v13380_v29  ;;  %v13388_v46 = vsel %vm2904_vm4, %v6315_v50, %v6316_v35  ;;  %v13394_v51 = vsel %vm2904_vm4, %v6314_v23, %v6315_v50  ;;  %v6319_v3 = vrot.slane %v13225_v6, 2  ;;  %v15641_v6 = vld [vmem:[#allocation25_spill] sm:$0xff] }
 0x41c   : > { %8983 = vmatprep.subr.bf16.mxu1 %v15475_v37  ;;  %9074 = vmatpush3.bf16.msra.mxu0 %v9732_v39  ;;  %15636 = vst [vmem:[#allocation74_spill] sm:$0xff] %v13384_v42  ;;  %15637 = vst [vmem:[#allocation75_spill] sm:$0xff] %v13388_v46  ;;  %v13399_v32 = vsel %vm2904_vm4, %v6316_v35, %v6317_v31  ;;  %v3490_v39 = vmul.f32 %v13285_v55, %v12856_v2  ;;  %9891 = vrcp.f32 %v3419_v18  ;;  %v9735_v2 = vld [vmem:[%s15309_s4 + $0xd8] sm:$0xff]   ;;  %v15645_v35 = vld [vmem:[#allocation32_spill] sm:$0xff] }
 0x41d   : > { %9075 = vmatprep.subr.bf16.mxu0 %v15475_v37  ;;  %15638 = vst [vmem:[#allocation76_spill] sm:$0xff] %v13394_v51  ;;  %15639 = vst [vmem:[#allocation77_spill] sm:$0xff] %v13399_v32  ;;  %v3491_v8 = vmul.f32 %v9878_v15, %v12873_v7  ;;  %v3366_v23 = vmul.f32 1.442695, %v3311_v63  ;;  %v13412_v50 = vadd.f32 %v13199_v61, %v12758_v49  ;;  %9893 = vrcp.f32 %v13311_v58 }
 0x41e   : > { %v13420_v7 = vsel %vm2904_vm4, %v6317_v31, %v6318_v1  ;;  %v15642_v49 = vpack.c.bf16 %v12672_v16, %v15641_v6  ;;  %v13431_v63 = vsel %vm2904_vm4, %v6318_v1, %v6319_v3  ;;  %v13437_v15 = vsel %vm2904_vm4, %v6319_v3, %v15397_v17  ;;  %v15646_v1 = vld [vmem:[#allocation13_spill] sm:$0xff] }
 0x41f   : > { %8984 = vmatpush3.bf16.msra.mxu1 %v9726_v21  ;;  %15640 = vst [vmem:[#allocation78_spill] sm:$0xff] %v13420_v7  ;;  %v9882_v55 = vpop.eup %9881  ;;  %15643 = vst [vmem:[#allocation25_spill] sm:$0xff] %v13431_v63  ;;  %v3364_v21 = vmul.f32 1.442695, %v3310_v34  ;;  %v13450_v6 = vmul.f32 %v15646_v1, %v3491_v8  ;;  %v9728_v34 = vld [vmem:[%s15309_s4 + $0x90] sm:$0xff]   ;;  %9895 = vpow2.f32 %v3366_v23  ;;  %v13488_v4 = vadd.f32 %v13199_v61, %v15656_v10  ;;  %v9734_v10 = vld [vmem:[%s15309_s4 + $0x80] sm:$0xff]  }
 0x420   : > { %8985 = vmatprep.subr.bf16.mxu1 %v15475_v37  ;;  %9076 = vmatpush3.bf16.msra.mxu0 %v9733_v12  ;;  %15644 = vst [vmem:[#allocation79_spill] sm:$0xff] %v13437_v15  ;;  %v9884_v58 = vpop.eup %9883  ;;  %v13441_v12 = vadd.f32 %v13199_v61, %v15645_v35  ;;  %v3313_v35 = vsub.f32 0.0, %v13412_v50  ;;  %v9736_v8 = vld [vmem:[%s15309_s4 + $0xd0] sm:$0xff]  }
 0x421   : > { %8818 = vmatmul.mubr.bf16.gmra.mxu1 %v12676_v60  ;;  %8910 = vmatmul.mubr.bf16.gmra.mxu0 %v15642_v49  ;;  %v9886_v31 = vpop.eup %9885  ;;  %15647 = vst [vmem:[#allocation32_spill] sm:$0xff] %v13450_v6  ;;  %v3421_v49 = vadd.f32 1.0, %v9882_v55  ;;  %v3420_v16 = vadd.f32 1.0, %v9884_v58  ;;  %9897 = vpow2.f32 %v3364_v21  ;;  %v15399_v18 = vrot.slane %v13450_v6, 7  ;;  %v15651_v21 = vld [vmem:[#allocation5_spill] sm:$0xff] }
 0x422   : > { %8821 = vmatprep.mubr.msk.bf16.mxu1 %vm10209_vm0, %v15475_v37  ;;  %8913 = vmatprep.mubr.msk.bf16.mxu0 %vm10209_vm0, %v15475_v37  ;;  %v9888_v3 = vpop.eup %9887  ;;  %v3312_v55 = vsub.f32 0.0, %v13441_v12  ;;  %v3493_v23 = vmul.f32 %v9886_v31, %v12949_v27  ;;  %v3370_v53 = vmul.f32 1.442695, %v3313_v35  ;;  %v15400_v58 = vrot.slane %v13450_v6, 6  ;;  %v9737_v27 = vld [vmem:[%s15309_s4 + $0xc8] sm:$0xff]  }
 0x423   : > { %8986 = vmatpush3.bf16.msra.mxu1 %v9727_v47  ;;  %9077 = vmatprep.subr.bf16.mxu0 %v15475_v37  ;;  %v9890_v1 = vpop.eup %9889  ;;  %v15648_v47 = vld [vmem:[#allocation12_spill] sm:$0xff]  ;;  %9899 = vrcp.f32 %v3421_v49  ;;  %v3492_v31 = vmul.f32 %v9880_v43, %v15651_v21  ;;  %v15654_v49 = vld [vmem:[#allocation29_spill] sm:$0xff] }
 0x424   : > { %8987 = vmatprep.subr.bf16.mxu1 %v15475_v37  ;;  %9078 = vmatpush3.bf16.msra.mxu0 %v9735_v2  ;;  %v13462_v17 = vmul.f32 %v15648_v47, %v3490_v39  ;;  %v9729_v2 = vld [vmem:[%s15309_s4 + $0x88] sm:$0xff]   ;;  %v13473_v39 = vadd.f32 %v13199_v61, %v15650_v20  ;;  %v15653_v47 = vld [vmem:[#allocation30_spill] sm:$0xff]  ;;  %9901 = vrcp.f32 %v3420_v16  ;;  %v3368_v52 = vmul.f32 1.442695, %v3312_v55 }
 0x425   : > { %9079 = vmatprep.subr.bf16.mxu0 %v15475_v37  ;;  %v15655_v35 = vpack.c.bf16 %v15653_v47, %v15654_v49  ;;  %v3423_v55 = vadd.f32 1.0, %v9890_v1  ;;  %9903 = vpow2.f32 %v3370_v53  ;;  %v15661_v1 = vld [vmem:[#allocation28_spill] sm:$0xff] }
 0x426   : > { %15649 = vst [vmem:[#allocation13_spill] sm:$0xff] %v13462_v17  ;;  %v3868_v20 = vrot.slane %v13462_v17, 7  ;;  %v3757_v43 = vrot.slane %v13462_v17, 6  ;;  %v3315_v47 = vsub.f32 0.0, %v13473_v39  ;;  %v15662_v53 = vrot.slane %v15661_v1, 7 }
 0x427   : > { %8988 = vmatpush3.bf16.msra.mxu1 %v9728_v34  ;;  %v15652_v34 = vld [vmem:[#allocation31_spill] sm:$0xff]  ;;  %9905 = vpow2.f32 %v3368_v52  ;;  %v15663_v63 = vrot.slane %v15661_v1, 6 }
 0x428   : > { %8989 = vmatprep.subr.bf16.mxu1 %v15475_v37  ;;  %9080 = vmatpush3.bf16.msra.mxu0 %v9736_v8  ;;  %v15657_v8 = vld [vmem:[#allocation8_spill] sm:$0xff]  ;;  %v3930_v16 = vsel %vm482_vm1, %v3868_v20, %v15399_v18  ;;  %v3931_v28 = vsel %vm482_vm1, %v15662_v53, %v3868_v20  ;;  %9907 = vrcp.f32 %v3423_v55  ;;  %v3374_v53 = vmul.f32 1.442695, %v3315_v47  ;;  %v15667_v47 = vld [vmem:[#allocation10_spill] sm:$0xff] }
 0x429   : > { %8822 = vmatmul.mubr.bf16.gmra.mxu1 %v15652_v34  ;;  %8914 = vmatmul.mubr.bf16.gmra.mxu0 %v15655_v35  ;;  %v13496_v21 = vmul.f32 %v15657_v8, %v3493_v23  ;;  %v3819_v23 = vsel %vm370_vm2, %v3757_v43, %v15400_v58  ;;  %v9892_v49 = vpop.eup %9891  ;;  %v15659_v35 = vld [vmem:[#allocation9_spill] sm:$0xff]  ;;  %v3422_v58 = vadd.f32 1.0, %v9888_v3  ;;  %v3820_v15 = vsel %vm370_vm2, %v15663_v63, %v3757_v43 }
 0x42a   : > { %8825 = vmatprep.mubr.msk.bf16.mxu1 %vm10209_vm0, %v15475_v37  ;;  %8917 = vmatprep.mubr.msk.bf16.mxu0 %vm10209_vm0, %v15475_v37  ;;  %v13516_v8 = vmul.f32 %v15659_v35, %v3492_v31  ;;  %v9894_v18 = vpop.eup %9893  ;;  %v13528_v32 = vpack.c.bf16 %v3930_v16, %v3931_v28  ;;  %v3831_v31 = vpack.c.bf16 %v3819_v23, %v3820_v15  ;;  %v15664_v15 = vld [vmem:[#allocation7_spill] sm:$0xff]  ;;  %v15665_v16 = vld [vmem:[#allocation17_spill] sm:$0xff] }
 0x42b   : > { %15658 = vst [vmem:[#allocation12_spill] sm:$0xff] %v13496_v21  ;;  %8990 = vmatpush3.bf16.msra.mxu1 %v9729_v2  ;;  %9081 = vmatprep.subr.bf16.mxu0 %v15475_v37  ;;  %v9738_v2 = vld [vmem:[%s15309_s4 + $0xc0] sm:$0xff]   ;;  %v3871_v35 = vrot.slane %v13496_v21, 7  ;;  %v3495_v20 = vmul.f32 %v9892_v49, %v13021_v9  ;;  %v3760_v3 = vrot.slane %v13496_v21, 6  ;;  %v3494_v7 = vmul.f32 %v9894_v18, %v12992_v38 }
 0x42c   : > { %8991 = vmatprep.subr.bf16.mxu1 %v15475_v37  ;;  %9082 = vmatpush3.bf16.msra.mxu0 %v9737_v27  ;;  %15660 = vst [vmem:[#allocation6_spill] sm:$0xff] %v13516_v8  ;;  %v3314_v27 = vsub.f32 0.0, %v13488_v4  ;;  %v9896_v52 = vpop.eup %9895  ;;  %v3870_v28 = vrot.slane %v13516_v8, 7  ;;  %9909 = vrcp.f32 %v3422_v58  ;;  %v13539_v43 = vadd.f32 %v13199_v61, %v15664_v15 }
 0x42d   : > { %9083 = vmatprep.subr.bf16.mxu0 %v15475_v37  ;;  %v3759_v9 = vrot.slane %v13516_v8, 6  ;;  %v3425_v58 = vadd.f32 1.0, %v9896_v52  ;;  %9911 = vpow2.f32 %v3374_v53  ;;  %v13555_v23 = vmul.f32 %v15667_v47, %v3494_v7 }
 0x42e   : > { %v3372_v63 = vmul.f32 1.442695, %v3314_v27  ;;  %v9898_v38 = vpop.eup %9897  ;;  %v3928_v18 = vsel %vm482_vm1, %v3870_v28, %v3871_v35 }
 0x42f   : > { %8992 = vmatpush3.bf16.msra.mxu1 %v9734_v10  ;;  %v13550_v10 = vmul.f32 %v15665_v16, %v3495_v20  ;;  %v3817_v61 = vsel %vm370_vm2, %v3759_v9, %v3760_v3  ;;  %15668 = vst [vmem:[#allocation31_spill] sm:$0xff] %v13555_v23  ;;  %v3424_v27 = vadd.f32 1.0, %v9898_v38  ;;  %v15670_v20 = vrot.slane %v13450_v6, 6 }
 0x430   : > { %9084 = vmatpush3.bf16.msra.mxu0 %v9738_v2  ;;  %9161 = vmatprep.subr.bf16.mxu1 %v15475_v37  ;;  %v9900_v55 = vpop.eup %9899  ;;  %v15669_v2 = vrot.slane %v13450_v6, 7  ;;  %9913 = vpow2.f32 %v3372_v63  ;;  %v3872_v63 = vrot.slane %v13555_v23, 7 }
 0x431   : > { %8826 = vmatmul.mubr.bf16.gmra.mxu1 %v13528_v32  ;;  %8918 = vmatmul.mubr.bf16.gmra.mxu0 %v3831_v31  ;;  %15666 = vst [vmem:[#allocation5_spill] sm:$0xff] %v13550_v10  ;;  %v3316_v31 = vsub.f32 0.0, %v13539_v43  ;;  %v3818_v53 = vsel %vm370_vm2, %v15670_v20, %v3759_v9  ;;  %v9902_v52 = vpop.eup %9901  ;;  %9915 = vrcp.f32 %v3425_v58  ;;  %v3497_v7 = vmul.f32 %v9900_v55, %v13203_v24 }
 0x432   : > { %8829 = vmatprep.mubr.msk.bf16.mxu1 %vm10209_vm0, %v15475_v37  ;;  %8921 = vmatprep.mubr.msk.bf16.mxu0 %vm10209_vm0, %v15475_v37  ;;  %v3929_v49 = vsel %vm482_vm1, %v15669_v2, %v3870_v28  ;;  %v3832_v16 = vpack.c.bf16 %v3817_v61, %v3818_v53  ;;  %v3873_v47 = vrot.slane %v13550_v10, 7  ;;  %v3762_v28 = vrot.slane %v13550_v10, 6  ;;  %v9904_v38 = vpop.eup %9903  ;;  %v15671_v61 = vld [vmem:[#allocation11_spill] sm:$0xff]  ;;  %v15673_v53 = vld [vmem:[#allocation16_spill] sm:$0xff] }
 0x433   : > { %9253 = vmatprep.subr.bf16.mxu0 %v15475_v37  ;;  %v13566_v15 = vpack.c.bf16 %v3928_v18, %v3929_v49  ;;  %9917 = vrcp.f32 %v3424_v27  ;;  %v3496_v9 = vmul.f32 %v9902_v52, %v13214_v5  ;;  %v3376_v2 = vmul.f32 1.442695, %v3316_v31 }
 0x434   : > { %v3761_v24 = vrot.slane %v13555_v23, 6  ;;  %v9906_v18 = vpop.eup %9905  ;;  %v3427_v58 = vadd.f32 1.0, %v9904_v38  ;;  %v13580_v55 = vmul.f32 %v15671_v61, %v3497_v7  ;;  %v3926_v49 = vsel %vm482_vm1, %v3872_v63, %v3873_v47 }
 0x435   : > { %v9908_v27 = vpop.eup %9907  ;;  %v3927_v31 = vsel %vm482_vm1, %v3871_v35, %v3872_v63  ;;  %v3426_v20 = vadd.f32 1.0, %v9906_v18  ;;  %v13589_v52 = vmul.f32 %v15673_v53, %v3496_v9  ;;  %9919 = vpow2.f32 %v3376_v2 }
 0x436   : > { %15672 = vst [vmem:[#allocation30_spill] sm:$0xff] %v13580_v55  ;;  %v3815_v5 = vsel %vm370_vm2, %v3761_v24, %v3762_v28  ;;  %v13593_v38 = vpack.c.bf16 %v3926_v49, %v3927_v31  ;;  %9921 = vrcp.f32 %v3427_v58  ;;  %v3499_v51 = vmul.f32 %v9908_v27, %v13236_v45  ;;  %v15677_v27 = vld [vmem:[#allocation14_spill] sm:$0xff] }
 0x437   : > { %15674 = vst [vmem:[#allocation29_spill] sm:$0xff] %v13589_v52  ;;  %v3875_v46 = vrot.slane %v13580_v55, 7  ;;  %v3764_v42 = vrot.slane %v13580_v55, 6  ;;  %9923 = vrcp.f32 %v3426_v20  ;;  %v3763_v45 = vrot.slane %v13589_v52, 6 }
 0x438   : > { %v13936_v19 = vpack.c.bf16 %v13580_v55, %v13589_v52 }
 0x439   : > { %8830 = vmatmul.mubr.bf16.gmra.mxu1 %v13566_v15  ;;  %8922 = vmatmul.mubr.bf16.gmra.mxu0 %v3832_v16  ;;  %v3816_v16 = vsel %vm370_vm2, %v3760_v3, %v3761_v24  ;;  %v9910_v7 = vpop.eup %9909  ;;  %v3874_v3 = vrot.slane %v13589_v52, 7  ;;  %v15675_v24 = vld [vmem:[#allocation20_spill] sm:$0xff]  ;;  %v3814_v53 = vsel %vm370_vm2, %v3762_v28, %v3763_v45 }
 0x43a   : > { %8833 = vmatprep.mubr.msk.bf16.mxu1 %vm10209_vm0, %v15475_v37  ;;  %8925 = vmatprep.mubr.msk.bf16.mxu0 %vm10209_vm0, %v15475_v37  ;;  %v3833_v61 = vpack.c.bf16 %v3815_v5, %v3816_v16  ;;  %v9912_v35 = vpop.eup %9911  ;;  %v3498_v63 = vmul.f32 %v9910_v7, %v13218_v13  ;;  %v13607_v18 = vmul.f32 %v15675_v24, %v3499_v51 }
 0x43b   : > { %v3429_v2 = vadd.f32 1.0, %v9912_v35  ;;  %v3924_v58 = vsel %vm482_vm1, %v3874_v3, %v3875_v46  ;;  %v3813_v13 = vsel %vm370_vm2, %v3763_v45, %v3764_v42  ;;  %v3925_v20 = vsel %vm482_vm1, %v3873_v47, %v3874_v3  ;;  %v15679_v3 = vld [vmem:[#allocation18_spill] sm:$0xff] }
 0x43c   : > { %15676 = vst [vmem:[#allocation34_spill] sm:$0xff] %v13607_v18  ;;  %v13614_v31 = vmul.f32 %v15677_v27, %v3498_v63  ;;  %v13620_v51 = vpack.c.bf16 %v3924_v58, %v3925_v20  ;;  %v3834_v7 = vpack.c.bf16 %v3813_v13, %v3814_v53  ;;  %v3877_v35 = vrot.slane %v13607_v18, 7  ;;  %v15681_v13 = vld [vmem:[#allocation15_spill] sm:$0xff] }
 0x43d   : > { %v9914_v9 = vpop.eup %9913  ;;  %9925 = vrcp.f32 %v3429_v2 }
 0x43e   : > { %v9916_v49 = vpop.eup %9915  ;;  %v3428_v5 = vadd.f32 1.0, %v9914_v9  ;;  %15678 = vst [vmem:[#allocation8_spill] sm:$0xff] %v13614_v31  ;;  %v3766_v9 = vrot.slane %v13607_v18, 6  ;;  %v3876_v28 = vrot.slane %v13614_v31, 7  ;;  %v13950_v57 = vpack.c.bf16 %v13607_v18, %v13614_v31 }
 0x440   : > { %v9918_v16 = vpop.eup %9917  ;;  %9927 = vrcp.f32 %v3428_v5  ;;  %v3922_v2 = vsel %vm482_vm1, %v3876_v28, %v3877_v35  ;;  %v3923_v5 = vsel %vm482_vm1, %v3875_v46, %v3876_v28 }
 0x441   : > { %8834 = vmatmul.mubr.bf16.gmra.mxu1 %v13593_v38  ;;  %8926 = vmatmul.mubr.bf16.gmra.mxu0 %v3833_v61  ;;  %v3501_v61 = vmul.f32 %v9916_v49, %v13305_v59  ;;  %v3500_v47 = vmul.f32 %v9918_v16, %v13298_v33  ;;  %v3765_v59 = vrot.slane %v13614_v31, 6  ;;  %v13647_v53 = vpack.c.bf16 %v3922_v2, %v3923_v5  ;;  %v15685_v2 = vld [vmem:[#allocation21_spill] sm:$0xff] }
 0x442   : > { %8837 = vmatprep.mubr.msk.bf16.mxu1 %vm10209_vm0, %v15475_v37  ;;  %8929 = vmatprep.mubr.msk.bf16.mxu0 %vm10209_vm0, %v15475_v37  ;;  %v9920_v63 = vpop.eup %9919 }
 0x443   : > { %v13634_v45 = vmul.f32 %v15679_v3, %v3501_v61  ;;  %v3811_v33 = vsel %vm370_vm2, %v3765_v59, %v3766_v9  ;;  %v9922_v24 = vpop.eup %9921  ;;  %v3430_v58 = vadd.f32 1.0, %v9920_v63  ;;  %v13641_v49 = vmul.f32 %v15681_v13, %v3500_v47 }
 0x444   : > { %v3812_v27 = vsel %vm370_vm2, %v3764_v42, %v3765_v59  ;;  %v9924_v20 = vpop.eup %9923 }
 0x445   : > { %15680 = vst [vmem:[#allocation9_spill] sm:$0xff] %v13634_v45  ;;  %15682 = vst [vmem:[#allocation7_spill] sm:$0xff] %v13641_v49  ;;  %v3835_v16 = vpack.c.bf16 %v3811_v33, %v3812_v27  ;;  %v3879_v61 = vrot.slane %v13634_v45, 7  ;;  %v3768_v3 = vrot.slane %v13634_v45, 6  ;;  %9929 = vrcp.f32 %v3430_v58 }
 0x446   : > { %v3502_v47 = vmul.f32 %v9924_v20, %v13441_v12  ;;  %v3878_v42 = vrot.slane %v13641_v49, 7  ;;  %v3767_v46 = vrot.slane %v13641_v49, 6  ;;  %v13964_v44 = vpack.c.bf16 %v13634_v45, %v13641_v49 }
 0x448   : > { %v3920_v59 = vsel %vm482_vm1, %v3878_v42, %v3879_v61  ;;  %v3809_v63 = vsel %vm370_vm2, %v3767_v46, %v3768_v3  ;;  %v13668_v33 = vmul.f32 %v15685_v2, %v3502_v47  ;;  %v3810_v58 = vsel %vm370_vm2, %v3766_v9, %v3767_v46 }
 0x449   : > { %8838 = vmatmul.mubr.bf16.gmra.mxu1 %v13620_v51  ;;  %8930 = vmatmul.mubr.bf16.gmra.mxu0 %v3834_v7  ;;  %v3503_v7 = vmul.f32 %v9922_v24, %v13412_v50  ;;  %v15683_v50 = vld [vmem:[#allocation19_spill] sm:$0xff]  ;;  %v3921_v24 = vsel %vm482_vm1, %v3877_v35, %v3878_v42  ;;  %v3836_v27 = vpack.c.bf16 %v3809_v63, %v3810_v58 }
 0x44a   : > { %8841 = vmatprep.mubr.msk.bf16.mxu1 %vm10209_vm0, %v15475_v37  ;;  %8933 = vmatprep.mubr.msk.bf16.mxu0 %vm10209_vm0, %v15475_v37  ;;  %v9926_v12 = vpop.eup %9925  ;;  %15686 = vst [vmem:[#allocation10_spill] sm:$0xff] %v13668_v33  ;;  %v13674_v5 = vpack.c.bf16 %v3920_v59, %v3921_v24  ;;  %v3880_v35 = vrot.slane %v13668_v33, 7  ;;  %v3769_v9 = vrot.slane %v13668_v33, 6 }
 0x44b   : > { %v13661_v28 = vmul.f32 %v15683_v50, %v3503_v7  ;;  %v3505_v20 = vmul.f32 %v9926_v12, %v13473_v39  ;;  %v15687_v39 = vld [vmem:[#allocation35_spill] sm:$0xff] }
 0x44c   : > { %v3919_v63 = vsel %vm482_vm1, %v3879_v61, %v3880_v35  ;;  %v3808_v12 = vsel %vm370_vm2, %v3768_v3, %v3769_v9 }
 0x44d   : > { %15684 = vst [vmem:[#allocation17_spill] sm:$0xff] %v13661_v28  ;;  %v9928_v13 = vpop.eup %9927  ;;  %v3770_v7 = vrot.slane %v13661_v28, 6  ;;  %v13688_v42 = vmul.f32 %v15687_v39, %v3505_v20  ;;  %v13978_v36 = vpack.c.bf16 %v13661_v28, %v13668_v33 }
 0x44e   : > { %v3504_v47 = vmul.f32 %v9928_v13, %v13488_v4  ;;  %v15689_v4 = vld [vmem:[#allocation22_spill] sm:$0xff] }
 0x44f   : > { %15688 = vst [vmem:[#allocation11_spill] sm:$0xff] %v13688_v42  ;;  %v3807_v50 = vsel %vm370_vm2, %v3769_v9, %v3770_v7  ;;  %v3883_v13 = vrot.slane %v13688_v42, 7  ;;  %v15691_v9 = vld [vmem:[#allocation36_spill] sm:$0xff] }
 0x450   : > { %v13695_v59 = vmul.f32 %v15689_v4, %v3504_v47  ;;  %v3837_v58 = vpack.c.bf16 %v3807_v50, %v3808_v12 }
 0x451   : > { %8842 = vmatmul.mubr.bf16.gmra.mxu1 %v13647_v53  ;;  %8934 = vmatmul.mubr.bf16.gmra.mxu0 %v3835_v16  ;;  %v3881_v16 = vrot.slane %v13661_v28, 7 }
 0x452   : > { %8845 = vmatprep.mubr.msk.bf16.mxu1 %vm10209_vm0, %v15475_v37  ;;  %8937 = vmatprep.mubr.msk.bf16.mxu0 %vm10209_vm0, %v15475_v37  ;;  %15690 = vst [vmem:[#allocation16_spill] sm:$0xff] %v13695_v59  ;;  %v9930_v2 = vpop.eup %9929  ;;  %v3882_v61 = vrot.slane %v13695_v59, 7  ;;  %v3771_v3 = vrot.slane %v13695_v59, 6  ;;  %v13992_v11 = vpack.c.bf16 %v13688_v42, %v13695_v59 }
 0x453   : > { %v3918_v46 = vsel %vm482_vm1, %v3880_v35, %v3881_v16  ;;  %v3506_v20 = vmul.f32 %v9930_v2, %v13539_v43 }
 0x454   : > { %v13701_v24 = vpack.c.bf16 %v3918_v46, %v3919_v63  ;;  %v3916_v47 = vsel %vm482_vm1, %v3882_v61, %v3883_v13  ;;  %v3917_v43 = vsel %vm482_vm1, %v3881_v16, %v3882_v61  ;;  %v3806_v46 = vsel %vm370_vm2, %v3770_v7, %v3771_v3  ;;  %v15693_v16 = vld [vmem:[#allocation37_spill] sm:$0xff] }
 0x455   : > { %v13718_v39 = vmul.f32 %v15691_v9, %v3506_v20  ;;  %v13724_v50 = vpack.c.bf16 %v3916_v47, %v3917_v43  ;;  %v15694_v2 = vrot.slane %v15693_v16, 7  ;;  %v15696_v9 = vld [vmem:[#allocation41_spill] sm:$0xff]  ;;  %v15697_v43 = vld [vmem:[#allocation39_spill] sm:$0xff] }
 0x457   : > { %15692 = vst [vmem:[#allocation20_spill] sm:$0xff] %v13718_v39  ;;  %v3884_v63 = vrot.slane %v13718_v39, 7  ;;  %v3773_v12 = vrot.slane %v13718_v39, 6 }
 0x459   : > { %8846 = vmatmul.mubr.bf16.gmra.mxu1 %v13674_v5  ;;  %8938 = vmatmul.mubr.bf16.gmra.mxu0 %v3836_v27  ;;  %v3772_v27 = vrot.slane %v13688_v42, 6  ;;  %v3914_v7 = vsel %vm482_vm1, %v3884_v63, %v15694_v2  ;;  %v3915_v61 = vsel %vm482_vm1, %v3883_v13, %v3884_v63  ;;  %v15702_v63 = vld [vmem:[#allocation42_spill] sm:$0xff]  ;;  %v15704_v2 = vld [vmem:[#allocation49_spill] sm:$0xff] }
 0x45a   : > { %8849 = vmatprep.mubr.msk.bf16.mxu1 %vm10209_vm0, %v15475_v37  ;;  %8941 = vmatprep.mubr.msk.bf16.mxu0 %vm10209_vm0, %v15475_v37  ;;  %v13745_v47 = vpack.c.bf16 %v3914_v7, %v3915_v61  ;;  %v15705_v7 = vld [vmem:[#allocation48_spill] sm:$0xff]  ;;  %v15708_v61 = vld [vmem:[#allocation55_spill] sm:$0xff] }
 0x45b   : > { %v3805_v35 = vsel %vm370_vm2, %v3771_v3, %v3772_v27  ;;  %v3804_v3 = vsel %vm370_vm2, %v3772_v27, %v3773_v12  ;;  %v15700_v27 = vld [vmem:[#allocation44_spill] sm:$0xff] }
 0x45c   : > { %v3838_v4 = vpack.c.bf16 %v3805_v35, %v3806_v46  ;;  %v15698_v46 = vld [vmem:[#allocation40_spill] sm:$0xff] }
 0x45d   : > { %v15699_v13 = vpack.c.bf16 %v15697_v43, %v15698_v46  ;;  %v15712_v46 = vpack.c.bf16 %v13127_v14, %v13101_v62  ;;  %v9739_v62 = vld [vmem:[%s15309_s4 + $0x138] sm:$0xff]  }
 0x45e   : > { %v9746_v14 = vld [vmem:[%s15309_s4 + $0x178] sm:$0xff]  }
 0x461   : > { %8850 = vmatmul.mubr.bf16.gmra.mxu1 %v13701_v24  ;;  %8942 = vmatmul.mubr.bf16.gmra.mxu0 %v3837_v58  ;;  %v15695_v58 = vrot.slane %v15693_v16, 6 }
 0x462   : > { %8853 = vmatprep.mubr.msk.bf16.mxu1 %vm10209_vm0, %v15475_v37  ;;  %8945 = vmatprep.mubr.msk.bf16.mxu0 %vm10209_vm0, %v15475_v37 }
 0x463   : > { %v3803_v20 = vsel %vm370_vm2, %v3773_v12, %v15695_v58  ;;  %v15706_v58 = vld [vmem:[#allocation46_spill] sm:$0xff] }
 0x464   : > { %v3839_v35 = vpack.c.bf16 %v3803_v20, %v3804_v3  ;;  %v15707_v20 = vpack.c.bf16 %v15705_v7, %v15706_v58  ;;  %v15709_v3 = vld [vmem:[#allocation54_spill] sm:$0xff]  ;;  %v9741_v58 = vld [vmem:[%s15309_s4 + $0x128] sm:$0xff]  }
 0x469   : > { %8854 = vmatmul.mubr.bf16.gmra.mxu1 %v13724_v50  ;;  %8946 = vmatmul.mubr.bf16.gmra.mxu0 %v3838_v4  ;;  %v15701_v4 = vld [vmem:[#allocation45_spill] sm:$0xff] }
 0x46a   : > { %8857 = vmatprep.mubr.msk.bf16.mxu1 %vm10209_vm0, %v15475_v37  ;;  %8949 = vmatprep.mubr.msk.bf16.mxu0 %vm10209_vm0, %v15475_v37  ;;  %v15703_v12 = vpack.c.bf16 %v15701_v4, %v15702_v63  ;;  %v15715_v63 = vld [vmem:[#allocation65_spill] sm:$0xff] }
 0x471   : > { %8858 = vmatmul.mubr.bf16.gmra.mxu1 %v13745_v47  ;;  %8950 = vmatmul.mubr.bf16.gmra.mxu0 %v3839_v35  ;;  %v15710_v35 = vld [vmem:[#allocation51_spill] sm:$0xff] }
 0x472   : > { %8861 = vmatprep.mubr.msk.bf16.mxu1 %vm10209_vm0, %v15475_v37  ;;  %8953 = vmatprep.mubr.msk.bf16.mxu0 %vm10209_vm0, %v15475_v37  ;;  %v15711_v43 = vpack.c.bf16 %v15709_v3, %v15710_v35  ;;  %v9742_v3 = vld [vmem:[%s15309_s4 + $0x120] sm:$0xff]   ;;  %v9743_v35 = vld [vmem:[%s15309_s4 + $0x118] sm:$0xff]  }
 0x479   : > { %8862 = vmatmul.mubr.bf16.gmra.mxu1 %v15696_v9  ;;  %8954 = vmatmul.mubr.bf16.gmra.mxu0 %v15699_v13  ;;  %v15713_v13 = vld [vmem:[#allocation60_spill] sm:$0xff] }
 0x47a   : > { %8865 = vmatprep.mubr.msk.bf16.mxu1 %vm10209_vm0, %v15475_v37  ;;  %8957 = vmatprep.mubr.msk.bf16.mxu0 %vm10209_vm0, %v15475_v37  ;;  %v15714_v4 = vpack.c.bf16 %v13185_v0, %v15713_v13  ;;  %v9740_v0 = vld [vmem:[%s15309_s4 + $0x130] sm:$0xff]  }
 0x47b   : > { %v9744_v13 = vld [vmem:[%s15309_s4 + $0x110] sm:$0xff]  }
 0x481   : > { %8866 = vmatmul.mubr.bf16.gmra.mxu1 %v15700_v27  ;;  %8958 = vmatmul.mubr.bf16.gmra.mxu0 %v15703_v12  ;;  %v9747_v12 = vld [vmem:[%s15309_s4 + $0x170] sm:$0xff]  }
 0x482   : > { %8869 = vmatprep.mubr.msk.bf16.mxu1 %vm10209_vm0, %v15475_v37  ;;  %8961 = vmatprep.mubr.msk.bf16.mxu0 %vm10209_vm0, %v15475_v37 }
 0x489   : > { %8870 = vmatmul.mubr.bf16.gmra.mxu1 %v15704_v2  ;;  %8962 = vmatmul.mubr.bf16.gmra.mxu0 %v15707_v20  ;;  %v9748_v20 = vld [vmem:[%s15309_s4 + $0x168] sm:$0xff]  }
 0x48a   : > { %8873 = vmatprep.mubr.msk.bf16.mxu1 %vm10209_vm0, %v15475_v37  ;;  %8965 = vmatprep.mubr.msk.bf16.mxu0 %vm10209_vm0, %v15475_v37 }
 0x491   : > { %8874 = vmatmul.mubr.bf16.gmra.mxu1 %v15708_v61  ;;  %8966 = vmatmul.mubr.bf16.gmra.mxu0 %v15711_v43  ;;  %v9751_v43 = vld [vmem:[%s15309_s4 + $0x158] sm:$0xff]  }
 0x492   : > { %8877 = vmatprep.mubr.msk.bf16.mxu1 %vm10209_vm0, %v15475_v37  ;;  %8969 = vmatprep.mubr.msk.bf16.mxu0 %vm10209_vm0, %v15475_v37 }
 0x499   : > { %8878 = vmatmul.mubr.bf16.gmra.mxu1 %v13131_v56  ;;  %8970 = vmatmul.mubr.bf16.gmra.mxu0 %v15712_v46  ;;  %v15718_v46 = vld [vmem:[#allocation24_spill] sm:$0xff] }
 0x49a   : > { %8881 = vmatprep.mubr.msk.bf16.mxu1 %vm10209_vm0, %v15475_v37  ;;  %8973 = vmatprep.mubr.msk.bf16.mxu0 %vm10209_vm0, %v15475_v37 }
 0x4a1   : > { %8882 = vmatmul.mubr.bf16.gmra.mxu1 %v13190_v54  ;;  %8974 = vmatmul.mubr.bf16.gmra.mxu0 %v15714_v4  ;;  %v15719_v4 = vld [vmem:[#allocation3_spill] sm:$0xff] }
 0x4a2   : > { %8993 = vmatprep.mubr.msk.bf16.mxu1 %vm10209_vm0, %v15475_v37  ;;  %9085 = vmatprep.mubr.msk.bf16.mxu0 %vm10209_vm0, %v15475_v37 }
 0x4a9   : > { %8994 = vmatmul.mubr.bf16.vlgmr.msra.gmra.mxu1 %v15715_v63  ;;  %9086 = vmatmul.mubr.bf16.vlgmr.msra.gmra.mxu0 %v13269_v25  ;;  %v15716_v25 = vld [vmem:[#allocation4_spill] sm:$0xff] }
 0x4aa   : > { %9162 = vmatpush3.bf16.msra.mxu1 %v9739_v62  ;;  %8997 = vmatprep.mubr.msk.bf16.mxu1 %vm10209_vm0, %v15475_v37  ;;  %v13822_v7 = vpack.c.bf16 %v15716_v25, %v13031_v48  ;;  %v13870_v62 = vpack.c.bf16 %v15661_v1, %v15719_v4 }
 0x4ab   : > { %9089 = vmatprep.mubr.msk.bf16.mxu0 %vm10209_vm0, %v15475_v37  ;;  %9163 = vmatprep.subr.bf16.mxu1 %v15475_v37 }
 0x4ac   : > { %9254 = vmatpush3.bf16.msra.mxu0 %v9746_v14  ;;  %15717 = vst [vmem:[#allocation14_spill] sm:$0xff] %v13822_v7  ;;  %v9745_v14 = vld [vmem:[%s15309_s4 + $0x108] sm:$0xff]  }
 0x4ad   : > { %9255 = vmatprep.subr.bf16.mxu0 %v15475_v37 }
 0x4ae   : > { %9164 = vmatpush3.bf16.msra.mxu1 %v9740_v0  ;;  %v9753_v0 = vld [vmem:[%s15309_s4 + $0x148] sm:$0xff]  }
 0x4af   : > { %9165 = vmatprep.subr.bf16.mxu1 %v15475_v37 }
 0x4b0   : > { %9256 = vmatpush3.bf16.msra.mxu0 %v9747_v12  ;;  %v9750_v12 = vld [vmem:[%s15309_s4 + $0x100] sm:$0xff]  }
 0x4b1   : > { %8998 = vmatmul.mubr.bf16.gmra.mxu1 %v13822_v7  ;;  %9090 = vmatmul.mubr.bf16.gmra.mxu0 %v12676_v60  ;;  %v9749_v60 = vld [vmem:[%s15309_s4 + $0x160] sm:$0xff]  }
 0x4b2   : > { %9001 = vmatprep.mubr.msk.bf16.mxu1 %vm10209_vm0, %v15475_v37  ;;  %9093 = vmatprep.mubr.msk.bf16.mxu0 %vm10209_vm0, %v15475_v37 }
 0x4b3   : > { %9166 = vmatpush3.bf16.msra.mxu1 %v9741_v58  ;;  %9257 = vmatprep.subr.bf16.mxu0 %v15475_v37  ;;  %v13896_v58 = vpack.c.bf16 %v13450_v6, %v13462_v17 }
 0x4b4   : > { %9167 = vmatprep.subr.bf16.mxu1 %v15475_v37  ;;  %9258 = vmatpush3.bf16.msra.mxu0 %v9748_v20  ;;  %v13908_v20 = vpack.c.bf16 %v13496_v21, %v13516_v8 }
 0x4b5   : > { %9259 = vmatprep.subr.bf16.mxu0 %v15475_v37 }
 0x4b7   : > { %9168 = vmatpush3.bf16.msra.mxu1 %v9742_v3 }
 0x4b8   : > { %9169 = vmatprep.subr.bf16.mxu1 %v15475_v37  ;;  %9260 = vmatpush3.bf16.msra.mxu0 %v9749_v60 }
 0x4b9   : > { %9002 = vmatmul.mubr.bf16.gmra.mxu1 %v15718_v46  ;;  %9094 = vmatmul.mubr.bf16.gmra.mxu0 %v15652_v34  ;;  %v9752_v34 = vld [vmem:[%s15309_s4 + $0x150] sm:$0xff]  }
 0x4ba   : > { %9005 = vmatprep.mubr.msk.bf16.mxu1 %vm10209_vm0, %v15475_v37  ;;  %9097 = vmatprep.mubr.msk.bf16.mxu0 %vm10209_vm0, %v15475_v37 }
 0x4bb   : > { %9170 = vmatpush3.bf16.msra.mxu1 %v9743_v35  ;;  %9261 = vmatprep.subr.bf16.mxu0 %v15475_v37 }
 0x4bc   : > { %9171 = vmatprep.subr.bf16.mxu1 %v15475_v37  ;;  %9262 = vmatpush3.bf16.msra.mxu0 %v9751_v43 }
 0x4bd   : > { %9263 = vmatprep.subr.bf16.mxu0 %v15475_v37 }
 0x4bf   : > { %9172 = vmatpush3.bf16.msra.mxu1 %v9744_v13 }
 0x4c0   : > { %9173 = vmatprep.subr.bf16.mxu1 %v15475_v37  ;;  %9264 = vmatpush3.bf16.msra.mxu0 %v9752_v34 }
 0x4c1   : > { %9006 = vmatmul.mubr.bf16.gmra.mxu1 %v13870_v62  ;;  %9098 = vmatmul.mubr.bf16.gmra.mxu0 %v13528_v32  ;;  %v9754_v32 = vld [vmem:[%s15309_s4 + $0x140] sm:$0xff]  }
 0x4c2   : > { %9009 = vmatprep.mubr.msk.bf16.mxu1 %vm10209_vm0, %v15475_v37  ;;  %9101 = vmatprep.mubr.msk.bf16.mxu0 %vm10209_vm0, %v15475_v37 }
 0x4c3   : > { %9174 = vmatpush3.bf16.msra.mxu1 %v9745_v14  ;;  %9265 = vmatprep.subr.bf16.mxu0 %v15475_v37 }
 0x4c4   : > { %9175 = vmatprep.subr.bf16.mxu1 %v15475_v37  ;;  %9266 = vmatpush3.bf16.msra.mxu0 %v9753_v0 }
 0x4c5   : > { %9267 = vmatprep.subr.bf16.mxu0 %v15475_v37 }
 0x4c7   : > { %9176 = vmatpush3.bf16.msra.mxu1 %v9750_v12 }
 0x4c8   : > { %9268 = vmatpush3.bf16.msra.mxu0 %v9754_v32  ;;  %9345 = vmatprep.subr.bf16.mxu1 %v15475_v37  ;;  %v13922_v32 = vpack.c.bf16 %v13550_v10, %v13555_v23 }
 0x4c9   : > { %9010 = vmatmul.mubr.bf16.gmra.mxu1 %v13896_v58  ;;  %9102 = vmatmul.mubr.bf16.gmra.mxu0 %v13566_v15 }
 0x4ca   : > { %9013 = vmatprep.mubr.msk.bf16.mxu1 %vm10209_vm0, %v15475_v37  ;;  %9105 = vmatprep.mubr.msk.bf16.mxu0 %vm10209_vm0, %v15475_v37 }
 0x4cb   : > { %9437 = vmatprep.subr.bf16.mxu0 %v15475_v37 }
 0x4d1   : > { %v4056_v3 = vpop.f32.mrf.mxu1  ;;  %v4289_v60 = vpop.f32.mrf.mxu0  ;;  %9014 = vmatmul.mubr.bf16.gmra.mxu1 %v13908_v20  ;;  %9106 = vmatmul.mubr.bf16.gmra.mxu0 %v13593_v38 }
 0x4d2   : > { %v13912_v35 = vadd.f32 %v4289_v60, %v4056_v3  ;;  %9017 = vmatprep.mubr.msk.bf16.mxu1 %vm10209_vm0, %v15475_v37  ;;  %9109 = vmatprep.mubr.msk.bf16.mxu0 %vm10209_vm0, %v15475_v37 }
 0x4d3   : > { %v8811_v15 = vpop.f32.mrf.mxu1  ;;  %v8903_v43 = vpop.f32.mrf.mxu0 }
 0x4d5   : > { %v4059_v13 = vpop.f32.mrf.mxu1  ;;  %v4292_v34 = vpop.f32.mrf.mxu0 }
 0x4d6   : > { %v13918_v14 = vadd.f32 %v4292_v34, %v4059_v13 }
 0x4d7   : > { %v8812_v0 = vpop.f32.mrf.mxu1  ;;  %v8904_v12 = vpop.f32.mrf.mxu0 }
 0x4d9   : > { %v4064_v38 = vpop.f32.mrf.mxu1  ;;  %v4297_v3 = vpop.f32.mrf.mxu0  ;;  %9018 = vmatmul.mubr.bf16.gmra.mxu1 %v13922_v32  ;;  %9110 = vmatmul.mubr.bf16.gmra.mxu0 %v13620_v51 }
 0x4da   : > { %v13926_v60 = vadd.f32 %v4297_v3, %v4064_v38  ;;  %9021 = vmatprep.mubr.msk.bf16.mxu1 %vm10209_vm0, %v15475_v37  ;;  %9113 = vmatprep.mubr.msk.bf16.mxu0 %vm10209_vm0, %v15475_v37 }
 0x4db   : > { %v8815_v15 = vpop.f32.mrf.mxu1  ;;  %v8907_v43 = vpop.f32.mrf.mxu0 }
 0x4dd   : > { %v4067_v13 = vpop.f32.mrf.mxu1  ;;  %v4300_v34 = vpop.f32.mrf.mxu0 }
 0x4de   : > { %v13932_v0 = vadd.f32 %v4300_v34, %v4067_v13 }
 0x4df   : > { %v8816_v12 = vpop.f32.mrf.mxu1  ;;  %v8908_v29 = vpop.f32.mrf.mxu0 }
 0x4e1   : > { %v4072_v51 = vpop.f32.mrf.mxu1  ;;  %v4305_v38 = vpop.f32.mrf.mxu0  ;;  %9022 = vmatmul.mubr.bf16.gmra.mxu1 %v13936_v19  ;;  %9114 = vmatmul.mubr.bf16.gmra.mxu0 %v13647_v53 }
 0x4e2   : > { %v13940_v3 = vadd.f32 %v4305_v38, %v4072_v51  ;;  %9025 = vmatprep.mubr.msk.bf16.mxu1 %vm10209_vm0, %v15475_v37  ;;  %9117 = vmatprep.mubr.msk.bf16.mxu0 %vm10209_vm0, %v15475_v37 }
 0x4e3   : > { %v8819_v15 = vpop.f32.mrf.mxu1  ;;  %v8911_v29 = vpop.f32.mrf.mxu0 }
 0x4e5   : > { %v4075_v43 = vpop.f32.mrf.mxu1  ;;  %v4308_v13 = vpop.f32.mrf.mxu0 }
 0x4e6   : > { %v13946_v34 = vadd.f32 %v4308_v13, %v4075_v43 }
 0x4e7   : > { %v8820_v12 = vpop.f32.mrf.mxu1  ;;  %v8912_v26 = vpop.f32.mrf.mxu0 }
 0x4e9   : > { %v4080_v53 = vpop.f32.mrf.mxu1  ;;  %v4313_v51 = vpop.f32.mrf.mxu0  ;;  %9026 = vmatmul.mubr.bf16.gmra.mxu1 %v13950_v57  ;;  %9118 = vmatmul.mubr.bf16.gmra.mxu0 %v13674_v5 }
 0x4ea   : > { %v13954_v38 = vadd.f32 %v4313_v51, %v4080_v53  ;;  %9029 = vmatprep.mubr.msk.bf16.mxu1 %vm10209_vm0, %v15475_v37  ;;  %9121 = vmatprep.mubr.msk.bf16.mxu0 %vm10209_vm0, %v15475_v37 }
 0x4eb   : > { %v8823_v15 = vpop.f32.mrf.mxu1  ;;  %v8915_v26 = vpop.f32.mrf.mxu0 }
 0x4ed   : > { %v4083_v29 = vpop.f32.mrf.mxu1  ;;  %v4316_v43 = vpop.f32.mrf.mxu0 }
 0x4ee   : > { %v13960_v13 = vadd.f32 %v4316_v43, %v4083_v29 }
 0x4ef   : > { %v8824_v12 = vpop.f32.mrf.mxu1  ;;  %v8916_v22 = vpop.f32.mrf.mxu0 }
 0x4f1   : > { %v4088_v5 = vpop.f32.mrf.mxu1  ;;  %v4321_v53 = vpop.f32.mrf.mxu0  ;;  %9030 = vmatmul.mubr.bf16.gmra.mxu1 %v13964_v44  ;;  %9122 = vmatmul.mubr.bf16.gmra.mxu0 %v13701_v24 }
 0x4f2   : > { %v13968_v51 = vadd.f32 %v4321_v53, %v4088_v5  ;;  %9033 = vmatprep.mubr.msk.bf16.mxu1 %vm10209_vm0, %v15475_v37  ;;  %9125 = vmatprep.mubr.msk.bf16.mxu0 %vm10209_vm0, %v15475_v37 }
 0x4f3   : > { %v8827_v15 = vpop.f32.mrf.mxu1  ;;  %v8919_v22 = vpop.f32.mrf.mxu0 }
 0x4f5   : > { %v4091_v26 = vpop.f32.mrf.mxu1  ;;  %v4324_v29 = vpop.f32.mrf.mxu0 }
 0x4f6   : > { %v13974_v43 = vadd.f32 %v4324_v29, %v4091_v26 }
 0x4f7   : > { %v8828_v12 = vpop.f32.mrf.mxu1  ;;  %v8920_v40 = vpop.f32.mrf.mxu0 }
 0x4f9   : > { %v4096_v24 = vpop.f32.mrf.mxu1  ;;  %v4329_v5 = vpop.f32.mrf.mxu0  ;;  %9034 = vmatmul.mubr.bf16.gmra.mxu1 %v13978_v36  ;;  %9126 = vmatmul.mubr.bf16.gmra.mxu0 %v13724_v50 }
 0x4fa   : > { %v13982_v53 = vadd.f32 %v4329_v5, %v4096_v24  ;;  %9037 = vmatprep.mubr.msk.bf16.mxu1 %vm10209_vm0, %v15475_v37  ;;  %9129 = vmatprep.mubr.msk.bf16.mxu0 %vm10209_vm0, %v15475_v37 }
 0x4fb   : > { %v8831_v15 = vpop.f32.mrf.mxu1  ;;  %v8923_v40 = vpop.f32.mrf.mxu0 }
 0x4fc   : > { %15720 = vst [vmem:[#allocation18_spill] sm:$0xff] %v13982_v53  ;;  %v14006_v53 = vpack.c.bf16 %v15693_v16, %v13718_v39  ;;  %v15727_v16 = vld [vmem:[#allocation38_spill] sm:$0xff] }
 0x4fd   : > { %v4099_v22 = vpop.f32.mrf.mxu1  ;;  %v4332_v26 = vpop.f32.mrf.mxu0 }
 0x4fe   : > { %v13988_v29 = vadd.f32 %v4332_v26, %v4099_v22  ;;  %15724 = vst [vmem:[#allocation35_spill] sm:$0xff] %v14006_v53 }
 0x4ff   : > { %v8832_v12 = vpop.f32.mrf.mxu1  ;;  %v8924_v63 = vpop.f32.mrf.mxu0 }
 0x500   : > { %15721 = vst [vmem:[#allocation15_spill] sm:$0xff] %v13988_v29 }
 0x501   : > { %v4104_v50 = vpop.f32.mrf.mxu1  ;;  %v4337_v24 = vpop.f32.mrf.mxu0  ;;  %9038 = vmatmul.mubr.bf16.gmra.mxu1 %v13992_v11  ;;  %9130 = vmatmul.mubr.bf16.gmra.mxu0 %v13745_v47 }
 0x502   : > { %v13996_v5 = vadd.f32 %v4337_v24, %v4104_v50  ;;  %9041 = vmatprep.mubr.msk.bf16.mxu1 %vm10209_vm0, %v15475_v37  ;;  %9133 = vmatprep.mubr.msk.bf16.mxu0 %vm10209_vm0, %v15475_v37 }
 0x503   : > { %v8835_v15 = vpop.f32.mrf.mxu1  ;;  %v8927_v63 = vpop.f32.mrf.mxu0 }
 0x504   : > { %15722 = vst [vmem:[#allocation19_spill] sm:$0xff] %v13996_v5 }
 0x505   : > { %v4107_v40 = vpop.f32.mrf.mxu1  ;;  %v4340_v22 = vpop.f32.mrf.mxu0 }
 0x506   : > { %v14002_v26 = vadd.f32 %v4340_v22, %v4107_v40 }
 0x507   : > { %v8836_v12 = vpop.f32.mrf.mxu1  ;;  %v8928_v29 = vpop.f32.mrf.mxu0 }
 0x508   : > { %15723 = vst [vmem:[#allocation21_spill] sm:$0xff] %v14002_v26 }
 0x509   : > { %v4112_v47 = vpop.f32.mrf.mxu1  ;;  %v4345_v50 = vpop.f32.mrf.mxu0  ;;  %9042 = vmatmul.mubr.bf16.gmra.mxu1 %v14006_v53  ;;  %9134 = vmatmul.mubr.bf16.gmra.mxu0 %v15696_v9 }
 0x50a   : > { %v14010_v24 = vadd.f32 %v4345_v50, %v4112_v47  ;;  %9045 = vmatprep.mubr.msk.bf16.mxu1 %vm10209_vm0, %v15475_v37  ;;  %9137 = vmatprep.mubr.msk.bf16.mxu0 %vm10209_vm0, %v15475_v37 }
 0x50b   : > { %v8839_v15 = vpop.f32.mrf.mxu1  ;;  %v8931_v29 = vpop.f32.mrf.mxu0 }
 0x50c   : > { %15725 = vst [vmem:[#allocation22_spill] sm:$0xff] %v14010_v24  ;;  %v15730_v24 = vld [vmem:[#allocation43_spill] sm:$0xff] }
 0x50d   : > { %v4115_v63 = vpop.f32.mrf.mxu1  ;;  %v4348_v40 = vpop.f32.mrf.mxu0 }
 0x50e   : > { %v14016_v22 = vadd.f32 %v4348_v40, %v4115_v63 }
 0x50f   : > { %v8840_v12 = vpop.f32.mrf.mxu1  ;;  %v8932_v26 = vpop.f32.mrf.mxu0 }
 0x510   : > { %15726 = vst [vmem:[#allocation36_spill] sm:$0xff] %v14016_v22 }
 0x511   : > { %v4120_v5 = vpop.f32.mrf.mxu1  ;;  %v4353_v53 = vpop.f32.mrf.mxu0  ;;  %9046 = vmatmul.mubr.bf16.gmra.mxu1 %v15727_v16  ;;  %9138 = vmatmul.mubr.bf16.gmra.mxu0 %v15700_v27 }
 0x512   : > { %v14020_v9 = vadd.f32 %v4353_v53, %v4120_v5  ;;  %9049 = vmatprep.mubr.msk.bf16.mxu1 %vm10209_vm0, %v15475_v37  ;;  %9141 = vmatprep.mubr.msk.bf16.mxu0 %vm10209_vm0, %v15475_v37 }
 0x513   : > { %v8843_v47 = vpop.f32.mrf.mxu1  ;;  %v8935_v50 = vpop.f32.mrf.mxu0 }
 0x514   : > { %15728 = vst [vmem:[#allocation41_spill] sm:$0xff] %v14020_v9  ;;  %v15733_v9 = vld [vmem:[#allocation47_spill] sm:$0xff] }
 0x515   : > { %v4123_v15 = vpop.f32.mrf.mxu1  ;;  %v4356_v29 = vpop.f32.mrf.mxu0 }
 0x516   : > { %v14026_v63 = vadd.f32 %v4356_v29, %v4123_v15 }
 0x517   : > { %v8844_v26 = vpop.f32.mrf.mxu1  ;;  %v8936_v40 = vpop.f32.mrf.mxu0 }
 0x518   : > { %15729 = vst [vmem:[#allocation39_spill] sm:$0xff] %v14026_v63 }
 0x519   : > { %v4128_v12 = vpop.f32.mrf.mxu1  ;;  %v4361_v22 = vpop.f32.mrf.mxu0  ;;  %9050 = vmatmul.mubr.bf16.gmra.mxu1 %v15730_v24  ;;  %9142 = vmatmul.mubr.bf16.gmra.mxu0 %v15704_v2 }
 0x51a   : > { %v14030_v27 = vadd.f32 %v4361_v22, %v4128_v12  ;;  %9053 = vmatprep.mubr.msk.bf16.mxu1 %vm10209_vm0, %v15475_v37  ;;  %9145 = vmatprep.mubr.msk.bf16.mxu0 %vm10209_vm0, %v15475_v37 }
 0x51b   : > { %v8847_v53 = vpop.f32.mrf.mxu1  ;;  %v8939_v5 = vpop.f32.mrf.mxu0 }
 0x51c   : > { %15731 = vst [vmem:[#allocation40_spill] sm:$0xff] %v14030_v27  ;;  %v15736_v27 = vld [vmem:[#allocation53_spill] sm:$0xff] }
 0x51d   : > { %v4131_v47 = vpop.f32.mrf.mxu1  ;;  %v4364_v50 = vpop.f32.mrf.mxu0 }
 0x51e   : > { %v14036_v15 = vadd.f32 %v4364_v50, %v4131_v47 }
 0x51f   : > { %v8848_v29 = vpop.f32.mrf.mxu1  ;;  %v8940_v26 = vpop.f32.mrf.mxu0 }
 0x520   : > { %15732 = vst [vmem:[#allocation44_spill] sm:$0xff] %v14036_v15 }
 0x521   : > { %v4136_v40 = vpop.f32.mrf.mxu1  ;;  %v4369_v63 = vpop.f32.mrf.mxu0  ;;  %9054 = vmatmul.mubr.bf16.gmra.mxu1 %v15733_v9  ;;  %9146 = vmatmul.mubr.bf16.gmra.mxu0 %v15708_v61 }
 0x522   : > { %v14040_v2 = vadd.f32 %v4369_v63, %v4136_v40  ;;  %9057 = vmatprep.mubr.msk.bf16.mxu1 %vm10209_vm0, %v15475_v37  ;;  %9149 = vmatprep.mubr.msk.bf16.mxu0 %vm10209_vm0, %v15475_v37 }
 0x523   : > { %v8851_v22 = vpop.f32.mrf.mxu1  ;;  %v8943_v12 = vpop.f32.mrf.mxu0 }
 0x524   : > { %15734 = vst [vmem:[#allocation45_spill] sm:$0xff] %v14040_v2  ;;  %v15739_v2 = vld [vmem:[#allocation57_spill] sm:$0xff] }
 0x525   : > { %v4139_v53 = vpop.f32.mrf.mxu1  ;;  %v4372_v5 = vpop.f32.mrf.mxu0 }
 0x526   : > { %v14046_v47 = vadd.f32 %v4372_v5, %v4139_v53 }
 0x527   : > { %v8852_v50 = vpop.f32.mrf.mxu1  ;;  %v8944_v29 = vpop.f32.mrf.mxu0 }
 0x528   : > { %15735 = vst [vmem:[#allocation42_spill] sm:$0xff] %v14046_v47 }
 0x529   : > { %v4144_v26 = vpop.f32.mrf.mxu1  ;;  %v4377_v15 = vpop.f32.mrf.mxu0  ;;  %9058 = vmatmul.mubr.bf16.gmra.mxu1 %v15736_v27  ;;  %9150 = vmatmul.mubr.bf16.gmra.mxu0 %v13131_v56 }
 0x52a   : > { %v14050_v61 = vadd.f32 %v4377_v15, %v4144_v26  ;;  %9061 = vmatprep.mubr.msk.bf16.mxu1 %vm10209_vm0, %v15475_v37  ;;  %9153 = vmatprep.mubr.msk.bf16.mxu0 %vm10209_vm0, %v15475_v37 }
 0x52b   : > { %v8855_v63 = vpop.f32.mrf.mxu1  ;;  %v8947_v40 = vpop.f32.mrf.mxu0 }
 0x52c   : > { %15737 = vst [vmem:[#allocation49_spill] sm:$0xff] %v14050_v61  ;;  %v15741_v61 = vld [vmem:[#allocation62_spill] sm:$0xff] }
 0x52d   : > { %v4147_v22 = vpop.f32.mrf.mxu1  ;;  %v4380_v12 = vpop.f32.mrf.mxu0 }
 0x52e   : > { %v14056_v53 = vadd.f32 %v4380_v12, %v4147_v22 }
 0x52f   : > { %v8856_v5 = vpop.f32.mrf.mxu1  ;;  %v8948_v50 = vpop.f32.mrf.mxu0 }
 0x530   : > { %15738 = vst [vmem:[#allocation48_spill] sm:$0xff] %v14056_v53 }
 0x531   : > { %v4152_v29 = vpop.f32.mrf.mxu1  ;;  %v4385_v47 = vpop.f32.mrf.mxu0  ;;  %9062 = vmatmul.mubr.bf16.gmra.mxu1 %v15739_v2  ;;  %9154 = vmatmul.mubr.bf16.gmra.mxu0 %v13190_v54  ;;  %v5324_v54 = vrot.slane %v15716_v25, 1  ;;  %v9755_v25 = vld [vmem:[%s15309_s4 + $0x1b8] sm:$0xff]  }
 0x532   : > { %v14060_v56 = vadd.f32 %v4385_v47, %v4152_v29  ;;  %9065 = vmatprep.mubr.msk.bf16.mxu1 %vm10209_vm0, %v15475_v37  ;;  %9157 = vmatprep.mubr.msk.bf16.mxu0 %vm10209_vm0, %v15475_v37 }
 0x533   : > { %v8859_v15 = vpop.f32.mrf.mxu1  ;;  %v8951_v26 = vpop.f32.mrf.mxu0 }
 0x534   : > { %v15743_v26 = vld [vmem:[#allocation23_spill] sm:$0xff] }
 0x535   : > { %v4155_v63 = vpop.f32.mrf.mxu1  ;;  %v4388_v40 = vpop.f32.mrf.mxu0 }
 0x536   : > { %v14066_v22 = vadd.f32 %v4388_v40, %v4155_v63  ;;  %v15744_v63 = vrot.slane %v15743_v26, 1 }
 0x537   : > { %v8860_v12 = vpop.f32.mrf.mxu1  ;;  %v8952_v5 = vpop.f32.mrf.mxu0 }
 0x538   : > { %15740 = vst [vmem:[#allocation46_spill] sm:$0xff] %v14066_v22  ;;  %v5396_v40 = vsel %vm1944_vm3, %v5324_v54, %v15744_v63  ;;  %v9762_v63 = vld [vmem:[%s15309_s4 + $0x1f8] sm:$0xff]  }
 0x539   : > { %v4160_v50 = vpop.f32.mrf.mxu1  ;;  %v4393_v53 = vpop.f32.mrf.mxu0  ;;  %9066 = vmatmul.mubr.bf16.gmra.mxu1 %v15741_v61  ;;  %9158 = vmatmul.mubr.bf16.gmra.mxu0 %v13267_v41  ;;  %v15745_v41 = vrot.slane %v13031_v48, 1 }
 0x53a   : > { %v14071_v47 = vadd.f32 %v4393_v53, %v4160_v50  ;;  %9177 = vmatprep.mubr.msk.bf16.mxu1 %vm10209_vm0, %v15475_v37  ;;  %9269 = vmatprep.mubr.msk.bf16.mxu0 %vm10209_vm0, %v15475_v37 }
 0x53b   : > { %v8863_v29 = vpop.f32.mrf.mxu1  ;;  %v8955_v15 = vpop.f32.mrf.mxu0  ;;  %v5397_v53 = vsel %vm1944_vm3, %v15745_v41, %v5324_v54 }
 0x53c   : > { %15742 = vst [vmem:[#allocation55_spill] sm:$0xff] %v14071_v47  ;;  %v14090_v47 = vpack.c.bf16 %v5396_v40, %v5397_v53  ;;  %v9756_v40 = vld [vmem:[%s15309_s4 + $0x1b0] sm:$0xff]  }
 0x53d   : > { %v4163_v12 = vpop.f32.mrf.mxu1  ;;  %v4396_v5 = vpop.f32.mrf.mxu0 }
 0x53e   : > { %v14085_v50 = vadd.f32 %v4396_v5, %v4163_v12  ;;  %15746 = vst [vmem:[#allocation54_spill] sm:$0xff] %v14090_v47 }
 0x53f   : > { %v8864_v29 = vpop.f32.mrf.mxu1  ;;  %v8956_v15 = vpop.f32.mrf.mxu0 }
 0x540   : > { %v9757_v15 = vld [vmem:[%s15309_s4 + $0x1a8] sm:$0xff]  }
 0x541   : > { %v4168_v26 = vpop.f32.mrf.mxu1  ;;  %v4401_v22 = vpop.f32.mrf.mxu0  ;;  %9178 = vmatmul.mubr.bf16.vlgmr.msra.gmra.mxu1 %v13822_v7  ;;  %9270 = vmatmul.mubr.bf16.vlgmr.msra.gmra.mxu0 %v14090_v47 }
 0x542   : > { %v14097_v54 = vadd.f32 %v4401_v22, %v4168_v26  ;;  %9346 = vmatpush3.bf16.msra.mxu1 %v9755_v25  ;;  %9181 = vmatprep.mubr.msk.bf16.mxu1 %vm10209_vm0, %v15475_v37  ;;  %v9763_v22 = vld [vmem:[%s15309_s4 + $0x1f0] sm:$0xff]  }
 0x543   : > { %v8867_v12 = vpop.f32.mrf.mxu1  ;;  %v8959_v5 = vpop.f32.mrf.mxu0  ;;  %9273 = vmatprep.mubr.msk.bf16.mxu0 %vm10209_vm0, %v15475_v37  ;;  %9347 = vmatprep.subr.bf16.mxu1 %v15475_v37 }
 0x544   : > { %9438 = vmatpush3.bf16.msra.mxu0 %v9762_v63  ;;  %v5329_v63 = vrot.slane %v13462_v17, 1  ;;  %v9764_v12 = vld [vmem:[%s15309_s4 + $0x1e8] sm:$0xff]  }
 0x545   : > { %v4171_v25 = vpop.f32.mrf.mxu1  ;;  %v4404_v26 = vpop.f32.mrf.mxu0  ;;  %9439 = vmatprep.subr.bf16.mxu0 %v15475_v37 }
 0x546   : > { %v14111_v41 = vadd.f32 %v4404_v26, %v4171_v25  ;;  %9348 = vmatpush3.bf16.msra.mxu1 %v9756_v40  ;;  %v15748_v40 = vld [vmem:[#allocation33_spill] sm:$0xff] }
 0x547   : > { %v8868_v53 = vpop.f32.mrf.mxu1  ;;  %v8960_v29 = vpop.f32.mrf.mxu0  ;;  %9349 = vmatprep.subr.bf16.mxu1 %v15475_v37 }
 0x548   : > { %15747 = vst [vmem:[#allocation51_spill] sm:$0xff] %v14111_v41  ;;  %9440 = vmatpush3.bf16.msra.mxu0 %v9763_v22  ;;  %v5328_v22 = vrot.slane %v15661_v1, 1  ;;  %v9758_v29 = vld [vmem:[%s15309_s4 + $0x1a0] sm:$0xff]   ;;  %v5331_v41 = vrot.slane %v13516_v8, 1 }
 0x549   : > { %v4176_v5 = vpop.f32.mrf.mxu1  ;;  %v4409_v48 = vpop.f32.mrf.mxu0  ;;  %9182 = vmatmul.mubr.bf16.gmra.mxu1 %v15718_v46  ;;  %9274 = vmatmul.mubr.bf16.gmra.mxu0 %v15748_v40 }
 0x54a   : > { %v14123_v25 = vadd.f32 %v4409_v48, %v4176_v5  ;;  %9185 = vmatprep.mubr.msk.bf16.mxu1 %vm10209_vm0, %v15475_v37  ;;  %9277 = vmatprep.mubr.msk.bf16.mxu0 %vm10209_vm0, %v15475_v37  ;;  %v5392_v48 = vsel %vm1944_vm3, %v5328_v22, %v5329_v63  ;;  %v9765_v5 = vld [vmem:[%s15309_s4 + $0x1e0] sm:$0xff]  }
 0x54b   : > { %v8871_v26 = vpop.f32.mrf.mxu1  ;;  %v8963_v53 = vpop.f32.mrf.mxu0  ;;  %9350 = vmatpush3.bf16.msra.mxu1 %v9757_v15  ;;  %9441 = vmatprep.subr.bf16.mxu0 %v15475_v37 }
 0x54c   : > { %15749 = vst [vmem:[#allocation60_spill] sm:$0xff] %v14123_v25  ;;  %9351 = vmatprep.subr.bf16.mxu1 %v15475_v37  ;;  %9442 = vmatpush3.bf16.msra.mxu0 %v9764_v12  ;;  %v15750_v53 = vrot.slane %v15719_v4, 1  ;;  %v9759_v12 = vld [vmem:[%s15309_s4 + $0x198] sm:$0xff]   ;;  %v5333_v4 = vrot.slane %v13555_v23, 1 }
 0x54d   : > { %v4179_v1 = vpop.f32.mrf.mxu1  ;;  %v4412_v26 = vpop.f32.mrf.mxu0  ;;  %9443 = vmatprep.subr.bf16.mxu0 %v15475_v37 }
 0x54e   : > { %v14141_v15 = vadd.f32 %v4412_v26, %v4179_v1  ;;  %v5393_v17 = vsel %vm1944_vm3, %v15750_v53, %v5328_v22  ;;  %v9767_v1 = vld [vmem:[%s15309_s4 + $0x1d8] sm:$0xff]   ;;  %v9768_v53 = vld [vmem:[%s15309_s4 + $0x1d0] sm:$0xff]  }
 0x54f   : > { %v8872_v47 = vpop.f32.mrf.mxu1  ;;  %v8964_v7 = vpop.f32.mrf.mxu0  ;;  %v14147_v25 = vpack.c.bf16 %v5392_v48, %v5393_v17  ;;  %9352 = vmatpush3.bf16.msra.mxu1 %v9758_v29  ;;  %v9760_v48 = vld [vmem:[%s15309_s4 + $0x190] sm:$0xff]  }
 0x550   : > { %9353 = vmatprep.subr.bf16.mxu1 %v15475_v37  ;;  %9444 = vmatpush3.bf16.msra.mxu0 %v9765_v5  ;;  %v5330_v7 = vrot.slane %v13450_v6, 1 }
 0x551   : > { %v4184_v26 = vpop.f32.mrf.mxu1  ;;  %v4417_v22 = vpop.f32.mrf.mxu0  ;;  %9186 = vmatmul.mubr.bf16.gmra.mxu1 %v13870_v62  ;;  %9278 = vmatmul.mubr.bf16.gmra.mxu0 %v14147_v25 }
 0x552   : > { %v14159_v17 = vadd.f32 %v4417_v22, %v4184_v26  ;;  %9189 = vmatprep.mubr.msk.bf16.mxu1 %vm10209_vm0, %v15475_v37  ;;  %9281 = vmatprep.mubr.msk.bf16.mxu0 %vm10209_vm0, %v15475_v37  ;;  %v5390_v5 = vsel %vm1944_vm3, %v5330_v7, %v5331_v41 }
 0x553   : > { %v8875_v47 = vpop.f32.mrf.mxu1  ;;  %v8967_v29 = vpop.f32.mrf.mxu0  ;;  %9354 = vmatpush3.bf16.msra.mxu1 %v9759_v12  ;;  %9445 = vmatprep.subr.bf16.mxu0 %v15475_v37 }
 0x554   : > { %9355 = vmatprep.subr.bf16.mxu1 %v15475_v37  ;;  %9446 = vmatpush3.bf16.msra.mxu0 %v9767_v1  ;;  %v5391_v47 = vsel %vm1944_vm3, %v5329_v63, %v5330_v7  ;;  %v9761_v1 = vld [vmem:[%s15309_s4 + $0x188] sm:$0xff]   ;;  %v5332_v7 = vrot.slane %v13496_v21, 1 }
 0x555   : > { %v4187_v26 = vpop.f32.mrf.mxu1  ;;  %v4420_v22 = vpop.f32.mrf.mxu0  ;;  %9447 = vmatprep.subr.bf16.mxu0 %v15475_v37  ;;  %v14181_v8 = vpack.c.bf16 %v5390_v5, %v5391_v47 }
 0x556   : > { %v14177_v12 = vadd.f32 %v4420_v22, %v4187_v26  ;;  %v9769_v26 = vld [vmem:[%s15309_s4 + $0x1c8] sm:$0xff]   ;;  %v5388_v47 = vsel %vm1944_vm3, %v5332_v7, %v5333_v4 }
 0x557   : > { %v8876_v29 = vpop.f32.mrf.mxu1  ;;  %v8968_v6 = vpop.f32.mrf.mxu0  ;;  %9356 = vmatpush3.bf16.msra.mxu1 %v9760_v48 }
 0x558   : > { %15751 = vst [vmem:[#allocation24_spill] sm:$0xff] %v14177_v12  ;;  %9357 = vmatprep.subr.bf16.mxu1 %v15475_v37  ;;  %9448 = vmatpush3.bf16.msra.mxu0 %v9768_v53  ;;  %v9766_v53 = vld [vmem:[%s15309_s4 + $0x180] sm:$0xff]  }
 0x559   : > { %v4192_v22 = vpop.f32.mrf.mxu1  ;;  %v4425_v63 = vpop.f32.mrf.mxu0  ;;  %9190 = vmatmul.mubr.bf16.gmra.mxu1 %v13896_v58  ;;  %9282 = vmatmul.mubr.bf16.gmra.mxu0 %v14181_v8  ;;  %v9770_v29 = vld [vmem:[%s15309_s4 + $0x1c0] sm:$0xff]  }
 0x55a   : > { %v14193_v6 = vadd.f32 %v4425_v63, %v4192_v22  ;;  %9193 = vmatprep.mubr.msk.bf16.mxu1 %vm10209_vm0, %v15475_v37  ;;  %9285 = vmatprep.mubr.msk.bf16.mxu0 %vm10209_vm0, %v15475_v37 }
 0x55b   : > { %v8879_v48 = vpop.f32.mrf.mxu1  ;;  %v8971_v5 = vpop.f32.mrf.mxu0  ;;  %9358 = vmatpush3.bf16.msra.mxu1 %v9761_v1  ;;  %9449 = vmatprep.subr.bf16.mxu0 %v15475_v37 }
 0x55c   : > { %15752 = vst [vmem:[#allocation38_spill] sm:$0xff] %v14193_v6  ;;  %9359 = vmatprep.subr.bf16.mxu1 %v15475_v37  ;;  %9450 = vmatpush3.bf16.msra.mxu0 %v9769_v26  ;;  %v5389_v48 = vsel %vm1944_vm3, %v5331_v41, %v5332_v7  ;;  %v5335_v26 = vrot.slane %v13589_v52, 1  ;;  %v5337_v52 = vrot.slane %v13614_v31, 1 }
 0x55d   : > { %v4195_v22 = vpop.f32.mrf.mxu1  ;;  %v4428_v63 = vpop.f32.mrf.mxu0  ;;  %9451 = vmatprep.subr.bf16.mxu0 %v15475_v37  ;;  %v14215_v23 = vpack.c.bf16 %v5388_v47, %v5389_v48 }
 0x55e   : > { %v14211_v1 = vadd.f32 %v4428_v63, %v4195_v22 }
 0x55f   : > { %v8880_v5 = vpop.f32.mrf.mxu1  ;;  %v8972_v21 = vpop.f32.mrf.mxu0  ;;  %9360 = vmatpush3.bf16.msra.mxu1 %v9766_v53 }
 0x560   : > { %9452 = vmatpush3.bf16.msra.mxu0 %v9770_v29  ;;  %9529 = vmatprep.subr.bf16.mxu1 %v15475_v37  ;;  %v5334_v21 = vrot.slane %v13550_v10, 1 }
 0x561   : > { %v4200_v6 = vpop.f32.mrf.mxu1  ;;  %v4433_v12 = vpop.f32.mrf.mxu0  ;;  %9194 = vmatmul.mubr.bf16.gmra.mxu1 %v13908_v20  ;;  %9286 = vmatmul.mubr.bf16.gmra.mxu0 %v14215_v23 }
 0x562   : > { %v14221_v22 = vadd.f32 %v4433_v12, %v4200_v6  ;;  %9197 = vmatprep.mubr.msk.bf16.mxu1 %vm10209_vm0, %v15475_v37  ;;  %9289 = vmatprep.mubr.msk.bf16.mxu0 %vm10209_vm0, %v15475_v37  ;;  %v5386_v53 = vsel %vm1944_vm3, %v5334_v21, %v5335_v26  ;;  %v5387_v12 = vsel %vm1944_vm3, %v5333_v4, %v5334_v21  ;;  %v5336_v4 = vrot.slane %v13580_v55, 1  ;;  %v15766_v55 = vld [vmem:[#allocation22_spill] sm:$0xff] }
 0x563   : > { %v8883_v41 = vpop.f32.mrf.mxu1  ;;  %v8975_v7 = vpop.f32.mrf.mxu0  ;;  %v14234_v5 = vpack.c.bf16 %v5386_v53, %v5387_v12 }
 0x564   : > { %15753 = vst [vmem:[#allocation43_spill] sm:$0xff] %v14221_v22 }
 0x565   : > { %v4203_v47 = vpop.f32.mrf.mxu1  ;;  %v4436_v29 = vpop.f32.mrf.mxu0 }
 0x566   : > { %v14230_v63 = vadd.f32 %v4436_v29, %v4203_v47  ;;  %v5384_v47 = vsel %vm1944_vm3, %v5336_v4, %v5337_v52 }
 0x567   : > { %v8884_v6 = vpop.f32.mrf.mxu1  ;;  %v8976_v48 = vpop.f32.mrf.mxu0 }
 0x568   : > { %15754 = vst [vmem:[#allocation47_spill] sm:$0xff] %v14230_v63 }
 0x569   : > { %v4558_v22 = vpop.f32.mrf.mxu1  ;;  %v4846_v10 = vpop.f32.mrf.mxu0  ;;  %9198 = vmatmul.mubr.bf16.gmra.mxu1 %v13922_v32  ;;  %9290 = vmatmul.mubr.bf16.gmra.mxu0 %v14234_v5 }
 0x56a   : > { %v4709_v41 = vadd.f32 %v4558_v22, %v13912_v35  ;;  %9201 = vmatprep.mubr.msk.bf16.mxu1 %vm10209_vm0, %v15475_v37  ;;  %9293 = vmatprep.mubr.msk.bf16.mxu0 %vm10209_vm0, %v15475_v37  ;;  %v5385_v35 = vsel %vm1944_vm3, %v5335_v26, %v5336_v4 }
 0x56b   : > { %v8995_v21 = vpop.f32.mrf.mxu1  ;;  %v9087_v7 = vpop.f32.mrf.mxu0  ;;  %v14252_v31 = vpack.c.bf16 %v5384_v47, %v5385_v35 }
 0x56c   : > { %v14245_v53 = vadd.f32 %v4846_v10, %v4709_v41  ;;  %v5339_v21 = vrot.slane %v13641_v49, 1 }
 0x56d   : > { %v4561_v29 = vpop.f32.mrf.mxu1  ;;  %v4849_v12 = vpop.f32.mrf.mxu0 }
 0x56e   : > { %v4710_v6 = vadd.f32 %v4561_v29, %v13918_v14  ;;  %v5338_v14 = vrot.slane %v13607_v18, 1 }
 0x56f   : > { %v8996_v22 = vpop.f32.mrf.mxu1  ;;  %v9088_v48 = vpop.f32.mrf.mxu0 }
 0x570   : > { %v14254_v63 = vadd.f32 %v4849_v12, %v4710_v6  ;;  %v5382_v29 = vsel %vm1944_vm3, %v5338_v14, %v5339_v21 }
 0x571   : > { %v4566_v10 = vpop.f32.mrf.mxu1  ;;  %v4854_v41 = vpop.f32.mrf.mxu0  ;;  %9202 = vmatmul.mubr.bf16.gmra.mxu1 %v13936_v19  ;;  %9294 = vmatmul.mubr.bf16.gmra.mxu0 %v14252_v31 }
 0x572   : > { %v4711_v7 = vadd.f32 %v4566_v10, %v13926_v60  ;;  %9205 = vmatprep.mubr.msk.bf16.mxu1 %vm10209_vm0, %v15475_v37  ;;  %9297 = vmatprep.mubr.msk.bf16.mxu0 %vm10209_vm0, %v15475_v37  ;;  %v5383_v60 = vsel %vm1944_vm3, %v5337_v52, %v5338_v14  ;;  %v5340_v52 = vrot.slane %v13634_v45, 1 }
 0x573   : > { %v8999_v26 = vpop.f32.mrf.mxu1  ;;  %v9091_v4 = vpop.f32.mrf.mxu0  ;;  %v14272_v10 = vpack.c.bf16 %v5382_v29, %v5383_v60 }
 0x574   : > { %v14265_v47 = vadd.f32 %v4854_v41, %v4711_v7  ;;  %v5341_v26 = vrot.slane %v13668_v33, 1 }
 0x575   : > { %v4569_v12 = vpop.f32.mrf.mxu1  ;;  %v4857_v6 = vpop.f32.mrf.mxu0 }
 0x576   : > { %v4712_v35 = vadd.f32 %v4569_v12, %v13932_v0  ;;  %v5380_v12 = vsel %vm1944_vm3, %v5340_v52, %v5341_v26 }
 0x577   : > { %v9000_v22 = vpop.f32.mrf.mxu1  ;;  %v9092_v48 = vpop.f32.mrf.mxu0 }
 0x578   : > { %v14274_v49 = vadd.f32 %v4857_v6, %v4712_v35 }
 0x579   : > { %v4574_v41 = vpop.f32.mrf.mxu1  ;;  %v4862_v7 = vpop.f32.mrf.mxu0  ;;  %9206 = vmatmul.mubr.bf16.gmra.mxu1 %v13950_v57  ;;  %9298 = vmatmul.mubr.bf16.gmra.mxu0 %v14272_v10 }
 0x57a   : > { %v4713_v4 = vadd.f32 %v4574_v41, %v13940_v3  ;;  %9209 = vmatprep.mubr.msk.bf16.mxu1 %vm10209_vm0, %v15475_v37  ;;  %9301 = vmatprep.mubr.msk.bf16.mxu0 %vm10209_vm0, %v15475_v37  ;;  %v5381_v3 = vsel %vm1944_vm3, %v5339_v21, %v5340_v52 }
 0x57b   : > { %v9003_v0 = vpop.f32.mrf.mxu1  ;;  %v9095_v14 = vpop.f32.mrf.mxu0  ;;  %v14292_v41 = vpack.c.bf16 %v5380_v12, %v5381_v3 }
 0x57c   : > { %v14285_v29 = vadd.f32 %v4862_v7, %v4713_v4  ;;  %v5343_v0 = vrot.slane %v13695_v59, 1 }
 0x57d   : > { %v4577_v6 = vpop.f32.mrf.mxu1  ;;  %v4865_v35 = vpop.f32.mrf.mxu0 }
 0x57e   : > { %v4714_v60 = vadd.f32 %v4577_v6, %v13946_v34  ;;  %v5342_v34 = vrot.slane %v13661_v28, 1 }
 0x57f   : > { %v9004_v22 = vpop.f32.mrf.mxu1  ;;  %v9096_v48 = vpop.f32.mrf.mxu0 }
 0x580   : > { %v14294_v33 = vadd.f32 %v4865_v35, %v4714_v60  ;;  %v5378_v6 = vsel %vm1944_vm3, %v5342_v34, %v5343_v0 }
 0x581   : > { %v4582_v7 = vpop.f32.mrf.mxu1  ;;  %v4870_v4 = vpop.f32.mrf.mxu0  ;;  %9210 = vmatmul.mubr.bf16.gmra.mxu1 %v13964_v44  ;;  %9302 = vmatmul.mubr.bf16.gmra.mxu0 %v14292_v41 }
 0x582   : > { %v4715_v14 = vadd.f32 %v4582_v7, %v13954_v38  ;;  %9213 = vmatprep.mubr.msk.bf16.mxu1 %vm10209_vm0, %v15475_v37  ;;  %9305 = vmatprep.mubr.msk.bf16.mxu0 %vm10209_vm0, %v15475_v37  ;;  %v5379_v38 = vsel %vm1944_vm3, %v5341_v26, %v5342_v34 }
 0x583   : > { %v9007_v21 = vpop.f32.mrf.mxu1  ;;  %v9099_v52 = vpop.f32.mrf.mxu0  ;;  %v14312_v7 = vpack.c.bf16 %v5378_v6, %v5379_v38 }
 0x584   : > { %v14305_v12 = vadd.f32 %v4870_v4, %v4715_v14  ;;  %v5345_v21 = vrot.slane %v13718_v39, 1 }
 0x585   : > { %v4585_v35 = vpop.f32.mrf.mxu1  ;;  %v4873_v60 = vpop.f32.mrf.mxu0 }
 0x586   : > { %v4716_v3 = vadd.f32 %v4585_v35, %v13960_v13  ;;  %v5344_v13 = vrot.slane %v13688_v42, 1 }
 0x587   : > { %v9008_v22 = vpop.f32.mrf.mxu1  ;;  %v9100_v48 = vpop.f32.mrf.mxu0 }
 0x588   : > { %v14314_v59 = vadd.f32 %v4873_v60, %v4716_v3  ;;  %v5376_v35 = vsel %vm1944_vm3, %v5344_v13, %v5345_v21 }
 0x589   : > { %v4590_v4 = vpop.f32.mrf.mxu1  ;;  %v4878_v14 = vpop.f32.mrf.mxu0  ;;  %9214 = vmatmul.mubr.bf16.gmra.mxu1 %v13978_v36  ;;  %9306 = vmatmul.mubr.bf16.gmra.mxu0 %v14312_v7 }
 0x58a   : > { %v4717_v52 = vadd.f32 %v4590_v4, %v13968_v51  ;;  %9217 = vmatprep.mubr.msk.bf16.mxu1 %vm10209_vm0, %v15475_v37  ;;  %9309 = vmatprep.mubr.msk.bf16.mxu0 %vm10209_vm0, %v15475_v37  ;;  %v5377_v51 = vsel %vm1944_vm3, %v5343_v0, %v5344_v13 }
 0x58b   : > { %v9011_v26 = vpop.f32.mrf.mxu1  ;;  %v9103_v34 = vpop.f32.mrf.mxu0  ;;  %v14332_v4 = vpack.c.bf16 %v5376_v35, %v5377_v51 }
 0x58c   : > { %v14325_v6 = vadd.f32 %v4878_v14, %v4717_v52  ;;  %v15755_v14 = vld [vmem:[#allocation18_spill] sm:$0xff] }
 0x58d   : > { %v4593_v60 = vpop.f32.mrf.mxu1  ;;  %v4881_v3 = vpop.f32.mrf.mxu0 }
 0x58e   : > { %v4718_v38 = vadd.f32 %v4593_v60, %v13974_v43  ;;  %v15756_v43 = vld [vmem:[#allocation37_spill] sm:$0xff] }
 0x58f   : > { %v9012_v22 = vpop.f32.mrf.mxu1  ;;  %v9104_v48 = vpop.f32.mrf.mxu0  ;;  %v5346_v0 = vrot.slane %v15756_v43, 1 }
 0x590   : > { %v14334_v39 = vadd.f32 %v4881_v3, %v4718_v38  ;;  %v15757_v3 = vld [vmem:[#allocation26_spill] sm:$0xff] }
 0x591   : > { %v4598_v26 = vpop.f32.mrf.mxu1  ;;  %v4886_v34 = vpop.f32.mrf.mxu0  ;;  %9218 = vmatmul.mubr.bf16.gmra.mxu1 %v13992_v11  ;;  %9310 = vmatmul.mubr.bf16.gmra.mxu0 %v14332_v4  ;;  %v15758_v38 = vrot.slane %v15757_v3, 1  ;;  %v5375_v42 = vsel %vm1944_vm3, %v5345_v21, %v5346_v0 }
 0x592   : > { %v4719_v52 = vadd.f32 %v4598_v26, %v15755_v14  ;;  %9221 = vmatprep.mubr.msk.bf16.mxu1 %vm10209_vm0, %v15475_v37  ;;  %9313 = vmatprep.mubr.msk.bf16.mxu0 %vm10209_vm0, %v15475_v37  ;;  %v15759_v26 = vld [vmem:[#allocation15_spill] sm:$0xff] }
 0x593   : > { %v9015_v13 = vpop.f32.mrf.mxu1  ;;  %v9107_v35 = vpop.f32.mrf.mxu0  ;;  %v5374_v51 = vsel %vm1944_vm3, %v5346_v0, %v15758_v38  ;;  %v15761_v38 = vld [vmem:[#allocation19_spill] sm:$0xff] }
 0x594   : > { %v14344_v60 = vadd.f32 %v4886_v34, %v4719_v52  ;;  %v14353_v18 = vpack.c.bf16 %v5374_v51, %v5375_v42  ;;  %v15760_v35 = vld [vmem:[#allocation35_spill] sm:$0xff]  ;;  %v15763_v51 = vld [vmem:[#allocation21_spill] sm:$0xff] }
 0x595   : > { %v4601_v22 = vpop.f32.mrf.mxu1  ;;  %v4889_v48 = vpop.f32.mrf.mxu0 }
 0x596   : > { %v4720_v14 = vadd.f32 %v4601_v22, %v15759_v26 }
 0x597   : > { %v9016_v28 = vpop.f32.mrf.mxu1  ;;  %v9108_v45 = vpop.f32.mrf.mxu0 }
 0x598   : > { %v14355_v13 = vadd.f32 %v4889_v48, %v4720_v14 }
 0x599   : > { %v4606_v34 = vpop.f32.mrf.mxu1  ;;  %v4894_v52 = vpop.f32.mrf.mxu0  ;;  %9222 = vmatmul.mubr.bf16.gmra.mxu1 %v15760_v35  ;;  %9314 = vmatmul.mubr.bf16.gmra.mxu0 %v14353_v18 }
 0x59a   : > { %v4721_v3 = vadd.f32 %v4606_v34, %v15761_v38  ;;  %9225 = vmatprep.mubr.msk.bf16.mxu1 %vm10209_vm0, %v15475_v37  ;;  %9317 = vmatprep.mubr.msk.bf16.mxu0 %vm10209_vm0, %v15475_v37  ;;  %v15765_v38 = vld [vmem:[#allocation56_spill] sm:$0xff] }
 0x59b   : > { %v9019_v28 = vpop.f32.mrf.mxu1  ;;  %v9111_v45 = vpop.f32.mrf.mxu0 }
 0x59c   : > { %v14364_v42 = vadd.f32 %v4894_v52, %v4721_v3 }
 0x59d   : > { %v4609_v21 = vpop.f32.mrf.mxu1  ;;  %v4897_v0 = vpop.f32.mrf.mxu0 }
 0x59e   : > { %15762 = vst [vmem:[#allocation53_spill] sm:$0xff] %v14364_v42  ;;  %v4722_v22 = vadd.f32 %v4609_v21, %v15763_v51  ;;  %v15771_v42 = vld [vmem:[#allocation41_spill] sm:$0xff] }
 0x59f   : > { %v9020_v48 = vpop.f32.mrf.mxu1  ;;  %v9112_v26 = vpop.f32.mrf.mxu0 }
 0x5a0   : > { %v14367_v14 = vadd.f32 %v4897_v0, %v4722_v22  ;;  %v15768_v0 = vld [vmem:[#allocation36_spill] sm:$0xff] }
 0x5a1   : > { %v4614_v43 = vpop.f32.mrf.mxu1  ;;  %v4902_v34 = vpop.f32.mrf.mxu0  ;;  %9226 = vmatmul.mubr.bf16.gmra.mxu1 %v15727_v16  ;;  %9318 = vmatmul.mubr.bf16.gmra.mxu0 %v15765_v38 }
 0x5a2   : > { %15764 = vst [vmem:[#allocation57_spill] sm:$0xff] %v14367_v14  ;;  %v4723_v30 = vadd.f32 %v4614_v43, %v15766_v55  ;;  %9229 = vmatprep.mubr.msk.bf16.mxu1 %vm10209_vm0, %v15475_v37  ;;  %9321 = vmatprep.mubr.msk.bf16.mxu0 %vm10209_vm0, %v15475_v37  ;;  %v15770_v43 = vld [vmem:[#allocation58_spill] sm:$0xff] }
 0x5a3   : > { %v9023_v3 = vpop.f32.mrf.mxu1  ;;  %v9115_v52 = vpop.f32.mrf.mxu0 }
 0x5a4   : > { %v14376_v28 = vadd.f32 %v4902_v34, %v4723_v30 }
 0x5a5   : > { %v4617_v45 = vpop.f32.mrf.mxu1  ;;  %v4905_v21 = vpop.f32.mrf.mxu0 }
 0x5a6   : > { %15767 = vst [vmem:[#allocation33_spill] sm:$0xff] %v14376_v28  ;;  %v4724_v51 = vadd.f32 %v4617_v45, %v15768_v0  ;;  %v15776_v28 = vld [vmem:[#allocation40_spill] sm:$0xff] }
 0x5a7   : > { %v9024_v22 = vpop.f32.mrf.mxu1  ;;  %v9116_v48 = vpop.f32.mrf.mxu0 }
 0x5a8   : > { %v14379_v26 = vadd.f32 %v4905_v21, %v4724_v51  ;;  %v15773_v21 = vld [vmem:[#allocation39_spill] sm:$0xff] }
 0x5a9   : > { %v4622_v14 = vpop.f32.mrf.mxu1  ;;  %v4910_v55 = vpop.f32.mrf.mxu0  ;;  %9230 = vmatmul.mubr.bf16.gmra.mxu1 %v15730_v24  ;;  %9322 = vmatmul.mubr.bf16.gmra.mxu0 %v15770_v43 }
 0x5aa   : > { %15769 = vst [vmem:[#allocation18_spill] sm:$0xff] %v14379_v26  ;;  %v4725_v38 = vadd.f32 %v4622_v14, %v15771_v42  ;;  %9233 = vmatprep.mubr.msk.bf16.mxu1 %vm10209_vm0, %v15475_v37  ;;  %9325 = vmatprep.mubr.msk.bf16.mxu0 %vm10209_vm0, %v15475_v37  ;;  %v15775_v14 = vld [vmem:[#allocation59_spill] sm:$0xff] }
 0x5ab   : > { %v9027_v30 = vpop.f32.mrf.mxu1  ;;  %v9119_v34 = vpop.f32.mrf.mxu0 }
 0x5ac   : > { %v14388_v3 = vadd.f32 %v4910_v55, %v4725_v38 }
 0x5ad   : > { %v4625_v52 = vpop.f32.mrf.mxu1  ;;  %v4913_v45 = vpop.f32.mrf.mxu0 }
 0x5ae   : > { %15772 = vst [vmem:[#allocation15_spill] sm:$0xff] %v14388_v3  ;;  %v4726_v0 = vadd.f32 %v4625_v52, %v15773_v21  ;;  %v15781_v3 = vld [vmem:[#allocation45_spill] sm:$0xff] }
 0x5af   : > { %v9028_v51 = vpop.f32.mrf.mxu1  ;;  %v9120_v22 = vpop.f32.mrf.mxu0 }
 0x5b0   : > { %v14391_v48 = vadd.f32 %v4913_v45, %v4726_v0  ;;  %v15778_v45 = vld [vmem:[#allocation44_spill] sm:$0xff] }
 0x5b1   : > { %v4630_v26 = vpop.f32.mrf.mxu1  ;;  %v4918_v42 = vpop.f32.mrf.mxu0  ;;  %9234 = vmatmul.mubr.bf16.gmra.mxu1 %v15733_v9  ;;  %9326 = vmatmul.mubr.bf16.gmra.mxu0 %v15775_v14 }
 0x5b2   : > { %15774 = vst [vmem:[#allocation35_spill] sm:$0xff] %v14391_v48  ;;  %v4727_v43 = vadd.f32 %v4630_v26, %v15776_v28  ;;  %9237 = vmatprep.mubr.msk.bf16.mxu1 %vm10209_vm0, %v15475_v37  ;;  %9329 = vmatprep.mubr.msk.bf16.mxu0 %vm10209_vm0, %v15475_v37  ;;  %v15780_v26 = vld [vmem:[#allocation61_spill] sm:$0xff] }
 0x5b3   : > { %v9031_v38 = vpop.f32.mrf.mxu1  ;;  %v9123_v55 = vpop.f32.mrf.mxu0 }
 0x5b4   : > { %v14400_v30 = vadd.f32 %v4918_v42, %v4727_v43 }
 0x5b5   : > { %v4633_v34 = vpop.f32.mrf.mxu1  ;;  %v4921_v52 = vpop.f32.mrf.mxu0 }
 0x5b6   : > { %15777 = vst [vmem:[#allocation19_spill] sm:$0xff] %v14400_v30  ;;  %v4728_v21 = vadd.f32 %v4633_v34, %v15778_v45  ;;  %v15786_v30 = vld [vmem:[#allocation49_spill] sm:$0xff] }
 0x5b7   : > { %v9032_v0 = vpop.f32.mrf.mxu1  ;;  %v9124_v51 = vpop.f32.mrf.mxu0 }
 0x5b8   : > { %v14403_v22 = vadd.f32 %v4921_v52, %v4728_v21  ;;  %v15783_v52 = vld [vmem:[#allocation42_spill] sm:$0xff] }
 0x5b9   : > { %v4638_v48 = vpop.f32.mrf.mxu1  ;;  %v4926_v28 = vpop.f32.mrf.mxu0  ;;  %9238 = vmatmul.mubr.bf16.gmra.mxu1 %v15736_v27  ;;  %9330 = vmatmul.mubr.bf16.gmra.mxu0 %v15780_v26 }
 0x5ba   : > { %15779 = vst [vmem:[#allocation21_spill] sm:$0xff] %v14403_v22  ;;  %v4729_v14 = vadd.f32 %v4638_v48, %v15781_v3  ;;  %9241 = vmatprep.mubr.msk.bf16.mxu1 %vm10209_vm0, %v15475_v37  ;;  %9333 = vmatprep.mubr.msk.bf16.mxu0 %vm10209_vm0, %v15475_v37  ;;  %v15785_v48 = vld [vmem:[#allocation63_spill] sm:$0xff] }
 0x5bb   : > { %v9035_v43 = vpop.f32.mrf.mxu1  ;;  %v9127_v42 = vpop.f32.mrf.mxu0 }
 0x5bc   : > { %v14412_v38 = vadd.f32 %v4926_v28, %v4729_v14 }
 0x5bd   : > { %v4641_v55 = vpop.f32.mrf.mxu1  ;;  %v4929_v34 = vpop.f32.mrf.mxu0 }
 0x5be   : > { %15782 = vst [vmem:[#allocation22_spill] sm:$0xff] %v14412_v38  ;;  %v4730_v45 = vadd.f32 %v4641_v55, %v15783_v52 }
 0x5bf   : > { %v9036_v21 = vpop.f32.mrf.mxu1  ;;  %v9128_v0 = vpop.f32.mrf.mxu0 }
 0x5c0   : > { %v14415_v51 = vadd.f32 %v4929_v34, %v4730_v45  ;;  %v15788_v34 = vld [vmem:[#allocation48_spill] sm:$0xff] }
 0x5c1   : > { %v4646_v22 = vpop.f32.mrf.mxu1  ;;  %v4934_v3 = vpop.f32.mrf.mxu0  ;;  %9242 = vmatmul.mubr.bf16.gmra.mxu1 %v15739_v2  ;;  %9334 = vmatmul.mubr.bf16.gmra.mxu0 %v15785_v48 }
 0x5c2   : > { %15784 = vst [vmem:[#allocation36_spill] sm:$0xff] %v14415_v51  ;;  %v4731_v26 = vadd.f32 %v4646_v22, %v15786_v30  ;;  %9245 = vmatprep.mubr.msk.bf16.mxu1 %vm10209_vm0, %v15475_v37  ;;  %9337 = vmatprep.mubr.msk.bf16.mxu0 %vm10209_vm0, %v15475_v37  ;;  %v15790_v22 = vld [vmem:[#allocation64_spill] sm:$0xff] }
 0x5c3   : > { %v9039_v14 = vpop.f32.mrf.mxu1  ;;  %v9131_v28 = vpop.f32.mrf.mxu0 }
 0x5c4   : > { %v14424_v43 = vadd.f32 %v4934_v3, %v4731_v26 }
 0x5c5   : > { %v4649_v42 = vpop.f32.mrf.mxu1  ;;  %v4937_v55 = vpop.f32.mrf.mxu0 }
 0x5c6   : > { %15787 = vst [vmem:[#allocation41_spill] sm:$0xff] %v14424_v43  ;;  %v4732_v52 = vadd.f32 %v4649_v42, %v15788_v34  ;;  %v15793_v43 = vld [vmem:[#allocation66_spill] sm:$0xff] }
 0x5c7   : > { %v9040_v45 = vpop.f32.mrf.mxu1  ;;  %v9132_v21 = vpop.f32.mrf.mxu0 }
 0x5c8   : > { %v14427_v0 = vadd.f32 %v4937_v55, %v4732_v52  ;;  %v15791_v55 = vld [vmem:[#allocation46_spill] sm:$0xff] }
 0x5c9   : > { %v4654_v51 = vpop.f32.mrf.mxu1  ;;  %v4942_v30 = vpop.f32.mrf.mxu0  ;;  %9246 = vmatmul.mubr.bf16.gmra.mxu1 %v15741_v61  ;;  %9338 = vmatmul.mubr.bf16.gmra.mxu0 %v15790_v22  ;;  %v15794_v22 = vld [vmem:[#allocation55_spill] sm:$0xff] }
 0x5ca   : > { %15789 = vst [vmem:[#allocation39_spill] sm:$0xff] %v14427_v0  ;;  %v4733_v38 = vadd.f32 %v4654_v51, %v14060_v56  ;;  %9249 = vmatprep.mubr.msk.bf16.mxu1 %vm10209_vm0, %v15475_v37  ;;  %9341 = vmatprep.mubr.msk.bf16.mxu0 %vm10209_vm0, %v15475_v37  ;;  %v15792_v51 = vld [vmem:[#allocation65_spill] sm:$0xff] }
 0x5cb   : > { %v9043_v26 = vpop.f32.mrf.mxu1  ;;  %v9135_v3 = vpop.f32.mrf.mxu0 }
 0x5cc   : > { %v14436_v14 = vadd.f32 %v4942_v30, %v4733_v38 }
 0x5cd   : > { %v4657_v28 = vpop.f32.mrf.mxu1  ;;  %v4945_v42 = vpop.f32.mrf.mxu0 }
 0x5ce   : > { %v4734_v34 = vadd.f32 %v4657_v28, %v15791_v55  ;;  %v9771_v55 = vld [vmem:[%s15309_s4 + $0x238] sm:$0xff]  }
 0x5cf   : > { %v9044_v52 = vpop.f32.mrf.mxu1  ;;  %v9136_v45 = vpop.f32.mrf.mxu0 }
 0x5d0   : > { %v14439_v21 = vadd.f32 %v4945_v42, %v4734_v34 }
 0x5d1   : > { %v4662_v0 = vpop.f32.mrf.mxu1  ;;  %v4950_v56 = vpop.f32.mrf.mxu0  ;;  %9250 = vmatmul.mubr.bf16.gmra.mxu1 %v15792_v51  ;;  %9342 = vmatmul.mubr.bf16.gmra.mxu0 %v15793_v43 }
 0x5d2   : > { %v4735_v61 = vadd.f32 %v4662_v0, %v15794_v22  ;;  %9361 = vmatprep.mubr.msk.bf16.mxu1 %vm10209_vm0, %v15475_v37  ;;  %9453 = vmatprep.mubr.msk.bf16.mxu0 %vm10209_vm0, %v15475_v37 }
 0x5d3   : > { %v9047_v38 = vpop.f32.mrf.mxu1  ;;  %v9139_v30 = vpop.f32.mrf.mxu0 }
 0x5d4   : > { %v14448_v26 = vadd.f32 %v4950_v56, %v4735_v61 }
 0x5d5   : > { %v4665_v3 = vpop.f32.mrf.mxu1  ;;  %v4953_v28 = vpop.f32.mrf.mxu0 }
 0x5d6   : > { %v4736_v42 = vadd.f32 %v4665_v3, %v14085_v50  ;;  %v9772_v50 = vld [vmem:[%s15309_s4 + $0x230] sm:$0xff]  }
 0x5d7   : > { %v9048_v34 = vpop.f32.mrf.mxu1  ;;  %v9140_v0 = vpop.f32.mrf.mxu0 }
 0x5d8   : > { %v14454_v22 = vadd.f32 %v4953_v28, %v4736_v42 }
 0x5d9   : > { %v4670_v52 = vpop.f32.mrf.mxu1  ;;  %v4958_v45 = vpop.f32.mrf.mxu0  ;;  %9362 = vmatmul.mubr.bf16.vlgmr.msra.gmra.mxu1 %v15718_v46  ;;  %9454 = vmatmul.mubr.bf16.vlgmr.msra.gmra.mxu0 %v15748_v40 }
 0x5da   : > { %v4737_v61 = vadd.f32 %v4670_v52, %v14097_v54  ;;  %9530 = vmatpush3.bf16.msra.mxu1 %v9771_v55  ;;  %9365 = vmatprep.mubr.msk.bf16.mxu1 %vm10209_vm0, %v15475_v37  ;;  %v15795_v54 = vld [vmem:[#allocation51_spill] sm:$0xff] }
 0x5db   : > { %v9051_v56 = vpop.f32.mrf.mxu1  ;;  %v9143_v38 = vpop.f32.mrf.mxu0  ;;  %9457 = vmatprep.mubr.msk.bf16.mxu0 %vm10209_vm0, %v15475_v37  ;;  %9531 = vmatprep.subr.bf16.mxu1 %v15475_v37  ;;  %v9773_v55 = vld [vmem:[%s15309_s4 + $0x228] sm:$0xff]  }
 0x5dc   : > { %v14467_v46 = vadd.f32 %v4958_v45, %v4737_v61  ;;  %v15796_v45 = vld [vmem:[#allocation60_spill] sm:$0xff]  ;;  %v9774_v38 = vld [vmem:[%s15309_s4 + $0x220] sm:$0xff]  }
 0x5dd   : > { %v4673_v40 = vpop.f32.mrf.mxu1  ;;  %v4961_v30 = vpop.f32.mrf.mxu0 }
 0x5de   : > { %v4738_v3 = vadd.f32 %v4673_v40, %v15795_v54  ;;  %9532 = vmatpush3.bf16.msra.mxu1 %v9772_v50 }
 0x5df   : > { %v9052_v28 = vpop.f32.mrf.mxu1  ;;  %v9144_v42 = vpop.f32.mrf.mxu0  ;;  %9533 = vmatprep.subr.bf16.mxu1 %v15475_v37 }
 0x5e0   : > { %v14474_v34 = vadd.f32 %v4961_v30, %v4738_v3  ;;  %v9775_v28 = vld [vmem:[%s15309_s4 + $0x218] sm:$0xff]  }
 0x5e1   : > { %v4678_v0 = vpop.f32.mrf.mxu1  ;;  %v4966_v52 = vpop.f32.mrf.mxu0  ;;  %9366 = vmatmul.mubr.bf16.gmra.mxu1 %v13870_v62  ;;  %9458 = vmatmul.mubr.bf16.gmra.mxu0 %v14147_v25 }
 0x5e2   : > { %v4739_v61 = vadd.f32 %v4678_v0, %v15796_v45  ;;  %9369 = vmatprep.mubr.msk.bf16.mxu1 %vm10209_vm0, %v15475_v37  ;;  %9461 = vmatprep.mubr.msk.bf16.mxu0 %vm10209_vm0, %v15475_v37 }
 0x5e3   : > { %v9055_v50 = vpop.f32.mrf.mxu1  ;;  %v9147_v56 = vpop.f32.mrf.mxu0  ;;  %9534 = vmatpush3.bf16.msra.mxu1 %v9773_v55 }
 0x5e4   : > { %v14486_v40 = vadd.f32 %v4966_v52, %v4739_v61  ;;  %9535 = vmatprep.subr.bf16.mxu1 %v15475_v37  ;;  %v9776_v61 = vld [vmem:[%s15309_s4 + $0x210] sm:$0xff]  }
 0x5e5   : > { %v4681_v62 = vpop.f32.mrf.mxu1  ;;  %v4969_v25 = vpop.f32.mrf.mxu0 }
 0x5e6   : > { %v4740_v30 = vadd.f32 %v4681_v62, %v14141_v15 }
 0x5e7   : > { %v9056_v54 = vpop.f32.mrf.mxu1  ;;  %v9148_v3 = vpop.f32.mrf.mxu0  ;;  %9536 = vmatpush3.bf16.msra.mxu1 %v9774_v38 }
 0x5e8   : > { %v14493_v42 = vadd.f32 %v4969_v25, %v4740_v30  ;;  %9537 = vmatprep.subr.bf16.mxu1 %v15475_v37  ;;  %v9777_v25 = vld [vmem:[%s15309_s4 + $0x208] sm:$0xff]  }
 0x5e9   : > { %v4686_v55 = vpop.f32.mrf.mxu1  ;;  %v4974_v0 = vpop.f32.mrf.mxu0  ;;  %9370 = vmatmul.mubr.bf16.gmra.mxu1 %v13896_v58  ;;  %9462 = vmatmul.mubr.bf16.gmra.mxu0 %v14181_v8 }
 0x5ea   : > { %v4741_v52 = vadd.f32 %v4686_v55, %v14159_v17  ;;  %9373 = vmatprep.mubr.msk.bf16.mxu1 %vm10209_vm0, %v15475_v37  ;;  %9465 = vmatprep.mubr.msk.bf16.mxu0 %vm10209_vm0, %v15475_v37  ;;  %v15797_v17 = vld [vmem:[#allocation24_spill] sm:$0xff] }
 0x5eb   : > { %v9059_v15 = vpop.f32.mrf.mxu1  ;;  %v9151_v45 = vpop.f32.mrf.mxu0  ;;  %9538 = vmatpush3.bf16.msra.mxu1 %v9775_v28  ;;  %v15798_v28 = vld [vmem:[#allocation38_spill] sm:$0xff] }
 0x5ec   : > { %v14506_v50 = vadd.f32 %v4974_v0, %v4741_v52  ;;  %9539 = vmatprep.subr.bf16.mxu1 %v15475_v37  ;;  %v9778_v15 = vld [vmem:[%s15309_s4 + $0x200] sm:$0xff]  }
 0x5ed   : > { %v4689_v8 = vpop.f32.mrf.mxu1  ;;  %v4977_v58 = vpop.f32.mrf.mxu0 }
 0x5ee   : > { %v4742_v56 = vadd.f32 %v4689_v8, %v15797_v17 }
 0x5ef   : > { %v9060_v38 = vpop.f32.mrf.mxu1  ;;  %v9152_v62 = vpop.f32.mrf.mxu0  ;;  %9540 = vmatpush3.bf16.msra.mxu1 %v9776_v61 }
 0x5f0   : > { %v14513_v30 = vadd.f32 %v4977_v58, %v4742_v56  ;;  %9541 = vmatprep.subr.bf16.mxu1 %v15475_v37  ;;  %v15799_v62 = vld [vmem:[#allocation43_spill] sm:$0xff] }
 0x5f1   : > { %v4694_v54 = vpop.f32.mrf.mxu1  ;;  %v4982_v3 = vpop.f32.mrf.mxu0  ;;  %9374 = vmatmul.mubr.bf16.gmra.mxu1 %v13908_v20  ;;  %9466 = vmatmul.mubr.bf16.gmra.mxu0 %v14215_v23 }
 0x5f2   : > { %v4743_v55 = vadd.f32 %v4694_v54, %v15798_v28  ;;  %9377 = vmatprep.mubr.msk.bf16.mxu1 %vm10209_vm0, %v15475_v37  ;;  %9469 = vmatprep.mubr.msk.bf16.mxu0 %vm10209_vm0, %v15475_v37 }
 0x5f3   : > { %v9063_v0 = vpop.f32.mrf.mxu1  ;;  %v9155_v52 = vpop.f32.mrf.mxu0  ;;  %9542 = vmatpush3.bf16.msra.mxu1 %v9777_v25 }
 0x5f4   : > { %v14526_v45 = vadd.f32 %v4982_v3, %v4743_v55  ;;  %9543 = vmatprep.subr.bf16.mxu1 %v15475_v37  ;;  %v15800_v0 = vld [vmem:[#allocation47_spill] sm:$0xff] }
 0x5f5   : > { %v4697_v23 = vpop.f32.mrf.mxu1  ;;  %v4985_v20 = vpop.f32.mrf.mxu0 }
 0x5f6   : > { %v4744_v61 = vadd.f32 %v4697_v23, %v14211_v1 }
 0x5f7   : > { %v9064_v8 = vpop.f32.mrf.mxu1  ;;  %v9156_v58 = vpop.f32.mrf.mxu0  ;;  %9544 = vmatpush3.bf16.msra.mxu1 %v9778_v15 }
 0x5f8   : > { %v14530_v17 = vadd.f32 %v4985_v20, %v4744_v61 }
 0x5f9   : > { %v4702_v56 = vpop.f32.mrf.mxu1  ;;  %v4990_v38 = vpop.f32.mrf.mxu0  ;;  %9378 = vmatmul.mubr.bf16.gmra.mxu1 %v13922_v32  ;;  %9470 = vmatmul.mubr.bf16.gmra.mxu0 %v14234_v5 }
 0x5fa   : > { %v4745_v25 = vadd.f32 %v4702_v56, %v15799_v62  ;;  %9381 = vmatprep.mubr.msk.bf16.mxu1 %vm10209_vm0, %v15475_v37  ;;  %9473 = vmatprep.mubr.msk.bf16.mxu0 %vm10209_vm0, %v15475_v37 }
 0x5fb   : > { %v9067_v1 = vpop.f32.mrf.mxu1  ;;  %v9159_v54 = vpop.f32.mrf.mxu0 }
 0x5fc   : > { %v14539_v3 = vadd.f32 %v4990_v38, %v4745_v25 }
 0x5fd   : > { %v4705_v28 = vpop.f32.mrf.mxu1  ;;  %v4993_v55 = vpop.f32.mrf.mxu0 }
 0x5fe   : > { %v4746_v52 = vadd.f32 %v4705_v28, %v15800_v0 }
 0x5ff   : > { %v9068_v15 = vpop.f32.mrf.mxu1  ;;  %v9160_v32 = vpop.f32.mrf.mxu0 }
 0x600   : > { %v14542_v23 = vadd.f32 %v4993_v55, %v4746_v52 }
 0x601   : > { %v5134_v5 = vpop.f32.mrf.mxu1  ;;  %v5517_v20 = vpop.f32.mrf.mxu0  ;;  %9382 = vmatmul.mubr.bf16.gmra.mxu1 %v13936_v19  ;;  %9474 = vmatmul.mubr.bf16.gmra.mxu0 %v14252_v31 }
 0x602   : > { %v5285_v61 = vadd.f32 %v5134_v5, %v14245_v53  ;;  %9385 = vmatprep.mubr.msk.bf16.mxu1 %vm10209_vm0, %v15475_v37  ;;  %9477 = vmatprep.mubr.msk.bf16.mxu0 %vm10209_vm0, %v15475_v37 }
 0x603   : > { %v9179_v8 = vpop.f32.mrf.mxu1  ;;  %v9271_v58 = vpop.f32.mrf.mxu0 }
 0x604   : > { %v14551_v56 = vadd.f32 %v5517_v20, %v5285_v61 }
 0x605   : > { %v5137_v38 = vpop.f32.mrf.mxu1  ;;  %v5520_v62 = vpop.f32.mrf.mxu0 }
 0x606   : > { %v5286_v25 = vadd.f32 %v5137_v38, %v14254_v63 }
 0x607   : > { %v9180_v1 = vpop.f32.mrf.mxu1  ;;  %v9272_v19 = vpop.f32.mrf.mxu0 }
 0x608   : > { %v14554_v54 = vadd.f32 %v5520_v62, %v5286_v25 }
 0x609   : > { %v5142_v31 = vpop.f32.mrf.mxu1  ;;  %v5525_v53 = vpop.f32.mrf.mxu0  ;;  %9386 = vmatmul.mubr.bf16.gmra.mxu1 %v13950_v57  ;;  %9478 = vmatmul.mubr.bf16.gmra.mxu0 %v14272_v10 }
 0x60a   : > { %v5287_v28 = vadd.f32 %v5142_v31, %v14265_v47  ;;  %9389 = vmatprep.mubr.msk.bf16.mxu1 %vm10209_vm0, %v15475_v37  ;;  %9481 = vmatprep.mubr.msk.bf16.mxu0 %vm10209_vm0, %v15475_v37 }
 0x60b   : > { %v9183_v55 = vpop.f32.mrf.mxu1  ;;  %v9275_v63 = vpop.f32.mrf.mxu0 }
 0x60c   : > { %v14563_v0 = vadd.f32 %v5525_v53, %v5287_v28 }
 0x60d   : > { %v5145_v52 = vpop.f32.mrf.mxu1  ;;  %v5528_v15 = vpop.f32.mrf.mxu0 }
 0x60e   : > { %v5288_v32 = vadd.f32 %v5145_v52, %v14274_v49 }
 0x60f   : > { %v9184_v5 = vpop.f32.mrf.mxu1  ;;  %v9276_v57 = vpop.f32.mrf.mxu0 }
 0x610   : > { %v14566_v20 = vadd.f32 %v5528_v15, %v5288_v32 }
 0x611   : > { %v5150_v10 = vpop.f32.mrf.mxu1  ;;  %v5533_v47 = vpop.f32.mrf.mxu0  ;;  %9390 = vmatmul.mubr.bf16.gmra.mxu1 %v13964_v44  ;;  %9482 = vmatmul.mubr.bf16.gmra.mxu0 %v14292_v41 }
 0x612   : > { %v5289_v61 = vadd.f32 %v5150_v10, %v14285_v29  ;;  %9393 = vmatprep.mubr.msk.bf16.mxu1 %vm10209_vm0, %v15475_v37  ;;  %9485 = vmatprep.mubr.msk.bf16.mxu0 %vm10209_vm0, %v15475_v37 }
 0x613   : > { %v9187_v8 = vpop.f32.mrf.mxu1  ;;  %v9279_v49 = vpop.f32.mrf.mxu0 }
 0x614   : > { %v14575_v58 = vadd.f32 %v5533_v47, %v5289_v61 }
 0x615   : > { %v5153_v38 = vpop.f32.mrf.mxu1  ;;  %v5536_v62 = vpop.f32.mrf.mxu0 }
 0x616   : > { %v5290_v25 = vadd.f32 %v5153_v38, %v14294_v33 }
 0x617   : > { %v9188_v1 = vpop.f32.mrf.mxu1  ;;  %v9280_v44 = vpop.f32.mrf.mxu0 }
 0x618   : > { %v14578_v19 = vadd.f32 %v5536_v62, %v5290_v25 }
 0x619   : > { %v5158_v41 = vpop.f32.mrf.mxu1  ;;  %v5541_v29 = vpop.f32.mrf.mxu0  ;;  %9394 = vmatmul.mubr.bf16.gmra.mxu1 %v13978_v36  ;;  %9486 = vmatmul.mubr.bf16.gmra.mxu0 %v14312_v7 }
 0x61a   : > { %v5291_v31 = vadd.f32 %v5158_v41, %v14305_v12  ;;  %9397 = vmatprep.mubr.msk.bf16.mxu1 %vm10209_vm0, %v15475_v37  ;;  %9489 = vmatprep.mubr.msk.bf16.mxu0 %vm10209_vm0, %v15475_v37 }
 0x61b   : > { %v9191_v53 = vpop.f32.mrf.mxu1  ;;  %v9283_v33 = vpop.f32.mrf.mxu0 }
 0x61c   : > { %v14587_v28 = vadd.f32 %v5541_v29, %v5291_v31  ;;  %v15801_v33 = vld [vmem:[#allocation56_spill] sm:$0xff] }
 0x61d   : > { %v5161_v55 = vpop.f32.mrf.mxu1  ;;  %v5544_v63 = vpop.f32.mrf.mxu0 }
 0x61e   : > { %v5292_v52 = vadd.f32 %v5161_v55, %v14314_v59  ;;  %v15802_v55 = vld [vmem:[#allocation53_spill] sm:$0xff] }
 0x61f   : > { %v9192_v15 = vpop.f32.mrf.mxu1  ;;  %v9284_v36 = vpop.f32.mrf.mxu0 }
 0x620   : > { %v14590_v32 = vadd.f32 %v5544_v63, %v5292_v52 }
 0x621   : > { %v5166_v7 = vpop.f32.mrf.mxu1  ;;  %v5549_v12 = vpop.f32.mrf.mxu0  ;;  %9398 = vmatmul.mubr.bf16.gmra.mxu1 %v13992_v11  ;;  %9490 = vmatmul.mubr.bf16.gmra.mxu0 %v14332_v4 }
 0x622   : > { %v5293_v5 = vadd.f32 %v5166_v7, %v14325_v6  ;;  %9401 = vmatprep.mubr.msk.bf16.mxu1 %vm10209_vm0, %v15475_v37  ;;  %9493 = vmatprep.mubr.msk.bf16.mxu0 %vm10209_vm0, %v15475_v37 }
 0x623   : > { %v9195_v57 = vpop.f32.mrf.mxu1  ;;  %v9287_v59 = vpop.f32.mrf.mxu0 }
 0x624   : > { %v14599_v10 = vadd.f32 %v5549_v12, %v5293_v5  ;;  %v15803_v12 = vld [vmem:[#allocation57_spill] sm:$0xff] }
 0x625   : > { %v5169_v47 = vpop.f32.mrf.mxu1  ;;  %v5552_v61 = vpop.f32.mrf.mxu0 }
 0x626   : > { %v5294_v8 = vadd.f32 %v5169_v47, %v14334_v39 }
 0x627   : > { %v9196_v49 = vpop.f32.mrf.mxu1  ;;  %v9288_v11 = vpop.f32.mrf.mxu0 }
 0x628   : > { %v14602_v38 = vadd.f32 %v5552_v61, %v5294_v8  ;;  %v15804_v8 = vld [vmem:[#allocation58_spill] sm:$0xff]  ;;  %v15805_v49 = vld [vmem:[#allocation33_spill] sm:$0xff] }
 0x629   : > { %v5174_v4 = vpop.f32.mrf.mxu1  ;;  %v5557_v6 = vpop.f32.mrf.mxu0  ;;  %9402 = vmatmul.mubr.bf16.gmra.mxu1 %v15760_v35  ;;  %9494 = vmatmul.mubr.bf16.gmra.mxu0 %v14353_v18 }
 0x62a   : > { %v5295_v62 = vadd.f32 %v5174_v4, %v14344_v60  ;;  %9405 = vmatprep.mubr.msk.bf16.mxu1 %vm10209_vm0, %v15475_v37  ;;  %9497 = vmatprep.mubr.msk.bf16.mxu0 %vm10209_vm0, %v15475_v37 }
 0x62b   : > { %v9199_v25 = vpop.f32.mrf.mxu1  ;;  %v9291_v39 = vpop.f32.mrf.mxu0 }
 0x62c   : > { %v14611_v1 = vadd.f32 %v5557_v6, %v5295_v62 }
 0x62d   : > { %v5177_v44 = vpop.f32.mrf.mxu1  ;;  %v5560_v41 = vpop.f32.mrf.mxu0 }
 0x62e   : > { %v5296_v29 = vadd.f32 %v5177_v44, %v14355_v13  ;;  %v15806_v44 = vld [vmem:[#allocation18_spill] sm:$0xff] }
 0x62f   : > { %v9200_v31 = vpop.f32.mrf.mxu1  ;;  %v9292_v35 = vpop.f32.mrf.mxu0 }
 0x630   : > { %v14614_v53 = vadd.f32 %v5560_v41, %v5296_v29 }
 0x631   : > { %v5182_v18 = vpop.f32.mrf.mxu1  ;;  %v5565_v60 = vpop.f32.mrf.mxu0  ;;  %9406 = vmatmul.mubr.bf16.gmra.mxu1 %v15727_v16  ;;  %9498 = vmatmul.mubr.bf16.gmra.mxu0 %v15801_v33  ;;  %v15808_v33 = vld [vmem:[#allocation15_spill] sm:$0xff] }
 0x632   : > { %v5297_v63 = vadd.f32 %v5182_v18, %v15802_v55  ;;  %9409 = vmatprep.mubr.msk.bf16.mxu1 %vm10209_vm0, %v15475_v37  ;;  %9501 = vmatprep.mubr.msk.bf16.mxu0 %vm10209_vm0, %v15475_v37 }
 0x633   : > { %v9203_v52 = vpop.f32.mrf.mxu1  ;;  %v9295_v13 = vpop.f32.mrf.mxu0 }
 0x634   : > { %v14623_v15 = vadd.f32 %v5565_v60, %v5297_v63  ;;  %v15807_v60 = vld [vmem:[#allocation59_spill] sm:$0xff] }
 0x635   : > { %v5185_v36 = vpop.f32.mrf.mxu1  ;;  %v5568_v7 = vpop.f32.mrf.mxu0 }
 0x636   : > { %v5298_v5 = vadd.f32 %v5185_v36, %v15803_v12  ;;  %v15809_v12 = vld [vmem:[#allocation35_spill] sm:$0xff] }
 0x637   : > { %v9204_v57 = vpop.f32.mrf.mxu1  ;;  %v9296_v16 = vpop.f32.mrf.mxu0 }
 0x638   : > { %v14626_v59 = vadd.f32 %v5568_v7, %v5298_v5 }
 0x639   : > { %v5190_v47 = vpop.f32.mrf.mxu1  ;;  %v5573_v61 = vpop.f32.mrf.mxu0  ;;  %9410 = vmatmul.mubr.bf16.gmra.mxu1 %v15730_v24  ;;  %9502 = vmatmul.mubr.bf16.gmra.mxu0 %v15804_v8  ;;  %v15810_v8 = vld [vmem:[#allocation61_spill] sm:$0xff] }
 0x63a   : > { %v5299_v11 = vadd.f32 %v5190_v47, %v15805_v49  ;;  %9413 = vmatprep.mubr.msk.bf16.mxu1 %vm10209_vm0, %v15475_v37  ;;  %9505 = vmatprep.mubr.msk.bf16.mxu0 %vm10209_vm0, %v15475_v37  ;;  %v15811_v49 = vld [vmem:[#allocation19_spill] sm:$0xff] }
 0x63b   : > { %v9207_v4 = vpop.f32.mrf.mxu1  ;;  %v9299_v6 = vpop.f32.mrf.mxu0 }
 0x63c   : > { %v14635_v62 = vadd.f32 %v5573_v61, %v5299_v11 }
 0x63d   : > { %v5193_v25 = vpop.f32.mrf.mxu1  ;;  %v5576_v39 = vpop.f32.mrf.mxu0 }
 0x63e   : > { %v5300_v41 = vadd.f32 %v5193_v25, %v15806_v44 }
 0x63f   : > { %v9208_v29 = vpop.f32.mrf.mxu1  ;;  %v9300_v24 = vpop.f32.mrf.mxu0 }
 0x640   : > { %v14638_v31 = vadd.f32 %v5576_v39, %v5300_v41  ;;  %v15812_v41 = vld [vmem:[#allocation21_spill] sm:$0xff] }
 0x641   : > { %v5198_v35 = vpop.f32.mrf.mxu1  ;;  %v5581_v18 = vpop.f32.mrf.mxu0  ;;  %9414 = vmatmul.mubr.bf16.gmra.mxu1 %v15733_v9  ;;  %9506 = vmatmul.mubr.bf16.gmra.mxu0 %v15807_v60 }
 0x642   : > { %v5301_v55 = vadd.f32 %v5198_v35, %v15808_v33  ;;  %9417 = vmatprep.mubr.msk.bf16.mxu1 %vm10209_vm0, %v15475_v37  ;;  %9509 = vmatprep.mubr.msk.bf16.mxu0 %vm10209_vm0, %v15475_v37  ;;  %v15813_v33 = vld [vmem:[#allocation22_spill] sm:$0xff] }
 0x643   : > { %v9211_v63 = vpop.f32.mrf.mxu1  ;;  %v9303_v52 = vpop.f32.mrf.mxu0 }
 0x644   : > { %v14647_v13 = vadd.f32 %v5581_v18, %v5301_v55 }
 0x645   : > { %v5201_v36 = vpop.f32.mrf.mxu1  ;;  %v5584_v7 = vpop.f32.mrf.mxu0 }
 0x646   : > { %v5302_v5 = vadd.f32 %v5201_v36, %v15809_v12 }
 0x647   : > { %v9212_v57 = vpop.f32.mrf.mxu1  ;;  %v9304_v9 = vpop.f32.mrf.mxu0 }
 0x648   : > { %v14650_v16 = vadd.f32 %v5584_v7, %v5302_v5  ;;  %v15814_v5 = vld [vmem:[#allocation36_spill] sm:$0xff] }
 0x649   : > { %v5206_v47 = vpop.f32.mrf.mxu1  ;;  %v5589_v61 = vpop.f32.mrf.mxu0  ;;  %9418 = vmatmul.mubr.bf16.gmra.mxu1 %v15736_v27  ;;  %9510 = vmatmul.mubr.bf16.gmra.mxu0 %v15810_v8  ;;  %v15815_v8 = vld [vmem:[#allocation62_spill] sm:$0xff] }
 0x64a   : > { %v5303_v11 = vadd.f32 %v5206_v47, %v15811_v49  ;;  %9421 = vmatprep.mubr.msk.bf16.mxu1 %vm10209_vm0, %v15475_v37  ;;  %9513 = vmatprep.mubr.msk.bf16.mxu0 %vm10209_vm0, %v15475_v37  ;;  %v15816_v49 = vld [vmem:[#allocation64_spill] sm:$0xff] }
 0x64b   : > { %v9215_v4 = vpop.f32.mrf.mxu1  ;;  %v9307_v6 = vpop.f32.mrf.mxu0 }
 0x64c   : > { %v14659_v25 = vadd.f32 %v5589_v61, %v5303_v11  ;;  %v15817_v11 = vld [vmem:[#allocation41_spill] sm:$0xff] }
 0x64d   : > { %v5209_v39 = vpop.f32.mrf.mxu1  ;;  %v5592_v44 = vpop.f32.mrf.mxu0 }
 0x64e   : > { %v5304_v29 = vadd.f32 %v5209_v39, %v15812_v41 }
 0x64f   : > { %v9216_v24 = vpop.f32.mrf.mxu1  ;;  %v9308_v27 = vpop.f32.mrf.mxu0 }
 0x650   : > { %v14662_v35 = vadd.f32 %v5592_v44, %v5304_v29  ;;  %v15818_v24 = vld [vmem:[#allocation39_spill] sm:$0xff] }
 0x651   : > { %v5214_v18 = vpop.f32.mrf.mxu1  ;;  %v5597_v60 = vpop.f32.mrf.mxu0  ;;  %9422 = vmatmul.mubr.bf16.gmra.mxu1 %v15739_v2  ;;  %9514 = vmatmul.mubr.bf16.gmra.mxu0 %v15785_v48 }
 0x652   : > { %v5305_v55 = vadd.f32 %v5214_v18, %v15813_v33  ;;  %9425 = vmatprep.mubr.msk.bf16.mxu1 %vm10209_vm0, %v15475_v37  ;;  %9517 = vmatprep.mubr.msk.bf16.mxu0 %vm10209_vm0, %v15475_v37 }
 0x653   : > { %v9219_v63 = vpop.f32.mrf.mxu1  ;;  %v9311_v52 = vpop.f32.mrf.mxu0 }
 0x654   : > { %v14671_v36 = vadd.f32 %v5597_v60, %v5305_v55 }
 0x655   : > { %v5217_v7 = vpop.f32.mrf.mxu1  ;;  %v5600_v12 = vpop.f32.mrf.mxu0 }
 0x656   : > { %v5306_v57 = vadd.f32 %v5217_v7, %v15814_v5 }
 0x657   : > { %v9220_v9 = vpop.f32.mrf.mxu1  ;;  %v9312_v2 = vpop.f32.mrf.mxu0 }
 0x658   : > { %v14674_v47 = vadd.f32 %v5600_v12, %v5306_v57 }
 0x659   : > { %v5222_v48 = vpop.f32.mrf.mxu1  ;;  %v5605_v61 = vpop.f32.mrf.mxu0  ;;  %9426 = vmatmul.mubr.bf16.gmra.mxu1 %v15815_v8  ;;  %9518 = vmatmul.mubr.bf16.gmra.mxu0 %v15816_v49  ;;  %v15819_v8 = vld [vmem:[#allocation14_spill] sm:$0xff] }
 0x65a   : > { %v5307_v4 = vadd.f32 %v5222_v48, %v15817_v11  ;;  %9429 = vmatprep.mubr.msk.bf16.mxu1 %vm10209_vm0, %v15475_v37  ;;  %9521 = vmatprep.mubr.msk.bf16.mxu0 %vm10209_vm0, %v15475_v37  ;;  %v15820_v49 = vld [vmem:[#allocation54_spill] sm:$0xff] }
 0x65b   : > { %v9223_v6 = vpop.f32.mrf.mxu1  ;;  %v9315_v39 = vpop.f32.mrf.mxu0 }
 0x65c   : > { %v14683_v44 = vadd.f32 %v5605_v61, %v5307_v4 }
 0x65d   : > { %v5225_v41 = vpop.f32.mrf.mxu1  ;;  %v5608_v29 = vpop.f32.mrf.mxu0 }
 0x65e   : > { %v5308_v27 = vadd.f32 %v5225_v41, %v15818_v24 }
 0x65f   : > { %v9224_v18 = vpop.f32.mrf.mxu1  ;;  %v9316_v60 = vpop.f32.mrf.mxu0 }
 0x660   : > { %v14686_v33 = vadd.f32 %v5608_v29, %v5308_v27  ;;  %v15821_v60 = vld [vmem:[#allocation13_spill] sm:$0xff] }
 0x661   : > { %v5230_v55 = vpop.f32.mrf.mxu1  ;;  %v5613_v63 = vpop.f32.mrf.mxu0  ;;  %9430 = vmatmul.mubr.bf16.gmra.mxu1 %v15792_v51  ;;  %9522 = vmatmul.mubr.bf16.gmra.mxu0 %v15793_v43 }
 0x662   : > { %v5309_v52 = vadd.f32 %v5230_v55, %v14436_v14  ;;  %9433 = vmatprep.mubr.msk.bf16.mxu1 %vm10209_vm0, %v15475_v37  ;;  %9525 = vmatprep.mubr.msk.bf16.mxu0 %vm10209_vm0, %v15475_v37  ;;  %v6288_v55 = vrot.slane %v15821_v60, 2 }
 0x663   : > { %v9227_v7 = vpop.f32.mrf.mxu1  ;;  %v9319_v12 = vpop.f32.mrf.mxu0 }
 0x664   : > { %v14695_v5 = vadd.f32 %v5613_v63, %v5309_v52  ;;  %v15823_v7 = vld [vmem:[#allocation52_spill] sm:$0xff] }
 0x665   : > { %v5233_v57 = vpop.f32.mrf.mxu1  ;;  %v5616_v9 = vpop.f32.mrf.mxu0 }
 0x666   : > { %v5310_v2 = vadd.f32 %v5233_v57, %v14439_v21 }
 0x667   : > { %v9228_v48 = vpop.f32.mrf.mxu1  ;;  %v9320_v51 = vpop.f32.mrf.mxu0 }
 0x668   : > { %v14698_v61 = vadd.f32 %v5616_v9, %v5310_v2  ;;  %v15825_v9 = vld [vmem:[#allocation28_spill] sm:$0xff] }
 0x669   : > { %v5238_v43 = vpop.f32.mrf.mxu1  ;;  %v5621_v14 = vpop.f32.mrf.mxu0  ;;  %9434 = vmatmul.mubr.bf16.gmra.mxu1 %v15819_v8  ;;  %9526 = vmatmul.mubr.bf16.gmra.mxu0 %v15820_v49  ;;  %v6287_v2 = vrot.slane %v15825_v9, 2 }
 0x66a   : > { %v5311_v11 = vadd.f32 %v5238_v43, %v14448_v26  ;;  %9545 = vmatprep.mubr.msk.bf16.mxu1 %vm10209_vm0, %v15475_v37  ;;  %v15822_v26 = vld [vmem:[#allocation27_spill] sm:$0xff] }
 0x66b   : > { %v9231_v4 = vpop.f32.mrf.mxu1  ;;  %v9323_v6 = vpop.f32.mrf.mxu0  ;;  %v15824_v12 = vpack.c.bf16 %v15822_v26, %v15823_v7 }
 0x66c   : > { %v14705_v39 = vadd.f32 %v5621_v14, %v5311_v11  ;;  %v6351_v14 = vsel %vm2904_vm4, %v6287_v2, %v6288_v55  ;;  %v15827_v4 = vld [vmem:[#allocation3_spill] sm:$0xff] }
 0x66d   : > { %v5241_v21 = vpop.f32.mrf.mxu1  ;;  %v5624_v41 = vpop.f32.mrf.mxu0  ;;  %v15828_v6 = vrot.slane %v15827_v4, 2 }
 0x66e   : > { %v5312_v29 = vadd.f32 %v5241_v21, %v14454_v22 }
 0x66f   : > { %v9232_v24 = vpop.f32.mrf.mxu1  ;;  %v9324_v27 = vpop.f32.mrf.mxu0 }
 0x670   : > { %v14708_v18 = vadd.f32 %v5624_v41, %v5312_v29  ;;  %v15829_v27 = vld [vmem:[#allocation6_spill] sm:$0xff] }
 0x671   : > { %v5246_v63 = vpop.f32.mrf.mxu1  ;;  %v5629_v52 = vpop.f32.mrf.mxu0  ;;  %9546 = vmatmul.mubr.bf16.vlgmr.msra.gmra.mxu1 %v15824_v12  ;;  %v6290_v60 = vrot.slane %v15829_v27, 2  ;;  %v15832_v27 = vld [vmem:[#allocation12_spill] sm:$0xff] }
 0x672   : > { %v5313_v57 = vadd.f32 %v5246_v63, %v14467_v46  ;;  %9549 = vmatprep.mubr.msk.bf16.mxu1 %vm10209_vm0, %v15475_v37  ;;  %v6352_v46 = vsel %vm2904_vm4, %v15828_v6, %v6287_v2  ;;  %v15831_v6 = vld [vmem:[#allocation31_spill] sm:$0xff] }
 0x673   : > { %v9235_v22 = vpop.f32.mrf.mxu1  ;;  %v9327_v48 = vpop.f32.mrf.mxu0  ;;  %v6359_v29 = vpack.c.bf16 %v6351_v14, %v6352_v46  ;;  %v6292_v46 = vrot.slane %v15831_v6, 2  ;;  %v15834_v6 = vld [vmem:[#allocation5_spill] sm:$0xff] }
 0x674   : > { %v14718_v51 = vadd.f32 %v5629_v52, %v5313_v57 }
 0x675   : > { %v5249_v8 = vpop.f32.mrf.mxu1  ;;  %v5632_v49 = vpop.f32.mrf.mxu0 }
 0x676   : > { %v5314_v11 = vadd.f32 %v5249_v8, %v14474_v34  ;;  %v15830_v34 = vld [vmem:[#allocation32_spill] sm:$0xff] }
 0x677   : > { %v9236_v21 = vpop.f32.mrf.mxu1  ;;  %v9328_v41 = vpop.f32.mrf.mxu0  ;;  %v6289_v7 = vrot.slane %v15830_v34, 2 }
 0x678   : > { %v14727_v24 = vadd.f32 %v5632_v49, %v5314_v11 }
 0x679   : > { %v5254_v63 = vpop.f32.mrf.mxu1  ;;  %v5637_v52 = vpop.f32.mrf.mxu0  ;;  %9550 = vmatmul.mubr.bf16.gmra.mxu1 %v6359_v29  ;;  %v6349_v2 = vsel %vm2904_vm4, %v6289_v7, %v6290_v60  ;;  %v6350_v8 = vsel %vm2904_vm4, %v6288_v55, %v6289_v7 }
 0x67a   : > { %v5315_v26 = vadd.f32 %v5254_v63, %v14486_v40  ;;  %9553 = vmatprep.mubr.msk.bf16.mxu1 %vm10209_vm0, %v15475_v37  ;;  %v6360_v11 = vpack.c.bf16 %v6349_v2, %v6350_v8 }
 0x67b   : > { %v9239_v12 = vpop.f32.mrf.mxu1  ;;  %v9331_v57 = vpop.f32.mrf.mxu0 }
 0x67c   : > { %v14734_v9 = vadd.f32 %v5637_v52, %v5315_v26 }
 0x67d   : > { %v5257_v22 = vpop.f32.mrf.mxu1  ;;  %v5640_v48 = vpop.f32.mrf.mxu0 }
 0x67e   : > { %v5316_v14 = vadd.f32 %v5257_v22, %v14493_v42  ;;  %v6291_v42 = vrot.slane %v15832_v27, 2 }
 0x67f   : > { %v9240_v40 = vpop.f32.mrf.mxu1  ;;  %v9332_v49 = vpop.f32.mrf.mxu0 }
 0x680   : > { %v14741_v4 = vadd.f32 %v5640_v48, %v5316_v14  ;;  %v6347_v26 = vsel %vm2904_vm4, %v6291_v42, %v6292_v46  ;;  %v6348_v57 = vsel %vm2904_vm4, %v6290_v60, %v6291_v42  ;;  %v15833_v14 = vld [vmem:[#allocation29_spill] sm:$0xff] }
 0x681   : > { %v5262_v21 = vpop.f32.mrf.mxu1  ;;  %v5645_v41 = vpop.f32.mrf.mxu0  ;;  %9554 = vmatmul.mubr.bf16.gmra.mxu1 %v6360_v11  ;;  %v6361_v22 = vpack.c.bf16 %v6347_v26, %v6348_v57  ;;  %v6294_v8 = vrot.slane %v15833_v14, 2  ;;  %v15836_v14 = vld [vmem:[#allocation30_spill] sm:$0xff] }
 0x682   : > { %v5317_v29 = vadd.f32 %v5262_v21, %v14506_v50  ;;  %9557 = vmatprep.mubr.msk.bf16.mxu1 %vm10209_vm0, %v15475_v37 }
 0x683   : > { %v9243_v63 = vpop.f32.mrf.mxu1  ;;  %v9335_v52 = vpop.f32.mrf.mxu0 }
 0x684   : > { %v14748_v55 = vadd.f32 %v5645_v41, %v5317_v29 }
 0x685   : > { %v5265_v34 = vpop.f32.mrf.mxu1  ;;  %v5648_v7 = vpop.f32.mrf.mxu0 }
 0x686   : > { %v5318_v12 = vadd.f32 %v5265_v34, %v14513_v30  ;;  %v6293_v30 = vrot.slane %v15834_v6, 2 }
 0x687   : > { %v9244_v50 = vpop.f32.mrf.mxu1  ;;  %v9336_v2 = vpop.f32.mrf.mxu0 }
 0x688   : > { %v14755_v48 = vadd.f32 %v5648_v7, %v5318_v12  ;;  %v6345_v29 = vsel %vm2904_vm4, %v6293_v30, %v6294_v8  ;;  %v6346_v52 = vsel %vm2904_vm4, %v6292_v46, %v6293_v30  ;;  %v15835_v12 = vld [vmem:[#allocation8_spill] sm:$0xff] }
 0x689   : > { %v5270_v40 = vpop.f32.mrf.mxu1  ;;  %v5653_v49 = vpop.f32.mrf.mxu0  ;;  %9558 = vmatmul.mubr.bf16.gmra.mxu1 %v6361_v22  ;;  %v6362_v34 = vpack.c.bf16 %v6345_v29, %v6346_v52  ;;  %v6296_v57 = vrot.slane %v15835_v12, 2  ;;  %v15838_v12 = vld [vmem:[#allocation34_spill] sm:$0xff] }
 0x68a   : > { %v5319_v11 = vadd.f32 %v5270_v40, %v14526_v45  ;;  %9561 = vmatprep.mubr.msk.bf16.mxu1 %vm10209_vm0, %v15475_v37 }
 0x68b   : > { %v9247_v21 = vpop.f32.mrf.mxu1  ;;  %v9339_v41 = vpop.f32.mrf.mxu0 }
 0x68c   : > { %v14762_v60 = vadd.f32 %v5653_v49, %v5319_v11 }
 0x68d   : > { %v5273_v27 = vpop.f32.mrf.mxu1  ;;  %v5656_v42 = vpop.f32.mrf.mxu0 }
 0x68e   : > { %v5320_v63 = vadd.f32 %v5273_v27, %v14530_v17  ;;  %v6295_v17 = vrot.slane %v15836_v14, 2 }
 0x68f   : > { %v9248_v45 = vpop.f32.mrf.mxu1  ;;  %v9340_v26 = vpop.f32.mrf.mxu0 }
 0x690   : > { %v14769_v7 = vadd.f32 %v5656_v42, %v5320_v63  ;;  %v6343_v11 = vsel %vm2904_vm4, %v6295_v17, %v6296_v57  ;;  %v6344_v41 = vsel %vm2904_vm4, %v6294_v8, %v6295_v17  ;;  %v15837_v63 = vld [vmem:[#allocation7_spill] sm:$0xff] }
 0x691   : > { %v5278_v50 = vpop.f32.mrf.mxu1  ;;  %v5661_v2 = vpop.f32.mrf.mxu0  ;;  %9562 = vmatmul.mubr.bf16.gmra.mxu1 %v6362_v34  ;;  %v6363_v27 = vpack.c.bf16 %v6343_v11, %v6344_v41  ;;  %v6298_v52 = vrot.slane %v15837_v63, 2  ;;  %v15840_v63 = vld [vmem:[#allocation9_spill] sm:$0xff] }
 0x692   : > { %v5321_v22 = vadd.f32 %v5278_v50, %v14539_v3  ;;  %9565 = vmatprep.mubr.msk.bf16.mxu1 %vm10209_vm0, %v15475_v37 }
 0x693   : > { %v9251_v40 = vpop.f32.mrf.mxu1  ;;  %v9343_v49 = vpop.f32.mrf.mxu0 }
 0x694   : > { %v14776_v46 = vadd.f32 %v5661_v2, %v5321_v22 }
 0x695   : > { %v5281_v6 = vpop.f32.mrf.mxu1  ;;  %v5664_v30 = vpop.f32.mrf.mxu0 }
 0x696   : > { %v5322_v21 = vadd.f32 %v5281_v6, %v14542_v23  ;;  %v6297_v23 = vrot.slane %v15838_v12, 2 }
 0x697   : > { %v9252_v3 = vpop.f32.mrf.mxu1  ;;  %v9344_v29 = vpop.f32.mrf.mxu0 }
 0x698   : > { %v14783_v42 = vadd.f32 %v5664_v30, %v5322_v21  ;;  %v6341_v22 = vsel %vm2904_vm4, %v6297_v23, %v6298_v52  ;;  %v6342_v49 = vsel %vm2904_vm4, %v6296_v57, %v6297_v23  ;;  %v15839_v21 = vld [vmem:[#allocation10_spill] sm:$0xff] }
 0x699   : > { %v5805_v45 = vpop.f32.mrf.mxu1  ;;  %v6093_v26 = vpop.f32.mrf.mxu0  ;;  %9566 = vmatmul.mubr.bf16.gmra.mxu1 %v6363_v27  ;;  %v6364_v6 = vpack.c.bf16 %v6341_v22, %v6342_v49  ;;  %v6300_v41 = vrot.slane %v15839_v21, 2  ;;  %v15842_v21 = vld [vmem:[#allocation17_spill] sm:$0xff] }
 0x69a   : > { %v5956_v34 = vadd.f32 %v5805_v45, %v14551_v56  ;;  %9569 = vmatprep.mubr.msk.bf16.mxu1 %vm10209_vm0, %v15475_v37 }
 0x69b   : > { %v9363_v50 = vpop.f32.mrf.mxu1  ;;  %v9455_v2 = vpop.f32.mrf.mxu0 }
 0x69c   : > { %v14790_v8 = vadd.f32 %v6093_v26, %v5956_v34 }
 0x69d   : > { %v5808_v14 = vpop.f32.mrf.mxu1  ;;  %v6096_v17 = vpop.f32.mrf.mxu0 }
 0x69e   : > { %v5957_v40 = vadd.f32 %v5808_v14, %v14554_v54  ;;  %v6299_v54 = vrot.slane %v15840_v63, 2 }
 0x69f   : > { %v9364_v56 = vpop.f32.mrf.mxu1  ;;  %v9456_v11 = vpop.f32.mrf.mxu0 }
 0x6a0   : > { %v14797_v30 = vadd.f32 %v6096_v17, %v5957_v40  ;;  %v6339_v34 = vsel %vm2904_vm4, %v6299_v54, %v6300_v41  ;;  %v6340_v2 = vsel %vm2904_vm4, %v6298_v52, %v6299_v54  ;;  %v15841_v40 = vld [vmem:[#allocation16_spill] sm:$0xff] }
 0x6a1   : > { %v5813_v3 = vpop.f32.mrf.mxu1  ;;  %v6101_v29 = vpop.f32.mrf.mxu0  ;;  %9570 = vmatmul.mubr.bf16.gmra.mxu1 %v6364_v6  ;;  %v6365_v14 = vpack.c.bf16 %v6339_v34, %v6340_v2  ;;  %v6302_v49 = vrot.slane %v15841_v40, 2  ;;  %v15844_v40 = vld [vmem:[#allocation11_spill] sm:$0xff] }
 0x6a2   : > { %v5958_v27 = vadd.f32 %v5813_v3, %v14563_v0  ;;  %9573 = vmatprep.mubr.msk.bf16.mxu1 %vm10209_vm0, %v15475_v37 }
 0x6a3   : > { %v9367_v45 = vpop.f32.mrf.mxu1  ;;  %v9459_v26 = vpop.f32.mrf.mxu0 }
 0x6a4   : > { %v14804_v57 = vadd.f32 %v6101_v29, %v5958_v27 }
 0x6a5   : > { %v5816_v12 = vpop.f32.mrf.mxu1  ;;  %v6104_v23 = vpop.f32.mrf.mxu0 }
 0x6a6   : > { %v5959_v50 = vadd.f32 %v5816_v12, %v14566_v20  ;;  %v6301_v20 = vrot.slane %v15842_v21, 2 }
 0x6a7   : > { %v9368_v0 = vpop.f32.mrf.mxu1  ;;  %v9460_v22 = vpop.f32.mrf.mxu0 }
 0x6a8   : > { %v14811_v17 = vadd.f32 %v6104_v23, %v5959_v50  ;;  %v6337_v27 = vsel %vm2904_vm4, %v6301_v20, %v6302_v49  ;;  %v6338_v26 = vsel %vm2904_vm4, %v6300_v41, %v6301_v20  ;;  %v15843_v50 = vld [vmem:[#allocation20_spill] sm:$0xff] }
 0x6a9   : > { %v5821_v56 = vpop.f32.mrf.mxu1  ;;  %v6109_v11 = vpop.f32.mrf.mxu0  ;;  %9574 = vmatmul.mubr.bf16.gmra.mxu1 %v6365_v14  ;;  %v6366_v12 = vpack.c.bf16 %v6337_v27, %v6338_v26  ;;  %v6304_v2 = vrot.slane %v15843_v50, 2 }
 0x6aa   : > { %v5960_v6 = vadd.f32 %v5821_v56, %v14575_v58  ;;  %9577 = vmatprep.mubr.msk.bf16.mxu1 %vm10209_vm0, %v15475_v37 }
 0x6ab   : > { %v9371_v3 = vpop.f32.mrf.mxu1  ;;  %v9463_v29 = vpop.f32.mrf.mxu0 }
 0x6ac   : > { %v14818_v52 = vadd.f32 %v6109_v11, %v5960_v6 }
 0x6ad   : > { %v5824_v63 = vpop.f32.mrf.mxu1  ;;  %v6112_v54 = vpop.f32.mrf.mxu0 }
 0x6ae   : > { %v5961_v45 = vadd.f32 %v5824_v63, %v14578_v19  ;;  %v6303_v19 = vrot.slane %v15844_v40, 2 }
 0x6af   : > { %v9372_v58 = vpop.f32.mrf.mxu1  ;;  %v9464_v34 = vpop.f32.mrf.mxu0 }
 0x6b0   : > { %v14825_v23 = vadd.f32 %v6112_v54, %v5961_v45  ;;  %v6335_v6 = vsel %vm2904_vm4, %v6303_v19, %v6304_v2  ;;  %v6336_v29 = vsel %vm2904_vm4, %v6302_v49, %v6303_v19  ;;  %v15845_v34 = vld [vmem:[#allocation37_spill] sm:$0xff]  ;;  %v15846_v49 = vld [vmem:[#allocation26_spill] sm:$0xff] }
 0x6b1   : > { %v5829_v0 = vpop.f32.mrf.mxu1  ;;  %v6117_v22 = vpop.f32.mrf.mxu0  ;;  %9578 = vmatmul.mubr.bf16.gmra.mxu1 %v6366_v12  ;;  %v6367_v63 = vpack.c.bf16 %v6335_v6, %v6336_v29  ;;  %v6305_v12 = vrot.slane %v15845_v34, 2 }
 0x6b2   : > { %v5962_v14 = vadd.f32 %v5829_v0, %v14587_v28  ;;  %9581 = vmatprep.mubr.msk.bf16.mxu1 %vm10209_vm0, %v15475_v37 }
 0x6b3   : > { %v9375_v56 = vpop.f32.mrf.mxu1  ;;  %v9467_v11 = vpop.f32.mrf.mxu0 }
 0x6b4   : > { %v14832_v41 = vadd.f32 %v6117_v22, %v5962_v14  ;;  %v15847_v22 = vrot.slane %v15846_v49, 2  ;;  %v15848_v49 = vld [vmem:[#allocation68_spill] sm:$0xff] }
 0x6b5   : > { %v5832_v21 = vpop.f32.mrf.mxu1  ;;  %v6120_v20 = vpop.f32.mrf.mxu0 }
 0x6b6   : > { %v5963_v3 = vadd.f32 %v5832_v21, %v14590_v32  ;;  %v6333_v14 = vsel %vm2904_vm4, %v6305_v12, %v15847_v22  ;;  %v15849_v22 = vld [vmem:[#allocation67_spill] sm:$0xff] }
 0x6b7   : > { %v9376_v28 = vpop.f32.mrf.mxu1  ;;  %v9468_v27 = vpop.f32.mrf.mxu0 }
 0x6b8   : > { %v14839_v54 = vadd.f32 %v6120_v20, %v5963_v3 }
 0x6b9   : > { %v5837_v45 = vpop.f32.mrf.mxu1  ;;  %v6125_v26 = vpop.f32.mrf.mxu0  ;;  %9582 = vmatmul.mubr.bf16.gmra.mxu1 %v6367_v63 }
 0x6ba   : > { %v5964_v58 = vadd.f32 %v5837_v45, %v14599_v10  ;;  %9585 = vmatprep.mubr.msk.bf16.mxu1 %vm10209_vm0, %v15475_v37  ;;  %v6334_v10 = vsel %vm2904_vm4, %v6304_v2, %v6305_v12 }
 0x6bb   : > { %v9379_v50 = vpop.f32.mrf.mxu1  ;;  %v9471_v32 = vpop.f32.mrf.mxu0  ;;  %v6368_v21 = vpack.c.bf16 %v6333_v14, %v6334_v10 }
 0x6bc   : > { %v14845_v0 = vadd.f32 %v6125_v26, %v5964_v58 }
 0x6bd   : > { %v5840_v40 = vpop.f32.mrf.mxu1  ;;  %v6128_v19 = vpop.f32.mrf.mxu0 }
 0x6be   : > { %v5965_v56 = vadd.f32 %v5840_v40, %v14602_v38 }
 0x6bf   : > { %v9380_v11 = vpop.f32.mrf.mxu1  ;;  %v9472_v6 = vpop.f32.mrf.mxu0 }
 0x6c0   : > { %v14854_v20 = vadd.f32 %v6128_v19, %v5965_v56 }
 0x6c1   : > { %v5845_v3 = vpop.f32.mrf.mxu1  ;;  %v6133_v29 = vpop.f32.mrf.mxu0  ;;  %9586 = vmatmul.mubr.bf16.gmra.mxu1 %v6368_v21 }
 0x6c2   : > { %v5966_v28 = vadd.f32 %v5845_v3, %v14611_v1  ;;  %9589 = vmatprep.mubr.msk.bf16.mxu1 %vm10209_vm0, %v15475_v37  ;;  %v15850_v1 = vpack.c.bf16 %v15848_v49, %v15849_v22 }
 0x6c3   : > { %v9383_v27 = vpop.f32.mrf.mxu1  ;;  %v9475_v63 = vpop.f32.mrf.mxu0 }
 0x6c4   : > { %v14859_v45 = vadd.f32 %v6133_v29, %v5966_v28  ;;  %v15851_v27 = vld [vmem:[#allocation70_spill] sm:$0xff]  ;;  %v15852_v63 = vld [vmem:[#allocation69_spill] sm:$0xff] }
 0x6c5   : > { %v5848_v38 = vpop.f32.mrf.mxu1  ;;  %v6136_v26 = vpop.f32.mrf.mxu0 }
 0x6c6   : > { %v5967_v2 = vadd.f32 %v5848_v38, %v14614_v53 }
 0x6c7   : > { %v9384_v58 = vpop.f32.mrf.mxu1  ;;  %v9476_v34 = vpop.f32.mrf.mxu0 }
 0x6c8   : > { %v14862_v12 = vadd.f32 %v6136_v26, %v5967_v2 }
 0x6c9   : > { %v5853_v50 = vpop.f32.mrf.mxu1  ;;  %v6141_v32 = vpop.f32.mrf.mxu0  ;;  %9590 = vmatmul.mubr.bf16.gmra.mxu1 %v15850_v1 }
 0x6ca   : > { %v5968_v14 = vadd.f32 %v5853_v50, %v14623_v15  ;;  %9593 = vmatprep.mubr.msk.bf16.mxu1 %vm10209_vm0, %v15475_v37  ;;  %v15853_v15 = vpack.c.bf16 %v15851_v27, %v15852_v63 }
 0x6cb   : > { %v9387_v40 = vpop.f32.mrf.mxu1  ;;  %v9479_v19 = vpop.f32.mrf.mxu0 }
 0x6cc   : > { %v14870_v56 = vadd.f32 %v6141_v32, %v5968_v14  ;;  %v15854_v40 = vld [vmem:[#allocation71_spill] sm:$0xff]  ;;  %v15855_v19 = vld [vmem:[#allocation72_spill] sm:$0xff] }
 0x6cd   : > { %v5856_v53 = vpop.f32.mrf.mxu1  ;;  %v6144_v10 = vpop.f32.mrf.mxu0 }
 0x6ce   : > { %v5969_v11 = vadd.f32 %v5856_v53, %v14626_v59 }
 0x6cf   : > { %v9388_v6 = vpop.f32.mrf.mxu1  ;;  %v9480_v21 = vpop.f32.mrf.mxu0 }
 0x6d0   : > { %v14873_v3 = vadd.f32 %v6144_v10, %v5969_v11 }
 0x6d1   : > { %v5861_v29 = vpop.f32.mrf.mxu1  ;;  %v6149_v28 = vpop.f32.mrf.mxu0  ;;  %9594 = vmatmul.mubr.bf16.gmra.mxu1 %v15853_v15 }
 0x6d2   : > { %v5970_v38 = vadd.f32 %v5861_v29, %v14635_v62  ;;  %9597 = vmatprep.mubr.msk.bf16.mxu1 %vm10209_vm0, %v15475_v37  ;;  %v15856_v62 = vpack.c.bf16 %v15854_v40, %v15855_v19 }
 0x6d3   : > { %v9391_v26 = vpop.f32.mrf.mxu1  ;;  %v9483_v2 = vpop.f32.mrf.mxu0 }
 0x6d4   : > { %v14881_v58 = vadd.f32 %v6149_v28, %v5970_v38  ;;  %v15857_v26 = vld [vmem:[#allocation73_spill] sm:$0xff]  ;;  %v15858_v2 = vld [vmem:[#allocation74_spill] sm:$0xff] }
 0x6d5   : > { %v5864_v59 = vpop.f32.mrf.mxu1  ;;  %v6152_v34 = vpop.f32.mrf.mxu0 }
 0x6d6   : > { %v5971_v50 = vadd.f32 %v5864_v59, %v14638_v31 }
 0x6d7   : > { %v9392_v32 = vpop.f32.mrf.mxu1  ;;  %v9484_v49 = vpop.f32.mrf.mxu0 }
 0x6d8   : > { %v14884_v22 = vadd.f32 %v6152_v34, %v5971_v50 }
 0x6d9   : > { %v5869_v1 = vpop.f32.mrf.mxu1  ;;  %v6157_v14 = vpop.f32.mrf.mxu0  ;;  %9598 = vmatmul.mubr.bf16.gmra.mxu1 %v15856_v62 }
 0x6da   : > { %v5972_v53 = vadd.f32 %v5869_v1, %v14647_v13  ;;  %9601 = vmatprep.mubr.msk.bf16.mxu1 %vm10209_vm0, %v15475_v37  ;;  %v15859_v13 = vpack.c.bf16 %v15857_v26, %v15858_v2 }
 0x6db   : > { %v9395_v10 = vpop.f32.mrf.mxu1  ;;  %v9487_v11 = vpop.f32.mrf.mxu0 }
 0x6dc   : > { %v14892_v6 = vadd.f32 %v6157_v14, %v5972_v53  ;;  %v15860_v10 = vld [vmem:[#allocation75_spill] sm:$0xff]  ;;  %v15861_v11 = vld [vmem:[#allocation76_spill] sm:$0xff] }
 0x6dd   : > { %v5872_v31 = vpop.f32.mrf.mxu1  ;;  %v6160_v21 = vpop.f32.mrf.mxu0 }
 0x6de   : > { %v5973_v29 = vadd.f32 %v5872_v31, %v14650_v16 }
 0x6df   : > { %v9396_v28 = vpop.f32.mrf.mxu1  ;;  %v9488_v27 = vpop.f32.mrf.mxu0 }
 0x6e0   : > { %v14895_v63 = vadd.f32 %v6160_v21, %v5973_v29 }
 0x6e1   : > { %v5877_v15 = vpop.f32.mrf.mxu1  ;;  %v6165_v38 = vpop.f32.mrf.mxu0  ;;  %9602 = vmatmul.mubr.bf16.gmra.mxu1 %v15859_v13 }
 0x6e2   : > { %v5974_v59 = vadd.f32 %v5877_v15, %v14659_v25  ;;  %9605 = vmatprep.mubr.msk.bf16.mxu1 %vm10209_vm0, %v15475_v37  ;;  %v15862_v25 = vpack.c.bf16 %v15860_v10, %v15861_v11 }
 0x6e3   : > { %v9399_v34 = vpop.f32.mrf.mxu1  ;;  %v9491_v50 = vpop.f32.mrf.mxu0 }
 0x6e4   : > { %v14903_v32 = vadd.f32 %v6165_v38, %v5974_v59  ;;  %v15863_v34 = vld [vmem:[#allocation78_spill] sm:$0xff]  ;;  %v15864_v50 = vld [vmem:[#allocation77_spill] sm:$0xff] }
 0x6e5   : > { %v5880_v16 = vpop.f32.mrf.mxu1  ;;  %v6168_v49 = vpop.f32.mrf.mxu0 }
 0x6e6   : > { %v5975_v1 = vadd.f32 %v5880_v16, %v14662_v35 }
 0x6e7   : > { %v9400_v14 = vpop.f32.mrf.mxu1  ;;  %v9492_v40 = vpop.f32.mrf.mxu0 }
 0x6e8   : > { %v14906_v19 = vadd.f32 %v6168_v49, %v5975_v1 }
 0x6e9   : > { %v5885_v62 = vpop.f32.mrf.mxu1  ;;  %v6173_v53 = vpop.f32.mrf.mxu0  ;;  %9606 = vmatmul.mubr.bf16.gmra.mxu1 %v15862_v25 }
 0x6ea   : > { %v5976_v31 = vadd.f32 %v5885_v62, %v14671_v36  ;;  %9609 = vmatprep.mubr.msk.bf16.mxu1 %vm10209_vm0, %v15475_v37  ;;  %v15865_v36 = vpack.c.bf16 %v15863_v34, %v15864_v50 }
 0x6eb   : > { %v9403_v21 = vpop.f32.mrf.mxu1  ;;  %v9495_v29 = vpop.f32.mrf.mxu0 }
 0x6ec   : > { %v14914_v28 = vadd.f32 %v6173_v53, %v5976_v31  ;;  %v15866_v21 = vld [vmem:[#allocation79_spill] sm:$0xff]  ;;  %v15867_v29 = vld [vmem:[#allocation25_spill] sm:$0xff] }
 0x6ed   : > { %v5888_v35 = vpop.f32.mrf.mxu1  ;;  %v6176_v27 = vpop.f32.mrf.mxu0 }
 0x6ee   : > { %v5977_v15 = vadd.f32 %v5888_v35, %v14674_v47 }
 0x6ef   : > { %v9404_v38 = vpop.f32.mrf.mxu1  ;;  %v9496_v26 = vpop.f32.mrf.mxu0 }
 0x6f0   : > { %v14917_v2 = vadd.f32 %v6176_v27, %v5977_v15  ;;  %v15869_v27 = vld [vmem:[#allocation4_spill] sm:$0xff] }
 0x6f1   : > { %v5893_v13 = vpop.f32.mrf.mxu1  ;;  %v6181_v59 = vpop.f32.mrf.mxu0  ;;  %9610 = vmatmul.mubr.bf16.gmra.mxu1 %v15865_v36  ;;  %v6283_v15 = vrot.slane %v15869_v27, 2 }
 0x6f2   : > { %v5978_v16 = vadd.f32 %v5893_v13, %v14683_v44  ;;  %9613 = vmatprep.mubr.msk.bf16.mxu1 %vm10209_vm0, %v15475_v37  ;;  %v15868_v44 = vpack.c.bf16 %v15866_v21, %v15867_v29  ;;  %v15870_v13 = vld [vmem:[#allocation23_spill] sm:$0xff] }
 0x6f3   : > { %v9407_v49 = vpop.f32.mrf.mxu1  ;;  %v9499_v1 = vpop.f32.mrf.mxu0 }
 0x6f4   : > { %v14925_v14 = vadd.f32 %v6181_v59, %v5978_v16  ;;  %v15871_v59 = vrot.slane %v15870_v13, 2  ;;  %v15872_v49 = vld [vmem:[#allocation50_spill] sm:$0xff] }
 0x6f5   : > { %v5896_v47 = vpop.f32.mrf.mxu1  ;;  %v6184_v40 = vpop.f32.mrf.mxu0 }
 0x6f6   : > { %v5979_v62 = vadd.f32 %v5896_v47, %v14686_v33  ;;  %v6355_v34 = vsel %vm2904_vm4, %v6283_v15, %v15871_v59 }
 0x6f7   : > { %v9408_v53 = vpop.f32.mrf.mxu1  ;;  %v9500_v10 = vpop.f32.mrf.mxu0 }
 0x6f8   : > { %v14928_v11 = vadd.f32 %v6184_v40, %v5979_v62 }
 0x6f9   : > { %v5901_v25 = vpop.f32.mrf.mxu1  ;;  %v6189_v31 = vpop.f32.mrf.mxu0  ;;  %9614 = vmatmul.mubr.bf16.gmra.mxu1 %v15868_v44 }
 0x6fa   : > { %v5980_v35 = vadd.f32 %v5901_v25, %v14695_v5  ;;  %9617 = vmatprep.mubr.msk.bf16.mxu1 %vm10209_vm0, %v15475_v37  ;;  %v15873_v5 = vrot.slane %v15872_v49, 2 }
 0x6fb   : > { %v9411_v38 = vpop.f32.mrf.mxu1  ;;  %v9503_v26 = vpop.f32.mrf.mxu0 }
 0x6fc   : > { %v14937_v33 = vadd.f32 %v6189_v31, %v5980_v35  ;;  %v6356_v37 = vsel %vm2904_vm4, %v15873_v5, %v6283_v15 }
 0x6fd   : > { %v5904_v50 = vpop.f32.mrf.mxu1  ;;  %v6192_v36 = vpop.f32.mrf.mxu0  ;;  %v6376_v40 = vpack.c.bf16 %v6355_v34, %v6356_v37 }
 0x6fe   : > { %v5981_v16 = vadd.f32 %v5904_v50, %v14698_v61 }
 0x6ff   : > { %v9412_v1 = vpop.f32.mrf.mxu1  ;;  %v9504_v47 = vpop.f32.mrf.mxu0 }
 0x700   : > { %v14948_v62 = vadd.f32 %v6192_v36, %v5981_v16 }
 0x701   : > { %v5909_v53 = vpop.f32.mrf.mxu1  ;;  %v6197_v10 = vpop.f32.mrf.mxu0  ;;  %9618 = vmatmul.mubr.bf16.gmra.mxu1 %v6376_v40 }
 0x702   : > { %v5982_v25 = vadd.f32 %v5909_v53, %v14705_v39 }
 0x703   : > { %v9415_v31 = vpop.f32.mrf.mxu1  ;;  %v9507_v21 = vpop.f32.mrf.mxu0 }
 0x704   : > { %v14951_v29 = vadd.f32 %v6197_v10, %v5982_v25 }
 0x705   : > { %v5912_v61 = vpop.f32.mrf.mxu1  ;;  %v6200_v44 = vpop.f32.mrf.mxu0 }
 0x706   : > { %v5983_v35 = vadd.f32 %v5912_v61, %v14708_v18 }
 0x707   : > { %v9416_v43 = vpop.f32.mrf.mxu1  ;;  %v9508_v27 = vpop.f32.mrf.mxu0 }
 0x708   : > { %v14954_v15 = vadd.f32 %v6200_v44, %v5983_v35 }
 0x709   : > { %v5917_v38 = vpop.f32.mrf.mxu1  ;;  %v6205_v26 = vpop.f32.mrf.mxu0 }
 0x70a   : > { %v5984_v13 = vadd.f32 %v5917_v38, %v14718_v51 }
 0x70b   : > { %v9419_v59 = vpop.f32.mrf.mxu1  ;;  %v9511_v34 = vpop.f32.mrf.mxu0 }
 0x70c   : > { %v14957_v50 = vadd.f32 %v6205_v26, %v5984_v13 }
 0x70d   : > { %v5920_v39 = vpop.f32.mrf.mxu1  ;;  %v6208_v36 = vpop.f32.mrf.mxu0 }
 0x70e   : > { %v5985_v16 = vadd.f32 %v5920_v39, %v14727_v24 }
 0x70f   : > { %v9420_v49 = vpop.f32.mrf.mxu1  ;;  %v9512_v5 = vpop.f32.mrf.mxu0 }
 0x710   : > { %v14960_v37 = vadd.f32 %v6208_v36, %v5985_v16 }
 0x711   : > { %v5925_v18 = vpop.f32.mrf.mxu1  ;;  %v6213_v1 = vpop.f32.mrf.mxu0 }
 0x712   : > { %v5986_v47 = vadd.f32 %v5925_v18, %v14734_v9 }
 0x713   : > { %v9423_v40 = vpop.f32.mrf.mxu1  ;;  %v9515_v53 = vpop.f32.mrf.mxu0 }
 0x714   : > { %v14963_v10 = vadd.f32 %v6213_v1, %v5986_v47 }
 0x715   : > { %v5928_v51 = vpop.f32.mrf.mxu1  ;;  %v6216_v25 = vpop.f32.mrf.mxu0 }
 0x716   : > { %v5987_v31 = vadd.f32 %v5928_v51, %v14741_v4 }
 0x717   : > { %v9424_v21 = vpop.f32.mrf.mxu1  ;;  %v9516_v61 = vpop.f32.mrf.mxu0 }
 0x718   : > { %v14966_v44 = vadd.f32 %v6216_v25, %v5987_v31 }
 0x719   : > { %v5933_v24 = vpop.f32.mrf.mxu1  ;;  %v6221_v35 = vpop.f32.mrf.mxu0 }
 0x71a   : > { %v5988_v43 = vadd.f32 %v5933_v24, %v14748_v55 }
 0x71b   : > { %v9427_v27 = vpop.f32.mrf.mxu1  ;;  %v9519_v38 = vpop.f32.mrf.mxu0 }
 0x71c   : > { %v14969_v26 = vadd.f32 %v6221_v35, %v5988_v43 }
 0x71d   : > { %v5936_v9 = vpop.f32.mrf.mxu1  ;;  %v6224_v13 = vpop.f32.mrf.mxu0 }
 0x71e   : > { %v5989_v59 = vadd.f32 %v5936_v9, %v14755_v48 }
 0x71f   : > { %v9428_v34 = vpop.f32.mrf.mxu1  ;;  %v9520_v39 = vpop.f32.mrf.mxu0 }
 0x720   : > { %v14972_v36 = vadd.f32 %v6224_v13, %v5989_v59 }
 0x721   : > { %v5941_v4 = vpop.f32.mrf.mxu1  ;;  %v6229_v16 = vpop.f32.mrf.mxu0 }
 0x722   : > { %v5990_v49 = vadd.f32 %v5941_v4, %v14762_v60 }
 0x723   : > { %v9431_v5 = vpop.f32.mrf.mxu1  ;;  %v9523_v18 = vpop.f32.mrf.mxu0 }
 0x724   : > { %v14975_v1 = vadd.f32 %v6229_v16, %v5990_v49 }
 0x725   : > { %v5944_v55 = vpop.f32.mrf.mxu1  ;;  %v6232_v47 = vpop.f32.mrf.mxu0 }
 0x726   : > { %v5991_v40 = vadd.f32 %v5944_v55, %v14769_v7  ;;  %v14989_v7 = vld [vmem:[%s15310_s5] ss:$0 sm:$0xff] }
 0x727   : > { %v9432_v53 = vpop.f32.mrf.mxu1  ;;  %v9524_v51 = vpop.f32.mrf.mxu0 }
 0x728   : > { %v14978_v25 = vadd.f32 %v6232_v47, %v5991_v40 }
 0x729   : > { %v5949_v48 = vpop.f32.mrf.mxu1  ;;  %v6237_v31 = vpop.f32.mrf.mxu0 }
 0x72a   : > { %v5992_v21 = vadd.f32 %v5949_v48, %v14776_v46 }
 0x72b   : > { %v9435_v61 = vpop.f32.mrf.mxu1  ;;  %v9527_v24 = vpop.f32.mrf.mxu0 }
 0x72c   : > { %v14981_v35 = vadd.f32 %v6237_v31, %v5992_v21 }
 0x72d   : > { %v5952_v60 = vpop.f32.mrf.mxu1  ;;  %v6240_v43 = vpop.f32.mrf.mxu0 }
 0x72e   : > { %v5993_v27 = vadd.f32 %v5952_v60, %v14783_v42 }
 0x72f   : > { %v9436_v38 = vpop.f32.mrf.mxu1  ;;  %v9528_v9 = vpop.f32.mrf.mxu0 }
 0x730   : > { %v14984_v13 = vadd.f32 %v6240_v43, %v5993_v27 }
 0x731   : > { %v6476_v59 = vpop.f32.mrf.mxu1 }
 0x732   : > { %v6627_v46 = vadd.f32 %v6476_v59, %v14790_v8 }
 0x733   : > { %v9547_v34 = vpop.f32.mrf.mxu1 }
 0x734   : > { %v14993_v39 = vadd.f32 %v14989_v7, %v6627_v46 }
 0x735   : > { %v6479_v4 = vpop.f32.mrf.mxu1 }
 0x736   : > { %v6709_v16 = vsub.f32 0.0, %v14993_v39  ;;  %v6628_v42 = vadd.f32 %v6479_v4, %v14797_v30 }
 0x737   : > { %v9548_v49 = vpop.f32.mrf.mxu1 }
 0x738   : > { %v6747_v5 = vmul.f32 1.442695, %v6709_v16  ;;  %v14998_v18 = vadd.f32 %v14989_v7, %v6628_v42 }
 0x739   : > { %v6484_v55 = vpop.f32.mrf.mxu1 }
 0x73a   : > { %9931 = vpow2.f32 %v6747_v5  ;;  %v6710_v47 = vsub.f32 0.0, %v14998_v18  ;;  %v6629_v8 = vadd.f32 %v6484_v55, %v14804_v57 }
 0x73b   : > { %v9551_v40 = vpop.f32.mrf.mxu1 }
 0x73c   : > { %v6749_v53 = vmul.f32 1.442695, %v6710_v47  ;;  %v15003_v51 = vadd.f32 %v14989_v7, %v6629_v8 }
 0x73d   : > { %v6487_v48 = vpop.f32.mrf.mxu1 }
 0x73e   : > { %9933 = vpow2.f32 %v6749_v53  ;;  %v6711_v30 = vsub.f32 0.0, %v15003_v51  ;;  %v6630_v31 = vadd.f32 %v6487_v48, %v14811_v17 }
 0x73f   : > { %v9552_v21 = vpop.f32.mrf.mxu1 }
 0x740   : > { %v6751_v61 = vmul.f32 1.442695, %v6711_v30  ;;  %v15008_v24 = vadd.f32 %v14989_v7, %v6630_v31 }
 0x741   : > { %v6492_v60 = vpop.f32.mrf.mxu1 }
 0x742   : > { %9935 = vpow2.f32 %v6751_v61  ;;  %v6712_v57 = vsub.f32 0.0, %v15008_v24  ;;  %v6631_v43 = vadd.f32 %v6492_v60, %v14818_v52 }
 0x743   : > { %v9555_v27 = vpop.f32.mrf.mxu1 }
 0x744   : > { %v6753_v38 = vmul.f32 1.442695, %v6712_v57  ;;  %v15013_v9 = vadd.f32 %v14989_v7, %v6631_v43 }
 0x745   : > { %v6495_v59 = vpop.f32.mrf.mxu1 }
 0x746   : > { %9937 = vpow2.f32 %v6753_v38  ;;  %v6713_v17 = vsub.f32 0.0, %v15013_v9  ;;  %v6632_v46 = vadd.f32 %v6495_v59, %v14825_v23 }
 0x747   : > { %v9932_v34 = vpop.eup %9931  ;;  %v9556_v4 = vpop.f32.mrf.mxu1 }
 0x748   : > { %v6823_v16 = vadd.f32 1.0, %v9932_v34  ;;  %v6755_v42 = vmul.f32 1.442695, %v6713_v17  ;;  %v15018_v49 = vadd.f32 %v14989_v7, %v6632_v46 }
 0x749   : > { %v6500_v5 = vpop.f32.mrf.mxu1 }
 0x74a   : > { %9939 = vrcp.f32 %v6823_v16  ;;  %v6714_v52 = vsub.f32 0.0, %v15018_v49  ;;  %v6633_v55 = vadd.f32 %v6500_v5, %v14832_v41 }
 0x74b   : > { %v9934_v47 = vpop.eup %9933  ;;  %9941 = vpow2.f32 %v6755_v42  ;;  %v9559_v8 = vpop.f32.mrf.mxu1 }
 0x74c   : > { %v6824_v40 = vadd.f32 1.0, %v9934_v47  ;;  %v6757_v53 = vmul.f32 1.442695, %v6714_v52  ;;  %v15023_v23 = vadd.f32 %v14989_v7, %v6633_v55 }
 0x74d   : > { %v6503_v48 = vpop.f32.mrf.mxu1 }
 0x74e   : > { %9943 = vrcp.f32 %v6824_v40  ;;  %v6715_v30 = vsub.f32 0.0, %v15023_v23  ;;  %v6634_v31 = vadd.f32 %v6503_v48, %v14839_v54 }
 0x74f   : > { %v9936_v21 = vpop.eup %9935  ;;  %9945 = vpow2.f32 %v6757_v53  ;;  %v9560_v61 = vpop.f32.mrf.mxu1 }
 0x750   : > { %v6825_v60 = vadd.f32 1.0, %v9936_v21  ;;  %v6759_v57 = vmul.f32 1.442695, %v6715_v30  ;;  %v15028_v41 = vadd.f32 %v14989_v7, %v6634_v31 }
 0x751   : > { %v6508_v43 = vpop.f32.mrf.mxu1 }
 0x752   : > { %9947 = vrcp.f32 %v6825_v60  ;;  %v6716_v27 = vsub.f32 0.0, %v15028_v41  ;;  %v6635_v38 = vadd.f32 %v6508_v43, %v14845_v0 }
 0x753   : > { %v9938_v59 = vpop.eup %9937  ;;  %9949 = vpow2.f32 %v6759_v57  ;;  %v9563_v17 = vpop.f32.mrf.mxu1 }
 0x754   : > { %v6826_v46 = vadd.f32 1.0, %v9938_v59  ;;  %v6761_v54 = vmul.f32 1.442695, %v6716_v27  ;;  %v15033_v34 = vadd.f32 %v14989_v7, %v6635_v38  ;;  %v10163_v59 = vld [vmem:[%s10306_s24 + $0x8] sm:$0xff] }
 0x755   : > { %v6511_v4 = vpop.f32.mrf.mxu1 }
 0x756   : > { %9951 = vrcp.f32 %v6826_v46  ;;  %v6717_v16 = vsub.f32 0.0, %v15033_v34  ;;  %v6636_v42 = vadd.f32 %v6511_v4, %v14854_v20  ;;  %v10162_v20 = vld [vmem:[%s10306_s24] sm:$0xff] }
 0x757   : > { %v9940_v5 = vpop.eup %9939  ;;  %9953 = vpow2.f32 %v6761_v54  ;;  %v9564_v52 = vpop.f32.mrf.mxu1 }
 0x758   : > { %v9942_v0 = vpop.eup %9941  ;;  %v6899_v55 = vmul.f32 %v9940_v5, %v14993_v39  ;;  %v6763_v47 = vmul.f32 1.442695, %v6717_v16  ;;  %v15039_v8 = vadd.f32 %v14989_v7, %v6636_v42 }
 0x759   : > { %v6827_v40 = vadd.f32 1.0, %v9942_v0  ;;  %v6516_v53 = vpop.f32.mrf.mxu1 }
 0x75a   : > { %v6937_v48 = vadd.f32 %v10162_v20, %v6899_v55  ;;  %9955 = vpow2.f32 %v6763_v47  ;;  %v6718_v30 = vsub.f32 0.0, %v15039_v8  ;;  %v6637_v39 = vadd.f32 %v6516_v53, %v14859_v45  ;;  %v10164_v55 = vld [vmem:[%s10306_s24 + $0x10] sm:$0xff] }
 0x75b   : > { %v9944_v31 = vpop.eup %9943  ;;  %9957 = vrcp.f32 %v6827_v40  ;;  %v9567_v21 = vpop.f32.mrf.mxu1 }
 0x75c   : > { %v9946_v61 = vpop.eup %9945  ;;  %6975 = vst [vmem:[%s15046_s13] sm:$0xff] %v6937_v48  ;;  %v6900_v60 = vmul.f32 %v9944_v31, %v14998_v18  ;;  %v6765_v57 = vmul.f32 1.442695, %v6718_v30  ;;  %v15054_v43 = vadd.f32 %v14989_v7, %v6637_v39 }
 0x75d   : > { %v6828_v27 = vadd.f32 1.0, %v9946_v61  ;;  %v6519_v38 = vpop.f32.mrf.mxu1  ;;  %v10165_v61 = vld [vmem:[%s10306_s24 + $0x18] sm:$0xff] }
 0x75e   : > { %v6938_v17 = vadd.f32 %v10163_v59, %v6900_v60  ;;  %9959 = vpow2.f32 %v6765_v57  ;;  %v6719_v45 = vsub.f32 0.0, %v15054_v43  ;;  %v6638_v46 = vadd.f32 %v6519_v38, %v14862_v12 }
 0x75f   : > { %v9948_v54 = vpop.eup %9947  ;;  %9961 = vrcp.f32 %v6828_v27  ;;  %v9568_v4 = vpop.f32.mrf.mxu1 }
 0x760   : > { %v9950_v16 = vpop.eup %9949  ;;  %6976 = vst [vmem:[%s15046_s13 + $0x8] sm:$0xff] %v6938_v17  ;;  %v6901_v18 = vmul.f32 %v9948_v54, %v15003_v51  ;;  %v6767_v42 = vmul.f32 1.442695, %v6719_v45  ;;  %v15062_v5 = vadd.f32 %v14989_v7, %v6638_v46 }
 0x761   : > { %v6829_v52 = vadd.f32 1.0, %v9950_v16  ;;  %v6524_v0 = vpop.f32.mrf.mxu1 }
 0x762   : > { %v6939_v47 = vadd.f32 %v10164_v55, %v6901_v18  ;;  %9963 = vpow2.f32 %v6767_v42  ;;  %v6720_v12 = vsub.f32 0.0, %v15062_v5  ;;  %v6639_v40 = vadd.f32 %v6524_v0, %v14870_v56  ;;  %v10166_v18 = vld [vmem:[%s10306_s24 + $0x20] sm:$0xff] }
 0x763   : > { %v9952_v53 = vpop.eup %9951  ;;  %9965 = vrcp.f32 %v6829_v52  ;;  %v9571_v20 = vpop.f32.mrf.mxu1 }
 0x764   : > { %v9954_v48 = vpop.eup %9953  ;;  %6977 = vst [vmem:[%s15046_s13 + $0x10] sm:$0xff] %v6939_v47  ;;  %v6902_v51 = vmul.f32 %v9952_v53, %v15008_v24  ;;  %v6769_v30 = vmul.f32 1.442695, %v6720_v12  ;;  %v15070_v39 = vadd.f32 %v14989_v7, %v6639_v40 }
 0x765   : > { %v6830_v31 = vadd.f32 1.0, %v9954_v48  ;;  %v6527_v21 = vpop.f32.mrf.mxu1  ;;  %v10167_v48 = vld [vmem:[%s10306_s24 + $0x28] sm:$0xff] }
 0x766   : > { %v6940_v60 = vadd.f32 %v10165_v61, %v6902_v51  ;;  %9967 = vpow2.f32 %v6769_v30  ;;  %v6721_v57 = vsub.f32 0.0, %v15070_v39  ;;  %v6640_v56 = vadd.f32 %v6527_v21, %v14873_v3 }
 0x767   : > { %v9956_v27 = vpop.eup %9955  ;;  %9969 = vrcp.f32 %v6830_v31  ;;  %v9572_v38 = vpop.f32.mrf.mxu1 }
 0x768   : > { %v9958_v59 = vpop.eup %9957  ;;  %6978 = vst [vmem:[%s15046_s13 + $0x18] sm:$0xff] %v6940_v60  ;;  %v6831_v24 = vadd.f32 1.0, %v9956_v27  ;;  %v6771_v17 = vmul.f32 1.442695, %v6721_v57  ;;  %v15077_v45 = vadd.f32 %v14989_v7, %v6640_v56  ;;  %v10168_v38 = vld [vmem:[%s10306_s24 + $0x30] sm:$0xff] }
 0x769   : > { %v6903_v46 = vmul.f32 %v9958_v59, %v15013_v9  ;;  %v6532_v54 = vpop.f32.mrf.mxu1 }
 0x76a   : > { %9971 = vrcp.f32 %v6831_v24  ;;  %v6722_v4 = vsub.f32 0.0, %v15077_v45  ;;  %v6641_v16 = vadd.f32 %v6532_v54, %v14881_v58 }
 0x76b   : > { %v9960_v3 = vpop.eup %9959  ;;  %v6941_v42 = vadd.f32 %v10166_v18, %v6903_v46  ;;  %9973 = vpow2.f32 %v6771_v17  ;;  %v9575_v52 = vpop.f32.mrf.mxu1 }
 0x76c   : > { %v9962_v0 = vpop.eup %9961  ;;  %v6832_v55 = vadd.f32 1.0, %v9960_v3  ;;  %v6773_v47 = vmul.f32 1.442695, %v6722_v4  ;;  %v15084_v12 = vadd.f32 %v14989_v7, %v6641_v16 }
 0x76d   : > { %6979 = vst [vmem:[%s15046_s13 + $0x20] sm:$0xff] %v6941_v42  ;;  %v6904_v9 = vmul.f32 %v9962_v0, %v15018_v49  ;;  %v6535_v40 = vpop.f32.mrf.mxu1  ;;  %v10169_v42 = vld [vmem:[%s10306_s24 + $0x38] sm:$0xff] }
 0x76e   : > { %9975 = vrcp.f32 %v6832_v55  ;;  %v6723_v58 = vsub.f32 0.0, %v15084_v12  ;;  %v6642_v53 = vadd.f32 %v6535_v40, %v14884_v22 }
 0x76f   : > { %v9964_v20 = vpop.eup %9963  ;;  %v6942_v51 = vadd.f32 %v10167_v48, %v6904_v9  ;;  %9977 = vpow2.f32 %v6773_v47  ;;  %v9576_v30 = vpop.f32.mrf.mxu1 }
 0x770   : > { %v9966_v31 = vpop.eup %9965  ;;  %v6833_v21 = vadd.f32 1.0, %v9964_v20  ;;  %v6775_v61 = vmul.f32 1.442695, %v6723_v58  ;;  %v15092_v60 = vadd.f32 %v14989_v7, %v6642_v53  ;;  %v10170_v53 = vld [vmem:[%s10306_s24 + $0x40] sm:$0xff] }
 0x771   : > { %6980 = vst [vmem:[%s15046_s13 + $0x28] sm:$0xff] %v6942_v51  ;;  %v6905_v49 = vmul.f32 %v9966_v31, %v15023_v23  ;;  %v6540_v57 = vpop.f32.mrf.mxu1 }
 0x772   : > { %9979 = vrcp.f32 %v6833_v21  ;;  %v6724_v22 = vsub.f32 0.0, %v15092_v60  ;;  %v6643_v56 = vadd.f32 %v6540_v57, %v14892_v6 }
 0x773   : > { %v9968_v27 = vpop.eup %9967  ;;  %v6943_v59 = vadd.f32 %v10168_v38, %v6905_v49  ;;  %9981 = vpow2.f32 %v6775_v61  ;;  %v9579_v24 = vpop.f32.mrf.mxu1 }
 0x774   : > { %v9970_v17 = vpop.eup %9969  ;;  %v6834_v46 = vadd.f32 1.0, %v9968_v27  ;;  %v6777_v54 = vmul.f32 1.442695, %v6724_v22  ;;  %v15100_v4 = vadd.f32 %v14989_v7, %v6643_v56  ;;  %v10171_v22 = vld [vmem:[%s10306_s24 + $0x48] sm:$0xff] }
 0x775   : > { %6981 = vst [vmem:[%s15046_s13 + $0x30] sm:$0xff] %v6943_v59  ;;  %v6906_v23 = vmul.f32 %v9970_v17, %v15028_v41  ;;  %v6543_v16 = vpop.f32.mrf.mxu1 }
 0x776   : > { %9983 = vrcp.f32 %v6834_v46  ;;  %v6725_v6 = vsub.f32 0.0, %v15100_v4  ;;  %v6644_v3 = vadd.f32 %v6543_v16, %v14895_v63  ;;  %v10172_v16 = vld [vmem:[%s10306_s24 + $0x50] sm:$0xff] }
 0x777   : > { %v9972_v18 = vpop.eup %9971  ;;  %v6944_v52 = vadd.f32 %v10169_v42, %v6906_v23  ;;  %9985 = vpow2.f32 %v6777_v54  ;;  %v9580_v0 = vpop.f32.mrf.mxu1 }
 0x778   : > { %v9974_v55 = vpop.eup %9973  ;;  %v6907_v47 = vmul.f32 %v9972_v18, %v15033_v34  ;;  %v6779_v9 = vmul.f32 1.442695, %v6725_v6  ;;  %v15109_v40 = vadd.f32 %v14989_v7, %v6644_v3 }
 0x779   : > { %6982 = vst [vmem:[%s15046_s13 + $0x38] sm:$0xff] %v6944_v52  ;;  %v6835_v41 = vadd.f32 1.0, %v9974_v55  ;;  %v6548_v58 = vpop.f32.mrf.mxu1 }
 0x77a   : > { %v6945_v20 = vadd.f32 %v10170_v53, %v6907_v47  ;;  %9987 = vpow2.f32 %v6779_v9  ;;  %v6726_v63 = vsub.f32 0.0, %v15109_v40  ;;  %v6645_v48 = vadd.f32 %v6548_v58, %v14903_v32 }
 0x77b   : > { %v9976_v51 = vpop.eup %9975  ;;  %9989 = vrcp.f32 %v6835_v41  ;;  %v9583_v30 = vpop.f32.mrf.mxu1  ;;  %v10173_v41 = vld [vmem:[%s10306_s24 + $0x58] sm:$0xff] }
 0x77c   : > { %v9978_v31 = vpop.eup %9977  ;;  %6983 = vst [vmem:[%s15046_s13 + $0x40] sm:$0xff] %v6945_v20  ;;  %v6908_v34 = vmul.f32 %v9976_v51, %v15039_v8  ;;  %v6781_v21 = vmul.f32 1.442695, %v6726_v63  ;;  %v15118_v61 = vadd.f32 %v14989_v7, %v6645_v48 }
 0x77d   : > { %v6836_v49 = vadd.f32 1.0, %v9978_v31  ;;  %v6551_v57 = vpop.f32.mrf.mxu1 }
 0x77e   : > { %v6946_v56 = vadd.f32 %v10171_v22, %v6908_v34  ;;  %9991 = vpow2.f32 %v6781_v21  ;;  %v6727_v32 = vsub.f32 0.0, %v15118_v61  ;;  %v6646_v27 = vadd.f32 %v6551_v57, %v14906_v19  ;;  %v10174_v57 = vld [vmem:[%s10306_s24 + $0x60] sm:$0xff] }
 0x77f   : > { %v9980_v38 = vpop.eup %9979  ;;  %9993 = vrcp.f32 %v6836_v49  ;;  %v9584_v59 = vpop.f32.mrf.mxu1 }
 0x780   : > { %v9982_v24 = vpop.eup %9981  ;;  %6984 = vst [vmem:[%s15046_s13 + $0x48] sm:$0xff] %v6946_v56  ;;  %v6909_v8 = vmul.f32 %v9980_v38, %v15054_v43  ;;  %v6783_v17 = vmul.f32 1.442695, %v6727_v32  ;;  %v15126_v46 = vadd.f32 %v14989_v7, %v6646_v27 }
 0x781   : > { %v6837_v54 = vadd.f32 1.0, %v9982_v24  ;;  %v6556_v23 = vpop.f32.mrf.mxu1 }
 0x782   : > { %v6947_v6 = vadd.f32 %v10172_v16, %v6909_v8  ;;  %9995 = vpow2.f32 %v6783_v17  ;;  %v6728_v19 = vsub.f32 0.0, %v15126_v46  ;;  %v6647_v3 = vadd.f32 %v6556_v23, %v14914_v28 }
 0x783   : > { %v9984_v18 = vpop.eup %9983  ;;  %9997 = vrcp.f32 %v6837_v54  ;;  %v9587_v42 = vpop.f32.mrf.mxu1  ;;  %v10175_v54 = vld [vmem:[%s10306_s24 + $0x68] sm:$0xff] }
 0x784   : > { %v9986_v52 = vpop.eup %9985  ;;  %6985 = vst [vmem:[%s15046_s13 + $0x50] sm:$0xff] %v6947_v6  ;;  %v6910_v43 = vmul.f32 %v9984_v18, %v15062_v5  ;;  %v6785_v0 = vmul.f32 1.442695, %v6728_v19  ;;  %v15134_v55 = vadd.f32 %v14989_v7, %v6647_v3 }
 0x785   : > { %v6838_v47 = vadd.f32 1.0, %v9986_v52  ;;  %v6559_v9 = vpop.f32.mrf.mxu1 }
 0x786   : > { %v6948_v58 = vadd.f32 %v10173_v41, %v6910_v43  ;;  %9999 = vpow2.f32 %v6785_v0  ;;  %v6729_v53 = vsub.f32 0.0, %v15134_v55  ;;  %v6648_v28 = vadd.f32 %v6559_v9, %v14917_v2  ;;  %v10176_v0 = vld [vmem:[%s10306_s24 + $0x70] sm:$0xff] }
 0x787   : > { %v9988_v20 = vpop.eup %9987  ;;  %10001 = vrcp.f32 %v6838_v47  ;;  %v9588_v63 = vpop.f32.mrf.mxu1 }
 0x788   : > { %v9990_v48 = vpop.eup %9989  ;;  %6986 = vst [vmem:[%s15046_s13 + $0x58] sm:$0xff] %v6948_v58  ;;  %v6839_v5 = vadd.f32 1.0, %v9988_v20  ;;  %v6787_v51 = vmul.f32 1.442695, %v6729_v53  ;;  %v15141_v30 = vadd.f32 %v14989_v7, %v6648_v28 }
 0x789   : > { %v6911_v31 = vmul.f32 %v9990_v48, %v15070_v39  ;;  %v6564_v34 = vpop.f32.mrf.mxu1 }
 0x78a   : > { %10003 = vrcp.f32 %v6839_v5  ;;  %v6730_v21 = vsub.f32 0.0, %v15141_v30  ;;  %v6649_v49 = vadd.f32 %v6564_v34, %v14925_v14  ;;  %v10177_v5 = vld [vmem:[%s10306_s24 + $0x78] sm:$0xff] }
 0x78b   : > { %v9992_v2 = vpop.eup %9991  ;;  %v6949_v22 = vadd.f32 %v10174_v57, %v6911_v31  ;;  %10005 = vpow2.f32 %v6787_v51  ;;  %v9591_v56 = vpop.f32.mrf.mxu1 }
 0x78c   : > { %v9994_v32 = vpop.eup %9993  ;;  %v6840_v27 = vadd.f32 1.0, %v9992_v2  ;;  %v6789_v38 = vmul.f32 1.442695, %v6730_v21  ;;  %v15148_v59 = vadd.f32 %v14989_v7, %v6649_v49 }
 0x78d   : > { %6987 = vst [vmem:[%s15046_s13 + $0x60] sm:$0xff] %v6949_v22  ;;  %v6912_v39 = vmul.f32 %v9994_v32, %v15077_v45  ;;  %v6567_v24 = vpop.f32.mrf.mxu1  ;;  %v10178_v22 = vld [vmem:[%s10306_s24 + $0x80] sm:$0xff] }
 0x78e   : > { %10007 = vrcp.f32 %v6840_v27  ;;  %v6731_v14 = vsub.f32 0.0, %v15148_v59  ;;  %v6650_v8 = vadd.f32 %v6567_v24, %v14928_v11 }
 0x78f   : > { %v9996_v17 = vpop.eup %9995  ;;  %v6950_v23 = vadd.f32 %v10175_v54, %v6912_v39  ;;  %10009 = vpow2.f32 %v6789_v38  ;;  %v9592_v16 = vpop.f32.mrf.mxu1  ;;  %v10179_v54 = vld [vmem:[%s10306_s24 + $0x88] sm:$0xff] }
 0x790   : > { %v9998_v6 = vpop.eup %9997  ;;  %v6841_v19 = vadd.f32 1.0, %v9996_v17  ;;  %v6791_v3 = vmul.f32 1.442695, %v6731_v14  ;;  %v15156_v18 = vadd.f32 %v14989_v7, %v6650_v8 }
 0x791   : > { %6988 = vst [vmem:[%s15046_s13 + $0x68] sm:$0xff] %v6950_v23  ;;  %v6913_v45 = vmul.f32 %v9998_v6, %v15084_v12  ;;  %v6572_v42 = vpop.f32.mrf.mxu1 }
 0x792   : > { %10011 = vrcp.f32 %v6841_v19  ;;  %v6732_v11 = vsub.f32 0.0, %v15156_v18  ;;  %v6651_v52 = vadd.f32 %v6572_v42, %v14937_v33 }
 0x793   : > { %v10000_v43 = vpop.eup %9999  ;;  %v6951_v47 = vadd.f32 %v10176_v0, %v6913_v45  ;;  %10013 = vpow2.f32 %v6791_v3  ;;  %v9595_v9 = vpop.f32.mrf.mxu1 }
 0x794   : > { %v10002_v41 = vpop.eup %10001  ;;  %v6842_v58 = vadd.f32 1.0, %v10000_v43  ;;  %v6793_v53 = vmul.f32 1.442695, %v6732_v11  ;;  %v15164_v28 = vadd.f32 %v14989_v7, %v6651_v52  ;;  %v10180_v43 = vld [vmem:[%s10306_s24 + $0x90] sm:$0xff] }
 0x795   : > { %6989 = vst [vmem:[%s15046_s13 + $0x70] sm:$0xff] %v6951_v47  ;;  %v6914_v12 = vmul.f32 %v10002_v41, %v15092_v60  ;;  %v6575_v20 = vpop.f32.mrf.mxu1 }
 0x796   : > { %10015 = vrcp.f32 %v6842_v58  ;;  %v6733_v33 = vsub.f32 0.0, %v15164_v28  ;;  %v6652_v63 = vadd.f32 %v6575_v20, %v14948_v62 }
 0x797   : > { %v10004_v48 = vpop.eup %10003  ;;  %v6952_v51 = vadd.f32 %v10177_v5, %v6914_v12  ;;  %10017 = vpow2.f32 %v6793_v53  ;;  %v9596_v31 = vpop.f32.mrf.mxu1 }
 0x798   : > { %v10006_v34 = vpop.eup %10005  ;;  %v6915_v21 = vmul.f32 %v10004_v48, %v15100_v4  ;;  %v6795_v49 = vmul.f32 1.442695, %v6733_v33  ;;  %v15173_v2 = vadd.f32 %v14989_v7, %v6652_v63  ;;  %v10181_v63 = vld [vmem:[%s10306_s24 + $0x98] sm:$0xff] }
 0x799   : > { %6990 = vst [vmem:[%s15046_s13 + $0x78] sm:$0xff] %v6952_v51  ;;  %v6843_v60 = vadd.f32 1.0, %v10006_v34  ;;  %v6580_v57 = vpop.f32.mrf.mxu1 }
 0x79a   : > { %v6953_v56 = vadd.f32 %v10178_v22, %v6915_v21  ;;  %10019 = vpow2.f32 %v6795_v49  ;;  %v6734_v62 = vsub.f32 0.0, %v15173_v2  ;;  %v6653_v32 = vadd.f32 %v6580_v57, %v14951_v29 }
 0x79b   : > { %v10008_v27 = vpop.eup %10007  ;;  %10021 = vrcp.f32 %v6843_v60  ;;  %v9599_v38 = vpop.f32.mrf.mxu1 }
 0x79c   : > { %v10010_v39 = vpop.eup %10009  ;;  %6991 = vst [vmem:[%s15046_s13 + $0x80] sm:$0xff] %v6953_v56  ;;  %v6916_v4 = vmul.f32 %v10008_v27, %v15109_v40  ;;  %v6797_v24 = vmul.f32 1.442695, %v6734_v62  ;;  %v15182_v14 = vadd.f32 %v14989_v7, %v6653_v32  ;;  %v10182_v62 = vld [vmem:[%s10306_s24 + $0xa0] sm:$0xff] }
 0x79d   : > { %v6844_v8 = vadd.f32 1.0, %v10010_v39  ;;  %v6583_v17 = vpop.f32.mrf.mxu1 }
 0x79e   : > { %v6954_v23 = vadd.f32 %v10179_v54, %v6916_v4  ;;  %10023 = vpow2.f32 %v6797_v24  ;;  %v6735_v29 = vsub.f32 0.0, %v15182_v14  ;;  %v6654_v16 = vadd.f32 %v6583_v17, %v14954_v15 }
 0x79f   : > { %v10012_v6 = vpop.eup %10011  ;;  %10025 = vrcp.f32 %v6844_v8  ;;  %v9600_v19 = vpop.f32.mrf.mxu1 }
 0x7a0   : > { %v10014_v3 = vpop.eup %10013  ;;  %6992 = vst [vmem:[%s15046_s13 + $0x88] sm:$0xff] %v6954_v23  ;;  %v6917_v40 = vmul.f32 %v10012_v6, %v15118_v61  ;;  %v6799_v45 = vmul.f32 1.442695, %v6735_v29  ;;  %v15190_v42 = vadd.f32 %v14989_v7, %v6654_v16  ;;  %v10183_v23 = vld [vmem:[%s10306_s24 + $0xa8] sm:$0xff] }
 0x7a1   : > { %v6845_v11 = vadd.f32 1.0, %v10014_v3  ;;  %v6588_v52 = vpop.f32.mrf.mxu1 }
 0x7a2   : > { %v6955_v0 = vadd.f32 %v10180_v43, %v6917_v40  ;;  %10027 = vpow2.f32 %v6799_v45  ;;  %v6736_v15 = vsub.f32 0.0, %v15190_v42  ;;  %v6655_v47 = vadd.f32 %v6588_v52, %v14957_v50  ;;  %v10184_v43 = vld [vmem:[%s10306_s24 + $0xb0] sm:$0xff] }
 0x7a3   : > { %v10016_v9 = vpop.eup %10015  ;;  %10029 = vrcp.f32 %v6845_v11  ;;  %v9603_v41 = vpop.f32.mrf.mxu1 }
 0x7a4   : > { %v10018_v58 = vpop.eup %10017  ;;  %6993 = vst [vmem:[%s15046_s13 + $0x90] sm:$0xff] %v6955_v0  ;;  %v6918_v61 = vmul.f32 %v10016_v9, %v15126_v46  ;;  %v6801_v53 = vmul.f32 1.442695, %v6736_v15  ;;  %v15198_v12 = vadd.f32 %v14989_v7, %v6655_v47 }
 0x7a5   : > { %v6846_v20 = vadd.f32 1.0, %v10018_v58  ;;  %v6591_v33 = vpop.f32.mrf.mxu1 }
 0x7a6   : > { %v6956_v48 = vadd.f32 %v10181_v63, %v6918_v61  ;;  %10031 = vpow2.f32 %v6801_v53  ;;  %v6737_v5 = vsub.f32 0.0, %v15198_v12  ;;  %v6656_v50 = vadd.f32 %v6591_v33, %v14960_v37  ;;  %v10185_v33 = vld [vmem:[%s10306_s24 + $0xb8] sm:$0xff] }
 0x7a7   : > { %v10020_v51 = vpop.eup %10019  ;;  %10033 = vrcp.f32 %v6846_v20  ;;  %v9604_v31 = vpop.f32.mrf.mxu1 }
 0x7a8   : > { %v10022_v34 = vpop.eup %10021  ;;  %6994 = vst [vmem:[%s15046_s13 + $0x98] sm:$0xff] %v6956_v48  ;;  %v6847_v46 = vadd.f32 1.0, %v10020_v51  ;;  %v6803_v21 = vmul.f32 1.442695, %v6737_v5  ;;  %v15205_v49 = vadd.f32 %v14989_v7, %v6656_v50 }
 0x7a9   : > { %v6919_v60 = vmul.f32 %v10022_v34, %v15134_v55  ;;  %v6596_v57 = vpop.f32.mrf.mxu1 }
 0x7aa   : > { %10035 = vrcp.f32 %v6847_v46  ;;  %v6738_v22 = vsub.f32 0.0, %v15205_v49  ;;  %v6657_v56 = vadd.f32 %v6596_v57, %v14963_v10  ;;  %v10186_v46 = vld [vmem:[%s10306_s24 + $0xc0] sm:$0xff] }
 0x7ab   : > { %v10024_v37 = vpop.eup %10023  ;;  %v6957_v32 = vadd.f32 %v10182_v62, %v6919_v60  ;;  %10037 = vpow2.f32 %v6803_v21  ;;  %v9607_v27 = vpop.f32.mrf.mxu1 }
 0x7ac   : > { %v10026_v38 = vpop.eup %10025  ;;  %v6848_v39 = vadd.f32 1.0, %v10024_v37  ;;  %v6805_v4 = vmul.f32 1.442695, %v6738_v22  ;;  %v15212_v24 = vadd.f32 %v14989_v7, %v6657_v56 }
 0x7ad   : > { %6995 = vst [vmem:[%s15046_s13 + $0xa0] sm:$0xff] %v6957_v32  ;;  %v6920_v55 = vmul.f32 %v10026_v38, %v15141_v30  ;;  %v6599_v8 = vpop.f32.mrf.mxu1  ;;  %v10187_v38 = vld [vmem:[%s10306_s24 + $0xc8] sm:$0xff] }
 0x7ae   : > { %10039 = vrcp.f32 %v6848_v39  ;;  %v6739_v10 = vsub.f32 0.0, %v15212_v24  ;;  %v6658_v17 = vadd.f32 %v6599_v8, %v14966_v44 }
 0x7af   : > { %v10028_v54 = vpop.eup %10027  ;;  %v6958_v29 = vadd.f32 %v10183_v23, %v6920_v55  ;;  %10041 = vpow2.f32 %v6805_v4  ;;  %v9608_v16 = vpop.f32.mrf.mxu1 }
 0x7b0   : > { %v10030_v6 = vpop.eup %10029  ;;  %v6849_v19 = vadd.f32 1.0, %v10028_v54  ;;  %v6807_v3 = vmul.f32 1.442695, %v6739_v10  ;;  %v15220_v40 = vadd.f32 %v14989_v7, %v6658_v17  ;;  %v10188_v16 = vld [vmem:[%s10306_s24 + $0xd0] sm:$0xff] }
 0x7b1   : > { %6996 = vst [vmem:[%s15046_s13 + $0xa8] sm:$0xff] %v6958_v29  ;;  %v6921_v30 = vmul.f32 %v10030_v6, %v15148_v59  ;;  %v6604_v45 = vpop.f32.mrf.mxu1 }
 0x7b2   : > { %10043 = vrcp.f32 %v6849_v19  ;;  %v6740_v44 = vsub.f32 0.0, %v15220_v40  ;;  %v6659_v11 = vadd.f32 %v6604_v45, %v14969_v26 }
 0x7b3   : > { %v10032_v52 = vpop.eup %10031  ;;  %v6959_v0 = vadd.f32 %v10184_v43, %v6921_v30  ;;  %10045 = vpow2.f32 %v6807_v3  ;;  %v9611_v15 = vpop.f32.mrf.mxu1 }
 0x7b4   : > { %v10034_v47 = vpop.eup %10033  ;;  %v6850_v9 = vadd.f32 1.0, %v10032_v52  ;;  %v6809_v41 = vmul.f32 1.442695, %v6740_v44  ;;  %v15228_v58 = vadd.f32 %v14989_v7, %v6659_v11 }
 0x7b5   : > { %6997 = vst [vmem:[%s15046_s13 + $0xb0] sm:$0xff] %v6959_v0  ;;  %v6922_v59 = vmul.f32 %v10034_v47, %v15156_v18  ;;  %v6607_v61 = vpop.f32.mrf.mxu1  ;;  %v10189_v0 = vld [vmem:[%s10306_s24 + $0xd8] sm:$0xff] }
 0x7b6   : > { %10047 = vrcp.f32 %v6850_v9  ;;  %v6741_v26 = vsub.f32 0.0, %v15228_v58  ;;  %v6660_v53 = vadd.f32 %v6607_v61, %v14972_v36 }
 0x7b7   : > { %v10036_v20 = vpop.eup %10035  ;;  %v6960_v63 = vadd.f32 %v10185_v33, %v6922_v59  ;;  %10049 = vpow2.f32 %v6809_v41  ;;  %v9612_v48 = vpop.f32.mrf.mxu1 }
 0x7b8   : > { %v10038_v5 = vpop.eup %10037  ;;  %v6923_v50 = vmul.f32 %v10036_v20, %v15164_v28  ;;  %v6811_v51 = vmul.f32 1.442695, %v6741_v26  ;;  %v15237_v31 = vadd.f32 %v14989_v7, %v6660_v53 }
 0x7b9   : > { %6998 = vst [vmem:[%s15046_s13 + $0xb8] sm:$0xff] %v6960_v63  ;;  %v6851_v18 = vadd.f32 1.0, %v10038_v5  ;;  %v6612_v34 = vpop.f32.mrf.mxu1 }
 0x7ba   : > { %v6961_v21 = vadd.f32 %v10186_v46, %v6923_v50  ;;  %10051 = vpow2.f32 %v6811_v51  ;;  %v6742_v36 = vsub.f32 0.0, %v15237_v31  ;;  %v6661_v60 = vadd.f32 %v6612_v34, %v14975_v1 }
 0x7bb   : > { %v10040_v57 = vpop.eup %10039  ;;  %10053 = vrcp.f32 %v6851_v18  ;;  %v9615_v22 = vpop.f32.mrf.mxu1  ;;  %v10191_v18 = vld [vmem:[%s10306_s24 + $0xe8] sm:$0xff] }
 0x7bc   : > { %v10042_v56 = vpop.eup %10041  ;;  %6999 = vst [vmem:[%s15046_s13 + $0xc0] sm:$0xff] %v6961_v21  ;;  %v6924_v28 = vmul.f32 %v10040_v57, %v15173_v2  ;;  %v6813_v37 = vmul.f32 1.442695, %v6742_v36  ;;  %v15246_v62 = vadd.f32 %v14989_v7, %v6661_v60  ;;  %v10192_v60 = vld [vmem:[%s10306_s24 + $0xf0] sm:$0xff] }
 0x7bd   : > { %v6852_v32 = vadd.f32 1.0, %v10042_v56  ;;  %v6615_v27 = vpop.f32.mrf.mxu1 }
 0x7be   : > { %v6962_v39 = vadd.f32 %v10187_v38, %v6924_v28  ;;  %10055 = vpow2.f32 %v6813_v37  ;;  %v6743_v1 = vsub.f32 0.0, %v15246_v62  ;;  %v6662_v4 = vadd.f32 %v6615_v27, %v14978_v25  ;;  %v10193_v37 = vld [vmem:[%s10306_s24 + $0xf8] sm:$0xff] }
 0x7bf   : > { %v10044_v55 = vpop.eup %10043  ;;  %10057 = vrcp.f32 %v6852_v32  ;;  %v9616_v8 = vpop.f32.mrf.mxu1 }
 0x7c0   : > { %v10046_v10 = vpop.eup %10045  ;;  %7000 = vst [vmem:[%s15046_s13 + $0xc8] sm:$0xff] %v6962_v39  ;;  %v6925_v2 = vmul.f32 %v10044_v55, %v15182_v14  ;;  %v6815_v17 = vmul.f32 1.442695, %v6743_v1  ;;  %v15254_v54 = vadd.f32 %v14989_v7, %v6662_v4  ;;  %v10194_v39 = vld [vmem:[%s10306_s24 + $0x100] sm:$0xff] }
 0x7c1   : > { %v6853_v23 = vadd.f32 1.0, %v10046_v10  ;;  %v6620_v29 = vpop.f32.mrf.mxu1  ;;  %v10195_v10 = vld [vmem:[%s10306_s24 + $0x108] sm:$0xff] }
 0x7c2   : > { %v6963_v6 = vadd.f32 %v10188_v16, %v6925_v2  ;;  %10059 = vpow2.f32 %v6815_v17  ;;  %v6744_v25 = vsub.f32 0.0, %v15254_v54  ;;  %v6663_v19 = vadd.f32 %v6620_v29, %v14981_v35 }
 0x7c3   : > { %v10048_v3 = vpop.eup %10047  ;;  %10061 = vrcp.f32 %v6853_v23  ;;  %v9619_v30 = vpop.f32.mrf.mxu1  ;;  %v10196_v23 = vld [vmem:[%s10306_s24 + $0x110] sm:$0xff] }
 0x7c4   : > { %v10050_v45 = vpop.eup %10049  ;;  %7001 = vst [vmem:[%s15046_s13 + $0xd0] sm:$0xff] %v6963_v6  ;;  %v6926_v14 = vmul.f32 %v10048_v3, %v15190_v42  ;;  %v6817_v44 = vmul.f32 1.442695, %v6744_v25  ;;  %v15262_v11 = vadd.f32 %v14989_v7, %v6663_v19  ;;  %v10198_v30 = vld [vmem:[%s10306_s24 + $0x120] sm:$0xff] }
 0x7c5   : > { %v6854_v52 = vadd.f32 1.0, %v10050_v45  ;;  %v6623_v43 = vpop.f32.mrf.mxu1 }
 0x7c6   : > { %v6964_v15 = vadd.f32 %v10189_v0, %v6926_v14  ;;  %10063 = vpow2.f32 %v6817_v44  ;;  %v6745_v35 = vsub.f32 0.0, %v15262_v11  ;;  %v6664_v47 = vadd.f32 %v6623_v43, %v14984_v13  ;;  %v10190_v13 = vld [vmem:[%s10306_s24 + $0xe0] sm:$0xff]  ;;  %v10199_v44 = vld [vmem:[%s10306_s24 + $0x128] sm:$0xff] }
 0x7c7   : > { %v10052_v9 = vpop.eup %10051  ;;  %10065 = vrcp.f32 %v6854_v52  ;;  %v9620_v41 = vpop.f32.mrf.mxu1 }
 0x7c8   : > { %v10054_v59 = vpop.eup %10053  ;;  %7002 = vst [vmem:[%s15046_s13 + $0xd8] sm:$0xff] %v6964_v15  ;;  %v6855_v42 = vadd.f32 1.0, %v10052_v9  ;;  %v6819_v61 = vmul.f32 1.442695, %v6745_v35  ;;  %v15269_v26 = vadd.f32 %v14989_v7, %v6664_v47 }
 0x7c9   : > { %v6927_v53 = vmul.f32 %v10054_v59, %v15198_v12 }
 0x7ca   : > { %10067 = vrcp.f32 %v6855_v42  ;;  %v6746_v20 = vsub.f32 0.0, %v15269_v26 }
 0x7cb   : > { %v10056_v33 = vpop.eup %10055  ;;  %v6965_v63 = vadd.f32 %v10190_v13, %v6927_v53  ;;  %10069 = vpow2.f32 %v6819_v61 }
 0x7cc   : > { %v10058_v48 = vpop.eup %10057  ;;  %v6856_v5 = vadd.f32 1.0, %v10056_v33  ;;  %v6821_v50 = vmul.f32 1.442695, %v6746_v20 }
 0x7cd   : > { %7003 = vst [vmem:[%s15046_s13 + $0xe0] sm:$0xff] %v6965_v63  ;;  %v6928_v51 = vmul.f32 %v10058_v48, %v15205_v49 }
 0x7ce   : > { %10071 = vrcp.f32 %v6856_v5 }
 0x7cf   : > { %v10060_v7 = vpop.eup %10059  ;;  %v6966_v12 = vadd.f32 %v10191_v18, %v6928_v51  ;;  %10073 = vpow2.f32 %v6821_v50 }
 0x7d0   : > { %v10062_v34 = vpop.eup %10061  ;;  %v6857_v46 = vadd.f32 1.0, %v10060_v7 }
 0x7d1   : > { %7004 = vst [vmem:[%s15046_s13 + $0xe8] sm:$0xff] %v6966_v12  ;;  %v6929_v21 = vmul.f32 %v10062_v34, %v15212_v24 }
 0x7d2   : > { %10075 = vrcp.f32 %v6857_v46 }
 0x7d3   : > { %v10064_v36 = vpop.eup %10063  ;;  %v6967_v57 = vadd.f32 %v10192_v60, %v6929_v21 }
 0x7d4   : > { %v10066_v22 = vpop.eup %10065  ;;  %v6858_v49 = vadd.f32 1.0, %v10064_v36 }
 0x7d5   : > { %7005 = vst [vmem:[%s15046_s13 + $0xf0] sm:$0xff] %v6967_v57  ;;  %v6930_v56 = vmul.f32 %v10066_v22, %v15220_v40 }
 0x7d6   : > { %10077 = vrcp.f32 %v6858_v49 }
 0x7d7   : > { %v10068_v28 = vpop.eup %10067  ;;  %v6968_v32 = vadd.f32 %v10193_v37, %v6930_v56 }
 0x7d8   : > { %v10070_v27 = vpop.eup %10069  ;;  %v6931_v24 = vmul.f32 %v10068_v28, %v15228_v58 }
 0x7d9   : > { %7006 = vst [vmem:[%s15046_s13 + $0xf8] sm:$0xff] %v6968_v32  ;;  %v6859_v38 = vadd.f32 1.0, %v10070_v27 }
 0x7da   : > { %v6969_v1 = vadd.f32 %v10194_v39, %v6931_v24 }
 0x7db   : > { %v10072_v4 = vpop.eup %10071  ;;  %10079 = vrcp.f32 %v6859_v38 }
 0x7dc   : > { %v10074_v55 = vpop.eup %10073  ;;  %7007 = vst [vmem:[%s15046_s13 + $0x100] sm:$0xff] %v6969_v1  ;;  %v6932_v40 = vmul.f32 %v10072_v4, %v15237_v31  ;;  %v10197_v31 = vld [vmem:[%s10306_s24 + $0x118] sm:$0xff] }
 0x7dd   : > { %v6860_v8 = vadd.f32 1.0, %v10074_v55 }
 0x7de   : > { %v6970_v2 = vadd.f32 %v10195_v10, %v6932_v40 }
 0x7df   : > { %v10076_v17 = vpop.eup %10075  ;;  %10081 = vrcp.f32 %v6860_v8 }
 0x7e0   : > { %7008 = vst [vmem:[%s15046_s13 + $0x108] sm:$0xff] %v6970_v2  ;;  %v6933_v58 = vmul.f32 %v10076_v17, %v15246_v62 }
 0x7e2   : > { %v6971_v29 = vadd.f32 %v10196_v23, %v6933_v58 }
 0x7e3   : > { %v10078_v16 = vpop.eup %10077 }
 0x7e4   : > { %7009 = vst [vmem:[%s15046_s13 + $0x110] sm:$0xff] %v6971_v29  ;;  %v6934_v6 = vmul.f32 %v10078_v16, %v15254_v54 }
 0x7e6   : > { %v6972_v25 = vadd.f32 %v10197_v31, %v6934_v6 }
 0x7e8   : > { %v10080_v19 = vpop.eup %10079  ;;  %7010 = vst [vmem:[%s15046_s13 + $0x118] sm:$0xff] %v6972_v25 }
 0x7e9   : > { %v6935_v3 = vmul.f32 %v10080_v19, %v15262_v11 }
 0x7eb   : > { %v6973_v45 = vadd.f32 %v10198_v30, %v6935_v3 }
 0x7ec   : > { %v10082_v14 = vpop.eup %10081 }
 0x7ed   : > { %7011 = vst [vmem:[%s15046_s13 + $0x120] sm:$0xff] %v6973_v45  ;;  %v6936_v62 = vmul.f32 %v10082_v14, %v15269_v26 }
 0x7ef   : > { %v6974_v52 = vadd.f32 %v10199_v44, %v6936_v62 }
 0x7f1   : > { %7012 = vst [vmem:[%s15046_s13 + $0x128] sm:$0xff] %v6974_v52 }
 0x7f2 PF: > { %s16_s21 = sadd.s32 1, %s10206_s21  }
 0x7f3   : > { %p13_p4 = scmp.ge.s32.totalorder %s16_s21, 4  }
 0x7f5   :  { %15 = sbr.rel (!%p13_p4) target bundleno = 1 (0x1), region = 90 }

</bundles_post_ra>
